<compile_context>
chip_gen: v7x
topology: tpu7x:2x2x1
jax: 0.10.0
libtpu: 0.0.40
codegen_flags: <defaults>
</compile_context>

<pallas_src>
import functools

import jax
import jax.numpy as jnp
from jax.experimental import pallas as pl
from jax.experimental.pallas import tpu as pltpu

CFG = [64, "M", 128, "M", 256, "M", 512]
NUM_CLASSES = 10
LANES = 128
BN_EPS = 1e-5
VMEM_BUDGET = 10 * 1024 * 1024      # per-grid-step activation budget (bytes)
MAX_BATCH_BLOCK = 16


def _round_up(x, m):
    return ((x + m - 1) // m) * m


def _pick_batch_block(n, h, w, cin_p, cout, *, pool):
    """Largest B that divides n, fits the VMEM budget and keeps >= 2 grid steps."""
    if pool:
        hp, wp = h // 2 + 2, w // 2 + 2
        per_img = (2 * 2 * (h + 2) * (w + 2) * cin_p      # x block (bf16, x2 buffers)
                   + 4 * h * w * cout                      # feat block (f32)
                   + 2 * 2 * hp * wp * cout                # carry block (bf16, x2)
                   + 2 * h * w * 9 * cin_p)                # im2col scratch (bf16)
    else:
        per_img = (2 * 2 * (h + 2) * (w + 2) * cin_p
                   + 2 * h * w * 9 * cin_p
                   + 4 * LANES)
    best = 1
    for b in range(1, min(n, MAX_BATCH_BLOCK) + 1):
        if n % b:
            continue
        if n >= 2 and n // b < 2:       # keep both TensorCores busy (v7x)
            continue
        if b * per_img > VMEM_BUDGET:   # stay well under the 32 MiB scoped VMEM
            continue
        best = b
    return best


# ---------------------------------------------------------------------------
# Fused conv3x3 (im2col, one big-K MXU matmul) + BN + ReLU (+ pool) kernels
# ---------------------------------------------------------------------------
def _im2col_conv_bn_relu(x_ref, w_ref, scale_ref, shift_ref, col_ref, B, H, W):
    """3x3 SAME conv as a single MXU matmul over an in-VMEM im2col buffer.

    x_ref:   (B, H+2, W+2, Cin) bf16, zero halo included.
    w_ref:   (9*Cin, Cout)      bf16 (tap-major).
    col_ref: (B*H*W, 9*Cin)     bf16 scratch.
    Returns  (B*H*W, Cout) f32 after the bias/BN/ReLU epilogue.
    """
    cin = x_ref.shape[-1]
    x = x_ref[...]
    t = 0
    for di in range(3):
        for dj in range(3):
            col_ref[:, t * cin:(t + 1) * cin] = (
                x[:, di:di + H, dj:dj + W, :].reshape(B * H * W, cin))
            t += 1
    acc = jnp.dot(col_ref[...], w_ref[...], preferred_element_type=jnp.float32)
    return jnp.maximum(acc * scale_ref[...] + shift_ref[...], 0.0)


def _conv_pool_kernel(x_ref, w_ref, scale_ref, shift_ref,
                      feat_ref, carry_ref, col_ref, *, B, H, W):
    y = _im2col_conv_bn_relu(x_ref, w_ref, scale_ref, shift_ref, col_ref, B, H, W)
    cout = y.shape[-1]
    # pre-pool feature map (PyTorch `feat`), f32 NHWC
    feat_ref[...] = y.reshape(B, H, W, cout).astype(feat_ref.dtype)
    # fused 2x2 / stride-2 max pool (H, W even — asserted in the wrapper)
    yw = y.reshape(B * H, W // 2, 2, cout)
    hmax = jnp.maximum(yw[:, :, 0, :], yw[:, :, 1, :])           # (B*H, W//2, C)
    yh = hmax.reshape(B * (H // 2), 2, W // 2, cout)
    pooled = jnp.maximum(yh[:, 0, :, :], yh[:, 1, :, :])         # (B*H//2, W//2, C)
    pooled = pooled.reshape(B, H // 2, W // 2, cout).astype(carry_ref.dtype)
    # write the carry with its zero halo in place (next layer's direct input)
    carry_ref[...] = jnp.zeros(carry_ref.shape, carry_ref.dtype)
    carry_ref[:, 1:1 + H // 2, 1:1 + W // 2, :] = pooled


def _conv_avg_fc_kernel(x_ref, w_ref, scale_ref, shift_ref, wc_ref, bc_ref,
                        logits_ref, col_ref, *, B, H, W):
    y = _im2col_conv_bn_relu(x_ref, w_ref, scale_ref, shift_ref, col_ref, B, H, W)
    cout = y.shape[-1]
    # fused global average pool (== F.avg_pool2d over the full spatial extent)
    pooled = jnp.mean(y.reshape(B, H * W, cout), axis=1)         # (B, 512) f32
    # fused classifier; class axis padded to 128 lanes
    logits = jnp.dot(pooled.astype(wc_ref.dtype), wc_ref[...],
                     preferred_element_type=jnp.float32) + bc_ref[...]
    logits_ref[...] = logits.reshape(B, 1, logits.shape[-1])


# ---------------------------------------------------------------------------
# Host-side wrappers
# ---------------------------------------------------------------------------
def _fold_bn(conv_b, gamma, beta, mean, var, cout):
    bn_scale = gamma / jnp.sqrt(var + BN_EPS)
    scale = bn_scale.reshape(1, cout).astype(jnp.float32)
    shift = ((conv_b - mean) * bn_scale + beta).reshape(1, cout).astype(jnp.float32)
    return scale, shift


def _pack_conv_weight(w, cin_p):
    _, _, cin, cout = w.shape
    w9 = jnp.pad(w.astype(jnp.bfloat16).reshape(9, cin, cout),
                 ((0, 0), (0, cin_p - cin), (0, 0)))
    return w9.reshape(9 * cin_p, cout)


def conv_block_pool(x_haloed, p):
    """x_haloed: (N, H+2, W+2, Cin_p) bf16 with zero halo.
    Returns (feat_nhwc f32 (N,H,W,Cout), carry bf16 (N,H/2+2,W/2+2,Cout))."""
    n, hp2, wp2, cin_p = x_haloed.shape
    h, w = hp2 - 2, wp2 - 2
    cout = p["w"].shape[-1]
    assert h % 2 == 0 and w % 2 == 0, "fused 2x2 max pool requires even H and W"
    scale, shift = _fold_bn(p["b"], p["gamma"], p["beta"], p["mean"], p["var"], cout)
    w9 = _pack_conv_weight(p["w"], cin_p)

    bsz = _pick_batch_block(n, h, w, cin_p, cout, pool=True)
    return pl.pallas_call(
        functools.partial(_conv_pool_kernel, B=bsz, H=h, W=w),
        out_shape=(
            jax.ShapeDtypeStruct((n, h, w, cout), jnp.float32),
            jax.ShapeDtypeStruct((n, h // 2 + 2, w // 2 + 2, cout), jnp.bfloat16),
        ),
        grid=(n // bsz,),
        in_specs=[
            pl.BlockSpec((bsz, h + 2, w + 2, cin_p), lambda i: (i, 0, 0, 0)),
            pl.BlockSpec((9 * cin_p, cout), lambda i: (0, 0)),   # weights resident
            pl.BlockSpec((1, cout), lambda i: (0, 0)),
            pl.BlockSpec((1, cout), lambda i: (0, 0)),
        ],
        out_specs=(
            pl.BlockSpec((bsz, h, w, cout), lambda i: (i, 0, 0, 0)),
            pl.BlockSpec((bsz, h // 2 + 2, w // 2 + 2, cout), lambda i: (i, 0, 0, 0)),
        ),
        scratch_shapes=[pltpu.VMEM((bsz * h * w, 9 * cin_p), jnp.bfloat16)],
        compiler_params=pltpu.CompilerParams(dimension_semantics=("parallel",)),
    )(x_haloed, w9, scale, shift)


def conv_block_avg_fc(x_haloed, p, wc, bc):
    """Last conv block: conv+BN+ReLU + global avg pool + fused 512->10 classifier."""
    n, hp2, wp2, cin_p = x_haloed.shape
    h, w = hp2 - 2, wp2 - 2
    cout = p["w"].shape[-1]
    scale, shift = _fold_bn(p["b"], p["gamma"], p["beta"], p["mean"], p["var"], cout)
    w9 = _pack_conv_weight(p["w"], cin_p)

    ncls = wc.shape[0]
    ncp = _round_up(ncls, LANES)
    wc_p = jnp.zeros((cout, ncp), jnp.bfloat16).at[:, :ncls].set(
        wc.T.astype(jnp.bfloat16))
    bc_p = jnp.zeros((1, ncp), jnp.float32).at[:, :ncls].set(bc.astype(jnp.float32))

    bsz = _pick_batch_block(n, h, w, cin_p, cout, pool=False)
    logits_p = pl.pallas_call(
        functools.partial(_conv_avg_fc_kernel, B=bsz, H=h, W=w),
        out_shape=jax.ShapeDtypeStruct((n, 1, ncp), jnp.float32),
        grid=(n // bsz,),
        in_specs=[
            pl.BlockSpec((bsz, h + 2, w + 2, cin_p), lambda i: (i, 0, 0, 0)),
            pl.BlockSpec((9 * cin_p, cout), lambda i: (0, 0)),
            pl.BlockSpec((1, cout), lambda i: (0, 0)),
            pl.BlockSpec((1, cout), lambda i: (0, 0)),
            pl.BlockSpec((cout, ncp), lambda i: (0, 0)),
            pl.BlockSpec((1, ncp), lambda i: (0, 0)),
        ],
        out_specs=pl.BlockSpec((bsz, 1, ncp), lambda i: (i, 0, 0)),
        scratch_shapes=[pltpu.VMEM((bsz * h * w, 9 * cin_p), jnp.bfloat16)],
        compiler_params=pltpu.CompilerParams(dimension_semantics=("parallel",)),
    )(x_haloed, w9, scale, shift, wc_p, bc_p)
    return logits_p[:, 0, :ncls]


# ---------------------------------------------------------------------------
# Parameters (deterministic, mirrors _initialize_weights)
# ---------------------------------------------------------------------------
def init_params(key):
    params = {"convs": [], "classifier": None}
    cin = 3
    for v in CFG:
        if v == "M":
            continue
        key, kw = jax.random.split(key)
        fan_out = v * 9  # kaiming_normal_, mode='fan_out', relu
        std = (2.0 / fan_out) ** 0.5
        params["convs"].append(
            dict(
                w=jax.random.normal(kw, (3, 3, cin, v), jnp.float32) * std,
                b=jnp.zeros((v,), jnp.float32),
                gamma=jnp.ones((v,), jnp.float32),
                beta=jnp.zeros((v,), jnp.float32),
                mean=jnp.zeros((v,), jnp.float32),
                var=jnp.ones((v,), jnp.float32),
            )
        )
        cin = v
    key, kw = jax.random.split(key)
    wc = jax.random.normal(kw, (NUM_CLASSES, 512), jnp.float32) * 0.01
    bc = jnp.zeros((NUM_CLASSES,), jnp.float32)
    params["classifier"] = (wc, bc)
    return params


# ---------------------------------------------------------------------------
# Forward pass (matches VGG_small.forward: returns (logits, feat))
# ---------------------------------------------------------------------------
def vgg_small_forward(params, x_nchw):
    # TODO(synk): BatchNorm uses eval-mode running statistics; the unused
    # lwf / no_ft / alphas / new_* / multi-head-classifier branches of the
    # PyTorch module are not part of this forward and are not implemented.
    cin_p0 = _round_up(3, 8)
    x = jnp.transpose(x_nchw, (0, 2, 3, 1)).astype(jnp.bfloat16)   # NCHW -> NHWC
    # one-time halo + channel pad for layer 1; later layers carry their halo.
    x = jnp.pad(x, ((0, 0), (1, 1), (1, 1), (0, cin_p0 - x.shape[-1])))

    feats = []
    convs = params["convs"]
    logits = None
    for li, p in enumerate(convs):
        if li < len(convs) - 1:
            feat_nhwc, x = conv_block_pool(x, p)
            feats.append(jnp.transpose(feat_nhwc, (0, 3, 1, 2)))   # pre-pool, NCHW
        else:
            wc, bc = params["classifier"]
            logits = conv_block_avg_fc(x, p, wc, bc)
    return logits, feats


if __name__ == "__main__":
    key = jax.random.PRNGKey(0)
    kp, kx = jax.random.split(key)
    params = init_params(kp)
    x = jax.random.normal(kx, (2, 3, 16, 16), jnp.float32)  # small CIFAR-like

    fwd = jax.jit(vgg_small_forward)
    logits, feats = fwd(params, x)
    jax.block_until_ready(logits)
    for f in feats:
        jax.block_until_ready(f)

    assert logits.shape == (2, NUM_CLASSES)
    assert [f.shape for f in feats] == [(2, 64, 16, 16), (2, 128, 8, 8), (2, 256, 4, 4)]
    assert jnp.all(jnp.isfinite(logits))
    print("KERNEL_OK")
</pallas_src>

<mosaic_0001>
module attributes {stable_mosaic.version = 11 : i64} {
  func.func @_conv_pool_kernel(%arg0: i32, %arg1: memref<1x18x18x8xbf16, #tpu.memory_space<vmem>>, %arg2: memref<72x64xbf16, #tpu.memory_space<vmem>>, %arg3: memref<1x64xf32, #tpu.memory_space<vmem>>, %arg4: memref<1x64xf32, #tpu.memory_space<vmem>>, %arg5: memref<1x16x16x64xf32, #tpu.memory_space<vmem>>, %arg6: memref<1x10x10x64xbf16, #tpu.memory_space<vmem>>, %arg7: memref<256x72xbf16, #tpu.memory_space<vmem>>) attributes {dimension_semantics = [#tpu.dimension_semantics<parallel>], iteration_bounds = array<i64: 2>, scalar_prefetch = 0 : i64, scratch_operands = 1 : i64, tpu.core_type = #tpu.core_type<tc>, window_params = [{transform_indices = @transform_0, window_bounds = array<i64: 1, 18, 18, 8>}, {pipeline_mode = #tpu.pipeline_mode<synchronous>, transform_indices = @transform_1, window_bounds = array<i64: 72, 64>}, {pipeline_mode = #tpu.pipeline_mode<synchronous>, transform_indices = @transform_2, window_bounds = array<i64: 1, 64>}, {pipeline_mode = #tpu.pipeline_mode<synchronous>, transform_indices = @transform_3, window_bounds = array<i64: 1, 64>}, {transform_indices = @transform_4, window_bounds = array<i64: 1, 16, 16, 64>}, {transform_indices = @transform_5, window_bounds = array<i64: 1, 10, 10, 64>}]} {
    %c0 = arith.constant 0 : index
    %c0_0 = arith.constant 0 : index
    %c0_1 = arith.constant 0 : index
    %c0_2 = arith.constant 0 : index
    %0 = vector.load %arg1[%c0, %c0_0, %c0_1, %c0_2] : memref<1x18x18x8xbf16, #tpu.memory_space<vmem>>, vector<1x18x18x8xbf16>
    %1 = vector.extract_strided_slice %0 {offsets = [0, 0, 0, 0], sizes = [1, 16, 16, 8], strides = [1, 1, 1, 1]} : vector<1x18x18x8xbf16> to vector<1x16x16x8xbf16>
    %2 = vector.shape_cast %1 : vector<1x16x16x8xbf16> to vector<256x8xbf16>
    %c0_3 = arith.constant 0 : index
    %c0_4 = arith.constant 0 : index
    %3 = vector.load %arg7[%c0_3, %c0_4] : memref<256x72xbf16, #tpu.memory_space<vmem>>, vector<256x8xbf16>
    tpu.vector_store %arg7[%c0_3, %c0_4], %2 {strides = array<i32>} : memref<256x72xbf16, #tpu.memory_space<vmem>>, vector<256x8xbf16>,
    %4 = vector.extract_strided_slice %0 {offsets = [0, 0, 1, 0], sizes = [1, 16, 16, 8], strides = [1, 1, 1, 1]} : vector<1x18x18x8xbf16> to vector<1x16x16x8xbf16>
    %5 = vector.shape_cast %4 : vector<1x16x16x8xbf16> to vector<256x8xbf16>
    %c0_5 = arith.constant 0 : index
    %c8 = arith.constant 8 : index
    %6 = vector.load %arg7[%c0_5, %c8] : memref<256x72xbf16, #tpu.memory_space<vmem>>, vector<256x8xbf16>
    tpu.vector_store %arg7[%c0_5, %c8], %5 {strides = array<i32>} : memref<256x72xbf16, #tpu.memory_space<vmem>>, vector<256x8xbf16>,
    %7 = vector.extract_strided_slice %0 {offsets = [0, 0, 2, 0], sizes = [1, 16, 16, 8], strides = [1, 1, 1, 1]} : vector<1x18x18x8xbf16> to vector<1x16x16x8xbf16>
    %8 = vector.shape_cast %7 : vector<1x16x16x8xbf16> to vector<256x8xbf16>
    %c0_6 = arith.constant 0 : index
    %c16 = arith.constant 16 : index
    %9 = vector.load %arg7[%c0_6, %c16] : memref<256x72xbf16, #tpu.memory_space<vmem>>, vector<256x8xbf16>
    tpu.vector_store %arg7[%c0_6, %c16], %8 {strides = array<i32>} : memref<256x72xbf16, #tpu.memory_space<vmem>>, vector<256x8xbf16>,
    %10 = vector.extract_strided_slice %0 {offsets = [0, 1, 0, 0], sizes = [1, 16, 16, 8], strides = [1, 1, 1, 1]} : vector<1x18x18x8xbf16> to vector<1x16x16x8xbf16>
    %11 = vector.shape_cast %10 : vector<1x16x16x8xbf16> to vector<256x8xbf16>
    %c0_7 = arith.constant 0 : index
    %c24 = arith.constant 24 : index
    %12 = vector.load %arg7[%c0_7, %c24] : memref<256x72xbf16, #tpu.memory_space<vmem>>, vector<256x8xbf16>
    tpu.vector_store %arg7[%c0_7, %c24], %11 {strides = array<i32>} : memref<256x72xbf16, #tpu.memory_space<vmem>>, vector<256x8xbf16>,
    %13 = vector.extract_strided_slice %0 {offsets = [0, 1, 1, 0], sizes = [1, 16, 16, 8], strides = [1, 1, 1, 1]} : vector<1x18x18x8xbf16> to vector<1x16x16x8xbf16>
    %14 = vector.shape_cast %13 : vector<1x16x16x8xbf16> to vector<256x8xbf16>
    %c0_8 = arith.constant 0 : index
    %c32 = arith.constant 32 : index
    %15 = vector.load %arg7[%c0_8, %c32] : memref<256x72xbf16, #tpu.memory_space<vmem>>, vector<256x8xbf16>
    tpu.vector_store %arg7[%c0_8, %c32], %14 {strides = array<i32>} : memref<256x72xbf16, #tpu.memory_space<vmem>>, vector<256x8xbf16>,
    %16 = vector.extract_strided_slice %0 {offsets = [0, 1, 2, 0], sizes = [1, 16, 16, 8], strides = [1, 1, 1, 1]} : vector<1x18x18x8xbf16> to vector<1x16x16x8xbf16>
    %17 = vector.shape_cast %16 : vector<1x16x16x8xbf16> to vector<256x8xbf16>
    %c0_9 = arith.constant 0 : index
    %c40 = arith.constant 40 : index
    %18 = vector.load %arg7[%c0_9, %c40] : memref<256x72xbf16, #tpu.memory_space<vmem>>, vector<256x8xbf16>
    tpu.vector_store %arg7[%c0_9, %c40], %17 {strides = array<i32>} : memref<256x72xbf16, #tpu.memory_space<vmem>>, vector<256x8xbf16>,
    %19 = vector.extract_strided_slice %0 {offsets = [0, 2, 0, 0], sizes = [1, 16, 16, 8], strides = [1, 1, 1, 1]} : vector<1x18x18x8xbf16> to vector<1x16x16x8xbf16>
    %20 = vector.shape_cast %19 : vector<1x16x16x8xbf16> to vector<256x8xbf16>
    %c0_10 = arith.constant 0 : index
    %c48 = arith.constant 48 : index
    %21 = vector.load %arg7[%c0_10, %c48] : memref<256x72xbf16, #tpu.memory_space<vmem>>, vector<256x8xbf16>
    tpu.vector_store %arg7[%c0_10, %c48], %20 {strides = array<i32>} : memref<256x72xbf16, #tpu.memory_space<vmem>>, vector<256x8xbf16>,
    %22 = vector.extract_strided_slice %0 {offsets = [0, 2, 1, 0], sizes = [1, 16, 16, 8], strides = [1, 1, 1, 1]} : vector<1x18x18x8xbf16> to vector<1x16x16x8xbf16>
    %23 = vector.shape_cast %22 : vector<1x16x16x8xbf16> to vector<256x8xbf16>
    %c0_11 = arith.constant 0 : index
    %c56 = arith.constant 56 : index
    %24 = vector.load %arg7[%c0_11, %c56] : memref<256x72xbf16, #tpu.memory_space<vmem>>, vector<256x8xbf16>
    tpu.vector_store %arg7[%c0_11, %c56], %23 {strides = array<i32>} : memref<256x72xbf16, #tpu.memory_space<vmem>>, vector<256x8xbf16>,
    %25 = vector.extract_strided_slice %0 {offsets = [0, 2, 2, 0], sizes = [1, 16, 16, 8], strides = [1, 1, 1, 1]} : vector<1x18x18x8xbf16> to vector<1x16x16x8xbf16>
    %26 = vector.shape_cast %25 : vector<1x16x16x8xbf16> to vector<256x8xbf16>
    %c0_12 = arith.constant 0 : index
    %c64 = arith.constant 64 : index
    %27 = vector.load %arg7[%c0_12, %c64] : memref<256x72xbf16, #tpu.memory_space<vmem>>, vector<256x8xbf16>
    tpu.vector_store %arg7[%c0_12, %c64], %26 {strides = array<i32>} : memref<256x72xbf16, #tpu.memory_space<vmem>>, vector<256x8xbf16>,
    %c0_13 = arith.constant 0 : index
    %c0_14 = arith.constant 0 : index
    %28 = vector.load %arg7[%c0_13, %c0_14] : memref<256x72xbf16, #tpu.memory_space<vmem>>, vector<256x72xbf16>
    %c0_15 = arith.constant 0 : index
    %c0_16 = arith.constant 0 : index
    %29 = vector.load %arg2[%c0_15, %c0_16] : memref<72x64xbf16, #tpu.memory_space<vmem>>, vector<72x64xbf16>
    %cst = arith.constant dense<0.000000e+00> : vector<256x64xf32>
    %30 = tpu.matmul %28, %29, %cst {dimension_numbers = #tpu.dot_dimension_numbers<[1], [0], [0], [1], [0, 0, 1, 1], [], []>} : vector<256x72xbf16>, vector<72x64xbf16>, vector<256x64xf32> -> vector<256x64xf32>
    %c0_17 = arith.constant 0 : index
    %c0_18 = arith.constant 0 : index
    %31 = vector.load %arg3[%c0_17, %c0_18] : memref<1x64xf32, #tpu.memory_space<vmem>>, vector<1x64xf32>
    %32 = vector.broadcast %31 : vector<1x64xf32> to vector<256x64xf32>
    %33 = arith.mulf %30, %32 : vector<256x64xf32>
    %c0_19 = arith.constant 0 : index
    %c0_20 = arith.constant 0 : index
    %34 = vector.load %arg4[%c0_19, %c0_20] : memref<1x64xf32, #tpu.memory_space<vmem>>, vector<1x64xf32>
    %35 = vector.broadcast %34 : vector<1x64xf32> to vector<256x64xf32>
    %36 = arith.addf %33, %35 : vector<256x64xf32>
    %cst_21 = arith.constant 0.000000e+00 : f32
    %37 = vector.broadcast %cst_21 : f32 to vector<256x64xf32>
    %38 = arith.maximumf %36, %37 : vector<256x64xf32>
    %39 = vector.shape_cast %38 : vector<256x64xf32> to vector<1x16x16x64xf32>
    %c0_22 = arith.constant 0 : index
    %c0_23 = arith.constant 0 : index
    %c0_24 = arith.constant 0 : index
    %c0_25 = arith.constant 0 : index
    %40 = vector.load %arg5[%c0_22, %c0_23, %c0_24, %c0_25] : memref<1x16x16x64xf32, #tpu.memory_space<vmem>>, vector<1x16x16x64xf32>
    tpu.vector_store %arg5[%c0_22, %c0_23, %c0_24, %c0_25], %39 {strides = array<i32>} : memref<1x16x16x64xf32, #tpu.memory_space<vmem>>, vector<1x16x16x64xf32>,
    %41 = vector.shape_cast %38 : vector<256x64xf32> to vector<16x8x2x64xf32>
    %42 = vector.extract_strided_slice %41 {offsets = [0, 0, 0, 0], sizes = [16, 8, 1, 64], strides = [1, 1, 1, 1]} : vector<16x8x2x64xf32> to vector<16x8x1x64xf32>
    %43 = vector.shape_cast %42 : vector<16x8x1x64xf32> to vector<16x8x64xf32>
    %44 = vector.extract_strided_slice %41 {offsets = [0, 0, 1, 0], sizes = [16, 8, 1, 64], strides = [1, 1, 1, 1]} : vector<16x8x2x64xf32> to vector<16x8x1x64xf32>
    %45 = vector.shape_cast %44 : vector<16x8x1x64xf32> to vector<16x8x64xf32>
    %46 = arith.maximumf %43, %45 : vector<16x8x64xf32>
    %47 = vector.shape_cast %46 : vector<16x8x64xf32> to vector<8x2x8x64xf32>
    %48 = vector.extract_strided_slice %47 {offsets = [0, 0, 0, 0], sizes = [8, 1, 8, 64], strides = [1, 1, 1, 1]} : vector<8x2x8x64xf32> to vector<8x1x8x64xf32>
    %49 = vector.shape_cast %48 : vector<8x1x8x64xf32> to vector<8x8x64xf32>
    %50 = vector.extract_strided_slice %47 {offsets = [0, 1, 0, 0], sizes = [8, 1, 8, 64], strides = [1, 1, 1, 1]} : vector<8x2x8x64xf32> to vector<8x1x8x64xf32>
    %51 = vector.shape_cast %50 : vector<8x1x8x64xf32> to vector<8x8x64xf32>
    %52 = arith.maximumf %49, %51 : vector<8x8x64xf32>
    %53 = vector.shape_cast %52 : vector<8x8x64xf32> to vector<1x8x8x64xf32>
    %54 = arith.truncf %53 : vector<1x8x8x64xf32> to vector<1x8x8x64xbf16>
    %cst_26 = arith.constant 0.000000e+00 : bf16
    %55 = vector.broadcast %cst_26 : bf16 to vector<1x10x10x64xbf16>
    %c0_27 = arith.constant 0 : index
    %c0_28 = arith.constant 0 : index
    %c0_29 = arith.constant 0 : index
    %c0_30 = arith.constant 0 : index
    %56 = vector.load %arg6[%c0_27, %c0_28, %c0_29, %c0_30] : memref<1x10x10x64xbf16, #tpu.memory_space<vmem>>, vector<1x10x10x64xbf16>
    tpu.vector_store %arg6[%c0_27, %c0_28, %c0_29, %c0_30], %55 {strides = array<i32>} : memref<1x10x10x64xbf16, #tpu.memory_space<vmem>>, vector<1x10x10x64xbf16>,
    %c0_31 = arith.constant 0 : index
    %c1 = arith.constant 1 : index
    %c1_32 = arith.constant 1 : index
    %c0_33 = arith.constant 0 : index
    %57 = vector.load %arg6[%c0_31, %c1, %c1_32, %c0_33] : memref<1x10x10x64xbf16, #tpu.memory_space<vmem>>, vector<1x8x8x64xbf16>
    tpu.vector_store %arg6[%c0_31, %c1, %c1_32, %c0_33], %54 {strides = array<i32>} : memref<1x10x10x64xbf16, #tpu.memory_space<vmem>>, vector<1x8x8x64xbf16>,
    return
  }
  func.func @transform_0(%arg0: i32) -> (i32, i32, i32, i32) {
    %c0_i32 = arith.constant 0 : i32
    %c0_i32_0 = arith.constant 0 : i32
    %c0_i32_1 = arith.constant 0 : i32
    %c0_i32_2 = arith.constant 0 : i32
    return %arg0, %c0_i32, %c0_i32_0, %c0_i32_1 : i32, i32, i32, i32
  }
  func.func @transform_1(%arg0: i32) -> (i32, i32) {
    %c0_i32 = arith.constant 0 : i32
    %c0_i32_0 = arith.constant 0 : i32
    %c0_i32_1 = arith.constant 0 : i32
    return %c0_i32, %c0_i32_0 : i32, i32
  }
  func.func @transform_2(%arg0: i32) -> (i32, i32) {
    %c0_i32 = arith.constant 0 : i32
    %c0_i32_0 = arith.constant 0 : i32
    %c0_i32_1 = arith.constant 0 : i32
    return %c0_i32, %c0_i32_0 : i32, i32
  }
  func.func @transform_3(%arg0: i32) -> (i32, i32) {
    %c0_i32 = arith.constant 0 : i32
    %c0_i32_0 = arith.constant 0 : i32
    %c0_i32_1 = arith.constant 0 : i32
    return %c0_i32, %c0_i32_0 : i32, i32
  }
  func.func @transform_4(%arg0: i32) -> (i32, i32, i32, i32) {
    %c0_i32 = arith.constant 0 : i32
    %c0_i32_0 = arith.constant 0 : i32
    %c0_i32_1 = arith.constant 0 : i32
    %c0_i32_2 = arith.constant 0 : i32
    return %arg0, %c0_i32, %c0_i32_0, %c0_i32_1 : i32, i32, i32, i32
  }
  func.func @transform_5(%arg0: i32) -> (i32, i32, i32, i32) {
    %c0_i32 = arith.constant 0 : i32
    %c0_i32_0 = arith.constant 0 : i32
    %c0_i32_1 = arith.constant 0 : i32
    %c0_i32_2 = arith.constant 0 : i32
    return %arg0, %c0_i32, %c0_i32_0, %c0_i32_1 : i32, i32, i32, i32
  }
}

module attributes {stable_mosaic.version = 11 : i64} {
  func.func @_conv_pool_kernel(%arg0: i32, %arg1: memref<1x10x10x64xbf16, #tpu.memory_space<vmem>>, %arg2: memref<576x128xbf16, #tpu.memory_space<vmem>>, %arg3: memref<1x128xf32, #tpu.memory_space<vmem>>, %arg4: memref<1x128xf32, #tpu.memory_space<vmem>>, %arg5: memref<1x8x8x128xf32, #tpu.memory_space<vmem>>, %arg6: memref<1x6x6x128xbf16, #tpu.memory_space<vmem>>, %arg7: memref<64x576xbf16, #tpu.memory_space<vmem>>) attributes {dimension_semantics = [#tpu.dimension_semantics<parallel>], iteration_bounds = array<i64: 2>, scalar_prefetch = 0 : i64, scratch_operands = 1 : i64, tpu.core_type = #tpu.core_type<tc>, window_params = [{transform_indices = @transform_0, window_bounds = array<i64: 1, 10, 10, 64>}, {pipeline_mode = #tpu.pipeline_mode<synchronous>, transform_indices = @transform_1, window_bounds = array<i64: 576, 128>}, {pipeline_mode = #tpu.pipeline_mode<synchronous>, transform_indices = @transform_2, window_bounds = array<i64: 1, 128>}, {pipeline_mode = #tpu.pipeline_mode<synchronous>, transform_indices = @transform_3, window_bounds = array<i64: 1, 128>}, {transform_indices = @transform_4, window_bounds = array<i64: 1, 8, 8, 128>}, {transform_indices = @transform_5, window_bounds = array<i64: 1, 6, 6, 128>}]} {
    %c0 = arith.constant 0 : index
    %c0_0 = arith.constant 0 : index
    %c0_1 = arith.constant 0 : index
    %c0_2 = arith.constant 0 : index
    %0 = vector.load %arg1[%c0, %c0_0, %c0_1, %c0_2] : memref<1x10x10x64xbf16, #tpu.memory_space<vmem>>, vector<1x10x10x64xbf16>
    %1 = vector.extract_strided_slice %0 {offsets = [0, 0, 0, 0], sizes = [1, 8, 8, 64], strides = [1, 1, 1, 1]} : vector<1x10x10x64xbf16> to vector<1x8x8x64xbf16>
    %2 = vector.shape_cast %1 : vector<1x8x8x64xbf16> to vector<64x64xbf16>
    %c0_3 = arith.constant 0 : index
    %c0_4 = arith.constant 0 : index
    %3 = vector.load %arg7[%c0_3, %c0_4] : memref<64x576xbf16, #tpu.memory_space<vmem>>, vector<64x64xbf16>
    tpu.vector_store %arg7[%c0_3, %c0_4], %2 {strides = array<i32>} : memref<64x576xbf16, #tpu.memory_space<vmem>>, vector<64x64xbf16>,
    %4 = vector.extract_strided_slice %0 {offsets = [0, 0, 1, 0], sizes = [1, 8, 8, 64], strides = [1, 1, 1, 1]} : vector<1x10x10x64xbf16> to vector<1x8x8x64xbf16>
    %5 = vector.shape_cast %4 : vector<1x8x8x64xbf16> to vector<64x64xbf16>
    %c0_5 = arith.constant 0 : index
    %c64 = arith.constant 64 : index
    %6 = vector.load %arg7[%c0_5, %c64] : memref<64x576xbf16, #tpu.memory_space<vmem>>, vector<64x64xbf16>
    tpu.vector_store %arg7[%c0_5, %c64], %5 {strides = array<i32>} : memref<64x576xbf16, #tpu.memory_space<vmem>>, vector<64x64xbf16>,
    %7 = vector.extract_strided_slice %0 {offsets = [0, 0, 2, 0], sizes = [1, 8, 8, 64], strides = [1, 1, 1, 1]} : vector<1x10x10x64xbf16> to vector<1x8x8x64xbf16>
    %8 = vector.shape_cast %7 : vector<1x8x8x64xbf16> to vector<64x64xbf16>
    %c0_6 = arith.constant 0 : index
    %c128 = arith.constant 128 : index
    %9 = vector.load %arg7[%c0_6, %c128] : memref<64x576xbf16, #tpu.memory_space<vmem>>, vector<64x64xbf16>
    tpu.vector_store %arg7[%c0_6, %c128], %8 {strides = array<i32>} : memref<64x576xbf16, #tpu.memory_space<vmem>>, vector<64x64xbf16>,
    %10 = vector.extract_strided_slice %0 {offsets = [0, 1, 0, 0], sizes = [1, 8, 8, 64], strides = [1, 1, 1, 1]} : vector<1x10x10x64xbf16> to vector<1x8x8x64xbf16>
    %11 = vector.shape_cast %10 : vector<1x8x8x64xbf16> to vector<64x64xbf16>
    %c0_7 = arith.constant 0 : index
    %c192 = arith.constant 192 : index
    %12 = vector.load %arg7[%c0_7, %c192] : memref<64x576xbf16, #tpu.memory_space<vmem>>, vector<64x64xbf16>
    tpu.vector_store %arg7[%c0_7, %c192], %11 {strides = array<i32>} : memref<64x576xbf16, #tpu.memory_space<vmem>>, vector<64x64xbf16>,
    %13 = vector.extract_strided_slice %0 {offsets = [0, 1, 1, 0], sizes = [1, 8, 8, 64], strides = [1, 1, 1, 1]} : vector<1x10x10x64xbf16> to vector<1x8x8x64xbf16>
    %14 = vector.shape_cast %13 : vector<1x8x8x64xbf16> to vector<64x64xbf16>
    %c0_8 = arith.constant 0 : index
    %c256 = arith.constant 256 : index
    %15 = vector.load %arg7[%c0_8, %c256] : memref<64x576xbf16, #tpu.memory_space<vmem>>, vector<64x64xbf16>
    tpu.vector_store %arg7[%c0_8, %c256], %14 {strides = array<i32>} : memref<64x576xbf16, #tpu.memory_space<vmem>>, vector<64x64xbf16>,
    %16 = vector.extract_strided_slice %0 {offsets = [0, 1, 2, 0], sizes = [1, 8, 8, 64], strides = [1, 1, 1, 1]} : vector<1x10x10x64xbf16> to vector<1x8x8x64xbf16>
    %17 = vector.shape_cast %16 : vector<1x8x8x64xbf16> to vector<64x64xbf16>
    %c0_9 = arith.constant 0 : index
    %c320 = arith.constant 320 : index
    %18 = vector.load %arg7[%c0_9, %c320] : memref<64x576xbf16, #tpu.memory_space<vmem>>, vector<64x64xbf16>
    tpu.vector_store %arg7[%c0_9, %c320], %17 {strides = array<i32>} : memref<64x576xbf16, #tpu.memory_space<vmem>>, vector<64x64xbf16>,
    %19 = vector.extract_strided_slice %0 {offsets = [0, 2, 0, 0], sizes = [1, 8, 8, 64], strides = [1, 1, 1, 1]} : vector<1x10x10x64xbf16> to vector<1x8x8x64xbf16>
    %20 = vector.shape_cast %19 : vector<1x8x8x64xbf16> to vector<64x64xbf16>
    %c0_10 = arith.constant 0 : index
    %c384 = arith.constant 384 : index
    %21 = vector.load %arg7[%c0_10, %c384] : memref<64x576xbf16, #tpu.memory_space<vmem>>, vector<64x64xbf16>
    tpu.vector_store %arg7[%c0_10, %c384], %20 {strides = array<i32>} : memref<64x576xbf16, #tpu.memory_space<vmem>>, vector<64x64xbf16>,
    %22 = vector.extract_strided_slice %0 {offsets = [0, 2, 1, 0], sizes = [1, 8, 8, 64], strides = [1, 1, 1, 1]} : vector<1x10x10x64xbf16> to vector<1x8x8x64xbf16>
    %23 = vector.shape_cast %22 : vector<1x8x8x64xbf16> to vector<64x64xbf16>
    %c0_11 = arith.constant 0 : index
    %c448 = arith.constant 448 : index
    %24 = vector.load %arg7[%c0_11, %c448] : memref<64x576xbf16, #tpu.memory_space<vmem>>, vector<64x64xbf16>
    tpu.vector_store %arg7[%c0_11, %c448], %23 {strides = array<i32>} : memref<64x576xbf16, #tpu.memory_space<vmem>>, vector<64x64xbf16>,
    %25 = vector.extract_strided_slice %0 {offsets = [0, 2, 2, 0], sizes = [1, 8, 8, 64], strides = [1, 1, 1, 1]} : vector<1x10x10x64xbf16> to vector<1x8x8x64xbf16>
    %26 = vector.shape_cast %25 : vector<1x8x8x64xbf16> to vector<64x64xbf16>
    %c0_12 = arith.constant 0 : index
    %c512 = arith.constant 512 : index
    %27 = vector.load %arg7[%c0_12, %c512] : memref<64x576xbf16, #tpu.memory_space<vmem>>, vector<64x64xbf16>
    tpu.vector_store %arg7[%c0_12, %c512], %26 {strides = array<i32>} : memref<64x576xbf16, #tpu.memory_space<vmem>>, vector<64x64xbf16>,
    %c0_13 = arith.constant 0 : index
    %c0_14 = arith.constant 0 : index
    %28 = vector.load %arg7[%c0_13, %c0_14] : memref<64x576xbf16, #tpu.memory_space<vmem>>, vector<64x576xbf16>
    %c0_15 = arith.constant 0 : index
    %c0_16 = arith.constant 0 : index
    %29 = vector.load %arg2[%c0_15, %c0_16] : memref<576x128xbf16, #tpu.memory_space<vmem>>, vector<576x128xbf16>
    %cst = arith.constant dense<0.000000e+00> : vector<64x128xf32>
    %30 = tpu.matmul %28, %29, %cst {dimension_numbers = #tpu.dot_dimension_numbers<[1], [0], [0], [1], [0, 0, 1, 1], [], []>} : vector<64x576xbf16>, vector<576x128xbf16>, vector<64x128xf32> -> vector<64x128xf32>
    %c0_17 = arith.constant 0 : index
    %c0_18 = arith.constant 0 : index
    %31 = vector.load %arg3[%c0_17, %c0_18] : memref<1x128xf32, #tpu.memory_space<vmem>>, vector<1x128xf32>
    %32 = vector.broadcast %31 : vector<1x128xf32> to vector<64x128xf32>
    %33 = arith.mulf %30, %32 : vector<64x128xf32>
    %c0_19 = arith.constant 0 : index
    %c0_20 = arith.constant 0 : index
    %34 = vector.load %arg4[%c0_19, %c0_20] : memref<1x128xf32, #tpu.memory_space<vmem>>, vector<1x128xf32>
    %35 = vector.broadcast %34 : vector<1x128xf32> to vector<64x128xf32>
    %36 = arith.addf %33, %35 : vector<64x128xf32>
    %cst_21 = arith.constant 0.000000e+00 : f32
    %37 = vector.broadcast %cst_21 : f32 to vector<64x128xf32>
    %38 = arith.maximumf %36, %37 : vector<64x128xf32>
    %39 = vector.shape_cast %38 : vector<64x128xf32> to vector<1x8x8x128xf32>
    %c0_22 = arith.constant 0 : index
    %c0_23 = arith.constant 0 : index
    %c0_24 = arith.constant 0 : index
    %c0_25 = arith.constant 0 : index
    %40 = vector.load %arg5[%c0_22, %c0_23, %c0_24, %c0_25] : memref<1x8x8x128xf32, #tpu.memory_space<vmem>>, vector<1x8x8x128xf32>
    tpu.vector_store %arg5[%c0_22, %c0_23, %c0_24, %c0_25], %39 {strides = array<i32>} : memref<1x8x8x128xf32, #tpu.memory_space<vmem>>, vector<1x8x8x128xf32>,
    %41 = vector.shape_cast %38 : vector<64x128xf32> to vector<8x4x2x128xf32>
    %42 = vector.extract_strided_slice %41 {offsets = [0, 0, 0, 0], sizes = [8, 4, 1, 128], strides = [1, 1, 1, 1]} : vector<8x4x2x128xf32> to vector<8x4x1x128xf32>
    %43 = vector.shape_cast %42 : vector<8x4x1x128xf32> to vector<8x4x128xf32>
    %44 = vector.extract_strided_slice %41 {offsets = [0, 0, 1, 0], sizes = [8, 4, 1, 128], strides = [1, 1, 1, 1]} : vector<8x4x2x128xf32> to vector<8x4x1x128xf32>
    %45 = vector.shape_cast %44 : vector<8x4x1x128xf32> to vector<8x4x128xf32>
    %46 = arith.maximumf %43, %45 : vector<8x4x128xf32>
    %47 = vector.shape_cast %46 : vector<8x4x128xf32> to vector<4x2x4x128xf32>
    %48 = vector.extract_strided_slice %47 {offsets = [0, 0, 0, 0], sizes = [4, 1, 4, 128], strides = [1, 1, 1, 1]} : vector<4x2x4x128xf32> to vector<4x1x4x128xf32>
    %49 = vector.shape_cast %48 : vector<4x1x4x128xf32> to vector<4x4x128xf32>
    %50 = vector.extract_strided_slice %47 {offsets = [0, 1, 0, 0], sizes = [4, 1, 4, 128], strides = [1, 1, 1, 1]} : vector<4x2x4x128xf32> to vector<4x1x4x128xf32>
    %51 = vector.shape_cast %50 : vector<4x1x4x128xf32> to vector<4x4x128xf32>
    %52 = arith.maximumf %49, %51 : vector<4x4x128xf32>
    %53 = vector.shape_cast %52 : vector<4x4x128xf32> to vector<1x4x4x128xf32>
    %54 = arith.truncf %53 : vector<1x4x4x128xf32> to vector<1x4x4x128xbf16>
    %cst_26 = arith.constant 0.000000e+00 : bf16
    %55 = vector.broadcast %cst_26 : bf16 to vector<1x6x6x128xbf16>
    %c0_27 = arith.constant 0 : index
    %c0_28 = arith.constant 0 : index
    %c0_29 = arith.constant 0 : index
    %c0_30 = arith.constant 0 : index
    %56 = vector.load %arg6[%c0_27, %c0_28, %c0_29, %c0_30] : memref<1x6x6x128xbf16, #tpu.memory_space<vmem>>, vector<1x6x6x128xbf16>
    tpu.vector_store %arg6[%c0_27, %c0_28, %c0_29, %c0_30], %55 {strides = array<i32>} : memref<1x6x6x128xbf16, #tpu.memory_space<vmem>>, vector<1x6x6x128xbf16>,
    %c0_31 = arith.constant 0 : index
    %c1 = arith.constant 1 : index
    %c1_32 = arith.constant 1 : index
    %c0_33 = arith.constant 0 : index
    %57 = vector.load %arg6[%c0_31, %c1, %c1_32, %c0_33] : memref<1x6x6x128xbf16, #tpu.memory_space<vmem>>, vector<1x4x4x128xbf16>
    tpu.vector_store %arg6[%c0_31, %c1, %c1_32, %c0_33], %54 {strides = array<i32>} : memref<1x6x6x128xbf16, #tpu.memory_space<vmem>>, vector<1x4x4x128xbf16>,
    return
  }
  func.func @transform_0(%arg0: i32) -> (i32, i32, i32, i32) {
    %c0_i32 = arith.constant 0 : i32
    %c0_i32_0 = arith.constant 0 : i32
    %c0_i32_1 = arith.constant 0 : i32
    %c0_i32_2 = arith.constant 0 : i32
    return %arg0, %c0_i32, %c0_i32_0, %c0_i32_1 : i32, i32, i32, i32
  }
  func.func @transform_1(%arg0: i32) -> (i32, i32) {
    %c0_i32 = arith.constant 0 : i32
    %c0_i32_0 = arith.constant 0 : i32
    %c0_i32_1 = arith.constant 0 : i32
    return %c0_i32, %c0_i32_0 : i32, i32
  }
  func.func @transform_2(%arg0: i32) -> (i32, i32) {
    %c0_i32 = arith.constant 0 : i32
    %c0_i32_0 = arith.constant 0 : i32
    %c0_i32_1 = arith.constant 0 : i32
    return %c0_i32, %c0_i32_0 : i32, i32
  }
  func.func @transform_3(%arg0: i32) -> (i32, i32) {
    %c0_i32 = arith.constant 0 : i32
    %c0_i32_0 = arith.constant 0 : i32
    %c0_i32_1 = arith.constant 0 : i32
    return %c0_i32, %c0_i32_0 : i32, i32
  }
  func.func @transform_4(%arg0: i32) -> (i32, i32, i32, i32) {
    %c0_i32 = arith.constant 0 : i32
    %c0_i32_0 = arith.constant 0 : i32
    %c0_i32_1 = arith.constant 0 : i32
    %c0_i32_2 = arith.constant 0 : i32
    return %arg0, %c0_i32, %c0_i32_0, %c0_i32_1 : i32, i32, i32, i32
  }
  func.func @transform_5(%arg0: i32) -> (i32, i32, i32, i32) {
    %c0_i32 = arith.constant 0 : i32
    %c0_i32_0 = arith.constant 0 : i32
    %c0_i32_1 = arith.constant 0 : i32
    %c0_i32_2 = arith.constant 0 : i32
    return %arg0, %c0_i32, %c0_i32_0, %c0_i32_1 : i32, i32, i32, i32
  }
}

module attributes {stable_mosaic.version = 11 : i64} {
  func.func @_conv_pool_kernel(%arg0: i32, %arg1: memref<1x6x6x128xbf16, #tpu.memory_space<vmem>>, %arg2: memref<1152x256xbf16, #tpu.memory_space<vmem>>, %arg3: memref<1x256xf32, #tpu.memory_space<vmem>>, %arg4: memref<1x256xf32, #tpu.memory_space<vmem>>, %arg5: memref<1x4x4x256xf32, #tpu.memory_space<vmem>>, %arg6: memref<1x4x4x256xbf16, #tpu.memory_space<vmem>>, %arg7: memref<16x1152xbf16, #tpu.memory_space<vmem>>) attributes {dimension_semantics = [#tpu.dimension_semantics<parallel>], iteration_bounds = array<i64: 2>, scalar_prefetch = 0 : i64, scratch_operands = 1 : i64, tpu.core_type = #tpu.core_type<tc>, window_params = [{transform_indices = @transform_0, window_bounds = array<i64: 1, 6, 6, 128>}, {pipeline_mode = #tpu.pipeline_mode<synchronous>, transform_indices = @transform_1, window_bounds = array<i64: 1152, 256>}, {pipeline_mode = #tpu.pipeline_mode<synchronous>, transform_indices = @transform_2, window_bounds = array<i64: 1, 256>}, {pipeline_mode = #tpu.pipeline_mode<synchronous>, transform_indices = @transform_3, window_bounds = array<i64: 1, 256>}, {transform_indices = @transform_4, window_bounds = array<i64: 1, 4, 4, 256>}, {transform_indices = @transform_5, window_bounds = array<i64: 1, 4, 4, 256>}]} {
    %c0 = arith.constant 0 : index
    %c0_0 = arith.constant 0 : index
    %c0_1 = arith.constant 0 : index
    %c0_2 = arith.constant 0 : index
    %0 = vector.load %arg1[%c0, %c0_0, %c0_1, %c0_2] : memref<1x6x6x128xbf16, #tpu.memory_space<vmem>>, vector<1x6x6x128xbf16>
    %1 = vector.extract_strided_slice %0 {offsets = [0, 0, 0, 0], sizes = [1, 4, 4, 128], strides = [1, 1, 1, 1]} : vector<1x6x6x128xbf16> to vector<1x4x4x128xbf16>
    %2 = vector.shape_cast %1 : vector<1x4x4x128xbf16> to vector<16x128xbf16>
    %c0_3 = arith.constant 0 : index
    %c0_4 = arith.constant 0 : index
    %3 = vector.load %arg7[%c0_3, %c0_4] : memref<16x1152xbf16, #tpu.memory_space<vmem>>, vector<16x128xbf16>
    tpu.vector_store %arg7[%c0_3, %c0_4], %2 {strides = array<i32>} : memref<16x1152xbf16, #tpu.memory_space<vmem>>, vector<16x128xbf16>,
    %4 = vector.extract_strided_slice %0 {offsets = [0, 0, 1, 0], sizes = [1, 4, 4, 128], strides = [1, 1, 1, 1]} : vector<1x6x6x128xbf16> to vector<1x4x4x128xbf16>
    %5 = vector.shape_cast %4 : vector<1x4x4x128xbf16> to vector<16x128xbf16>
    %c0_5 = arith.constant 0 : index
    %c128 = arith.constant 128 : index
    %6 = vector.load %arg7[%c0_5, %c128] : memref<16x1152xbf16, #tpu.memory_space<vmem>>, vector<16x128xbf16>
    tpu.vector_store %arg7[%c0_5, %c128], %5 {strides = array<i32>} : memref<16x1152xbf16, #tpu.memory_space<vmem>>, vector<16x128xbf16>,
    %7 = vector.extract_strided_slice %0 {offsets = [0, 0, 2, 0], sizes = [1, 4, 4, 128], strides = [1, 1, 1, 1]} : vector<1x6x6x128xbf16> to vector<1x4x4x128xbf16>
    %8 = vector.shape_cast %7 : vector<1x4x4x128xbf16> to vector<16x128xbf16>
    %c0_6 = arith.constant 0 : index
    %c256 = arith.constant 256 : index
    %9 = vector.load %arg7[%c0_6, %c256] : memref<16x1152xbf16, #tpu.memory_space<vmem>>, vector<16x128xbf16>
    tpu.vector_store %arg7[%c0_6, %c256], %8 {strides = array<i32>} : memref<16x1152xbf16, #tpu.memory_space<vmem>>, vector<16x128xbf16>,
    %10 = vector.extract_strided_slice %0 {offsets = [0, 1, 0, 0], sizes = [1, 4, 4, 128], strides = [1, 1, 1, 1]} : vector<1x6x6x128xbf16> to vector<1x4x4x128xbf16>
    %11 = vector.shape_cast %10 : vector<1x4x4x128xbf16> to vector<16x128xbf16>
    %c0_7 = arith.constant 0 : index
    %c384 = arith.constant 384 : index
    %12 = vector.load %arg7[%c0_7, %c384] : memref<16x1152xbf16, #tpu.memory_space<vmem>>, vector<16x128xbf16>
    tpu.vector_store %arg7[%c0_7, %c384], %11 {strides = array<i32>} : memref<16x1152xbf16, #tpu.memory_space<vmem>>, vector<16x128xbf16>,
    %13 = vector.extract_strided_slice %0 {offsets = [0, 1, 1, 0], sizes = [1, 4, 4, 128], strides = [1, 1, 1, 1]} : vector<1x6x6x128xbf16> to vector<1x4x4x128xbf16>
    %14 = vector.shape_cast %13 : vector<1x4x4x128xbf16> to vector<16x128xbf16>
    %c0_8 = arith.constant 0 : index
    %c512 = arith.constant 512 : index
    %15 = vector.load %arg7[%c0_8, %c512] : memref<16x1152xbf16, #tpu.memory_space<vmem>>, vector<16x128xbf16>
    tpu.vector_store %arg7[%c0_8, %c512], %14 {strides = array<i32>} : memref<16x1152xbf16, #tpu.memory_space<vmem>>, vector<16x128xbf16>,
    %16 = vector.extract_strided_slice %0 {offsets = [0, 1, 2, 0], sizes = [1, 4, 4, 128], strides = [1, 1, 1, 1]} : vector<1x6x6x128xbf16> to vector<1x4x4x128xbf16>
    %17 = vector.shape_cast %16 : vector<1x4x4x128xbf16> to vector<16x128xbf16>
    %c0_9 = arith.constant 0 : index
    %c640 = arith.constant 640 : index
    %18 = vector.load %arg7[%c0_9, %c640] : memref<16x1152xbf16, #tpu.memory_space<vmem>>, vector<16x128xbf16>
    tpu.vector_store %arg7[%c0_9, %c640], %17 {strides = array<i32>} : memref<16x1152xbf16, #tpu.memory_space<vmem>>, vector<16x128xbf16>,
    %19 = vector.extract_strided_slice %0 {offsets = [0, 2, 0, 0], sizes = [1, 4, 4, 128], strides = [1, 1, 1, 1]} : vector<1x6x6x128xbf16> to vector<1x4x4x128xbf16>
    %20 = vector.shape_cast %19 : vector<1x4x4x128xbf16> to vector<16x128xbf16>
    %c0_10 = arith.constant 0 : index
    %c768 = arith.constant 768 : index
    %21 = vector.load %arg7[%c0_10, %c768] : memref<16x1152xbf16, #tpu.memory_space<vmem>>, vector<16x128xbf16>
    tpu.vector_store %arg7[%c0_10, %c768], %20 {strides = array<i32>} : memref<16x1152xbf16, #tpu.memory_space<vmem>>, vector<16x128xbf16>,
    %22 = vector.extract_strided_slice %0 {offsets = [0, 2, 1, 0], sizes = [1, 4, 4, 128], strides = [1, 1, 1, 1]} : vector<1x6x6x128xbf16> to vector<1x4x4x128xbf16>
    %23 = vector.shape_cast %22 : vector<1x4x4x128xbf16> to vector<16x128xbf16>
    %c0_11 = arith.constant 0 : index
    %c896 = arith.constant 896 : index
    %24 = vector.load %arg7[%c0_11, %c896] : memref<16x1152xbf16, #tpu.memory_space<vmem>>, vector<16x128xbf16>
    tpu.vector_store %arg7[%c0_11, %c896], %23 {strides = array<i32>} : memref<16x1152xbf16, #tpu.memory_space<vmem>>, vector<16x128xbf16>,
    %25 = vector.extract_strided_slice %0 {offsets = [0, 2, 2, 0], sizes = [1, 4, 4, 128], strides = [1, 1, 1, 1]} : vector<1x6x6x128xbf16> to vector<1x4x4x128xbf16>
    %26 = vector.shape_cast %25 : vector<1x4x4x128xbf16> to vector<16x128xbf16>
    %c0_12 = arith.constant 0 : index
    %c1024 = arith.constant 1024 : index
    %27 = vector.load %arg7[%c0_12, %c1024] : memref<16x1152xbf16, #tpu.memory_space<vmem>>, vector<16x128xbf16>
    tpu.vector_store %arg7[%c0_12, %c1024], %26 {strides = array<i32>} : memref<16x1152xbf16, #tpu.memory_space<vmem>>, vector<16x128xbf16>,
    %c0_13 = arith.constant 0 : index
    %c0_14 = arith.constant 0 : index
    %28 = vector.load %arg7[%c0_13, %c0_14] : memref<16x1152xbf16, #tpu.memory_space<vmem>>, vector<16x1152xbf16>
    %c0_15 = arith.constant 0 : index
    %c0_16 = arith.constant 0 : index
    %29 = vector.load %arg2[%c0_15, %c0_16] : memref<1152x256xbf16, #tpu.memory_space<vmem>>, vector<1152x256xbf16>
    %cst = arith.constant dense<0.000000e+00> : vector<16x256xf32>
    %30 = tpu.matmul %28, %29, %cst {dimension_numbers = #tpu.dot_dimension_numbers<[1], [0], [0], [1], [0, 0, 1, 1], [], []>} : vector<16x1152xbf16>, vector<1152x256xbf16>, vector<16x256xf32> -> vector<16x256xf32>
    %c0_17 = arith.constant 0 : index
    %c0_18 = arith.constant 0 : index
    %31 = vector.load %arg3[%c0_17, %c0_18] : memref<1x256xf32, #tpu.memory_space<vmem>>, vector<1x256xf32>
    %32 = vector.broadcast %31 : vector<1x256xf32> to vector<16x256xf32>
    %33 = arith.mulf %30, %32 : vector<16x256xf32>
    %c0_19 = arith.constant 0 : index
    %c0_20 = arith.constant 0 : index
    %34 = vector.load %arg4[%c0_19, %c0_20] : memref<1x256xf32, #tpu.memory_space<vmem>>, vector<1x256xf32>
    %35 = vector.broadcast %34 : vector<1x256xf32> to vector<16x256xf32>
    %36 = arith.addf %33, %35 : vector<16x256xf32>
    %cst_21 = arith.constant 0.000000e+00 : f32
    %37 = vector.broadcast %cst_21 : f32 to vector<16x256xf32>
    %38 = arith.maximumf %36, %37 : vector<16x256xf32>
    %39 = vector.shape_cast %38 : vector<16x256xf32> to vector<1x4x4x256xf32>
    %c0_22 = arith.constant 0 : index
    %c0_23 = arith.constant 0 : index
    %c0_24 = arith.constant 0 : index
    %c0_25 = arith.constant 0 : index
    %40 = vector.load %arg5[%c0_22, %c0_23, %c0_24, %c0_25] : memref<1x4x4x256xf32, #tpu.memory_space<vmem>>, vector<1x4x4x256xf32>
    tpu.vector_store %arg5[%c0_22, %c0_23, %c0_24, %c0_25], %39 {strides = array<i32>} : memref<1x4x4x256xf32, #tpu.memory_space<vmem>>, vector<1x4x4x256xf32>,
    %41 = vector.shape_cast %38 : vector<16x256xf32> to vector<4x2x2x256xf32>
    %42 = vector.extract_strided_slice %41 {offsets = [0, 0, 0, 0], sizes = [4, 2, 1, 256], strides = [1, 1, 1, 1]} : vector<4x2x2x256xf32> to vector<4x2x1x256xf32>
    %43 = vector.shape_cast %42 : vector<4x2x1x256xf32> to vector<4x2x256xf32>
    %44 = vector.extract_strided_slice %41 {offsets = [0, 0, 1, 0], sizes = [4, 2, 1, 256], strides = [1, 1, 1, 1]} : vector<4x2x2x256xf32> to vector<4x2x1x256xf32>
    %45 = vector.shape_cast %44 : vector<4x2x1x256xf32> to vector<4x2x256xf32>
    %46 = arith.maximumf %43, %45 : vector<4x2x256xf32>
    %47 = vector.shape_cast %46 : vector<4x2x256xf32> to vector<2x2x2x256xf32>
    %48 = vector.extract_strided_slice %47 {offsets = [0, 0, 0, 0], sizes = [2, 1, 2, 256], strides = [1, 1, 1, 1]} : vector<2x2x2x256xf32> to vector<2x1x2x256xf32>
    %49 = vector.shape_cast %48 : vector<2x1x2x256xf32> to vector<2x2x256xf32>
    %50 = vector.extract_strided_slice %47 {offsets = [0, 1, 0, 0], sizes = [2, 1, 2, 256], strides = [1, 1, 1, 1]} : vector<2x2x2x256xf32> to vector<2x1x2x256xf32>
    %51 = vector.shape_cast %50 : vector<2x1x2x256xf32> to vector<2x2x256xf32>
    %52 = arith.maximumf %49, %51 : vector<2x2x256xf32>
    %53 = vector.shape_cast %52 : vector<2x2x256xf32> to vector<1x2x2x256xf32>
    %54 = arith.truncf %53 : vector<1x2x2x256xf32> to vector<1x2x2x256xbf16>
    %cst_26 = arith.constant 0.000000e+00 : bf16
    %55 = vector.broadcast %cst_26 : bf16 to vector<1x4x4x256xbf16>
    %c0_27 = arith.constant 0 : index
    %c0_28 = arith.constant 0 : index
    %c0_29 = arith.constant 0 : index
    %c0_30 = arith.constant 0 : index
    %56 = vector.load %arg6[%c0_27, %c0_28, %c0_29, %c0_30] : memref<1x4x4x256xbf16, #tpu.memory_space<vmem>>, vector<1x4x4x256xbf16>
    tpu.vector_store %arg6[%c0_27, %c0_28, %c0_29, %c0_30], %55 {strides = array<i32>} : memref<1x4x4x256xbf16, #tpu.memory_space<vmem>>, vector<1x4x4x256xbf16>,
    %c0_31 = arith.constant 0 : index
    %c1 = arith.constant 1 : index
    %c1_32 = arith.constant 1 : index
    %c0_33 = arith.constant 0 : index
    %57 = vector.load %arg6[%c0_31, %c1, %c1_32, %c0_33] : memref<1x4x4x256xbf16, #tpu.memory_space<vmem>>, vector<1x2x2x256xbf16>
    tpu.vector_store %arg6[%c0_31, %c1, %c1_32, %c0_33], %54 {strides = array<i32>} : memref<1x4x4x256xbf16, #tpu.memory_space<vmem>>, vector<1x2x2x256xbf16>,
    return
  }
  func.func @transform_0(%arg0: i32) -> (i32, i32, i32, i32) {
    %c0_i32 = arith.constant 0 : i32
    %c0_i32_0 = arith.constant 0 : i32
    %c0_i32_1 = arith.constant 0 : i32
    %c0_i32_2 = arith.constant 0 : i32
    return %arg0, %c0_i32, %c0_i32_0, %c0_i32_1 : i32, i32, i32, i32
  }
  func.func @transform_1(%arg0: i32) -> (i32, i32) {
    %c0_i32 = arith.constant 0 : i32
    %c0_i32_0 = arith.constant 0 : i32
    %c0_i32_1 = arith.constant 0 : i32
    return %c0_i32, %c0_i32_0 : i32, i32
  }
  func.func @transform_2(%arg0: i32) -> (i32, i32) {
    %c0_i32 = arith.constant 0 : i32
    %c0_i32_0 = arith.constant 0 : i32
    %c0_i32_1 = arith.constant 0 : i32
    return %c0_i32, %c0_i32_0 : i32, i32
  }
  func.func @transform_3(%arg0: i32) -> (i32, i32) {
    %c0_i32 = arith.constant 0 : i32
    %c0_i32_0 = arith.constant 0 : i32
    %c0_i32_1 = arith.constant 0 : i32
    return %c0_i32, %c0_i32_0 : i32, i32
  }
  func.func @transform_4(%arg0: i32) -> (i32, i32, i32, i32) {
    %c0_i32 = arith.constant 0 : i32
    %c0_i32_0 = arith.constant 0 : i32
    %c0_i32_1 = arith.constant 0 : i32
    %c0_i32_2 = arith.constant 0 : i32
    return %arg0, %c0_i32, %c0_i32_0, %c0_i32_1 : i32, i32, i32, i32
  }
  func.func @transform_5(%arg0: i32) -> (i32, i32, i32, i32) {
    %c0_i32 = arith.constant 0 : i32
    %c0_i32_0 = arith.constant 0 : i32
    %c0_i32_1 = arith.constant 0 : i32
    %c0_i32_2 = arith.constant 0 : i32
    return %arg0, %c0_i32, %c0_i32_0, %c0_i32_1 : i32, i32, i32, i32
  }
}

module attributes {stable_mosaic.version = 11 : i64} {
  func.func @_conv_avg_fc_kernel(%arg0: i32, %arg1: memref<1x4x4x256xbf16, #tpu.memory_space<vmem>>, %arg2: memref<2304x512xbf16, #tpu.memory_space<vmem>>, %arg3: memref<1x512xf32, #tpu.memory_space<vmem>>, %arg4: memref<1x512xf32, #tpu.memory_space<vmem>>, %arg5: memref<512x128xbf16, #tpu.memory_space<vmem>>, %arg6: memref<1x128xf32, #tpu.memory_space<vmem>>, %arg7: memref<1x1x128xf32, #tpu.memory_space<vmem>>, %arg8: memref<4x2304xbf16, #tpu.memory_space<vmem>>) attributes {dimension_semantics = [#tpu.dimension_semantics<parallel>], iteration_bounds = array<i64: 2>, scalar_prefetch = 0 : i64, scratch_operands = 1 : i64, tpu.core_type = #tpu.core_type<tc>, window_params = [{transform_indices = @transform_0, window_bounds = array<i64: 1, 4, 4, 256>}, {pipeline_mode = #tpu.pipeline_mode<synchronous>, transform_indices = @transform_1, window_bounds = array<i64: 2304, 512>}, {pipeline_mode = #tpu.pipeline_mode<synchronous>, transform_indices = @transform_2, window_bounds = array<i64: 1, 512>}, {pipeline_mode = #tpu.pipeline_mode<synchronous>, transform_indices = @transform_3, window_bounds = array<i64: 1, 512>}, {pipeline_mode = #tpu.pipeline_mode<synchronous>, transform_indices = @transform_4, window_bounds = array<i64: 512, 128>}, {pipeline_mode = #tpu.pipeline_mode<synchronous>, transform_indices = @transform_5, window_bounds = array<i64: 1, 128>}, {transform_indices = @transform_6, window_bounds = array<i64: 1, 1, 128>}]} {
    %c0 = arith.constant 0 : index
    %c0_0 = arith.constant 0 : index
    %c0_1 = arith.constant 0 : index
    %c0_2 = arith.constant 0 : index
    %0 = vector.load %arg1[%c0, %c0_0, %c0_1, %c0_2] : memref<1x4x4x256xbf16, #tpu.memory_space<vmem>>, vector<1x4x4x256xbf16>
    %1 = vector.extract_strided_slice %0 {offsets = [0, 0, 0, 0], sizes = [1, 2, 2, 256], strides = [1, 1, 1, 1]} : vector<1x4x4x256xbf16> to vector<1x2x2x256xbf16>
    %2 = vector.shape_cast %1 : vector<1x2x2x256xbf16> to vector<4x256xbf16>
    %c0_3 = arith.constant 0 : index
    %c0_4 = arith.constant 0 : index
    %3 = vector.load %arg8[%c0_3, %c0_4] : memref<4x2304xbf16, #tpu.memory_space<vmem>>, vector<4x256xbf16>
    tpu.vector_store %arg8[%c0_3, %c0_4], %2 {strides = array<i32>} : memref<4x2304xbf16, #tpu.memory_space<vmem>>, vector<4x256xbf16>,
    %4 = vector.extract_strided_slice %0 {offsets = [0, 0, 1, 0], sizes = [1, 2, 2, 256], strides = [1, 1, 1, 1]} : vector<1x4x4x256xbf16> to vector<1x2x2x256xbf16>
    %5 = vector.shape_cast %4 : vector<1x2x2x256xbf16> to vector<4x256xbf16>
    %c0_5 = arith.constant 0 : index
    %c256 = arith.constant 256 : index
    %6 = vector.load %arg8[%c0_5, %c256] : memref<4x2304xbf16, #tpu.memory_space<vmem>>, vector<4x256xbf16>
    tpu.vector_store %arg8[%c0_5, %c256], %5 {strides = array<i32>} : memref<4x2304xbf16, #tpu.memory_space<vmem>>, vector<4x256xbf16>,
    %7 = vector.extract_strided_slice %0 {offsets = [0, 0, 2, 0], sizes = [1, 2, 2, 256], strides = [1, 1, 1, 1]} : vector<1x4x4x256xbf16> to vector<1x2x2x256xbf16>
    %8 = vector.shape_cast %7 : vector<1x2x2x256xbf16> to vector<4x256xbf16>
    %c0_6 = arith.constant 0 : index
    %c512 = arith.constant 512 : index
    %9 = vector.load %arg8[%c0_6, %c512] : memref<4x2304xbf16, #tpu.memory_space<vmem>>, vector<4x256xbf16>
    tpu.vector_store %arg8[%c0_6, %c512], %8 {strides = array<i32>} : memref<4x2304xbf16, #tpu.memory_space<vmem>>, vector<4x256xbf16>,
    %10 = vector.extract_strided_slice %0 {offsets = [0, 1, 0, 0], sizes = [1, 2, 2, 256], strides = [1, 1, 1, 1]} : vector<1x4x4x256xbf16> to vector<1x2x2x256xbf16>
    %11 = vector.shape_cast %10 : vector<1x2x2x256xbf16> to vector<4x256xbf16>
    %c0_7 = arith.constant 0 : index
    %c768 = arith.constant 768 : index
    %12 = vector.load %arg8[%c0_7, %c768] : memref<4x2304xbf16, #tpu.memory_space<vmem>>, vector<4x256xbf16>
    tpu.vector_store %arg8[%c0_7, %c768], %11 {strides = array<i32>} : memref<4x2304xbf16, #tpu.memory_space<vmem>>, vector<4x256xbf16>,
    %13 = vector.extract_strided_slice %0 {offsets = [0, 1, 1, 0], sizes = [1, 2, 2, 256], strides = [1, 1, 1, 1]} : vector<1x4x4x256xbf16> to vector<1x2x2x256xbf16>
    %14 = vector.shape_cast %13 : vector<1x2x2x256xbf16> to vector<4x256xbf16>
    %c0_8 = arith.constant 0 : index
    %c1024 = arith.constant 1024 : index
    %15 = vector.load %arg8[%c0_8, %c1024] : memref<4x2304xbf16, #tpu.memory_space<vmem>>, vector<4x256xbf16>
    tpu.vector_store %arg8[%c0_8, %c1024], %14 {strides = array<i32>} : memref<4x2304xbf16, #tpu.memory_space<vmem>>, vector<4x256xbf16>,
    %16 = vector.extract_strided_slice %0 {offsets = [0, 1, 2, 0], sizes = [1, 2, 2, 256], strides = [1, 1, 1, 1]} : vector<1x4x4x256xbf16> to vector<1x2x2x256xbf16>
    %17 = vector.shape_cast %16 : vector<1x2x2x256xbf16> to vector<4x256xbf16>
    %c0_9 = arith.constant 0 : index
    %c1280 = arith.constant 1280 : index
    %18 = vector.load %arg8[%c0_9, %c1280] : memref<4x2304xbf16, #tpu.memory_space<vmem>>, vector<4x256xbf16>
    tpu.vector_store %arg8[%c0_9, %c1280], %17 {strides = array<i32>} : memref<4x2304xbf16, #tpu.memory_space<vmem>>, vector<4x256xbf16>,
    %19 = vector.extract_strided_slice %0 {offsets = [0, 2, 0, 0], sizes = [1, 2, 2, 256], strides = [1, 1, 1, 1]} : vector<1x4x4x256xbf16> to vector<1x2x2x256xbf16>
    %20 = vector.shape_cast %19 : vector<1x2x2x256xbf16> to vector<4x256xbf16>
    %c0_10 = arith.constant 0 : index
    %c1536 = arith.constant 1536 : index
    %21 = vector.load %arg8[%c0_10, %c1536] : memref<4x2304xbf16, #tpu.memory_space<vmem>>, vector<4x256xbf16>
    tpu.vector_store %arg8[%c0_10, %c1536], %20 {strides = array<i32>} : memref<4x2304xbf16, #tpu.memory_space<vmem>>, vector<4x256xbf16>,
    %22 = vector.extract_strided_slice %0 {offsets = [0, 2, 1, 0], sizes = [1, 2, 2, 256], strides = [1, 1, 1, 1]} : vector<1x4x4x256xbf16> to vector<1x2x2x256xbf16>
    %23 = vector.shape_cast %22 : vector<1x2x2x256xbf16> to vector<4x256xbf16>
    %c0_11 = arith.constant 0 : index
    %c1792 = arith.constant 1792 : index
    %24 = vector.load %arg8[%c0_11, %c1792] : memref<4x2304xbf16, #tpu.memory_space<vmem>>, vector<4x256xbf16>
    tpu.vector_store %arg8[%c0_11, %c1792], %23 {strides = array<i32>} : memref<4x2304xbf16, #tpu.memory_space<vmem>>, vector<4x256xbf16>,
    %25 = vector.extract_strided_slice %0 {offsets = [0, 2, 2, 0], sizes = [1, 2, 2, 256], strides = [1, 1, 1, 1]} : vector<1x4x4x256xbf16> to vector<1x2x2x256xbf16>
    %26 = vector.shape_cast %25 : vector<1x2x2x256xbf16> to vector<4x256xbf16>
    %c0_12 = arith.constant 0 : index
    %c2048 = arith.constant 2048 : index
    %27 = vector.load %arg8[%c0_12, %c2048] : memref<4x2304xbf16, #tpu.memory_space<vmem>>, vector<4x256xbf16>
    tpu.vector_store %arg8[%c0_12, %c2048], %26 {strides = array<i32>} : memref<4x2304xbf16, #tpu.memory_space<vmem>>, vector<4x256xbf16>,
    %c0_13 = arith.constant 0 : index
    %c0_14 = arith.constant 0 : index
    %28 = vector.load %arg8[%c0_13, %c0_14] : memref<4x2304xbf16, #tpu.memory_space<vmem>>, vector<4x2304xbf16>
    %c0_15 = arith.constant 0 : index
    %c0_16 = arith.constant 0 : index
    %29 = vector.load %arg2[%c0_15, %c0_16] : memref<2304x512xbf16, #tpu.memory_space<vmem>>, vector<2304x512xbf16>
    %cst = arith.constant dense<0.000000e+00> : vector<4x512xf32>
    %30 = tpu.matmul %28, %29, %cst {dimension_numbers = #tpu.dot_dimension_numbers<[1], [0], [0], [1], [0, 0, 1, 1], [], []>} : vector<4x2304xbf16>, vector<2304x512xbf16>, vector<4x512xf32> -> vector<4x512xf32>
    %c0_17 = arith.constant 0 : index
    %c0_18 = arith.constant 0 : index
    %31 = vector.load %arg3[%c0_17, %c0_18] : memref<1x512xf32, #tpu.memory_space<vmem>>, vector<1x512xf32>
    %32 = vector.broadcast %31 : vector<1x512xf32> to vector<4x512xf32>
    %33 = arith.mulf %30, %32 : vector<4x512xf32>
    %c0_19 = arith.constant 0 : index
    %c0_20 = arith.constant 0 : index
    %34 = vector.load %arg4[%c0_19, %c0_20] : memref<1x512xf32, #tpu.memory_space<vmem>>, vector<1x512xf32>
    %35 = vector.broadcast %34 : vector<1x512xf32> to vector<4x512xf32>
    %36 = arith.addf %33, %35 : vector<4x512xf32>
    %cst_21 = arith.constant 0.000000e+00 : f32
    %37 = vector.broadcast %cst_21 : f32 to vector<4x512xf32>
    %38 = arith.maximumf %36, %37 : vector<4x512xf32>
    %39 = vector.shape_cast %38 : vector<4x512xf32> to vector<1x4x512xf32>
    %cst_22 = arith.constant dense<0.000000e+00> : vector<1x512xf32>
    %40 = vector.multi_reduction <add>, %39, %cst_22 [1] : vector<1x4x512xf32> to vector<1x512xf32>
    %cst_23 = arith.constant 4.000000e+00 : f32
    %41 = vector.broadcast %cst_23 : f32 to vector<1x512xf32>
    %42 = arith.divf %40, %41 : vector<1x512xf32>
    %43 = arith.truncf %42 : vector<1x512xf32> to vector<1x512xbf16>
    %c0_24 = arith.constant 0 : index
    %c0_25 = arith.constant 0 : index
    %44 = vector.load %arg5[%c0_24, %c0_25] : memref<512x128xbf16, #tpu.memory_space<vmem>>, vector<512x128xbf16>
    %cst_26 = arith.constant dense<0.000000e+00> : vector<1x128xf32>
    %45 = tpu.matmul %43, %44, %cst_26 {dimension_numbers = #tpu.dot_dimension_numbers<[1], [0], [0], [1], [0, 0, 1, 1], [], []>} : vector<1x512xbf16>, vector<512x128xbf16>, vector<1x128xf32> -> vector<1x128xf32>
    %c0_27 = arith.constant 0 : index
    %c0_28 = arith.constant 0 : index
    %46 = vector.load %arg6[%c0_27, %c0_28] : memref<1x128xf32, #tpu.memory_space<vmem>>, vector<1x128xf32>
    %47 = arith.addf %45, %46 : vector<1x128xf32>
    %48 = vector.shape_cast %47 : vector<1x128xf32> to vector<1x1x128xf32>
    %c0_29 = arith.constant 0 : index
    %c0_30 = arith.constant 0 : index
    %c0_31 = arith.constant 0 : index
    %49 = vector.load %arg7[%c0_29, %c0_30, %c0_31] : memref<1x1x128xf32, #tpu.memory_space<vmem>>, vector<1x1x128xf32>
    tpu.vector_store %arg7[%c0_29, %c0_30, %c0_31], %48 {strides = array<i32>} : memref<1x1x128xf32, #tpu.memory_space<vmem>>, vector<1x1x128xf32>,
    return
  }
  func.func @transform_0(%arg0: i32) -> (i32, i32, i32, i32) {
    %c0_i32 = arith.constant 0 : i32
    %c0_i32_0 = arith.constant 0 : i32
    %c0_i32_1 = arith.constant 0 : i32
    %c0_i32_2 = arith.constant 0 : i32
    return %arg0, %c0_i32, %c0_i32_0, %c0_i32_1 : i32, i32, i32, i32
  }
  func.func @transform_1(%arg0: i32) -> (i32, i32) {
    %c0_i32 = arith.constant 0 : i32
    %c0_i32_0 = arith.constant 0 : i32
    %c0_i32_1 = arith.constant 0 : i32
    return %c0_i32, %c0_i32_0 : i32, i32
  }
  func.func @transform_2(%arg0: i32) -> (i32, i32) {
    %c0_i32 = arith.constant 0 : i32
    %c0_i32_0 = arith.constant 0 : i32
    %c0_i32_1 = arith.constant 0 : i32
    return %c0_i32, %c0_i32_0 : i32, i32
  }
  func.func @transform_3(%arg0: i32) -> (i32, i32) {
    %c0_i32 = arith.constant 0 : i32
    %c0_i32_0 = arith.constant 0 : i32
    %c0_i32_1 = arith.constant 0 : i32
    return %c0_i32, %c0_i32_0 : i32, i32
  }
  func.func @transform_4(%arg0: i32) -> (i32, i32) {
    %c0_i32 = arith.constant 0 : i32
    %c0_i32_0 = arith.constant 0 : i32
    %c0_i32_1 = arith.constant 0 : i32
    return %c0_i32, %c0_i32_0 : i32, i32
  }
  func.func @transform_5(%arg0: i32) -> (i32, i32) {
    %c0_i32 = arith.constant 0 : i32
    %c0_i32_0 = arith.constant 0 : i32
    %c0_i32_1 = arith.constant 0 : i32
    return %c0_i32, %c0_i32_0 : i32, i32
  }
  func.func @transform_6(%arg0: i32) -> (i32, i32, i32) {
    %c0_i32 = arith.constant 0 : i32
    %c0_i32_0 = arith.constant 0 : i32
    %c0_i32_1 = arith.constant 0 : i32
    return %arg0, %c0_i32, %c0_i32_0 : i32, i32, i32
  }
}

</mosaic_0001>

<bundles_post_ra>
// kernel: vgg_small_forward.5
= control target key start
LH: loop header
LB: loop body
LE: loop exit
PB: predicated region body
PF: predicated region fallthrough
CT: control target
= control target key end

     0   :  { %11 = vsyncpa [#allocation4], 0  ;;  %s2851_s0 = inlined_call_operand.vmem [shape: bf16[2,10,10,64], index: 0, kind: input, shape index: {}]   ;;  %s2852_s1 = inlined_call_operand.vmem [shape: bf16[576,128], index: 1, kind: input, shape index: {}]   ;;  %s2853_s2 = inlined_call_operand.vmem [shape: f32[1,128], index: 2, kind: input, shape index: {}]   ;;  %s2854_s3 = inlined_call_operand.vmem [shape: f32[1,128], index: 3, kind: input, shape index: {}]   ;;  %s2855_s4 = inlined_call_operand.hbm [shape: f32[2,8,8,128], index: 4, kind: output, shape index: {0}]   ;;  %s2856_s5 = inlined_call_operand.vmem [shape: bf16[2,6,6,128], index: 5, kind: output, shape index: {1}]  }
   0x1   :  { %13 = vsyncpa [#allocation4 + $0x1], 0  ;;  %s2203_s18 = smov 0   ;;  %s2205_s19 = smov 0  }
   0x2   :  { %s2207_s20 = smov 0   ;;  %s2209_s21 = smov 0  }
   0x3 LB: > { %s2224_s22 = sadd.s32 4294967295, %s2165_s21   ;;  %s1741_s23 = sadd.s32 4294967294, %s2165_s21   ;;  %s2165_s21 = sphi %s2209_s21, %s2868_s21   ;;  %s2161_s20 = sphi %s2207_s20, %s2867_s20   ;;  %s2157_s19 = sphi %s2205_s19, %s2866_s19   ;;  %s2153_s18 = sphi %s2203_s18, %s2865_s18  }
   0x4   : > { %s2228_s24 = sadd.s32 1, %s2165_s21   ;;  %s115_s25 = sadd.s32 1, %s2161_s20 }
   0x5   : > { %s112_s26 = ssub.s32 %s2165_s21, %s2228_s24  ;;  %p125_p0 = scmp.ne.s32.totalorder %s2161_s20, %s2157_s19 }
   0x6   : > { %p113_p1 = scmp.eq.s32.totalorder %s112_s26, 0  ;;  %p126_p2 = scmp.eq.s32.totalorder %s2224_s22, 1 }
   0x7   : > { %p131_p3 = scmp.ne.s32.totalorder %s2157_s19, %s2153_s18  ;;  %p132_p4 = scmp.eq.s32.totalorder %s1741_s23, 1 }
   0x8   : > { %s2239_s27 = scalar_select %p113_p1, %s2161_s20, %s115_s25  }
   0x9   : > { %p2241_p5 = por %p126_p2, %p125_p0  ;;  %p2245_p6 = por %p132_p4, %p131_p3 }
   0xa   : > { %p1744_p7 = scmp.ge.s32.totalorder %s2165_s21, 1  ;;  %p193_p8 = scmp.lt.s32.totalorder %s2165_s21, 3 }
   0xc   : > { %p194_p9 = pnand %p1744_p7, %p193_p8 }
   0xd   : > { %p226_p10 = scmp.lt.s32.totalorder (!%p194_p9), %s2224_s22, 1  ;;  %v2067_v0 = vld [vmem:[%s2852_s1 + $0x40] sm:$0xff] (!%p194_p9)   ;;  %vm286_vm0 = vsmask.f32 (!%p194_p9), 3328  ;;  %vm287_vm1 = vsmask.f32 (!%p194_p9), 7440 }
   0xe   : > { %197 = sbr.rel (%p194_p9) target bundleno = 491 (0x1eb), region = 36  ;;  %1905 = vmatprep.subr.bf16.mxu0 (!%p194_p9), %v2067_v0  ;;  %v2068_v1 = vld [vmem:[%s2852_s1 + $0xc0] sm:$0xff] (!%p194_p9)   ;;  %vm281_vm2 = vcmask (!%p194_p9), 523264   ;;  %vm438_vm3 = vcmask (!%p194_p9), 1042432   ;;  %vm439_vm4 = vcmask (!%p194_p9), 1046532   ;;  %v2071_v34 = vld [vmem:[%s2852_s1 + $0x48] sm:$0xff] (!%p194_p9)   ;;  %vm2320_vm5 = vmor (!%p194_p9), %vm286_vm0, %vm287_vm1 }
   0xf   : > { %v2069_v2 = vld [vmem:[%s2852_s1] sm:$0xff] (!%p194_p9)   ;;  %1945 = vmatprep.subr.bf16.mxu1 (!%p194_p9), %v2068_v1  ;;  %v2072_v58 = vld [vmem:[%s2852_s1 + $0xc8] sm:$0xff] (!%p194_p9)   ;;  %vm2351_vm6 = vmor (!%p194_p9), %vm438_vm3, %vm439_vm4  ;;  %s2167_s6 = smov (!%p194_p9), 64   ;;  %vm425_vm7 = vcmask (!%p194_p9), 1048064   ;;  %vm1580_vm8 = vcmask (!%p194_p9), 1042434   ;;  %vm1583_vm9 = vcmask (!%p194_p9), 1043459  }
  0x10   : > { %v2070_v3 = vld [vmem:[%s2852_s1 + $0x80] sm:$0xff] (!%p194_p9)   ;;  %1906 = vmatpush3.bf16.msra.mxu0 (!%p194_p9), %v2069_v2  ;;  %vm1618_vm10 = vsmask.f32 (!%p194_p9), 2306  ;;  %vm1586_vm11 = vcmask (!%p194_p9), 1044484   ;;  %s1904_s30 = sshll.u32 (!%p194_p9), %s2224_s22, 10  ;;  %s2170_s13 = smov (!%p194_p9), [#allocation3]  }
  0x11   : > { %1946 = vmatpush3.bf16.msra.mxu1 (!%p194_p9), %v2070_v3  ;;  %1907 = vmatprep.subr.bf16.mxu0 (!%p194_p9), %v2071_v34  ;;  %v2075_v34 = vld [vmem:[%s2852_s1 + $0x50] sm:$0xff] (!%p194_p9)   ;;  %s2748_s11 = scalar_lea.hbm (!%p194_p9), %s2855_s4, %s1904_s30 }
  0x12   : > { %1947 = vmatprep.subr.bf16.mxu1 (!%p194_p9), %v2072_v58 }
  0x15   : > { %s2256_s7 = scalar_select %p226_p10, %s2224_s22, 1 }
  0x17   : > { %s2017_s8 = smul.u32 80, %s2256_s7 }
  0x18   : > { %s2018_s12 = smul.u32 24, %s2256_s7  ;;  %s216_s7 = sand.u32 1, %s2157_s19  }
  0x19   : > { %s2268_s15 = scalar_lea.vmem %s2851_s0, %s2017_s8  ;;  %s1745_s25 = sshll.u32 %s216_s7, 6 }
  0x1a   : > { %v2274_v4 = vld [vmem:[%s2268_s15 + $0x10] sm:$0xf]  ;;  %v2277_v5 = vld [vmem:[%s2268_s15 + $0x14] sm:$0x1]  ;;  %v2280_v6 = vld [vmem:[%s2268_s15 + $0x18] sm:$0xf]  ;;  %s2646_s14 = scalar_lea.vmem %s2856_s5, %s2018_s12 }
  0x1b   : > { %v2283_v7 = vld [vmem:[%s2268_s15 + $0x1c] sm:$0x1]  ;;  %v2286_v8 = vld [vmem:[%s2268_s15 + $0x20] sm:$0xf]  ;;  %v2289_v9 = vld [vmem:[%s2268_s15 + $0x24] sm:$0x1]  ;;  %v1749_v10 = vcombine.low %v2274_v4, %v2280_v6 }
  0x1c   : > { %v318_v11 = vshrl.u32 %v2274_v4, 16  ;;  %v321_v12 = vshll.u32 %v2274_v4, 16  ;;  %v327_v13 = vshll.u32 %v2277_v5, 16  ;;  %v332_v14 = vshrl.u32 %v2280_v6, 16  ;;  %v2298_v15 = vld [vmem:[%s2268_s15] sm:$0xf] }
  0x1d   : > { %v335_v16 = vshll.u32 %v2280_v6, 16  ;;  %v341_v17 = vshll.u32 %v2283_v7, 16  ;;  %v346_v18 = vshrl.u32 %v2286_v8, 16  ;;  %v349_v19 = vshll.u32 %v2286_v8, 16  ;;  %v2305_v20 = vld [vmem:[%s2268_s15 + $0x4] sm:$0x1] }
  0x1e   : > { %283 = vst.msk [vmem:[#allocation2 + $0x28] sm:$0xff] %vm281_vm2, %v1749_v10  ;;  %572 = vst.msk [vmem:[#allocation2 + $0x18] sm:$0xff] %vm281_vm2, %v1749_v10  ;;  %v320_v21 = vrot.slane %v318_v11, 4  ;;  %v323_v22 = vrot.slane %v321_v12, 5  ;;  %v329_v23 = vrot.slane %v327_v13, 5  ;;  %v334_v24 = vrot.slane %v332_v14, 4 }
  0x1f   : > { %v2310_v25 = vld [vmem:[%s2268_s15 + $0x8] sm:$0xf]  ;;  %v337_v26 = vrot.slane %v335_v16, 5  ;;  %v343_v27 = vrot.slane %v341_v17, 5  ;;  %v348_v28 = vrot.slane %v346_v18, 4  ;;  %v351_v29 = vrot.slane %v349_v19, 5 }
  0x20   : > { %v324_v30 = vor.u32 %v323_v22, %v320_v21  ;;  %v355_v31 = vshll.u32 %v2289_v9, 16  ;;  %v290_v32 = vshrl.u32 %v2298_v15, 16  ;;  %v293_v33 = vshll.u32 %v2298_v15, 16  ;;  %v240_v38 = vld [vmem:[%s2268_s15 + $0xc] sm:$0x1]  ;;  %s2682_s26 = scalar_lea.vmem [#allocation3], %s1745_s25 }
  0x21   : > { %v338_v36 = vor.u32 %v337_v26, %v334_v24  ;;  %v352_v37 = vor.u32 %v351_v29, %v348_v28  ;;  %v299_v39 = vshll.u32 %v2305_v20, 16  ;;  %v304_v40 = vshrl.u32 %v2310_v25, 16  ;;  %v2342_v57 = vld [vmem:[%s2268_s15 + $0x28] sm:$0xf]  ;;  %v2356_v0 = vld [vmem:[%s2268_s15 + $0x2c] sm:$0x1] }
  0x22   : > { %v325_v41 = vrot.slane %v324_v30, 4  ;;  %v357_v42 = vrot.slane %v355_v31, 5  ;;  %v292_v43 = vrot.slane %v290_v32, 4  ;;  %v295_v44 = vrot.slane %v293_v33, 5  ;;  %v2366_v16 = vld [vmem:[%s2268_s15 + $0x30] sm:$0xf] }
  0x23   : > { %v339_v45 = vrot.slane %v338_v36, 4  ;;  %v353_v46 = vrot.slane %v352_v37, 4  ;;  %v301_v47 = vrot.slane %v299_v39, 5  ;;  %v306_v48 = vrot.slane %v304_v40, 4  ;;  %v2377_v21 = vld [vmem:[%s2268_s15 + $0x34] sm:$0x1] }
  0x24   : > { %v2329_v49 = vsel %vm2320_vm5, %v325_v41, %v329_v23  ;;  %v296_v50 = vor.u32 %v295_v44, %v292_v43  ;;  %v307_v51 = vshll.u32 %v2310_v25, 16  ;;  %v313_v52 = vshll.u32 %v240_v38, 16  ;;  %v2073_v22 = vld [vmem:[%s2852_s1 + $0x8] sm:$0xff]   ;;  %v2397_v33 = vld [vmem:[%s2268_s15 + $0x3c] sm:$0x1]  ;;  %v2076_v39 = vld [vmem:[%s2852_s1 + $0xd0] sm:$0xff]  }
  0x25   : > { %v344_v53 = vsel %vm2320_vm5, %v339_v45, %v343_v27  ;;  %v2336_v54 = vsel %vm2320_vm5, %v353_v46, %v357_v42  ;;  %v443_v55 = vrot.slane %v2305_v20, 5  ;;  %v1768_v56 = vcombine.low %v2310_v25, %v2274_v4  ;;  %v2074_v28 = vld [vmem:[%s2852_s1 + $0x88] sm:$0xff]   ;;  %1908 = vmatpush3.bf16.msra.mxu0 %v2073_v22  ;;  %s1651_s8 = sshll.u32 %s2682_s26, 4  ;;  %s2765_s22 = scalar_lea.sflag [#allocation4], %s216_s7  ;;  %s2750_s8 = int_to_ptr.vmem [resolvable:$true] %s1651_s8 }
  0x26   : > { %v1753_v59 = vcombine.low %v2329_v49, %v344_v53  ;;  %v1773_v60 = vcombine.low %v344_v53, %v2336_v54  ;;  %v297_v61 = vrot.slane %v296_v50, 4  ;;  %v309_v62 = vrot.slane %v307_v51, 5  ;;  %1948 = vmatpush3.bf16.msra.mxu1 %v2074_v28  ;;  %1909 = vmatprep.subr.bf16.mxu0 %v2075_v34  ;;  %v2435_v53 = vld [vmem:[%s2268_s15 + $0x40] sm:$0xf]  ;;  %v2089_v20 = vld [vmem:[%s2852_s1 + $0x28] sm:$0xff]   ;;  %s2103_s12 = scalar_lea.vmem %s2750_s8, 1024 }
  0x27   : > { %v315_v1 = vrot.slane %v313_v52, 5  ;;  %v1757_v2 = vrot.slane %v2310_v25, 9  ;;  %v447_v3 = vrot.slane %v240_v38, 5  ;;  %v1758_v10 = vrot.slane %v2274_v4, 9  ;;  %1949 = vmatprep.subr.bf16.mxu1 %v2076_v39  ;;  %p2104_p11 = scmp.ne.s32.totalorder %s2750_s8, %s2103_s12 }
  0x28   : > { %415 = vrot.lane.b32.xlu0 %v1753_v59, %s2167_s6  ;;  %v302_v11 = vsel %vm2320_vm5, %v297_v61, %v301_v47  ;;  %v310_v12 = vor.u32 %v309_v62, %v306_v48  ;;  %v451_v13 = vrot.slane %v2277_v5, 5  ;;  %v360_v14 = vshrl.u32 %v2342_v57, 16  ;;  %539 = vst.msk [vmem:[#allocation2 + $0x38] sm:$0xff] %vm281_vm2, %v1773_v60  ;;  %v2380_v5 = vld [vmem:[%s2268_s15 + $0x38] sm:$0xf]  ;;  %v2078_v48 = vld [vmem:[%s2852_s1 + $0x90] sm:$0xff]  }
  0x29   : > { %v2371_v17 = vsel %vm2351_vm6, %v1757_v2, %v447_v3  ;;  %v363_v4 = vshll.u32 %v2342_v57, 16  ;;  %v369_v18 = vshll.u32 %v2356_v0, 16  ;;  %v1759_v19 = vrot.slane %v2280_v6, 9  ;;  %v2443_v62 = vld [vmem:[%s2268_s15 + $0x44] sm:$0x1]  ;;  %p2105_p12 = pnand %p2104_p11, %p2241_p5 }
  0x2a   : > { %v311_v23 = vrot.slane %v310_v12, 4  ;;  %v2387_v24 = vsel %vm2351_vm6, %v1758_v10, %v451_v13  ;;  %v362_v26 = vrot.slane %v360_v14, 4  ;;  %v455_v27 = vrot.slane %v2283_v7, 5  ;;  %1950 = vmatpush3.bf16.msra.mxu1 %v2078_v48 }
  0x2b   : > { %v1777_v29 = vcombine.low %v2371_v17, %v2387_v24  ;;  %v365_v30 = vrot.slane %v363_v4, 5  ;;  %v371_v31 = vrot.slane %v369_v18, 5  ;;  %v1760_v32 = vrot.slane %v2286_v8, 9  ;;  %p2106_p13 = pneg %p2105_p12 }
  0x2c   : > { %v316_v7 = vsel %vm2320_vm5, %v311_v23, %v315_v1  ;;  %499 = vrot.lane.b32.xlu0 %v1768_v56, %s2167_s6  ;;  %v2407_v36 = vsel %vm2351_vm6, %v1759_v19, %v455_v27  ;;  %v459_v37 = vrot.slane %v2289_v9, 5  ;;  %v1769_v38 = vcombine.low %v2280_v6, %v2286_v8  ;;  %v2077_v9 = vld [vmem:[%s2852_s1 + $0x10] sm:$0xff]   ;;  %v2079_v56 = vld [vmem:[%s2852_s1 + $0x58] sm:$0xff]   ;;  %v2446_v1 = vld [vmem:[%s2268_s15 + $0x48] sm:$0xf] }
  0x2d   : > { %v1752_v40 = vcombine.low %v302_v11, %v316_v7  ;;  %v1772_v41 = vcombine.low %v316_v7, %v2329_v49  ;;  %v366_v42 = vor.u32 %v365_v30, %v362_v26  ;;  %v374_v43 = vshrl.u32 %v2366_v16, 16  ;;  %1910 = vmatpush3.bf16.msra.mxu0 %v2077_v9  ;;  %v256_v26 = vld [vmem:[%s2268_s15 + $0x4c] sm:$0x1]  ;;  %v2080_v27 = vld [vmem:[%s2852_s1 + $0xd8] sm:$0xff]   ;;  %s2107_s15 = sshll.u32 %s2170_s13, 4  ;;  %s2108_s15 = int_to_ptr.vmem [resolvable:$false] %s2107_s15 }
  0x2e   : > { %v2422_v44 = vsel %vm2351_vm6, %v1760_v32, %v459_v37  ;;  %v377_v45 = vshll.u32 %v2366_v16, 16  ;;  %v383_v46 = vshll.u32 %v2377_v21, 16  ;;  %v388_v47 = vshrl.u32 %v2380_v5, 16  ;;  %1911 = vmatprep.subr.bf16.mxu0 %v2079_v56  ;;  %v2082_v30 = vld [vmem:[%s2852_s1 + $0x98] sm:$0xff]   ;;  %1951 = vmatprep.subr.bf16.mxu1 %v2080_v27  ;;  %v2083_v37 = vld [vmem:[%s2852_s1 + $0x60] sm:$0xff]   ;;  %s2109_s16 = scalar_lea.vmem %s2108_s15, 2048  ;;  %p2110_p0 = scmp.lt.s32.totalorder %s2750_s8, %s2108_s15 }
  0x2f   : > { %413 = vrot.lane.b32.xlu1 %v1752_v40, %s2167_s6  ;;  %v367_v49 = vrot.slane %v366_v42, 4  ;;  %v1778_v50 = vcombine.low %v2407_v36, %v2422_v44  ;;  %v376_v51 = vrot.slane %v374_v43, 4  ;;  %v391_v52 = vshll.u32 %v2380_v5, 16  ;;  %538 = vst.msk [vmem:[#allocation2 + $0x10] sm:$0xff] %vm281_vm2, %v1772_v41  ;;  %1952 = vmatpush3.bf16.msra.mxu1 %v2082_v30  ;;  %p2111_p1 = scmp.lt.s32.totalorder %s2109_s16, %s2103_s12 }
  0x30   : > { %v379_v58 = vrot.slane %v377_v45, 5  ;;  %v385_v59 = vrot.slane %v383_v46, 5  ;;  %v390_v60 = vrot.slane %v388_v47, 4  ;;  %v397_v61 = vshll.u32 %v2397_v33, 16  ;;  %v2084_v47 = vld [vmem:[%s2852_s1 + $0xe0] sm:$0xff]  }
  0x31   : > { %v2450_v2 = vsel %vm2320_vm5, %v367_v49, %v371_v31  ;;  %v393_v3 = vrot.slane %v391_v52, 5  ;;  %v1770_v10 = vcombine.low %v2342_v57, %v2366_v16  ;;  %v1761_v11 = vrot.slane %v2342_v57, 9  ;;  %1953 = vmatprep.subr.bf16.mxu1 %v2084_v47  ;;  %p2112_p2 = por %p2111_p1, %p2110_p0 }
  0x32   : > { %v1754_v12 = vcombine.low %v2336_v54, %v2450_v2  ;;  %v380_v13 = vor.u32 %v379_v58, %v376_v51  ;;  %v399_v14 = vrot.slane %v397_v61, 5  ;;  %v463_v4 = vrot.slane %v2356_v0, 5  ;;  %v2081_v54 = vld [vmem:[%s2852_s1 + $0x18] sm:$0xff]  }
  0x33   : > { %552 = vrot.lane.b32.xlu1 %v1777_v29, %s2167_s6  ;;  %v394_v18 = vor.u32 %v393_v3, %v390_v60  ;;  %v1762_v19 = vrot.slane %v2366_v16, 9  ;;  %v467_v22 = vrot.slane %v2377_v21, 5  ;;  %v1771_v23 = vcombine.low %v2380_v5, %v2435_v53  ;;  %1912 = vmatpush3.bf16.msra.mxu0 %v2081_v54  ;;  %p2113_p3 = pnand %p2112_p2, %p2106_p13 }
  0x34   : > { %417 = vrot.lane.b32.xlu0 %v1754_v12, %s2167_s6  ;;  %v381_v0 = vrot.slane %v380_v13, 4  ;;  %v464_v28 = vsel %vm2351_vm6, %v1761_v11, %v463_v4  ;;  %v516_v21 = vshrl.u32 %v2435_v53, 16  ;;  %v519_v29 = vshll.u32 %v2435_v53, 16  ;;  %1913 = vmatprep.subr.bf16.mxu0 %v2083_v37 }
  0x35   : > { %v395_v31 = vrot.slane %v394_v18, 4  ;;  %v2480_v32 = vsel %vm2351_vm6, %v1762_v19, %v467_v22  ;;  %v525_v34 = vshll.u32 %v2443_v62, 16  ;;  %v577_v7 = vshrl.u32 %v2446_v1, 16  ;;  %v2086_v18 = vld [vmem:[%s2852_s1 + $0xa0] sm:$0xff]  }
  0x36   : > { %v2489_v39 = vsel %vm2320_vm5, %v381_v0, %v385_v59  ;;  %v1779_v40 = vcombine.low %v464_v28, %v2480_v32  ;;  %v518_v41 = vrot.slane %v516_v21, 4  ;;  %v521_v42 = vrot.slane %v519_v29, 5  ;;  %1954 = vmatpush3.bf16.msra.mxu1 %v2086_v18  ;;  %v2099_v29 = vld [vmem:[%s2852_s1 + $0x100] sm:$0xff]  }
  0x37   : > { %501 = vrot.lane.b32.xlu1 %v1769_v38, %s2167_s6  ;;  %v2498_v43 = vsel %vm2320_vm5, %v395_v31, %v399_v14  ;;  %v527_v9 = vrot.slane %v525_v34, 5  ;;  %v579_v45 = vrot.slane %v577_v7, 4  ;;  %v580_v46 = vshll.u32 %v2446_v1, 16 }
  0x38   : > { %554 = vrot.lane.b32.xlu0 %v1778_v50, %s2167_s6  ;;  %v1755_v48 = vcombine.low %v2489_v39, %v2498_v43  ;;  %v522_v6 = vor.u32 %v521_v42, %v518_v41  ;;  %v586_v38 = vshll.u32 %v256_v26, 16  ;;  %v1763_v49 = vrot.slane %v2380_v5, 9 }
  0x39   : > { %v582_v51 = vrot.slane %v580_v46, 5  ;;  %v471_v52 = vrot.slane %v2397_v33, 5  ;;  %v1776_v56 = vrot.slane %v2435_v53, 9  ;;  %v545_v58 = vrot.slane %v2443_v62, 5  ;;  %v2085_v33 = vld [vmem:[%s2852_s1 + $0x20] sm:$0xff]   ;;  %v2101_v46 = vld [vmem:[%s2852_s1 + $0x110] sm:$0xff]  }
  0x3a   : > { %v523_v59 = vrot.slane %v522_v6, 4  ;;  %v588_v60 = vrot.slane %v586_v38, 5  ;;  %v1783_v61 = vrot.slane %v2446_v1, 9  ;;  %v602_v50 = vrot.slane %v256_v26, 5  ;;  %1914 = vmatpush3.bf16.msra.mxu0 %v2085_v33 }
  0x3b   : > { %419 = vrot.lane.b32.xlu1 %v1755_v48, %s2167_s6  ;;  %v583_v3 = vor.u32 %v582_v51, %v579_v45  ;;  %v472_v11 = vsel %vm2351_vm6, %v1763_v49, %v471_v52  ;;  %v546_v12 = vsel %vm2351_vm6, %v1776_v56, %v545_v58  ;;  %v1748_v62 = vcombine.low %v2298_v15, %v2310_v25  ;;  %v2087_v25 = vld [vmem:[%s2852_s1 + $0x68] sm:$0xff]   ;;  %v2102_v49 = vld [vmem:[%s2852_s1 + $0x118] sm:$0xff]  }
  0x3c   : > { %503 = vrot.lane.b32.xlu0 %v1770_v10, %s2167_s6  ;;  %v528_v13 = vsel %vm2320_vm5, %v523_v59, %v527_v9  ;;  %v1780_v14 = vcombine.low %v472_v11, %v546_v12  ;;  %v603_v4 = vsel %vm2351_vm6, %v1783_v61, %v602_v50  ;;  %v1756_v19 = vrot.slane %v2298_v15, 9  ;;  %v2088_v15 = vld [vmem:[%s2852_s1 + $0xe8] sm:$0xff]   ;;  %1915 = vmatprep.subr.bf16.mxu0 %v2087_v25 }
  0x3d   : > { %v584_v22 = vrot.slane %v583_v3, 4  ;;  %v1784_v26 = vcombine.low %v546_v12, %v603_v4  ;;  %282 = vst.msk [vmem:[#allocation2] sm:$0xff] %vm281_vm2, %v1748_v62  ;;  %v1750_v10 = vcombine.low %v2286_v8, %v2342_v57  ;;  %v1765_v27 = vcombine.low %v2387_v24, %v2407_v36  ;;  %1955 = vmatprep.subr.bf16.mxu1 %v2088_v15  ;;  %v2091_v24 = vld [vmem:[%s2852_s1 + $0x70] sm:$0xff]  }
  0x3e   : > { %v444_v54 = vsel %vm2351_vm6, %v1756_v19, %v443_v55  ;;  %v1751_v0 = vcombine.low %v2366_v16, %v2380_v5  ;;  %v1766_v21 = vcombine.low %v2422_v44, %v464_v28  ;;  %v1774_v8 = vcombine.low %v2450_v2, %v2489_v39  ;;  %v2090_v16 = vld [vmem:[%s2852_s1 + $0xa8] sm:$0xff]   ;;  %1916 = vmatpush3.bf16.msra.mxu0 %v2089_v20  ;;  %v2092_v36 = vld [vmem:[%s2852_s1 + $0xf0] sm:$0xff]   ;;  %v2096_v2 = vld [vmem:[%s2852_s1 + $0xf8] sm:$0xff]  }
  0x3f   : > { %556 = vrot.lane.b32.xlu1 %v1779_v40, %s2167_s6  ;;  %v589_v57 = vsel %vm2320_vm5, %v584_v22, %v588_v60  ;;  %610 = vst.msk [vmem:[#allocation2 + $0x98] sm:$0xff] %vm281_vm2, %v1784_v26  ;;  %v1764_v55 = vcombine.low %v444_v54, %v2371_v17  ;;  %284 = vst.msk [vmem:[#allocation2 + $0x50] sm:$0xff] %vm281_vm2, %v1750_v10  ;;  %v1767_v35 = vcombine.low %v2480_v32, %v472_v11  ;;  %v2093_v44 = vld [vmem:[%s2852_s1 + $0x30] sm:$0xff]   ;;  %v2098_v28 = vld [vmem:[%s2852_s1 + $0xb8] sm:$0xff]   ;;  %v2168_v19 = vmov 0  }
  0x40   : > { %573 = vst.msk [vmem:[#allocation2 + $0x40] sm:$0xff] %vm281_vm2, %v1750_v10  ;;  %490 = vst.msk [vmem:[#allocation2 + $0x30] sm:$0xff] %vm281_vm2, %v1765_v27  ;;  %505 = vrot.lane.b32.xlu0 %v1771_v23, %s2167_s6  ;;  %v1782_v63 = vcombine.low %v528_v13, %v589_v57  ;;  %v1781_v17 = vcombine.low %v2435_v53, %v2446_v1  ;;  %v1775_v5 = vcombine.low %v2498_v43, %v528_v13  ;;  %v2094_v53 = vld [vmem:[%s2852_s1 + $0xb0] sm:$0xff]   ;;  %v2095_v1 = vld [vmem:[%s2852_s1 + $0x78] sm:$0xff]  }
  0x41   : > { %607 = vst.msk [vmem:[#allocation2 + $0x20] sm:$0xff] %vm281_vm2, %v1765_v27  ;;  %285 = vst.msk [vmem:[#allocation2 + $0x78] sm:$0xff] %vm281_vm2, %v1751_v0  ;;  %1956 = vmatpush3.bf16.msra.mxu1 %v2090_v16  ;;  %1917 = vmatprep.subr.bf16.mxu0 %v2091_v24  ;;  %v2097_v23 = vld [vmem:[%s2852_s1 + $0x38] sm:$0xff]   ;;  %v2100_v40 = vld [vmem:[%s2852_s1 + $0x108] sm:$0xff]  }
  0x42   : > { %574 = vst.msk [vmem:[#allocation2 + $0x68] sm:$0xff] %vm281_vm2, %v1751_v0  ;;  %491 = vst.msk [vmem:[#allocation2 + $0x58] sm:$0xff] %vm281_vm2, %v1766_v21  ;;  %1957 = vmatprep.subr.bf16.mxu1 %v2092_v36  ;;  %1918 = vmatpush3.bf16.msra.mxu0 %v2093_v44 }
  0x43   : > { %608 = vst.msk [vmem:[#allocation2 + $0x48] sm:$0xff] %vm281_vm2, %v1766_v21  ;;  %540 = vst.msk [vmem:[#allocation2 + $0x60] sm:$0xff] %vm281_vm2, %v1774_v8  ;;  %592 = vrot.lane.b32.xlu1 %v1782_v63, %s2167_s6  ;;  %1919 = vmatprep.subr.bf16.mxu0 %v2095_v1 }
  0x44   : > { %489 = vst.msk [vmem:[#allocation2 + $0x8] sm:$0xff] %vm281_vm2, %v1764_v55  ;;  %492 = vst.msk [vmem:[#allocation2 + $0x80] sm:$0xff] %vm281_vm2, %v1767_v35  ;;  %558 = vrot.lane.b32.xlu0 %v1780_v14, %s2167_s6 }
  0x45   : > { %609 = vst.msk [vmem:[#allocation2 + $0x70] sm:$0xff] %vm281_vm2, %v1767_v35  ;;  %575 = vst.msk [vmem:[#allocation2 + $0x90] sm:$0xff] %vm281_vm2, %v1781_v17  ;;  %1958 = vmatpush3.bf16.msra.mxu1 %v2094_v53 }
  0x46   : > { %541 = vst.msk [vmem:[#allocation2 + $0x88] sm:$0xff] %vm281_vm2, %v1775_v5  ;;  %1959 = vmatprep.subr.bf16.mxu1 %v2096_v2  ;;  %1920 = vmatpush3.bf16.msra.mxu0 %v2097_v23  ;;  %v630_v18 = vld [vmem:[#allocation2 + $0x98] sm:$0xff]  ;;  %1508 = vst [vmem:[%s2646_s14] sm:$0x7] %v2168_v19 }
  0x47   : > { %1993 = vmatprep.subr.bf16.mxu0 %v2099_v29  ;;  %1512 = vst [vmem:[%s2646_s14 + $0x10] sm:$0x7] %v2168_v19  ;;  %1513 = vst [vmem:[%s2646_s14 + $0x14] sm:$0x7] %v2168_v19 }
  0x48   : > { %v615_v33 = vld [vmem:[#allocation2 + $0x20] sm:$0xff]  ;;  %1509 = vst [vmem:[%s2646_s14 + $0x4] sm:$0x7] %v2168_v19  ;;  %1510 = vst [vmem:[%s2646_s14 + $0x8] sm:$0x7] %v2168_v19 }
  0x49   : > { %1960 = vmatpush3.bf16.msra.mxu1 %v2098_v28  ;;  %1511 = vst [vmem:[%s2646_s14 + $0xc] sm:$0x7] %v2168_v19 }
  0x4a   : > { %2009 = vmatprep.subr.bf16.mxu1 %v2099_v29  ;;  %v620_v4 = vld [vmem:[#allocation2 + $0x48] sm:$0xff] }
  0x4c   : > { %v625_v14 = vld [vmem:[#allocation2 + $0x70] sm:$0xff] }
  0x9a   : > { %v416_v30 = vpop.permute.xlu0 %415 }
  0x9b   : > { %427 = vst.msk [vmem:[#allocation2 + $0x28] sm:$0xff] %vm425_vm7, %v416_v30  ;;  %595 = vst.msk [vmem:[#allocation2 + $0x18] sm:$0xff] %vm425_vm7, %v416_v30 }
  0x9e   : > { %v500_v31 = vpop.permute.xlu0 %499 }
  0x9f   : > { %511 = vst.msk [vmem:[#allocation2 + $0x8] sm:$0xff] %vm425_vm7, %v500_v31 }
  0xa1   : > { %v414_v32 = vpop.permute.xlu1 %413 }
  0xa2   : > { %426 = vst.msk [vmem:[#allocation2] sm:$0xff] %vm425_vm7, %v414_v32  ;;  %v614_v34 = vld [vmem:[#allocation2 + $0x18] sm:$0xff]  ;;  %v616_v51 = vld [vmem:[#allocation2 + $0x28] sm:$0xff] }
  0xa3   : > { %1028 = vmatprep.mubr.bf16.mxu1 %v614_v34 }
  0xa5   : > { %v553_v7 = vpop.permute.xlu1 %552 }
  0xa6   : > { %564 = vst.msk [vmem:[#allocation2 + $0x10] sm:$0xff] %vm425_vm7, %v553_v7  ;;  %v418_v37 = vpop.permute.xlu0 %417  ;;  %v612_v39 = vld [vmem:[#allocation2 + $0x8] sm:$0xff] }
  0xa7   : > { %428 = vst.msk [vmem:[#allocation2 + $0x50] sm:$0xff] %vm425_vm7, %v418_v37  ;;  %596 = vst.msk [vmem:[#allocation2 + $0x40] sm:$0xff] %vm425_vm7, %v418_v37  ;;  %963 = vmatprep.mubr.bf16.mxu0 %v612_v39 }
  0xa9   : > { %v502_v41 = vpop.permute.xlu1 %501  ;;  %v611_v42 = vld [vmem:[#allocation2] sm:$0xff] }
  0xaa   : > { %v555_v43 = vpop.permute.xlu0 %554  ;;  %512 = vst.msk [vmem:[#allocation2 + $0x30] sm:$0xff] %vm425_vm7, %v502_v41  ;;  %964 = vmatmul.mubr.bf16.vlgmr.msra.gmra.mrb[0].mxu0 %v611_v42 }
  0xab   : > { %565 = vst.msk [vmem:[#allocation2 + $0x38] sm:$0xff] %vm425_vm7, %v555_v43  ;;  %1994 = vmatpush3.bf16.msra.mxu0 %v2099_v29 }
  0xac   : > { %1995 = vmatprep.subr.bf16.mxu0 %v2100_v40 }
  0xad   : > { %v613_v9 = vld [vmem:[#allocation2 + $0x10] sm:$0xff]  ;;  %v420_v45 = vpop.permute.xlu1 %419 }
  0xae   : > { %1029 = vmatmul.mubr.bf16.vlgmr.msra.gmra.mrb[0].mxu1 %v613_v9  ;;  %429 = vst.msk [vmem:[#allocation2 + $0x78] sm:$0xff] %vm425_vm7, %v420_v45  ;;  %597 = vst.msk [vmem:[#allocation2 + $0x68] sm:$0xff] %vm425_vm7, %v420_v45  ;;  %v619_v47 = vld [vmem:[#allocation2 + $0x40] sm:$0xff]  ;;  %v504_v48 = vpop.permute.xlu0 %503  ;;  %v621_v50 = vld [vmem:[#allocation2 + $0x50] sm:$0xff] }
  0xaf   : > { %2013 = vmatpush3.bf16.msra.mxu1 %v2099_v29  ;;  %1036 = vmatprep.mubr.bf16.mxu1 %v619_v47  ;;  %513 = vst.msk [vmem:[#allocation2 + $0x58] sm:$0xff] %vm425_vm7, %v504_v48 }
  0xb0   : > { %2010 = vmatprep.subr.bf16.mxu1 %v2100_v40  ;;  %1996 = vmatpush3.bf16.msra.mxu0 %v2100_v40 }
  0xb1   : > { %v557_v6 = vpop.permute.xlu1 %556  ;;  %v617_v38 = vld [vmem:[#allocation2 + $0x30] sm:$0xff]  ;;  %1997 = vmatprep.subr.bf16.mxu0 %v2101_v46 }
  0xb2   : > { %566 = vst.msk [vmem:[#allocation2 + $0x60] sm:$0xff] %vm425_vm7, %v557_v6  ;;  %971 = vmatprep.mubr.bf16.mxu0 %v617_v38  ;;  %v506_v52 = vpop.permute.xlu0 %505  ;;  %v618_v56 = vld [vmem:[#allocation2 + $0x38] sm:$0xff] }
  0xb3   : > { %972 = vmatmul.mubr.bf16.gmra.mrb[4].mxu0 %v616_v51  ;;  %2014 = vmatpush3.bf16.msra.mxu1 %v2100_v40  ;;  %514 = vst.msk [vmem:[#allocation2 + $0x80] sm:$0xff] %vm425_vm7, %v506_v52 }
  0xb4   : > { %2011 = vmatprep.subr.bf16.mxu1 %v2101_v46  ;;  %1998 = vmatpush3.bf16.msra.mxu0 %v2101_v46 }
  0xb5   : > { %v624_v58 = vld [vmem:[#allocation2 + $0x68] sm:$0xff]  ;;  %v593_v59 = vpop.permute.xlu1 %592  ;;  %1999 = vmatprep.subr.bf16.mxu0 %v2102_v49  ;;  %v626_v62 = vld [vmem:[#allocation2 + $0x78] sm:$0xff] }
  0xb6   : > { %1037 = vmatmul.mubr.bf16.gmra.mrb[4].mxu1 %v618_v56  ;;  %598 = vst.msk [vmem:[#allocation2 + $0x90] sm:$0xff] %vm425_vm7, %v593_v59  ;;  %v559_v60 = vpop.permute.xlu0 %558  ;;  %v622_v61 = vld [vmem:[#allocation2 + $0x58] sm:$0xff] }
  0xb7   : > { %1044 = vmatprep.mubr.bf16.mxu1 %v624_v58  ;;  %567 = vst.msk [vmem:[#allocation2 + $0x88] sm:$0xff] %vm425_vm7, %v559_v60  ;;  %979 = vmatprep.mubr.bf16.mxu0 %v622_v61  ;;  %v2169_v61 = vmov 1983009808  }
  0xb8   : > { %2015 = vmatpush3.bf16.msra.mxu1 %v2101_v46  ;;  %2000 = vmatpush3.bf16.msra.mxu0 %v2102_v49 }
  0xb9   : > { %2012 = vmatprep.subr.bf16.mxu1 %v2102_v49  ;;  %v623_v11 = vld [vmem:[#allocation2 + $0x60] sm:$0xff] }
  0xba   : > { %v627_v3 = vld [vmem:[#allocation2 + $0x80] sm:$0xff] }
  0xbb   : > { %980 = vmatmul.mubr.bf16.gmra.mrb[8].mxu0 %v621_v50  ;;  %v1182_v50 = vunpack.c.l.s4 %v2169_v61 }
  0xbc   : > { %987 = vmatprep.mubr.bf16.mxu0 %v627_v3  ;;  %2016 = vmatpush3.bf16.msra.mxu1 %v2102_v49  ;;  %v1184_v3 = vlaneseq }
  0xbd   : > { %v629_v12 = vld [vmem:[#allocation2 + $0x90] sm:$0xff] }
  0xbe   : > { %1045 = vmatmul.mubr.bf16.gmra.mrb[8].mxu1 %v623_v11  ;;  %v628_v13 = vld [vmem:[#allocation2 + $0x88] sm:$0xff] }
  0xbf   : > { %1052 = vmatprep.mubr.bf16.mxu1 %v629_v12 }
  0xc3   : > { %988 = vmatmul.mubr.bf16.gmra.mrb[12].mxu0 %v626_v62  ;;  %v2658_v62 = vld [vmem:[%s2853_s2] ss:$0 sm:$0xff] }
  0xc4   : > { %2001 = vmatprep.mubr.msk.bf16.mxu0 %vm281_vm2, %v615_v33 }
  0xc6   : > { %1053 = vmatmul.mubr.bf16.gmra.mrb[12].mxu1 %v628_v13 }
  0xc7   : > { %2005 = vmatprep.mubr.msk.bf16.mxu1 %vm281_vm2, %v625_v14  ;;  %v1183_v14 = vunpack.c.0.s8 %v1182_v50 }
  0xcb   : > { %2002 = vmatmul.mubr.msk.bf16.vlgmr.msra.gmra.mrb[16].mxu0 %vm281_vm2, %v620_v4  ;;  %v1185_v4 = vshrl.u32 %v1184_v3, 7 }
  0xce   : > { %2006 = vmatmul.mubr.msk.bf16.vlgmr.msra.gmra.mrb[16].mxu1 %vm281_vm2, %v630_v18 }
 0x17d   : > { %v1921_v22 = vpop.f32.mrb[0].mxu0 }
 0x17e   : > { %v1922_v26 = vpop.f32.mrb[1].mxu0 }
 0x17f   : > { %v1923_v25 = vadd.f32 %v1922_v26, %v1921_v22  ;;  %v1924_v10 = vpop.f32.mrb[2].mxu0  ;;  %v2663_v26 = vld [vmem:[%s2854_s3] ss:$0 sm:$0xff] }
 0x180   : > { %v1925_v27 = vpop.f32.mrb[3].mxu0 }
 0x181   : > { %v1961_v15 = vpop.f32.mrb[0].mxu1  ;;  %v1926_v54 = vadd.f32 %v1925_v27, %v1924_v10 }
 0x182   : > { %v1962_v0 = vpop.f32.mrb[1].mxu1 }
 0x183   : > { %v1963_v21 = vadd.f32 %v1962_v0, %v1961_v15  ;;  %v1964_v8 = vpop.f32.mrb[2].mxu1 }
 0x184   : > { %v1965_v57 = vpop.f32.mrb[3].mxu1 }
 0x185   : > { %v1966_v20 = vadd.f32 %v1965_v57, %v1964_v8  ;;  %v1031_v55 = vadd.f32 %v1963_v21, %v1923_v25 }
 0x186   : > { %v1927_v35 = vpop.f32.mrb[4].mxu0 }
 0x187   : > { %v1928_v63 = vpop.f32.mrb[5].mxu0  ;;  %v1034_v16 = vadd.f32 %v1966_v20, %v1926_v54 }
 0x188   : > { %v1929_v17 = vadd.f32 %v1928_v63, %v1927_v35  ;;  %v1930_v5 = vpop.f32.mrb[6].mxu0  ;;  %v2669_v35 = vsub.s32 %v1183_v14, %v1185_v4 }
 0x189   : > { %v1967_v24 = vpop.f32.mrb[4].mxu1  ;;  %v1931_v36 = vpop.f32.mrb[7].mxu0 }
 0x18a   : > { %v1968_v44 = vpop.f32.mrb[5].mxu1  ;;  %v1932_v53 = vadd.f32 %v1931_v36, %v1930_v5 }
 0x18b   : > { %v1969_v1 = vadd.f32 %v1968_v44, %v1967_v24  ;;  %v1970_v2 = vpop.f32.mrb[6].mxu1 }
 0x18c   : > { %v1971_v23 = vpop.f32.mrb[7].mxu1 }
 0x18d   : > { %v1972_v28 = vadd.f32 %v1971_v23, %v1970_v2  ;;  %v1039_v29 = vadd.f32 %v1969_v1, %v1929_v17 }
 0x18e   : > { %v1933_v30 = vpop.f32.mrb[8].mxu0 }
 0x18f   : > { %v1934_v31 = vpop.f32.mrb[9].mxu0  ;;  %v1042_v32 = vadd.f32 %v1972_v28, %v1932_v53 }
 0x190   : > { %v1935_v34 = vadd.f32 %v1934_v31, %v1933_v30  ;;  %v1936_v7 = vpop.f32.mrb[10].mxu0 }
 0x191   : > { %v1973_v37 = vpop.f32.mrb[8].mxu1  ;;  %v1937_v39 = vpop.f32.mrb[11].mxu0 }
 0x192   : > { %v1974_v40 = vpop.f32.mrb[9].mxu1  ;;  %v1938_v41 = vadd.f32 %v1937_v39, %v1936_v7 }
 0x193   : > { %v1975_v42 = vadd.f32 %v1974_v40, %v1973_v37  ;;  %v1976_v43 = vpop.f32.mrb[10].mxu1 }
 0x194   : > { %v1977_v9 = vpop.f32.mrb[11].mxu1 }
 0x195   : > { %v1978_v45 = vadd.f32 %v1977_v9, %v1976_v43  ;;  %v1047_v46 = vadd.f32 %v1975_v42, %v1935_v34 }
 0x196   : > { %v1939_v47 = vpop.f32.mrb[12].mxu0 }
 0x197   : > { %v1940_v48 = vpop.f32.mrb[13].mxu0  ;;  %v1050_v6 = vadd.f32 %v1978_v45, %v1938_v41 }
 0x198   : > { %v1941_v38 = vadd.f32 %v1940_v48, %v1939_v47  ;;  %v1942_v49 = vpop.f32.mrb[14].mxu0 }
 0x199   : > { %v1979_v51 = vpop.f32.mrb[12].mxu1  ;;  %v1943_v52 = vpop.f32.mrb[15].mxu0 }
 0x19a   : > { %v1980_v56 = vpop.f32.mrb[13].mxu1  ;;  %v1944_v58 = vadd.f32 %v1943_v52, %v1942_v49 }
 0x19b   : > { %v1981_v59 = vadd.f32 %v1980_v56, %v1979_v51  ;;  %v1982_v60 = vpop.f32.mrb[14].mxu1 }
 0x19c   : > { %v1983_v11 = vpop.f32.mrb[15].mxu1 }
 0x19d   : > { %v1984_v12 = vadd.f32 %v1983_v11, %v1982_v60  ;;  %v1055_v33 = vadd.f32 %v1981_v59, %v1941_v38 }
 0x19e   : > { %v2003_v13 = vpop.f32.mrb[16].mxu0 }
 0x19f   : > { %v1104_v18 = vadd.f32 %v2003_v13, %v1039_v29  ;;  %v1095_v19 = vpop.f32.mrb[17].mxu0  ;;  %v1058_v22 = vadd.f32 %v1984_v12, %v1944_v58 }
 0x1a0   : > { %v1096_v25 = vadd.f32 %v1095_v19, %v1031_v55  ;;  %v2004_v10 = vpop.f32.mrb[18].mxu0 }
 0x1a1   : > { %v2007_v27 = vpop.f32.mrb[16].mxu1  ;;  %v1135_v15 = vmul.f32 %v2658_v62, %v1104_v18  ;;  %v1107_v54 = vadd.f32 %v2004_v10, %v1042_v32  ;;  %v1098_v0 = vpop.f32.mrb[19].mxu0 }
 0x1a2   : > { %v1120_v21 = vadd.f32 %v2007_v27, %v1055_v33  ;;  %v1111_v8 = vpop.f32.mrb[17].mxu1  ;;  %v1133_v57 = vmul.f32 %v2658_v62, %v1096_v25  ;;  %v1099_v20 = vadd.f32 %v1098_v0, %v1034_v16 }
 0x1a3   : > { %v1150_v63 = vadd.f32 %v2663_v26, %v1135_v15  ;;  %v1112_v17 = vadd.f32 %v1111_v8, %v1047_v46  ;;  %v2008_v5 = vpop.f32.mrb[18].mxu1  ;;  %v1136_v55 = vmul.f32 %v2658_v62, %v1107_v54 }
 0x1a4   : > { %v1139_v24 = vmul.f32 %v2658_v62, %v1120_v21  ;;  %v1148_v36 = vadd.f32 %v2663_v26, %v1133_v57  ;;  %v1123_v44 = vadd.f32 %v2008_v5, %v1058_v22  ;;  %v1114_v53 = vpop.f32.mrb[19].mxu1  ;;  %v1134_v1 = vmul.f32 %v2658_v62, %v1099_v20 }
 0x1a5   : > { %v1158_v2 = vmax.f32 %v1150_v63, 0.0  ;;  %v1137_v23 = vmul.f32 %v2658_v62, %v1112_v17  ;;  %v1151_v16 = vadd.f32 %v2663_v26, %v1136_v55  ;;  %v2678_v28 = vadd.f32 %v1114_v53, %v1050_v6 }
 0x1a6   : > { %v1154_v29 = vadd.f32 %v2663_v26, %v1139_v24  ;;  %v1156_v30 = vmax.f32 %v1148_v36, 0.0  ;;  %v1140_v31 = vmul.f32 %v2658_v62, %v1123_v44  ;;  %v1149_v42 = vadd.f32 %v2663_v26, %v1134_v1 }
 0x1a7   : > { %1166 = vst [vmem:[%s2682_s26 + $0x10] sm:$0xff] %v1158_v2  ;;  %v1214_v32 = vcombine.high %v1158_v2, %v1158_v2  ;;  %v1221_v34 = vrot.slane %v1158_v2, %v2669_v35  ;;  %v1152_v7 = vadd.f32 %v2663_v26, %v1137_v23  ;;  %v2687_v37 = vmax.f32 %v1151_v16, 0.0 }
 0x1a8   : > { %v1162_v39 = vmax.f32 %v1154_v29, 0.0  ;;  %1164 = vst [vmem:[%s2682_s26] sm:$0xff] %v1156_v30  ;;  %v1180_v40 = vcombine.high %v1156_v30, %v1156_v30  ;;  %v1187_v41 = vrot.slane %v1156_v30, %v2669_v35  ;;  %v1155_v38 = vadd.f32 %v2663_v26, %v1140_v31 }
 0x1a9   : > { %v1228_v43 = vrot.slane %v1214_v32, %v2669_v35  ;;  %v1229_v9 = vcombine.high %v1221_v34, %v1221_v34  ;;  %v1835_v45 = vrot.slane %v1221_v34, 9  ;;  %v1160_v46 = vmax.f32 %v1152_v7, 0.0  ;;  %1167 = vst [vmem:[%s2682_s26 + $0x18] sm:$0xff] %v2687_v37 }
 0x1aa   : > { %1170 = vst [vmem:[%s2682_s26 + $0x30] sm:$0xff] %v1162_v39  ;;  %v1282_v47 = vcombine.high %v1162_v39, %v1162_v39  ;;  %v1289_v48 = vrot.slane %v1162_v39, %v2669_v35  ;;  %v1194_v6 = vrot.slane %v1180_v40, %v2669_v35  ;;  %v1195_v56 = vcombine.high %v1187_v41, %v1187_v41 }
 0x1ab   : > { %v1230_v49 = vcombine.high %v1228_v43, %v1228_v43  ;;  %v1836_v51 = vrot.slane %v1229_v9, 9  ;;  %v1837_v52 = vrot.slane %v1228_v43, 9  ;;  %1168 = vst [vmem:[%s2682_s26 + $0x20] sm:$0xff] %v1160_v46  ;;  %v1248_v61 = vcombine.high %v1160_v46, %v1160_v46 }
 0x1ac   : > { %v1296_v58 = vrot.slane %v1282_v47, %v2669_v35  ;;  %v1297_v59 = vcombine.high %v1289_v48, %v1289_v48  ;;  %v1851_v60 = vrot.slane %v1289_v48, 9  ;;  %v1452_v3 = vmax.f32 %v1221_v34, %v1835_v45 }
 0x1ad   : > { %v1838_v50 = vrot.slane %v1230_v49, 9  ;;  %v2701_v11 = vmax.f32 %v1229_v9, %v1836_v51  ;;  %v1255_v12 = vrot.slane %v1160_v46, %v2669_v35  ;;  %v2704_v4 = vmax.f32 %v1228_v43, %v1837_v52 }
 0x1ae   : > { %v1298_v33 = vcombine.high %v1296_v58, %v1296_v58  ;;  %v1852_v13 = vrot.slane %v1297_v59, 9  ;;  %v1853_v14 = vrot.slane %v1296_v58, 9  ;;  %v1468_v18 = vmax.f32 %v1289_v48, %v1851_v60 }
 0x1af   : > { %v1262_v19 = vrot.slane %v1248_v61, %v2669_v35  ;;  %v1263_v22 = vcombine.high %v1255_v12, %v1255_v12  ;;  %v1843_v25 = vrot.slane %v1255_v12, 9  ;;  %v2707_v15 = vmax.f32 %v1230_v49, %v1838_v50 }
 0x1b0   : > { %v1854_v10 = vrot.slane %v1298_v33, 9  ;;  %v1469_v27 = vmax.f32 %v1297_v59, %v1852_v13  ;;  %v1196_v54 = vcombine.high %v1194_v6, %v1194_v6  ;;  %v1470_v0 = vmax.f32 %v1296_v58, %v1853_v14 }
 0x1b1   : > { %v1264_v21 = vcombine.high %v1262_v19, %v1262_v19  ;;  %v1844_v8 = vrot.slane %v1263_v22, 9  ;;  %v1845_v57 = vrot.slane %v1262_v19, 9  ;;  %v2709_v20 = vmax.f32 %v1255_v12, %v1843_v25 }
 0x1b2   : > { %v1827_v63 = vrot.slane %v1187_v41, 9  ;;  %v1828_v17 = vrot.slane %v1195_v56, 9  ;;  %v1829_v5 = vrot.slane %v1194_v6, 9  ;;  %v1471_v55 = vmax.f32 %v1298_v33, %v1854_v10 }
 0x1b3   : > { %v1846_v24 = vrot.slane %v1264_v21, 9  ;;  %v2711_v36 = vmax.f32 %v1263_v22, %v1844_v8  ;;  %v1830_v44 = vrot.slane %v1196_v54, 9  ;;  %v2713_v53 = vmax.f32 %v1262_v19, %v1845_v57 }
 0x1b4   : > { %v2715_v1 = vmax.f32 %v1187_v41, %v1827_v63  ;;  %v2717_v2 = vmax.f32 %v1195_v56, %v1828_v17  ;;  %v1163_v23 = vmax.f32 %v1155_v38, 0.0  ;;  %v2721_v29 = vmax.f32 %v1194_v6, %v1829_v5 }
 0x1b5   : > { %v2719_v16 = vmax.f32 %v1264_v21, %v1846_v24  ;;  %v1231_v30 = vcombine.high %v2687_v37, %v2687_v37  ;;  %v1238_v31 = vrot.slane %v2687_v37, %v2669_v35  ;;  %v1138_v7 = vmul.f32 %v2658_v62, %v2678_v28 }
 0x1b6   : > { %1171 = vst [vmem:[%s2682_s26 + $0x38] sm:$0xff] %v1163_v23  ;;  %v1299_v32 = vcombine.high %v1163_v23, %v1163_v23  ;;  %v1306_v34 = vrot.slane %v1163_v23, %v2669_v35  ;;  %v2731_v39 = vmax.f32 %v1149_v42, 0.0  ;;  %v2733_v40 = vmax.f32 %v1196_v54, %v1830_v44 }
 0x1b7   : > { %v1245_v41 = vrot.slane %v1231_v30, %v2669_v35  ;;  %v1246_v43 = vcombine.high %v1238_v31, %v1238_v31  ;;  %v1839_v9 = vrot.slane %v1238_v31, 9  ;;  %v1153_v37 = vadd.f32 %v2663_v26, %v1138_v7 }
 0x1b8   : > { %v1313_v45 = vrot.slane %v1299_v32, %v2669_v35  ;;  %v1314_v46 = vcombine.high %v1306_v34, %v1306_v34  ;;  %v1855_v47 = vrot.slane %v1306_v34, 9  ;;  %1165 = vst [vmem:[%s2682_s26 + $0x8] sm:$0xff] %v2731_v39 }
 0x1b9   : > { %v1247_v48 = vcombine.high %v1245_v41, %v1245_v41  ;;  %v1840_v6 = vrot.slane %v1246_v43, 9  ;;  %v1841_v38 = vrot.slane %v1245_v41, 9  ;;  %v1456_v62 = vmax.f32 %v1238_v31, %v1839_v9 }
 0x1ba   : > { %v1315_v28 = vcombine.high %v1313_v45, %v1313_v45  ;;  %v1856_v42 = vrot.slane %v1314_v46, 9  ;;  %v1857_v49 = vrot.slane %v1313_v45, 9  ;;  %v1472_v51 = vmax.f32 %v1306_v34, %v1855_v47 }
 0x1bb   : > { %v1842_v52 = vrot.slane %v1247_v48, 9  ;;  %v1457_v56 = vmax.f32 %v1246_v43, %v1840_v6  ;;  %v1458_v58 = vmax.f32 %v1245_v41, %v1841_v38  ;;  %v1480_v59 = vmax.f32 %v1452_v3, %v1456_v62 }
 0x1bc   : > { %v1858_v60 = vrot.slane %v1315_v28, 9  ;;  %v1473_v61 = vmax.f32 %v1314_v46, %v1856_v42  ;;  %v1474_v26 = vmax.f32 %v1313_v45, %v1857_v49  ;;  %v1488_v50 = vmax.f32 %v1468_v18, %v1472_v51 }
 0x1bd   : > { %v1459_v12 = vmax.f32 %v1247_v48, %v1842_v52  ;;  %v1481_v33 = vmax.f32 %v2701_v11, %v1457_v56  ;;  %v1482_v13 = vmax.f32 %v2704_v4, %v1458_v58  ;;  %v1892_v14 = vpack.c.bf16 %v1480_v59, %v1480_v59 }
 0x1be   : > { %v1475_v19 = vmax.f32 %v1315_v28, %v1858_v60  ;;  %v1489_v22 = vmax.f32 %v1469_v27, %v1473_v61  ;;  %v1490_v25 = vmax.f32 %v1470_v0, %v1474_v26  ;;  %v1900_v10 = vpack.c.bf16 %v1488_v50, %v1488_v50 }
 0x1bf   : > { %v1483_v3 = vmax.f32 %v2707_v15, %v1459_v12  ;;  %v1893_v54 = vpack.c.bf16 %v1481_v33, %v1481_v33  ;;  %v1894_v21 = vpack.c.bf16 %v1482_v13, %v1482_v13  ;;  %v1566_v8 = vunpack.c.l.b16 %v1892_v14 }
 0x1c0   : > { %v1491_v57 = vmax.f32 %v1471_v55, %v1475_v19  ;;  %v1901_v18 = vpack.c.bf16 %v1489_v22, %v1489_v22  ;;  %v1902_v63 = vpack.c.bf16 %v1490_v25, %v1490_v25  ;;  %v1574_v17 = vunpack.c.l.b16 %v1900_v10 }
 0x1c1   : > { %v1895_v5 = vpack.c.bf16 %v1483_v3, %v1483_v3  ;;  %v1567_v11 = vunpack.c.l.b16 %v1893_v54  ;;  %v1568_v24 = vunpack.c.l.b16 %v1894_v21  ;;  %v1588_v4 = vrot.slane %v1566_v8, 7 }
 0x1c2   : > { %v1903_v44 = vpack.c.bf16 %v1491_v57, %v1491_v57  ;;  %v1575_v27 = vunpack.c.l.b16 %v1901_v18  ;;  %v1576_v0 = vunpack.c.l.b16 %v1902_v63  ;;  %v1602_v23 = vrot.slane %v1574_v17, 7 }
 0x1c3   : > { %v1569_v15 = vunpack.c.l.b16 %v1895_v5  ;;  %v1589_v55 = vrot.slane %v1567_v11, 6  ;;  %v1591_v30 = vrot.slane %v1568_v24, 5  ;;  %v1161_v31 = vmax.f32 %v1153_v37, 0.0 }
 0x1c4   : > { %v1577_v32 = vunpack.c.l.b16 %v1903_v44  ;;  %v1603_v34 = vrot.slane %v1575_v27, 6  ;;  %v1605_v7 = vrot.slane %v1576_v0, 5  ;;  %v1197_v41 = vcombine.high %v2731_v39, %v2731_v39 }
 0x1c5   : > { %v1590_v43 = vsel %vm1580_vm8, %v1589_v55, %v1588_v4  ;;  %v1593_v9 = vrot.slane %v1569_v15, 4  ;;  %1169 = vst [vmem:[%s2682_s26 + $0x28] sm:$0xff] %v1161_v31  ;;  %v1265_v45 = vcombine.high %v1161_v31, %v1161_v31  ;;  %v1272_v46 = vrot.slane %v1161_v31, %v2669_v35 }
 0x1c6   : > { %v1604_v47 = vsel %vm1580_vm8, %v1603_v34, %v1602_v23  ;;  %v1607_v48 = vrot.slane %v1577_v32, 4  ;;  %v1592_v37 = vsel %vm1583_vm9, %v1591_v30, %v1590_v43  ;;  %v2761_v6 = vrot.slane %v2731_v39, %v2669_v35 }
 0x1c7   : > { %2116 = shalt.err (!%p2113_p3)
}
 0x1c8   : > { %s2117_s7 = scalar_lea.hbm %s2748_s11, 1024  ;;  %s2121_s23 = scalar_lea.hbm %s2855_s4, 2048 }
 0x1c9   : > { %p2118_p4 = scmp.ne.s32.totalorder %s2748_s11, %s2117_s7  ;;  %p2122_p9 = scmp.lt.u32.totalorder %s2748_s11, %s2855_s4 }
 0x1ca   : > { %p2123_p10 = scmp.lt.u32.totalorder %s2121_s23, %s2117_s7  ;;  %p2125_p12 = scmp.lt.u32.totalorder %s2117_s7, %s2748_s11 }
 0x1cb   : > { %p2119_p7 = pnand %p2118_p4, %p2241_p5 }
 0x1cc   : > { %p2124_p11 = por %p2123_p10, %p2122_p9 }
 0x1cd   : > { %p2120_p8 = pneg %p2119_p7 }
 0x1ce   : > { %p2126_p13 = por %p2125_p12, %p2124_p11 }
 0x1d0   : > { %p2127_p0 = pnand %p2126_p13, %p2120_p8 }
 0x1d2   : > { %2130 = shalt.err (!%p2127_p0)
}
 0x1d3   : > { %s2171_s30 = smov 128   ;;  %s2172_s9 = smov 8   ;;  %vm2791_vm12 = vmand %vm438_vm3, %vm1618_vm10  ;;  %v1606_v38 = vsel %vm1583_vm9, %v1605_v7, %v1604_v47  ;;  %v1594_v62 = vsel %vm1586_vm11, %v1593_v9, %v1592_v37  ;;  %v1877_v28 = vld [vmem:[%s2646_s14 + $0x8] sm:$0x7]  ;;  %v1279_v42 = vrot.slane %v1265_v45, %v2669_v35  ;;  %v1280_v49 = vcombine.high %v1272_v46, %v1272_v46  ;;  %v1881_v52 = vld [vmem:[%s2646_s14 + $0x10] sm:$0x7] }
 0x1d4   : > { %2019 = dma.vmem_to_hbm [thread:$0]  (%p2241_p5), %s2750_s8, 1024, %s2748_s11, %s2765_s22, %s2171_s30, %s2171_s30, %s2172_s9   ;;  %v1608_v51 = vsel %vm1586_vm11, %v1607_v48, %v1606_v38  ;;  %v1610_v56 = vpack.c.b16 %v1594_v62, %v1594_v62  ;;  %v1847_v58 = vrot.slane %v1272_v46, 9  ;;  %v1211_v59 = vrot.slane %v1197_v41, %v2669_v35 }
 0x1d5   : > { %v1612_v60 = vpack.c.b16 %v1608_v51, %v1608_v51  ;;  %v1281_v61 = vcombine.high %v1279_v42, %v1279_v42  ;;  %v1848_v26 = vrot.slane %v1280_v49, 9  ;;  %v1849_v50 = vrot.slane %v1279_v42, 9 }
 0x1d6   : > { %v1624_v12 = vsel %vm2791_vm12, %v1610_v56, %v1877_v28  ;;  %v1464_v33 = vmax.f32 %v1272_v46, %v1847_v58  ;;  %v1212_v13 = vcombine.high %v2761_v6, %v2761_v6  ;;  %v1213_v14 = vcombine.high %v1211_v59, %v1211_v59  ;;  %v1879_v28 = vld [vmem:[%s2646_s14 + $0xc] sm:$0x7] }
 0x1d7   : > { %v1630_v19 = vsel %vm2791_vm12, %v1612_v60, %v1881_v52  ;;  %1878 = vst [vmem:[%s2646_s14 + $0x8] sm:$0x7] %v1624_v12  ;;  %v1850_v22 = vrot.slane %v1281_v61, 9  ;;  %v1465_v25 = vmax.f32 %v1280_v49, %v1848_v26  ;;  %v1466_v10 = vmax.f32 %v1279_v42, %v1849_v50 }
 0x1d8   : > { %1882 = vst [vmem:[%s2646_s14 + $0x10] sm:$0x7] %v1630_v19  ;;  %v1484_v35 = vmax.f32 %v2709_v20, %v1464_v33  ;;  %v1831_v3 = vrot.slane %v2761_v6, 9  ;;  %v1832_v54 = vrot.slane %v1212_v13, 9  ;;  %v1833_v21 = vrot.slane %v1211_v59, 9 }
 0x1d9   : > { %v1467_v8 = vmax.f32 %v1281_v61, %v1850_v22  ;;  %v1485_v57 = vmax.f32 %v2711_v36, %v1465_v25  ;;  %v1486_v18 = vmax.f32 %v2713_v53, %v1466_v10  ;;  %v1834_v63 = vrot.slane %v1213_v14, 9 }
 0x1da   : > { %v1896_v17 = vpack.c.bf16 %v1484_v35, %v1484_v35  ;;  %v1448_v5 = vmax.f32 %v2761_v6, %v1831_v3  ;;  %v1449_v11 = vmax.f32 %v1212_v13, %v1832_v54  ;;  %v1450_v24 = vmax.f32 %v1211_v59, %v1833_v21  ;;  %v1875_v59 = vld [vmem:[%s2646_s14 + $0x4] sm:$0x7] }
 0x1db   : > { %v1487_v4 = vmax.f32 %v2719_v16, %v1467_v8  ;;  %v1897_v44 = vpack.c.bf16 %v1485_v57, %v1485_v57  ;;  %v1898_v27 = vpack.c.bf16 %v1486_v18, %v1486_v18  ;;  %v1451_v20 = vmax.f32 %v1213_v14, %v1834_v63 }
 0x1dc   : > { %v1570_v0 = vunpack.c.l.b16 %v1896_v17  ;;  %v1476_v23 = vmax.f32 %v2715_v1, %v1448_v5  ;;  %v1477_v15 = vmax.f32 %v2717_v2, %v1449_v11  ;;  %v1478_v36 = vmax.f32 %v2721_v29, %v1450_v24 }
 0x1dd   : > { %v1899_v55 = vpack.c.bf16 %v1487_v4, %v1487_v4  ;;  %v1571_v53 = vunpack.c.l.b16 %v1897_v44  ;;  %v1572_v30 = vunpack.c.l.b16 %v1898_v27  ;;  %v1479_v31 = vmax.f32 %v2733_v40, %v1451_v20 }
 0x1de   : > { %v1595_v32 = vrot.slane %v1570_v0, 7  ;;  %v1888_v34 = vpack.c.bf16 %v1476_v23, %v1476_v23  ;;  %v1889_v7 = vpack.c.bf16 %v1477_v15, %v1477_v15  ;;  %v1890_v41 = vpack.c.bf16 %v1478_v36, %v1478_v36 }
 0x1df   : > { %v1573_v16 = vunpack.c.l.b16 %v1899_v55  ;;  %v1596_v43 = vrot.slane %v1571_v53, 6  ;;  %v1598_v9 = vrot.slane %v1572_v30, 5  ;;  %v1891_v45 = vpack.c.bf16 %v1479_v31, %v1479_v31 }
 0x1e0   : > { %v1562_v46 = vunpack.c.l.b16 %v1888_v34  ;;  %v1563_v1 = vunpack.c.l.b16 %v1889_v7  ;;  %v1564_v47 = vunpack.c.l.b16 %v1890_v41 }
 0x1e1   : > { %v1597_v2 = vsel %vm1580_vm8, %v1596_v43, %v1595_v32  ;;  %v1600_v29 = vrot.slane %v1573_v16, 4  ;;  %v1565_v48 = vunpack.c.l.b16 %v1891_v45 }
 0x1e2   : > { %v1599_v40 = vsel %vm1583_vm9, %v1598_v9, %v1597_v2  ;;  %v1578_v37 = vrot.slane %v1562_v46, 7  ;;  %v1579_v6 = vrot.slane %v1563_v1, 6  ;;  %v1582_v38 = vrot.slane %v1564_v47, 5 }
 0x1e3   : > { %v1601_v62 = vsel %vm1586_vm11, %v1600_v29, %v1599_v40  ;;  %v1585_v42 = vrot.slane %v1565_v48, 4 }
 0x1e4   : > { %v1611_v49 = vpack.c.b16 %v1601_v62, %v1601_v62  ;;  %v1581_v51 = vsel %vm1580_vm8, %v1579_v6, %v1578_v37 }
 0x1e5   : > { %v1584_v52 = vsel %vm1583_vm9, %v1582_v38, %v1581_v51 }
 0x1e6   : > { %v1627_v56 = vsel %vm2791_vm12, %v1611_v49, %v1879_v28  ;;  %v1587_v58 = vsel %vm1586_vm11, %v1585_v42, %v1584_v52 }
 0x1e7   : > { %1880 = vst [vmem:[%s2646_s14 + $0xc] sm:$0x7] %v1627_v56  ;;  %v1609_v60 = vpack.c.b16 %v1587_v58, %v1587_v58 }
 0x1e9   : > { %v1621_v61 = vsel %vm2791_vm12, %v1609_v60, %v1875_v59 }
 0x1ea   : > { %1876 = vst [vmem:[%s2646_s14 + $0x4] sm:$0x7] %v1621_v61 }
 0x1eb PF: > { %p2025_p5 = scmp.ge.s32.totalorder %s2165_s21, 2  ;;  %s1669_s28 = sand.u32 1, %s2153_s18  }
 0x1ec   : > { %s1670_s8 = scalar_lea.sflag [#allocation4], %s1669_s28 }
 0x1ed   : > { %p2022_p1 = pnand %p2025_p5, %p2245_p6 }
 0x1ef   : > { %2148 = dma.done.wait (!%p2022_p1), %s1670_s8, 1024  }
 0x1f0   : > { %2150 = vsyncadd (!%p2022_p1), %s1670_s8, 4294966272  ;;  %p16_p2 = scmp.ge.s32.totalorder %s2228_s24, 4   ;;  %s2865_s18 = smov %s2157_s19 }
 0x1f1   : > { %s2866_s19 = smov %s2161_s20  ;;  %s2867_s20 = smov %s2239_s27 }
 0x1f2   : > { %s2868_s21 = smov %s2228_s24  ;;  %18 = sbr.rel (!%p16_p2) target bundleno = 3 (0x3), region = 84 }
 0x1f9   :  { %1683 = vsyncpa [#allocation4], 1 }
 0x1fa   :  { %1685 = vsyncpa [#allocation4 + $0x1], 1 }

// kernel: vgg_small_forward.6
= control target key start
LH: loop header
LB: loop body
LE: loop exit
PB: predicated region body
PF: predicated region fallthrough
CT: control target
= control target key end

     0   :  { %11 = vsyncpa [#allocation4], 0  ;;  %s3459_s0 = inlined_call_operand.vmem [shape: bf16[2,6,6,128], index: 0, kind: input, shape index: {}]   ;;  %s3460_s1 = inlined_call_operand.vmem [shape: bf16[1152,256], index: 1, kind: input, shape index: {}]   ;;  %s3461_s2 = inlined_call_operand.vmem [shape: f32[1,256], index: 2, kind: input, shape index: {}]   ;;  %s3462_s3 = inlined_call_operand.vmem [shape: f32[1,256], index: 3, kind: input, shape index: {}]   ;;  %s3463_s4 = inlined_call_operand.hbm [shape: f32[2,4,4,256], index: 4, kind: output, shape index: {0}]   ;;  %s3464_s5 = inlined_call_operand.vmem [shape: bf16[2,4,4,256], index: 5, kind: output, shape index: {1}]  }
   0x1   :  { %13 = vsyncpa [#allocation4 + $0x1], 0  ;;  %s2629_s18 = smov 0   ;;  %s2631_s19 = smov 0  }
   0x2   :  { %s2633_s20 = smov 0   ;;  %s2635_s21 = smov 0  }
   0x3 LB: > { %s2650_s22 = sadd.s32 4294967295, %s2592_s21   ;;  %s2068_s23 = sadd.s32 4294967294, %s2592_s21   ;;  %s2592_s21 = sphi %s2635_s21, %s3486_s21   ;;  %s2588_s20 = sphi %s2633_s20, %s3485_s20   ;;  %s2584_s19 = sphi %s2631_s19, %s3484_s19   ;;  %s2580_s18 = sphi %s2629_s18, %s3483_s18  }
   0x4   : > { %s2654_s24 = sadd.s32 1, %s2592_s21   ;;  %s115_s25 = sadd.s32 1, %s2588_s20 }
   0x5   : > { %s112_s26 = ssub.s32 %s2592_s21, %s2654_s24  ;;  %p125_p0 = scmp.ne.s32.totalorder %s2588_s20, %s2584_s19 }
   0x6   : > { %p113_p1 = scmp.eq.s32.totalorder %s112_s26, 0  ;;  %p126_p2 = scmp.eq.s32.totalorder %s2650_s22, 1 }
   0x7   : > { %p131_p3 = scmp.ne.s32.totalorder %s2584_s19, %s2580_s18  ;;  %p132_p4 = scmp.eq.s32.totalorder %s2068_s23, 1 }
   0x8   : > { %s2665_s27 = scalar_select %p113_p1, %s2588_s20, %s115_s25  }
   0x9   : > { %p2667_p5 = por %p126_p2, %p125_p0  ;;  %p2671_p6 = por %p132_p4, %p131_p3 }
   0xa   : > { %p2071_p7 = scmp.ge.s32.totalorder %s2592_s21, 1  ;;  %p193_p8 = scmp.lt.s32.totalorder %s2592_s21, 3 }
   0xc   : > { %p194_p9 = pnand %p2071_p7, %p193_p8 }
   0xd   : > { %v2309_v0 = vld [vmem:[%s3460_s1 + $0x4] ss:$8 sps:$4 sm:$0xff] (!%p194_p9)   ;;  %v2313_v2 = vld [vmem:[%s3460_s1] ss:$8 sps:$4 sm:$0xff] (!%p194_p9)   ;;  %v2315_v4 = vld [vmem:[%s3460_s1 + $0x14] ss:$8 sps:$4 sm:$0xff] (!%p194_p9)   ;;  %v252_v38 = vlaneseq (!%p194_p9) }
   0xe   : > { %197 = sbr.rel (%p194_p9) target bundleno = 442 (0x1ba), region = 36  ;;  %v2311_v1 = vld [vmem:[%s3460_s1 + $0x204] ss:$8 sps:$4 sm:$0xff] (!%p194_p9)   ;;  %1439 = vmatprep.subr.bf16.mxu1 (!%p194_p9), %v2309_v0  ;;  %v2314_v3 = vld [vmem:[%s3460_s1 + $0x200] ss:$8 sps:$4 sm:$0xff] (!%p194_p9)   ;;  %p226_p10 = scmp.lt.s32.totalorder (!%p194_p9), %s2650_s22, 1 }
   0xf   : > { %1525 = vmatprep.subr.bf16.mxu0 (!%p194_p9), %v2311_v1  ;;  %1440 = vmatpush1.bf16.msra.mxu1 (!%p194_p9), %v2313_v2  ;;  %v2317_v5 = vld [vmem:[%s3460_s1 + $0x214] ss:$8 sps:$4 sm:$0xff] (!%p194_p9)   ;;  %v2319_v6 = vld [vmem:[%s3460_s1 + $0x10] ss:$8 sps:$4 sm:$0xff] (!%p194_p9)   ;;  %v2321_v8 = vld [vmem:[%s3460_s1 + $0x24] ss:$8 sps:$4 sm:$0xff] (!%p194_p9)  }
  0x10   : > { %1526 = vmatpush1.bf16.msra.mxu0 (!%p194_p9), %v2314_v3  ;;  %1441 = vmatprep.subr.bf16.mxu1 (!%p194_p9), %v2315_v4  ;;  %v2320_v7 = vld [vmem:[%s3460_s1 + $0x210] ss:$8 sps:$4 sm:$0xff] (!%p194_p9)   ;;  %v2323_v9 = vld [vmem:[%s3460_s1 + $0x224] ss:$8 sps:$4 sm:$0xff] (!%p194_p9)   ;;  %v2325_v10 = vld [vmem:[%s3460_s1 + $0x20] ss:$8 sps:$4 sm:$0xff] (!%p194_p9)  }
  0x11   : > { %1527 = vmatprep.subr.bf16.mxu0 (!%p194_p9), %v2317_v5  ;;  %v2326_v11 = vld [vmem:[%s3460_s1 + $0x220] ss:$8 sps:$4 sm:$0xff] (!%p194_p9)   ;;  %v2327_v12 = vld [vmem:[%s3460_s1 + $0x34] ss:$8 sps:$4 sm:$0xff] (!%p194_p9)   ;;  %v2331_v14 = vld [vmem:[%s3460_s1 + $0x30] ss:$8 sps:$4 sm:$0xff] (!%p194_p9)  }
  0x12   : > { %v2329_v13 = vld [vmem:[%s3460_s1 + $0x234] ss:$8 sps:$4 sm:$0xff] (!%p194_p9)   ;;  %v2332_v15 = vld [vmem:[%s3460_s1 + $0x230] ss:$8 sps:$4 sm:$0xff] (!%p194_p9)   ;;  %v2333_v16 = vld [vmem:[%s3460_s1 + $0x44] ss:$8 sps:$4 sm:$0xff] (!%p194_p9)  }
  0x13   : > { %1442 = vmatpush1.bf16.msra.mxu1 (!%p194_p9), %v2319_v6  ;;  %v2335_v17 = vld [vmem:[%s3460_s1 + $0x244] ss:$8 sps:$4 sm:$0xff] (!%p194_p9)   ;;  %v2337_v18 = vld [vmem:[%s3460_s1 + $0x40] ss:$8 sps:$4 sm:$0xff] (!%p194_p9)   ;;  %v2339_v20 = vld [vmem:[%s3460_s1 + $0x54] ss:$8 sps:$4 sm:$0xff] (!%p194_p9)  }
  0x14   : > { %1528 = vmatpush1.bf16.msra.mxu0 (!%p194_p9), %v2320_v7  ;;  %1443 = vmatprep.subr.bf16.mxu1 (!%p194_p9), %v2321_v8  ;;  %v2338_v19 = vld [vmem:[%s3460_s1 + $0x240] ss:$8 sps:$4 sm:$0xff] (!%p194_p9)   ;;  %v2341_v21 = vld [vmem:[%s3460_s1 + $0x254] ss:$8 sps:$4 sm:$0xff] (!%p194_p9)   ;;  %v2343_v22 = vld [vmem:[%s3460_s1 + $0x50] ss:$8 sps:$4 sm:$0xff] (!%p194_p9)  }
  0x15   : > { %1529 = vmatprep.subr.bf16.mxu0 %v2323_v9  ;;  %v2344_v23 = vld [vmem:[%s3460_s1 + $0x250] ss:$8 sps:$4 sm:$0xff]   ;;  %v2345_v24 = vld [vmem:[%s3460_s1 + $0x64] ss:$8 sps:$4 sm:$0xff]   ;;  %v2349_v26 = vld [vmem:[%s3460_s1 + $0x60] ss:$8 sps:$4 sm:$0xff]  }
  0x16   : > { %v2347_v25 = vld [vmem:[%s3460_s1 + $0x264] ss:$8 sps:$4 sm:$0xff]   ;;  %v2350_v27 = vld [vmem:[%s3460_s1 + $0x260] ss:$8 sps:$4 sm:$0xff]   ;;  %v2351_v28 = vld [vmem:[%s3460_s1 + $0x74] ss:$8 sps:$4 sm:$0xff]  }
  0x17   : > { %1444 = vmatpush1.bf16.msra.mxu1 %v2325_v10  ;;  %v2353_v29 = vld [vmem:[%s3460_s1 + $0x274] ss:$8 sps:$4 sm:$0xff]   ;;  %v2355_v30 = vld [vmem:[%s3460_s1 + $0x70] ss:$8 sps:$4 sm:$0xff]   ;;  %v2357_v32 = vld [vmem:[%s3460_s1 + $0x84] ss:$8 sps:$4 sm:$0xff]  }
  0x18   : > { %1530 = vmatpush1.bf16.msra.mxu0 %v2326_v11  ;;  %1445 = vmatprep.subr.bf16.mxu1 %v2327_v12  ;;  %v2356_v31 = vld [vmem:[%s3460_s1 + $0x270] ss:$8 sps:$4 sm:$0xff]   ;;  %v2359_v33 = vld [vmem:[%s3460_s1 + $0x284] ss:$8 sps:$4 sm:$0xff]   ;;  %v2361_v34 = vld [vmem:[%s3460_s1 + $0x80] ss:$8 sps:$4 sm:$0xff]  }
  0x19   : > { %1531 = vmatprep.subr.bf16.mxu0 %v2329_v13  ;;  %v2362_v35 = vld [vmem:[%s3460_s1 + $0x280] ss:$8 sps:$4 sm:$0xff]   ;;  %s2787_s13 = scalar_select %p226_p10, %s2650_s22, 1  ;;  %v2594_v36 = vmov 1983009808   ;;  %v2799_v43 = vshrl.u32 %v252_v38, 7 }
  0x1a   : > { %v250_v37 = vunpack.c.l.s4 %v2594_v36  ;;  %v2363_v39 = vld [vmem:[%s3460_s1 + $0x94] ss:$8 sps:$4 sm:$0xff]   ;;  %v2367_v41 = vld [vmem:[%s3460_s1 + $0x90] ss:$8 sps:$4 sm:$0xff]   ;;  %v2369_v45 = vld [vmem:[%s3460_s1 + $0xa4] ss:$8 sps:$4 sm:$0xff]  }
  0x1b   : > { %1446 = vmatpush1.bf16.msra.mxu1 %v2331_v14  ;;  %v2365_v40 = vld [vmem:[%s3460_s1 + $0x294] ss:$8 sps:$4 sm:$0xff]   ;;  %s2265_s26 = smul.u32 24, %s2787_s13  ;;  %v2368_v44 = vld [vmem:[%s3460_s1 + $0x290] ss:$8 sps:$4 sm:$0xff]   ;;  %s2247_s9 = sshll.u32 %s2787_s13, 4 }
  0x1c   : > { %1532 = vmatpush1.bf16.msra.mxu0 %v2332_v15  ;;  %1447 = vmatprep.subr.bf16.mxu1 %v2333_v16  ;;  %v251_v42 = vunpack.c.0.s8 %v250_v37  ;;  %v2371_v46 = vld [vmem:[%s3460_s1 + $0x2a4] ss:$8 sps:$4 sm:$0xff]   ;;  %s2814_s15 = scalar_lea.vmem %s3464_s5, %s2247_s9  ;;  %vm298_vm0 = vsmask.f32 1280  ;;  %v2595_v47 = vmov 0   ;;  %vm380_vm3 = vcmask 1040384  }
  0x1d   : > { %1533 = vmatprep.subr.bf16.mxu0 %v2335_v17  ;;  %1834 = vst [vmem:[%s2814_s15] sm:$0xf] %v2595_v47  ;;  %1835 = vst [vmem:[%s2814_s15 + $0x4] sm:$0xf] %v2595_v47  ;;  %v2373_v48 = vld [vmem:[%s3460_s1 + $0xa0] ss:$8 sps:$4 sm:$0xff]   ;;  %s2833_s6 = scalar_lea.vmem %s3459_s0, %s2265_s26  ;;  %vm381_vm4 = vcmask 1042434  }
  0x1e   : > { %1836 = vst [vmem:[%s2814_s15 + $0x8] sm:$0xf] %v2595_v47  ;;  %1837 = vst [vmem:[%s2814_s15 + $0xc] sm:$0xf] %v2595_v47  ;;  %v2374_v49 = vld [vmem:[%s3460_s1 + $0x2a0] ss:$8 sps:$4 sm:$0xff]   ;;  %v2836_v50 = vsub.s32 %v251_v42, %v2799_v43 }
  0x1f   : > { %1448 = vmatpush1.bf16.msra.mxu1 %v2337_v18  ;;  %vm299_vm1 = vsmask.f32 3336  ;;  %v2375_v51 = vld [vmem:[%s3460_s1 + $0xb4] ss:$8 sps:$4 sm:$0xff]   ;;  %vm301_vm2 = vsmask.f32 5392  ;;  %vm2955_vm11 = vmor %vm380_vm3, %vm381_vm4 }
  0x20   : > { %1534 = vmatpush1.bf16.msra.mxu0 %v2338_v19  ;;  %1449 = vmatprep.subr.bf16.mxu1 %v2339_v20  ;;  %v2377_v52 = vld [vmem:[%s3460_s1 + $0x2b4] ss:$8 sps:$4 sm:$0xff]   ;;  %vm303_vm5 = vsmask.f32 7448  ;;  %v2379_v53 = vld [vmem:[%s3460_s1 + $0xb0] ss:$8 sps:$4 sm:$0xff]   ;;  %vm2886_vm6 = vmor %vm298_vm0, %vm299_vm1 }
  0x21   : > { %1535 = vmatprep.subr.bf16.mxu0 %v2341_v21  ;;  %v2380_v54 = vld [vmem:[%s3460_s1 + $0x2b0] ss:$8 sps:$4 sm:$0xff]   ;;  %v2851_v55 = vld [vmem:[%s2833_s6] sm:$0x7]  ;;  %v2381_v56 = vld [vmem:[%s3460_s1 + $0xc4] ss:$8 sps:$4 sm:$0xff]  }
  0x22   : > { %v2857_v57 = vld [vmem:[%s2833_s6 + $0x4] sm:$0x7]  ;;  %v2860_v58 = vld [vmem:[%s2833_s6 + $0x8] sm:$0x7]  ;;  %v2863_v59 = vld [vmem:[%s2833_s6 + $0xc] sm:$0x7]  ;;  %v2867_v60 = vrot.slane %v2851_v55, %v2836_v50 }
  0x23   : > { %1450 = vmatpush1.bf16.msra.mxu1 %v2343_v22  ;;  %v2870_v61 = vld [vmem:[%s2833_s6 + $0x10] sm:$0x7]  ;;  %v2874_v62 = vrot.slane %v2857_v57, %v2836_v50  ;;  %v2878_v63 = vrot.slane %v2860_v58, %v2836_v50  ;;  %v2882_v0 = vrot.slane %v2863_v59, %v2836_v50  ;;  %vm383_vm7 = vcmask 1044484   ;;  %v2383_v2 = vld [vmem:[%s3460_s1 + $0x2c4] ss:$8 sps:$4 sm:$0xff]   ;;  %vm2925_vm9 = vmor %vm2886_vm6, %vm301_vm2  ;;  %s216_s23 = sand.u32 1, %s2584_s19  }
  0x24   : > { %1536 = vmatpush1.bf16.msra.mxu0 %v2344_v23  ;;  %1451 = vmatprep.subr.bf16.mxu1 %v2345_v24  ;;  %v2895_v3 = vcombine.high %v2867_v60, %v2867_v60  ;;  %v306_v4 = vshrl.u32 %v2867_v60, 16  ;;  %v309_v5 = vshll.u32 %v2867_v60, 16  ;;  %v2901_v6 = vrot.slane %v2870_v61, %v2836_v50  ;;  %v2385_v7 = vld [vmem:[%s3460_s1 + $0xc0] ss:$8 sps:$4 sm:$0xff]   ;;  %v2387_v18 = vld [vmem:[%s3460_s1 + $0xd4] ss:$8 sps:$4 sm:$0xff]   ;;  %vm2944_vm10 = vmor %vm2925_vm9, %vm303_vm5 }
  0x25   : > { %1537 = vmatprep.subr.bf16.mxu0 %v2347_v25  ;;  %v2386_v8 = vld [vmem:[%s3460_s1 + $0x2c0] ss:$8 sps:$4 sm:$0xff]   ;;  %v2911_v9 = vcombine.high %v2874_v62, %v2874_v62  ;;  %v2915_v10 = vcombine.high %v2878_v63, %v2878_v63  ;;  %v2919_v11 = vcombine.high %v2882_v0, %v2882_v0  ;;  %v320_v12 = vshrl.u32 %v2874_v62, 16  ;;  %v2389_v23 = vld [vmem:[%s3460_s1 + $0x2d4] ss:$8 sps:$4 sm:$0xff]   ;;  %vm2981_vm12 = vmor %vm2955_vm11, %vm383_vm7  ;;  %s2072_s25 = sshll.u32 %s216_s23, 5 }
  0x26   : > { %vm385_vm8 = vcmask 1046534   ;;  %v308_v14 = vrot.slane %v306_v4, 6  ;;  %v311_v15 = vrot.slane %v309_v5, 7  ;;  %v315_v16 = vshll.u32 %v2895_v3, 16  ;;  %v2397_v4 = vld [vmem:[%s3460_s1 + $0xe0] ss:$8 sps:$4 sm:$0xff]  }
  0x27   : > { %1452 = vmatpush1.bf16.msra.mxu1 %v2349_v26  ;;  %v323_v17 = vshll.u32 %v2874_v62, 16  ;;  %v322_v19 = vrot.slane %v320_v12, 6  ;;  %v329_v20 = vshll.u32 %v2911_v9, 16  ;;  %v334_v21 = vshrl.u32 %v2878_v63, 16  ;;  %v2398_v5 = vld [vmem:[%s3460_s1 + $0x2e0] ss:$8 sps:$4 sm:$0xff]   ;;  %vm3009_vm13 = vmor %vm2981_vm12, %vm385_vm8 }
  0x28   : > { %1538 = vmatpush1.bf16.msra.mxu0 %v2350_v27  ;;  %1453 = vmatprep.subr.bf16.mxu1 %v2351_v28  ;;  %v337_v22 = vshll.u32 %v2878_v63, 16  ;;  %v312_v24 = vor.u32 %v311_v15, %v308_v14  ;;  %v317_v25 = vrot.slane %v315_v16, 7  ;;  %v343_v27 = vshll.u32 %v2915_v10, 16  ;;  %v2399_v14 = vld [vmem:[%s3460_s1 + $0xf4] ss:$8 sps:$4 sm:$0xff]   ;;  %s2248_s30 = sshll.u32 %s2650_s22, 9 }
  0x29   : > { %1539 = vmatprep.subr.bf16.mxu0 %v2353_v29  ;;  %v325_v26 = vrot.slane %v323_v17, 7  ;;  %v331_v29 = vrot.slane %v329_v20, 7  ;;  %v351_v37 = vshll.u32 %v2882_v0, 16  ;;  %v2076_v13 = vrot.slane %v2867_v60, 9  ;;  %v2410_v38 = vld [vmem:[%s3460_s1 + $0x304] ss:$8 sps:$4 sm:$0xff]   ;;  %s3366_s9 = scalar_lea.hbm %s3463_s4, %s2248_s30 }
  0x2a   : > { %v345_v36 = vrot.slane %v343_v27, 7  ;;  %v2078_v27 = vrot.slane %v2878_v63, 9  ;;  %v2404_v63 = vld [vmem:[%s3460_s1 + $0x2f0] ss:$8 sps:$4 sm:$0xff]   ;;  %v2433_v28 = vld [vmem:[%s3460_s1 + $0x144] ss:$8 sps:$4 sm:$0xff]  }
  0x2b   : > { %1454 = vmatpush1.bf16.msra.mxu1 %v2355_v30  ;;  %v336_v30 = vrot.slane %v334_v21, 6  ;;  %v2413_v21 = vld [vmem:[%s3460_s1 + $0x110] ss:$8 sps:$4 sm:$0xff]   ;;  %s218_s7 = scalar_lea.vmem [#allocation3], %s2072_s25  ;;  %s3379_s22 = scalar_lea.sflag [#allocation4], %s216_s23 }
  0x2c   : > { %1540 = vmatpush1.bf16.msra.mxu0 %v2356_v31  ;;  %1455 = vmatprep.subr.bf16.mxu1 %v2357_v32  ;;  %v339_v31 = vrot.slane %v337_v22, 7  ;;  %v348_v32 = vshrl.u32 %v2882_v0, 16  ;;  %v389_v22 = vrot.slane %v2895_v3, 7  ;;  %v397_v3 = vrot.slane %v2915_v10, 7  ;;  %s1978_s8 = sshll.u32 %s218_s7, 4  ;;  %s2596_s11 = smov [#allocation3]   ;;  %s3368_s8 = int_to_ptr.vmem [resolvable:$true] %s1978_s8 }
  0x2d   : > { %1541 = vmatprep.subr.bf16.mxu0 %v2359_v33  ;;  %v2391_v33 = vld [vmem:[%s3460_s1 + $0xd0] ss:$8 sps:$4 sm:$0xff]   ;;  %s2530_s10 = scalar_lea.vmem %s3368_s8, 512  ;;  %s2534_s12 = sshll.u32 %s2596_s11, 4  ;;  %s2535_s12 = int_to_ptr.vmem [resolvable:$false] %s2534_s12 }
  0x2e   : > { %v350_v42 = vrot.slane %v348_v32, 6  ;;  %v398_v10 = vsel %vm3009_vm13, %v2078_v27, %v397_v3  ;;  %v2424_v3 = vld [vmem:[%s3460_s1 + $0x324] ss:$8 sps:$4 sm:$0xff]   ;;  %p2531_p11 = scmp.ne.s32.totalorder %s3368_s8, %s2530_s10  ;;  %s2536_s14 = scalar_lea.vmem %s2535_s12, 1024 }
  0x2f   : > { %1456 = vmatpush1.bf16.msra.mxu1 %v2361_v34  ;;  %v313_v34 = vrot.slane %v312_v24, 2  ;;  %p2537_p0 = scmp.lt.s32.totalorder %s3368_s8, %s2535_s12  ;;  %p2538_p1 = scmp.lt.s32.totalorder %s2536_s14, %s2530_s10 }
  0x30   : > { %1542 = vmatpush1.bf16.msra.mxu0 %v2362_v35  ;;  %1457 = vmatprep.subr.bf16.mxu1 %v2363_v39  ;;  %v326_v35 = vor.u32 %v325_v26, %v322_v19  ;;  %v2392_v39 = vld [vmem:[%s3460_s1 + $0x2d0] ss:$8 sps:$4 sm:$0xff]   ;;  %v2401_v19 = vld [vmem:[%s3460_s1 + $0x2f4] ss:$8 sps:$4 sm:$0xff]   ;;  %v393_v26 = vrot.slane %v2911_v9, 7  ;;  %p2532_p12 = pnand %p2531_p11, %p2667_p5 }
  0x31   : > { %1543 = vmatprep.subr.bf16.mxu0 %v2365_v40  ;;  %v2393_v40 = vld [vmem:[%s3460_s1 + $0xe4] ss:$8 sps:$4 sm:$0xff]   ;;  %p2539_p2 = por %p2538_p1, %p2537_p0 }
  0x32   : > { %p2533_p13 = pneg %p2532_p12 }
  0x33   : > { %1458 = vmatpush1.bf16.msra.mxu1 %v2367_v41  ;;  %v340_v41 = vor.u32 %v339_v31, %v336_v30  ;;  %v390_v31 = vsel %vm3009_vm13, %v2076_v13, %v389_v22 }
  0x34   : > { %1544 = vmatpush1.bf16.msra.mxu0 %v2368_v44  ;;  %1459 = vmatprep.subr.bf16.mxu1 %v2369_v45  ;;  %v357_v44 = vshll.u32 %v2919_v11, 16  ;;  %v2968_v45 = vcombine.high %v2901_v6, %v2901_v6  ;;  %p2540_p3 = pnand %p2539_p2, %p2533_p13 }
  0x35   : > { %1545 = vmatprep.subr.bf16.mxu0 %v2371_v46  ;;  %v2395_v46 = vld [vmem:[%s3460_s1 + $0x2e4] ss:$8 sps:$4 sm:$0xff]  }
  0x36   : > { %v460_v1 = vshll.u32 %v2968_v45, 16 }
  0x37   : > { %1460 = vmatpush1.bf16.msra.mxu1 %v2373_v48  ;;  %v318_v48 = vsel %vm2944_vm10, %v313_v34, %v317_v25  ;;  %v401_v34 = vrot.slane %v2919_v11, 7 }
  0x38   : > { %1546 = vmatpush1.bf16.msra.mxu0 %v2374_v49  ;;  %1461 = vmatprep.subr.bf16.mxu1 %v2375_v51  ;;  %v327_v49 = vrot.slane %v326_v35, 2  ;;  %v353_v51 = vrot.slane %v351_v37, 7  ;;  %v485_v37 = vrot.slane %v2968_v45, 7 }
  0x39   : > { %1547 = vmatprep.subr.bf16.mxu0 %v2377_v52  ;;  %v451_v52 = vshrl.u32 %v2901_v6, 16 }
  0x3b   : > { %1462 = vmatpush1.bf16.msra.mxu1 %v2379_v53  ;;  %v341_v53 = vrot.slane %v340_v41, 2  ;;  %v453_v12 = vrot.slane %v451_v52, 6 }
  0x3c   : > { %1548 = vmatpush1.bf16.msra.mxu0 %v2380_v54  ;;  %1463 = vmatprep.subr.bf16.mxu1 %v2381_v56  ;;  %v359_v54 = vrot.slane %v357_v44, 7  ;;  %v454_v56 = vshll.u32 %v2901_v6, 16 }
  0x3d   : > { %1549 = vmatprep.subr.bf16.mxu0 %v2383_v2  ;;  %v346_v15 = vsel %vm2944_vm10, %v341_v53, %v345_v36  ;;  %v2080_v36 = vrot.slane %v2901_v6, 9 }
  0x3e   : > { %v456_v17 = vrot.slane %v454_v56, 7 }
  0x3f   : > { %1464 = vmatpush1.bf16.msra.mxu1 %v2385_v7  ;;  %v2993_v7 = vsel %vm2944_vm10, %v327_v49, %v331_v29  ;;  %v2403_v29 = vld [vmem:[%s3460_s1 + $0xf0] ss:$8 sps:$4 sm:$0xff]  }
  0x40   : > { %1550 = vmatpush1.bf16.msra.mxu0 %v2386_v8  ;;  %1465 = vmatprep.subr.bf16.mxu1 %v2387_v18  ;;  %v354_v8 = vor.u32 %v353_v51, %v350_v42  ;;  %v361_v16 = vcombine.low %v318_v48, %v2993_v7  ;;  %v462_v18 = vrot.slane %v460_v1, 7  ;;  %v464_v20 = vcombine.low %v2993_v7, %v346_v15 }
  0x41   : > { %1551 = vmatprep.subr.bf16.mxu0 %v2389_v23  ;;  %v2077_v23 = vrot.slane %v2874_v62, 9  ;;  %v457_v25 = vor.u32 %v456_v17, %v453_v12  ;;  %v2079_v62 = vrot.slane %v2882_v0, 9  ;;  %v2407_v0 = vld [vmem:[%s3460_s1 + $0x104] ss:$8 sps:$4 sm:$0xff]   ;;  %v248_v1 = vcombine.low %v2860_v58, %v2863_v59  ;;  %v2405_v17 = vld [vmem:[%s3460_s1 + $0x100] ss:$8 sps:$4 sm:$0xff]  }
  0x42   : > { %v355_v60 = vrot.slane %v354_v8, 2  ;;  %v369_v24 = vrot.slane %v361_v16, %v2836_v50  ;;  %v472_v2 = vrot.slane %v464_v20, %v2836_v50  ;;  %v423_v12 = vcombine.low %v2857_v57, %v2860_v58 }
  0x43   : > { %1466 = vmatpush1.bf16.msra.mxu1 %v2391_v33  ;;  %v458_v32 = vrot.slane %v457_v25, 2  ;;  %v394_v33 = vsel %vm3009_vm13, %v2077_v23, %v393_v26  ;;  %v402_v41 = vsel %vm3009_vm13, %v2079_v62, %v401_v34  ;;  %v424_v16 = vcombine.low %v2863_v59, %v2870_v61  ;;  %v2415_v59 = vld [vmem:[%s3460_s1 + $0x114] ss:$8 sps:$4 sm:$0xff]  }
  0x44   : > { %1552 = vmatpush1.bf16.msra.mxu0 %v2392_v39  ;;  %1467 = vmatprep.subr.bf16.mxu1 %v2393_v40  ;;  %v360_v30 = vsel %vm2944_vm10, %v355_v60, %v359_v54  ;;  %v403_v35 = vcombine.low %v390_v31, %v394_v33  ;;  %v242_v40 = vld [vmem:[%s2833_s6 + $0x14] sm:$0x7]  ;;  %v487_v42 = vcombine.low %v394_v33, %v398_v10 }
  0x45   : > { %1553 = vmatprep.subr.bf16.mxu0 %v2395_v46  ;;  %v362_v9 = vcombine.low %v346_v15, %v360_v30  ;;  %v3048_v39 = vsel %vm2944_vm10, %v458_v32, %v462_v18  ;;  %v404_v44 = vcombine.low %v398_v10, %v402_v41  ;;  %v486_v46 = vsel %vm3009_vm13, %v2080_v36, %v485_v37  ;;  %v2421_v32 = vld [vmem:[%s3460_s1 + $0x124] ss:$8 sps:$4 sm:$0xff]   ;;  %v2430_v36 = vld [vmem:[%s3460_s1 + $0x334] ss:$8 sps:$4 sm:$0xff]  }
  0x46   : > { %v465_v6 = vcombine.low %v360_v30, %v3048_v39  ;;  %v3055_v45 = vrot.slane %v403_v35, %v2836_v50  ;;  %v488_v49 = vcombine.low %v402_v41, %v486_v46  ;;  %v495_v51 = vrot.slane %v487_v42, %v2836_v50  ;;  %v2419_v35 = vld [vmem:[%s3460_s1 + $0x120] ss:$8 sps:$4 sm:$0xff]   ;;  %v2428_v41 = vld [vmem:[%s3460_s1 + $0x330] ss:$8 sps:$4 sm:$0xff]  }
  0x47   : > { %1468 = vmatpush1.bf16.msra.mxu1 %v2397_v4  ;;  %v3044_v11 = vrot.slane %v362_v9, %v2836_v50  ;;  %v3062_v52 = vrot.slane %v404_v44, %v2836_v50  ;;  %v524_v53 = vrot.slane %v242_v40, %v2836_v50  ;;  %v247_v54 = vcombine.low %v2851_v55, %v2857_v57  ;;  %v2408_v55 = vld [vmem:[%s3460_s1 + $0x300] ss:$8 sps:$4 sm:$0xff]   ;;  %v2418_v57 = vld [vmem:[%s3460_s1 + $0x314] ss:$8 sps:$4 sm:$0xff]   ;;  %v2436_v44 = vld [vmem:[%s3460_s1 + $0x344] ss:$8 sps:$4 sm:$0xff]  }
  0x48   : > { %1554 = vmatpush1.bf16.msra.mxu0 %v2398_v5  ;;  %1469 = vmatprep.subr.bf16.mxu1 %v2399_v14  ;;  %v502_v56 = vrot.slane %v488_v49, %v2836_v50  ;;  %v479_v4 = vrot.slane %v465_v6, %v2836_v50  ;;  %v3079_v14 = vrot.slane %v248_v1, %v2836_v50  ;;  %v2425_v6 = vld [vmem:[%s3460_s1 + $0x130] ss:$8 sps:$4 sm:$0xff]   ;;  %v2431_v49 = vld [vmem:[%s3460_s1 + $0x140] ss:$8 sps:$4 sm:$0xff]   ;;  %v2445_v1 = vld [vmem:[%s3460_s1 + $0x164] ss:$8 sps:$4 sm:$0xff]  }
  0x49   : > { %1555 = vmatprep.subr.bf16.mxu0 %v2401_v19  ;;  %v377_v48 = vcombine.low %v369_v24, %v3044_v11  ;;  %v525_v5 = vcombine.high %v524_v53, %v524_v53  ;;  %v2081_v7 = vrot.slane %v524_v53, 9  ;;  %v255_v8 = vrot.slane %v247_v54, %v2836_v50  ;;  %v2437_v54 = vld [vmem:[%s3460_s1 + $0x150] ss:$8 sps:$4 sm:$0xff]  }
  0x4a   : > { %v503_v13 = vcombine.low %v495_v51, %v502_v56  ;;  %v480_v15 = vcombine.low %v472_v2, %v479_v4  ;;  %v431_v58 = vrot.slane %v423_v12, %v2836_v50  ;;  %v419_v19 = vcombine.low %v3055_v45, %v3062_v52  ;;  %v2442_v51 = vld [vmem:[%s3460_s1 + $0x354] ss:$8 sps:$4 sm:$0xff]   ;;  %v2448_v56 = vld [vmem:[%s3460_s1 + $0x364] ss:$8 sps:$4 sm:$0xff]   ;;  %v2446_v2 = vld [vmem:[%s3460_s1 + $0x360] ss:$8 sps:$4 sm:$0xff]  }
  0x4b   : > { %1470 = vmatpush1.bf16.msra.mxu1 %v2403_v29  ;;  %1471 = vmatprep.mubr.bf16.mxu1 %v377_v48  ;;  %v553_v18 = vrot.slane %v525_v5, 7  ;;  %v507_v60 = vcombine.low %v2870_v61, %v242_v40  ;;  %v263_v20 = vcombine.low %v255_v8, %v3079_v14  ;;  %v438_v22 = vrot.slane %v424_v16, %v2836_v50  ;;  %v2416_v29 = vld [vmem:[%s3460_s1 + $0x310] ss:$8 sps:$4 sm:$0xff]   ;;  %v2443_v4 = vld [vmem:[%s3460_s1 + $0x160] ss:$8 sps:$4 sm:$0xff]  }
  0x4c   : > { %1556 = vmatpush1.bf16.msra.mxu0 %v2404_v63  ;;  %1482 = vmatprep.subr.bf16.mxu1 %v2407_v0  ;;  %v527_v23 = vshrl.u32 %v524_v53, 16  ;;  %v530_v24 = vshll.u32 %v524_v53, 16  ;;  %v536_v26 = vshll.u32 %v525_v5, 16  ;;  %v2422_v0 = vld [vmem:[%s3460_s1 + $0x320] ss:$8 sps:$4 sm:$0xff]  }
  0x4d   : > { %1568 = vmatprep.subr.bf16.mxu0 %v2410_v38  ;;  %1557 = vmatprep.mubr.bf16.mxu0 %v503_v13  ;;  %v554_v25 = vsel %vm3009_vm13, %v2081_v7, %v553_v18  ;;  %v3101_v27 = vrot.slane %v507_v60, %v2836_v50  ;;  %v439_v30 = vcombine.low %v431_v58, %v438_v22  ;;  %v2427_v38 = vld [vmem:[%s3460_s1 + $0x134] ss:$8 sps:$4 sm:$0xff]   ;;  %v2452_v8 = vld [vmem:[%s3460_s1 + $0x370] ss:$8 sps:$4 sm:$0xff]   ;;  %v2460_v13 = vld [vmem:[%s3460_s1 + $0x384] ss:$8 sps:$4 sm:$0xff]  }
  0x4e   : > { %v555_v61 = vcombine.low %v486_v46, %v554_v25  ;;  %1472 = vmatmul.mubr.bf16.vlgmr.msra.gmra.mrb[0].mxu1 %v263_v20  ;;  %v529_v31 = vrot.slane %v527_v23, 6  ;;  %v532_v62 = vrot.slane %v530_v24, 7  ;;  %v538_v34 = vrot.slane %v536_v26, 7  ;;  %v2439_v53 = vld [vmem:[%s3460_s1 + $0x154] ss:$8 sps:$4 sm:$0xff]  }
  0x4f   : > { %1558 = vmatmul.mubr.bf16.vlgmr.msra.gmra.mrb[0].mxu0 %v480_v15  ;;  %1483 = vmatpush1.bf16.msra.mxu1 %v2405_v17  ;;  %v515_v63 = vcombine.low %v3079_v14, %v3101_v27  ;;  %v2454_v5 = vld [vmem:[%s3460_s1 + $0x374] ss:$8 sps:$4 sm:$0xff]   ;;  %v2449_v12 = vld [vmem:[%s3460_s1 + $0x170] ss:$8 sps:$4 sm:$0xff]   ;;  %v2458_v15 = vld [vmem:[%s3460_s1 + $0x380] ss:$8 sps:$4 sm:$0xff]  }
  0x50   : > { %1569 = vmatpush1.bf16.msra.mxu0 %v2408_v55  ;;  %v3115_v9 = vrot.slane %v555_v61, %v2836_v50  ;;  %1484 = vmatprep.subr.bf16.mxu1 %v2415_v59  ;;  %v533_v33 = vor.u32 %v532_v62, %v529_v31  ;;  %v2451_v7 = vld [vmem:[%s3460_s1 + $0x174] ss:$8 sps:$4 sm:$0xff]   ;;  %v2457_v55 = vld [vmem:[%s3460_s1 + $0x184] ss:$8 sps:$4 sm:$0xff]   ;;  %v2455_v16 = vld [vmem:[%s3460_s1 + $0x180] ss:$8 sps:$4 sm:$0xff]  }
  0x51   : > { %1570 = vmatprep.subr.bf16.mxu0 %v2418_v57  ;;  %1514 = vmatprep.mubr.bf16.mxu1 %v439_v30  ;;  %v2466_v17 = vld [vmem:[%s3460_s1 + $0x394] ss:$8 sps:$4 sm:$0xff]   ;;  %v2464_v57 = vld [vmem:[%s3460_s1 + $0x390] ss:$8 sps:$4 sm:$0xff]   ;;  %v2472_v60 = vld [vmem:[%s3460_s1 + $0x3a4] ss:$8 sps:$4 sm:$0xff]  }
  0x52   : > { %v563_v10 = vcombine.low %v3062_v52, %v3115_v9  ;;  %v534_v37 = vrot.slane %v533_v33, 2  ;;  %v2463_v18 = vld [vmem:[%s3460_s1 + $0x194] ss:$8 sps:$4 sm:$0xff]   ;;  %v2461_v58 = vld [vmem:[%s3460_s1 + $0x190] ss:$8 sps:$4 sm:$0xff]  }
  0x53   : > { %1485 = vmatpush1.bf16.msra.mxu1 %v2413_v21  ;;  %v2469_v20 = vld [vmem:[%s3460_s1 + $0x1a4] ss:$8 sps:$4 sm:$0xff]   ;;  %v2470_v59 = vld [vmem:[%s3460_s1 + $0x3a0] ss:$8 sps:$4 sm:$0xff]   ;;  %v2478_v23 = vld [vmem:[%s3460_s1 + $0x3b4] ss:$8 sps:$4 sm:$0xff]  }
  0x54   : > { %1571 = vmatpush1.bf16.msra.mxu0 %v2416_v29  ;;  %1486 = vmatprep.subr.bf16.mxu1 %v2421_v32  ;;  %v539_v40 = vsel %vm2944_vm10, %v534_v37, %v538_v34  ;;  %v2467_v22 = vld [vmem:[%s3460_s1 + $0x1a0] ss:$8 sps:$4 sm:$0xff]   ;;  %v2475_v24 = vld [vmem:[%s3460_s1 + $0x1b4] ss:$8 sps:$4 sm:$0xff]   ;;  %v2476_v25 = vld [vmem:[%s3460_s1 + $0x3b0] ss:$8 sps:$4 sm:$0xff]  }
  0x55   : > { %1572 = vmatprep.subr.bf16.mxu0 %v2424_v3  ;;  %v540_v42 = vcombine.low %v3048_v39, %v539_v40  ;;  %v2434_v39 = vld [vmem:[%s3460_s1 + $0x340] ss:$8 sps:$4 sm:$0xff]   ;;  %v2473_v26 = vld [vmem:[%s3460_s1 + $0x1b0] ss:$8 sps:$4 sm:$0xff]   ;;  %v2484_v61 = vld [vmem:[%s3460_s1 + $0x3c4] ss:$8 sps:$4 sm:$0xff]  }
  0x56   : > { %v2481_v29 = vld [vmem:[%s3460_s1 + $0x1c4] ss:$8 sps:$4 sm:$0xff]   ;;  %v2482_v30 = vld [vmem:[%s3460_s1 + $0x3c0] ss:$8 sps:$4 sm:$0xff]   ;;  %v2490_v21 = vld [vmem:[%s3460_s1 + $0x3d4] ss:$8 sps:$4 sm:$0xff]  }
  0x57   : > { %1487 = vmatpush1.bf16.msra.mxu1 %v2419_v35  ;;  %v547_v46 = vrot.slane %v540_v42, %v2836_v50  ;;  %v2479_v31 = vld [vmem:[%s3460_s1 + $0x1c0] ss:$8 sps:$4 sm:$0xff]   ;;  %v2487_v3 = vld [vmem:[%s3460_s1 + $0x1d4] ss:$8 sps:$4 sm:$0xff]   ;;  %v2488_v62 = vld [vmem:[%s3460_s1 + $0x3d0] ss:$8 sps:$4 sm:$0xff]  }
  0x58   : > { %1573 = vmatpush1.bf16.msra.mxu0 %v2422_v0  ;;  %1488 = vmatprep.subr.bf16.mxu1 %v2427_v38  ;;  %v2485_v32 = vld [vmem:[%s3460_s1 + $0x1d0] ss:$8 sps:$4 sm:$0xff]   ;;  %v2496_v33 = vld [vmem:[%s3460_s1 + $0x3e4] ss:$8 sps:$4 sm:$0xff]   ;;  %v2494_v0 = vld [vmem:[%s3460_s1 + $0x3e0] ss:$8 sps:$4 sm:$0xff]  }
  0x59   : > { %1574 = vmatprep.subr.bf16.mxu0 %v2430_v36  ;;  %v548_v48 = vcombine.low %v3044_v11, %v547_v46  ;;  %v2440_v11 = vld [vmem:[%s3460_s1 + $0x350] ss:$8 sps:$4 sm:$0xff]   ;;  %v2493_v34 = vld [vmem:[%s3460_s1 + $0x1e4] ss:$8 sps:$4 sm:$0xff]   ;;  %v2491_v35 = vld [vmem:[%s3460_s1 + $0x1e0] ss:$8 sps:$4 sm:$0xff]  }
  0x5a   : > { %v2502_v36 = vld [vmem:[%s3460_s1 + $0x3f4] ss:$8 sps:$4 sm:$0xff]   ;;  %v2500_v38 = vld [vmem:[%s3460_s1 + $0x3f0] ss:$8 sps:$4 sm:$0xff]   ;;  %v2505_v42 = vld [vmem:[%s3460_s1 + $0x400] ss:$8 sps:$4 sm:$0xff]  }
  0x5b   : > { %1489 = vmatpush1.bf16.msra.mxu1 %v2425_v6  ;;  %1600 = vmatprep.mubr.bf16.mxu0 %v548_v48  ;;  %v2499_v37 = vld [vmem:[%s3460_s1 + $0x1f4] ss:$8 sps:$4 sm:$0xff]   ;;  %v2497_v40 = vld [vmem:[%s3460_s1 + $0x1f0] ss:$8 sps:$4 sm:$0xff]   ;;  %v2512_v14 = vld [vmem:[%s3460_s1 + $0x420] ss:$8 sps:$4 sm:$0xff]  }
  0x5c   : > { %1575 = vmatpush1.bf16.msra.mxu0 %v2428_v41  ;;  %1490 = vmatprep.subr.bf16.mxu1 %v2433_v28  ;;  %v2507_v41 = vld [vmem:[%s3460_s1 + $0x404] ss:$8 sps:$4 sm:$0xff]   ;;  %v2511_v6 = vld [vmem:[%s3460_s1 + $0x414] ss:$8 sps:$4 sm:$0xff]   ;;  %v2518_v27 = vld [vmem:[%s3460_s1 + $0x440] ss:$8 sps:$4 sm:$0xff]  }
  0x5d   : > { %1576 = vmatprep.subr.bf16.mxu0 %v2436_v44  ;;  %v2509_v44 = vld [vmem:[%s3460_s1 + $0x410] ss:$8 sps:$4 sm:$0xff]   ;;  %v2514_v28 = vld [vmem:[%s3460_s1 + $0x424] ss:$8 sps:$4 sm:$0xff]   ;;  %v2517_v45 = vld [vmem:[%s3460_s1 + $0x434] ss:$8 sps:$4 sm:$0xff]  }
  0x5e   : > { %v2521_v46 = vld [vmem:[%s3460_s1 + $0x450] ss:$8 sps:$4 sm:$0xff]   ;;  %v2524_v48 = vld [vmem:[%s3460_s1 + $0x460] ss:$8 sps:$4 sm:$0xff]  }
  0x5f   : > { %1491 = vmatpush1.bf16.msra.mxu1 %v2431_v49  ;;  %v2529_v49 = vld [vmem:[%s3460_s1 + $0x474] ss:$8 sps:$4 sm:$0xff]  }
  0x60   : > { %1577 = vmatpush1.bf16.msra.mxu0 %v2434_v39  ;;  %1492 = vmatprep.subr.bf16.mxu1 %v2439_v53  ;;  %v2526_v39 = vld [vmem:[%s3460_s1 + $0x464] ss:$8 sps:$4 sm:$0xff]  }
  0x61   : > { %1578 = vmatprep.subr.bf16.mxu0 %v2442_v51  ;;  %v2527_v51 = vld [vmem:[%s3460_s1 + $0x470] ss:$8 sps:$4 sm:$0xff]  }
  0x63   : > { %1493 = vmatpush1.bf16.msra.mxu1 %v2437_v54 }
  0x64   : > { %1579 = vmatpush1.bf16.msra.mxu0 %v2440_v11  ;;  %1494 = vmatprep.subr.bf16.mxu1 %v2445_v1  ;;  %v3348_v1 = vsub.s32 0, %v2799_v43 }
  0x65   : > { %1580 = vmatprep.subr.bf16.mxu0 %v2448_v56 }
  0x67   : > { %1495 = vmatpush1.bf16.msra.mxu1 %v2443_v4  ;;  %v1662_v4 = vsub.s32 1, %v2799_v43 }
  0x68   : > { %1581 = vmatpush1.bf16.msra.mxu0 %v2446_v2  ;;  %1496 = vmatprep.subr.bf16.mxu1 %v2451_v7  ;;  %v1654_v2 = vld [vmem:[%s3461_s2] sm:$0x3] }
  0x69   : > { %1582 = vmatprep.subr.bf16.mxu0 %v2454_v5  ;;  %v1670_v5 = vld [vmem:[%s3462_s3] sm:$0x3]  ;;  %v1659_v52 = vrot.slane %v1654_v2, %v3348_v1 }
  0x6b   : > { %1497 = vmatpush1.bf16.msra.mxu1 %v2449_v12 }
  0x6c   : > { %1583 = vmatpush1.bf16.msra.mxu0 %v2452_v8  ;;  %1498 = vmatprep.subr.bf16.mxu1 %v2457_v55  ;;  %v1675_v8 = vrot.slane %v1670_v5, %v3348_v1  ;;  %v1679_v55 = vrot.slane %v1670_v5, %v1662_v4 }
  0x6d   : > { %1584 = vmatprep.subr.bf16.mxu0 %v2460_v13 }
  0x6f   : > { %1499 = vmatpush1.bf16.msra.mxu1 %v2455_v16 }
  0x70   : > { %1585 = vmatpush1.bf16.msra.mxu0 %v2458_v15  ;;  %1500 = vmatprep.subr.bf16.mxu1 %v2463_v18 }
  0x71   : > { %1586 = vmatprep.subr.bf16.mxu0 %v2466_v17 }
  0x73   : > { %1501 = vmatpush1.bf16.msra.mxu1 %v2461_v58 }
  0x74   : > { %1587 = vmatpush1.bf16.msra.mxu0 %v2464_v57  ;;  %1502 = vmatprep.subr.bf16.mxu1 %v2469_v20 }
  0x75   : > { %1588 = vmatprep.subr.bf16.mxu0 %v2472_v60 }
  0x77   : > { %1503 = vmatpush1.bf16.msra.mxu1 %v2467_v22 }
  0x78   : > { %1589 = vmatpush1.bf16.msra.mxu0 %v2470_v59  ;;  %1504 = vmatprep.subr.bf16.mxu1 %v2475_v24 }
  0x79   : > { %1590 = vmatprep.subr.bf16.mxu0 %v2478_v23 }
  0x7b   : > { %1505 = vmatpush1.bf16.msra.mxu1 %v2473_v26 }
  0x7c   : > { %1591 = vmatpush1.bf16.msra.mxu0 %v2476_v25  ;;  %1506 = vmatprep.subr.bf16.mxu1 %v2481_v29 }
  0x7d   : > { %1592 = vmatprep.subr.bf16.mxu0 %v2484_v61 }
  0x7f   : > { %1507 = vmatpush1.bf16.msra.mxu1 %v2479_v31 }
  0x80   : > { %1593 = vmatpush1.bf16.msra.mxu0 %v2482_v30  ;;  %1508 = vmatprep.subr.bf16.mxu1 %v2487_v3 }
  0x81   : > { %1594 = vmatprep.subr.bf16.mxu0 %v2490_v21 }
  0x83   : > { %1509 = vmatpush1.bf16.msra.mxu1 %v2485_v32 }
  0x84   : > { %1595 = vmatpush1.bf16.msra.mxu0 %v2488_v62  ;;  %1510 = vmatprep.subr.bf16.mxu1 %v2493_v34 }
  0x85   : > { %1596 = vmatprep.subr.bf16.mxu0 %v2496_v33 }
  0x87   : > { %1511 = vmatpush1.bf16.msra.mxu1 %v2491_v35 }
  0x88   : > { %1597 = vmatpush1.bf16.msra.mxu0 %v2494_v0  ;;  %1512 = vmatprep.subr.bf16.mxu1 %v2499_v37 }
  0x89   : > { %1598 = vmatprep.subr.bf16.mxu0 %v2502_v36  ;;  %v3373_v36 = vsub.s32 2, %v2799_v43 }
  0x8b   : > { %1513 = vmatpush1.bf16.msra.mxu1 %v2497_v40 }
  0x8c   : > { %1599 = vmatpush1.bf16.msra.mxu0 %v2500_v38 }
  0x8d   : > { %1611 = vmatprep.subr.bf16.mxu0 %v2507_v41 }
  0x8e   : > { %1515 = vmatmul.mubr.bf16.vlgmr.msra.gmra.mrb[0].mxu1 %v419_v19  ;;  %v2515_v19 = vld [vmem:[%s3460_s1 + $0x430] ss:$8 sps:$4 sm:$0xff]  }
  0x8f   : > { %1601 = vmatmul.mubr.bf16.vlgmr.msra.gmra.mrb[0].mxu0 %v515_v63  ;;  %v2523_v63 = vld [vmem:[%s3460_s1 + $0x454] ss:$8 sps:$4 sm:$0xff]  }
  0x90   : > { %1612 = vmatpush1.bf16.msra.mxu0 %v2505_v42  ;;  %1643 = vmatprep.mubr.bf16.mxu0 %v2595_v47  ;;  %v2520_v47 = vld [vmem:[%s3460_s1 + $0x444] ss:$8 sps:$4 sm:$0xff]  }
  0x91   : > { %1613 = vmatprep.subr.bf16.mxu0 %v2511_v6 }
  0x94   : > { %1614 = vmatpush1.bf16.msra.mxu0 %v2509_v44 }
  0x95   : > { %1615 = vmatprep.subr.bf16.mxu0 %v2514_v28 }
  0x98   : > { %1616 = vmatpush1.bf16.msra.mxu0 %v2512_v14 }
  0x99   : > { %1617 = vmatprep.subr.bf16.mxu0 %v2517_v45 }
  0x9c   : > { %1618 = vmatpush1.bf16.msra.mxu0 %v2515_v19 }
  0x9d   : > { %1619 = vmatprep.subr.bf16.mxu0 %v2520_v47 }
  0xa0   : > { %1620 = vmatpush1.bf16.msra.mxu0 %v2518_v27 }
  0xa1   : > { %1621 = vmatprep.subr.bf16.mxu0 %v2523_v63 }
  0xa4   : > { %1622 = vmatpush1.bf16.msra.mxu0 %v2521_v46 }
  0xa5   : > { %1623 = vmatprep.subr.bf16.mxu0 %v2526_v39 }
  0xa8   : > { %1624 = vmatpush1.bf16.msra.mxu0 %v2524_v48 }
  0xa9   : > { %1625 = vmatprep.subr.bf16.mxu0 %v2529_v49 }
  0xac   : > { %1626 = vmatpush1.bf16.msra.mxu0 %v2527_v51 }
  0xaf   : > { %1644 = vmatmul.mubr.bf16.vlgmr.msra.gmra.mrb[0].mxu0 %v563_v10  ;;  %v1663_v10 = vrot.slane %v1654_v2, %v1662_v4 }
 0x161   : > { %v1516_v53 = vpop.f32.mrb[0].mxu1 }
 0x162   : > { %v1518_v11 = vpop.f32.mrb[1].mxu1 }
 0x163   : > { %v1520_v54 = vpop.f32.mrb[2].mxu1 }
 0x164   : > { %v1522_v56 = vpop.f32.mrb[3].mxu1 }
 0x182   : > { %v1645_v9 = vpop.f32.mrb[0].mxu0 }
 0x183   : > { %v2249_v7 = vadd.f32 %v1645_v9, %v1516_v53  ;;  %v1647_v12 = vpop.f32.mrb[1].mxu0 }
 0x184   : > { %v2250_v13 = vadd.f32 %v1647_v12, %v1518_v11  ;;  %v1649_v15 = vpop.f32.mrb[2].mxu0 }
 0x185   : > { %v1666_v16 = vmul.f32 %v2249_v7, %v1659_v52  ;;  %v2251_v17 = vadd.f32 %v1649_v15, %v1520_v54  ;;  %v1651_v18 = vpop.f32.mrb[3].mxu0 }
 0x186   : > { %v1667_v57 = vmul.f32 %v2250_v13, %v1663_v10  ;;  %v2252_v58 = vadd.f32 %v1651_v18, %v1522_v56 }
 0x187   : > { %v1682_v60 = vadd.f32 %v1675_v8, %v1666_v16  ;;  %v1668_v20 = vmul.f32 %v2251_v17, %v1659_v52 }
 0x188   : > { %v1683_v59 = vadd.f32 %v1679_v55, %v1667_v57  ;;  %v1669_v22 = vmul.f32 %v2252_v58, %v1663_v10 }
 0x189   : > { %v1686_v23 = vmax.f32 %v1682_v60, 0.0  ;;  %v1684_v24 = vadd.f32 %v1675_v8, %v1668_v20 }
 0x18a   : > { %v1687_v25 = vmax.f32 %v1683_v59, 0.0  ;;  %v1685_v26 = vadd.f32 %v1679_v55, %v1669_v22 }
 0x18b   : > { %v1688_v61 = vmax.f32 %v1684_v24, 0.0 }
 0x18c   : > { %v1694_v29 = vcombine.low %v1686_v23, %v1687_v25  ;;  %v1695_v30 = vcombine.high %v1686_v23, %v1687_v25  ;;  %v1689_v31 = vmax.f32 %v1685_v26, 0.0 }
 0x18e   : > { %1702 = vst [vmem:[%s218_s7] sm:$0xff] %v1694_v29  ;;  %1703 = vst [vmem:[%s218_s7 + $0x8] sm:$0xff] %v1695_v30  ;;  %v1712_v21 = vrot.slane %v1694_v29, %v2836_v50  ;;  %v1719_v3 = vrot.slane %v1695_v30, %v2836_v50  ;;  %v1696_v62 = vcombine.low %v1688_v61, %v1689_v31 }
 0x18f   : > { %v1697_v32 = vcombine.high %v1688_v61, %v1689_v31 }
 0x190   : > { %v1720_v33 = vcombine.high %v1712_v21, %v1712_v21  ;;  %v1721_v34 = vcombine.high %v1719_v3, %v1719_v3  ;;  %v2226_v0 = vrot.slane %v1712_v21, 9  ;;  %v2228_v35 = vrot.slane %v1719_v3, 9  ;;  %1704 = vst [vmem:[%s218_s7 + $0x10] sm:$0xff] %v1696_v62 }
 0x191   : > { %1705 = vst [vmem:[%s218_s7 + $0x18] sm:$0xff] %v1697_v32  ;;  %v1728_v37 = vrot.slane %v1696_v62, %v2836_v50  ;;  %v1735_v38 = vrot.slane %v1697_v32, %v2836_v50 }
 0x192   : > { %2543 = shalt.err (!%p2540_p3)
}
 0x193   : > { %s2544_s13 = scalar_lea.hbm %s3366_s9, 512  ;;  %s2548_s23 = scalar_lea.hbm %s3463_s4, 1024 }
 0x194   : > { %p2545_p4 = scmp.ne.s32.totalorder %s3366_s9, %s2544_s13  ;;  %p2549_p9 = scmp.lt.u32.totalorder %s3366_s9, %s3463_s4 }
 0x195   : > { %p2550_p10 = scmp.lt.u32.totalorder %s2548_s23, %s2544_s13  ;;  %p2552_p12 = scmp.lt.u32.totalorder %s2544_s13, %s3366_s9 }
 0x196   : > { %p2546_p7 = pnand %p2545_p4, %p2667_p5 }
 0x197   : > { %p2551_p11 = por %p2550_p10, %p2549_p9 }
 0x198   : > { %p2547_p8 = pneg %p2546_p7 }
 0x199   : > { %p2553_p13 = por %p2552_p12, %p2551_p11 }
 0x19b   : > { %p2554_p0 = pnand %p2553_p13, %p2547_p8 }
 0x19d   : > { %2557 = shalt.err (!%p2554_p0)
}
 0x19e   : > { %s2597_s7 = smov 128   ;;  %s2598_s6 = smov 8   ;;  %v2227_v43 = vrot.slane %v1720_v33, 9  ;;  %v2229_v40 = vrot.slane %v1721_v34, 9  ;;  %v1770_v41 = vmax.f32 %v1712_v21, %v2226_v0  ;;  %v1772_v42 = vmax.f32 %v1719_v3, %v2228_v35 }
 0x19f   : > { %2266 = dma.vmem_to_hbm [thread:$0]  (%p2667_p5), %s3368_s8, 512, %s3366_s9, %s3379_s22, %s2597_s7, %s2597_s7, %s2598_s6   ;;  %v1736_v6 = vcombine.high %v1728_v37, %v1728_v37  ;;  %v1737_v44 = vcombine.high %v1735_v38, %v1735_v38  ;;  %v2230_v28 = vrot.slane %v1728_v37, 9  ;;  %v2232_v14 = vrot.slane %v1735_v38, 9 }
 0x1a0   : > { %v1771_v45 = vmax.f32 %v1720_v33, %v2227_v43  ;;  %v1773_v19 = vmax.f32 %v1721_v34, %v2229_v40  ;;  %v1778_v47 = vmax.f32 %v1770_v41, %v1772_v42  ;;  %vm1946_vm14 = vcmask 1041408  }
 0x1a1   : > { %v2231_v27 = vrot.slane %v1736_v6, 9  ;;  %v2233_v63 = vrot.slane %v1737_v44, 9  ;;  %v1774_v46 = vmax.f32 %v1728_v37, %v2230_v28  ;;  %v1776_v39 = vmax.f32 %v1735_v38, %v2232_v14  ;;  %v2238_v37 = vld [vmem:[%s2814_s15 + $0x4] sm:$0xf] }
 0x1a2   : > { %v1779_v48 = vmax.f32 %v1771_v45, %v1773_v19  ;;  %v1789_v49 = vrot.slane %v1778_v47, %v3348_v1  ;;  %v1793_v51 = vrot.slane %v1778_v47, %v3373_v36  ;;  %vm1947_vm15 = vsmask.f32 1282 }
 0x1a3   : > { %v1775_v53 = vmax.f32 %v1736_v6, %v2231_v27  ;;  %v1777_v11 = vmax.f32 %v1737_v44, %v2233_v63  ;;  %v1780_v54 = vmax.f32 %v1774_v46, %v1776_v39  ;;  %vm1949_vm0 = vcmask 1043458   ;;  %vm3420_vm2 = vmand %vm1946_vm14, %vm1947_vm15  ;;  %v2240_v6 = vld [vmem:[%s2814_s15 + $0x8] sm:$0xf] }
 0x1a4   : > { %v1797_v56 = vrot.slane %v1779_v48, %v3348_v1  ;;  %v1801_v2 = vrot.slane %v1779_v48, %v3373_v36  ;;  %v2234_v4 = vpack.c.bf16 %v1793_v51, %v1789_v49  ;;  %vm1950_vm1 = vsmask.f32 3338 }
 0x1a5   : > { %v1781_v5 = vmax.f32 %v1775_v53, %v1777_v11  ;;  %v1805_v52 = vrot.slane %v1780_v54, %v3348_v1  ;;  %v1809_v9 = vrot.slane %v1780_v54, %v3373_v36  ;;  %vm3424_vm3 = vmand %vm1949_vm0, %vm1950_vm1 }
 0x1a6   : > { %v1853_v10 = vrot.slane %v2234_v4, %v2836_v50  ;;  %v2235_v7 = vpack.c.bf16 %v1801_v2, %v1797_v56  ;;  %vm1952_vm5 = vmor %vm3424_vm3, %vm3420_vm2 }
 0x1a7   : > { %v1813_v8 = vrot.slane %v1781_v5, %v3348_v1  ;;  %v1817_v12 = vrot.slane %v1781_v5, %v3373_v36  ;;  %v2236_v13 = vpack.c.bf16 %v1809_v9, %v1805_v52 }
 0x1a8   : > { %v1861_v55 = vrot.slane %v2235_v7, %v2836_v50  ;;  %v1884_v15 = vrot.slane %v1853_v10, %v2836_v50 }
 0x1a9   : > { %v1869_v16 = vrot.slane %v2236_v13, %v2836_v50  ;;  %v2237_v17 = vpack.c.bf16 %v1817_v12, %v1813_v8 }
 0x1aa   : > { %v1891_v18 = vrot.slane %v1861_v55, %v2836_v50  ;;  %v1906_v57 = vunpack.c.l.b16 %v1884_v15  ;;  %v1907_v58 = vunpack.c.h.b16 %v1884_v15 }
 0x1ab   : > { %v1877_v60 = vrot.slane %v2237_v17, %v2836_v50  ;;  %v1898_v1 = vrot.slane %v1869_v16, %v2836_v50 }
 0x1ac   : > { %v1908_v20 = vunpack.c.l.b16 %v1891_v18  ;;  %v1909_v59 = vunpack.c.h.b16 %v1891_v18  ;;  %v1914_v25 = vrot.slane %v1906_v57, 7  ;;  %v1918_v61 = vrot.slane %v1907_v58, 7 }
 0x1ad   : > { %v1905_v22 = vrot.slane %v1877_v60, %v2836_v50  ;;  %v1910_v23 = vunpack.c.l.b16 %v1898_v1  ;;  %v1911_v24 = vunpack.c.h.b16 %v1898_v1 }
 0x1ae   : > { %v1915_v26 = vrot.slane %v1908_v20, 6  ;;  %v1919_v29 = vrot.slane %v1909_v59, 6 }
 0x1af   : > { %v1912_v21 = vunpack.c.l.b16 %v1905_v22  ;;  %v1913_v3 = vunpack.c.h.b16 %v1905_v22  ;;  %v1921_v33 = vrot.slane %v1910_v23, 7  ;;  %v1924_v35 = vrot.slane %v1911_v24, 7 }
 0x1b0   : > { %v1917_v62 = vsel %vm381_vm4, %v1915_v26, %v1914_v25  ;;  %v1920_v32 = vsel %vm381_vm4, %v1919_v29, %v1918_v61 }
 0x1b1   : > { %v1927_v34 = vpack.c.b16 %v1920_v32, %v1917_v62  ;;  %v1922_v0 = vrot.slane %v1912_v21, 6  ;;  %v1925_v36 = vrot.slane %v1913_v3, 6 }
 0x1b3   : > { %v1935_v38 = vrot.slane %v1927_v34, %v2836_v50  ;;  %v1923_v43 = vsel %vm381_vm4, %v1922_v0, %v1921_v33  ;;  %v1926_v40 = vsel %vm381_vm4, %v1925_v36, %v1924_v35 }
 0x1b4   : > { %v1928_v41 = vpack.c.b16 %v1926_v40, %v1923_v43 }
 0x1b5   : > { %v1954_v42 = vsel %vm1952_vm5, %v1935_v38, %v2238_v37 }
 0x1b6   : > { %2239 = vst [vmem:[%s2814_s15 + $0x4] sm:$0xf] %v1954_v42  ;;  %v1942_v44 = vrot.slane %v1928_v41, %v2836_v50 }
 0x1b8   : > { %v1957_v28 = vsel %vm1952_vm5, %v1942_v44, %v2240_v6 }
 0x1b9   : > { %2241 = vst [vmem:[%s2814_s15 + $0x8] sm:$0xf] %v1957_v28 }
 0x1ba PF: > { %p2272_p5 = scmp.ge.s32.totalorder %s2592_s21, 2  ;;  %s1996_s28 = sand.u32 1, %s2580_s18  }
 0x1bb   : > { %s1997_s8 = scalar_lea.sflag [#allocation4], %s1996_s28 }
 0x1bc   : > { %p2269_p1 = pnand %p2272_p5, %p2671_p6 }
 0x1be   : > { %2575 = dma.done.wait (!%p2269_p1), %s1997_s8, 512  }
 0x1bf   : > { %2577 = vsyncadd (!%p2269_p1), %s1997_s8, 4294966784  ;;  %p16_p2 = scmp.ge.s32.totalorder %s2654_s24, 4   ;;  %s3483_s18 = smov %s2584_s19 }
 0x1c0   : > { %s3484_s19 = smov %s2588_s20  ;;  %s3485_s20 = smov %s2665_s27 }
 0x1c1   : > { %s3486_s21 = smov %s2654_s24  ;;  %18 = sbr.rel (!%p16_p2) target bundleno = 3 (0x3), region = 84 }
 0x1c8   :  { %2010 = vsyncpa [#allocation4], 1 }
 0x1c9   :  { %2012 = vsyncpa [#allocation4 + $0x1], 1 }

// kernel: vgg_small_forward.4
= control target key start
LH: loop header
LB: loop body
LE: loop exit
PB: predicated region body
PF: predicated region fallthrough
CT: control target
= control target key end

     0   :  { %11 = vsyncpa [#allocation4], 0  ;;  %s6280_s0 = inlined_call_operand.vmem [shape: bf16[2,18,18,8], index: 0, kind: input, shape index: {}]   ;;  %s6281_s1 = inlined_call_operand.vmem [shape: bf16[72,64], index: 1, kind: input, shape index: {}]   ;;  %s6282_s2 = inlined_call_operand.vmem [shape: f32[1,64], index: 2, kind: input, shape index: {}]   ;;  %s6283_s3 = inlined_call_operand.vmem [shape: f32[1,64], index: 3, kind: input, shape index: {}]   ;;  %s6284_s4 = inlined_call_operand.hbm [shape: f32[2,16,16,64], index: 4, kind: output, shape index: {0}]   ;;  %s6285_s5 = inlined_call_operand.vmem [shape: bf16[2,10,10,64], index: 5, kind: output, shape index: {1}]  }
   0x1   :  { %13 = vsyncpa [#allocation4 + $0x1], 0  ;;  %s4629_s18 = smov 0   ;;  %s4631_s19 = smov 0  }
   0x2   :  { %s4633_s20 = smov 0   ;;  %s4635_s21 = smov 0  }
   0x3 LB: > { %s4650_s22 = sadd.s32 4294967295, %s4585_s21   ;;  %s3961_s23 = sadd.s32 4294967294, %s4585_s21   ;;  %s4585_s21 = sphi %s4635_s21, %s6334_s21   ;;  %s4581_s20 = sphi %s4633_s20, %s6333_s20   ;;  %s4577_s19 = sphi %s4631_s19, %s6332_s19   ;;  %s4573_s18 = sphi %s4629_s18, %s6331_s18  }
   0x4   : > { %s4654_s24 = sadd.s32 1, %s4585_s21   ;;  %s115_s25 = sadd.s32 1, %s4581_s20 }
   0x5   : > { %s112_s26 = ssub.s32 %s4585_s21, %s4654_s24  ;;  %p125_p0 = scmp.ne.s32.totalorder %s4581_s20, %s4577_s19 }
   0x6   : > { %p113_p1 = scmp.eq.s32.totalorder %s112_s26, 0  ;;  %p126_p2 = scmp.eq.s32.totalorder %s4650_s22, 1 }
   0x7   : > { %p131_p3 = scmp.ne.s32.totalorder %s4577_s19, %s4573_s18  ;;  %p132_p4 = scmp.eq.s32.totalorder %s3961_s23, 1 }
   0x8   : > { %s4665_s27 = scalar_select %p113_p1, %s4581_s20, %s115_s25  }
   0x9   : > { %p4667_p5 = por %p126_p2, %p125_p0  ;;  %p4671_p6 = por %p132_p4, %p131_p3 }
   0xa   : > { %p3964_p7 = scmp.ge.s32.totalorder %s4585_s21, 1  ;;  %p193_p8 = scmp.lt.s32.totalorder %s4585_s21, 3 }
   0xc   : > { %p194_p9 = pnand %p3964_p7, %p193_p8 }
   0xe   : > { %197 = sbr.rel (%p194_p9) target bundleno = 704 (0x2c0), region = 36 }
  0x15   : > { %p226_p10 = scmp.lt.s32.totalorder %s4650_s22, 1  ;;  %vm387_vm0 = vcmask 64512   ;;  %vm920_vm1 = vcmask 1042432   ;;  %vm921_vm2 = vcmask 1046532   ;;  %vm404_vm3 = vsmask.f32 3328 }
  0x16   : > { %vm405_vm4 = vsmask.f32 7440  ;;  %s4587_s10 = smov 24   ;;  %vm4717_vm5 = vmor %vm920_vm1, %vm921_vm2  ;;  %s4588_s11 = smov 16   ;;  %vm1725_vm7 = vcmask 1043456   ;;  %vm887_vm8 = vcmask 130112  }
  0x17   : > { %s4679_s30 = scalar_select %p226_p10, %s4650_s22, 1  ;;  %vm4762_vm6 = vmor %vm404_vm3, %vm405_vm4  ;;  %vm1131_vm9 = vcmask 195712   ;;  %vm1201_vm10 = vcmask 261312   ;;  %vm1293_vm11 = vcmask 326912   ;;  %vm1369_vm12 = vcmask 392512  }
  0x18   : > { %s4589_s12 = smov 8   ;;  %s4590_s13 = smov 32   ;;  %vm1439_vm13 = vcmask 458112   ;;  %vm1531_vm14 = vcmask 523712   ;;  %vm1607_vm15 = vcmask 589312   ;;  %vm3379_vm1 = vcmask 516096  }
  0x19   : > { %s4448_s6 = smul.u32 216, %s4679_s30  ;;  %s4591_s14 = smov 40   ;;  %vm3377_vm2 = vcmask 519168   ;;  %vm2000_vm3 = vcmask 523264   ;;  %vm3657_vm4 = vcmask 1042434  }
  0x1a   : > { %s4592_s15 = smov 48   ;;  %s4593_s23 = smov 56  }
  0x1b   : > { %s4685_s9 = scalar_lea.vmem %s6280_s0, %s4448_s6  ;;  %s4594_s8 = smov 64  }
  0x1c   : > { %v4688_v0 = vld [vmem:[%s4685_s9 + $0x6c] sm:$0xf]  ;;  %v4691_v1 = vld [vmem:[%s4685_s9 + $0x70] sm:$0xf]  ;;  %v4703_v12 = vld [vmem:[%s4685_s9 + $0x60] sm:$0xf] }
  0x1d   : > { %v240_v2 = vld [vmem:[%s4685_s9 + $0xc] sm:$0xf]  ;;  %v4696_v3 = vcombine.low %v4688_v0, %v4691_v1  ;;  %v624_v4 = vshrl.u32 %v4688_v0, 16  ;;  %v627_v5 = vshll.u32 %v4688_v0, 16  ;;  %v637_v6 = vshrl.u32 %v4691_v1, 16  ;;  %s4597_s6 = smov [#allocation3]  }
  0x1e   : > { %v241_v7 = vld [vmem:[%s4685_s9 + $0x10] sm:$0xf]  ;;  %v432_v9 = vshrl.u32 %v240_v2, 16  ;;  %v435_v10 = vshll.u32 %v240_v2, 16  ;;  %v4710_v14 = vld [vmem:[%s4685_s9 + $0x64] sm:$0xf] }
  0x1f   : > { %6301 = vst [vmem:[#allocation6_spill] sm:$0xff] %v4696_v3  ;;  %v3969_v8 = vcombine.low %v240_v2, %v241_v7  ;;  %v441_v11 = vshll.u32 %v241_v7, 16  ;;  %1169 = vrot.lane.b32.xlu1 %v4696_v3, %s4587_s10  ;;  %v445_v13 = vshrl.u32 %v241_v7, 16  ;;  %397 = vst.msk [vmem:[#allocation2 + $0x48] sm:$0xff] %vm387_vm0, %v4696_v3  ;;  %v4713_v15 = vld [vmem:[%s4685_s9 + $0x68] sm:$0x1] }
  0x20   : > { %v4008_v17 = vrot.slane %v4703_v12, 9  ;;  %v434_v18 = vrot.slane %v432_v9, 4  ;;  %v437_v19 = vrot.slane %v435_v10, 5  ;;  %v981_v20 = vrot.slane %v4710_v14, 5  ;;  %v4727_v22 = vld [vmem:[%s4685_s9] sm:$0xf] }
  0x21   : > { %1153 = vrot.lane.b32.xlu0 %v3969_v8, %s4587_s10  ;;  %389 = vst.msk [vmem:[#allocation2 + $0x8] sm:$0xff] %vm387_vm0, %v3969_v8  ;;  %v984_v21 = vrot.slane %v4713_v15, 5  ;;  %v447_v23 = vrot.slane %v445_v13, 4  ;;  %v4730_v24 = vld [vmem:[%s4685_s9 + $0x4] sm:$0xf]  ;;  %v4000_v26 = vrot.slane %v4727_v22, 9 }
  0x22   : > { %v239_v25 = vld [vmem:[%s4685_s9 + $0x8] sm:$0x1]  ;;  %v982_v27 = vsel %vm4717_vm5, %v4008_v17, %v981_v20  ;;  %v983_v28 = vrot.slane %v981_v20, 4  ;;  %v925_v29 = vrot.slane %v4730_v24, 5  ;;  %v4738_v31 = vld [vmem:[%s4685_s9 + $0x74] sm:$0x1]  ;;  %v438_v48 = vor.u32 %v437_v19, %v434_v18 }
  0x23   : > { %v928_v30 = vrot.slane %v239_v25, 5  ;;  %v4009_v32 = vrot.slane %v4688_v0, 9  ;;  %v988_v33 = vrot.slane %v4691_v1, 5  ;;  %v991_v34 = vrot.slane %v4738_v31, 5  ;;  %v242_v35 = vld [vmem:[%s4685_s9 + $0x14] sm:$0x1] }
  0x24   : > { %v4001_v36 = vrot.slane %v240_v2, 9  ;;  %v985_v37 = vsel %vm4717_vm5, %v983_v28, %v984_v21  ;;  %v926_v38 = vsel %vm4717_vm5, %v4000_v26, %v925_v29  ;;  %v927_v39 = vrot.slane %v925_v29, 4 }
  0x25   : > { %v932_v40 = vrot.slane %v241_v7, 5  ;;  %v4748_v41 = vcombine.low %v982_v27, %v985_v37  ;;  %v989_v42 = vsel %vm4717_vm5, %v4009_v32, %v988_v33  ;;  %v990_v43 = vrot.slane %v988_v33, 4 }
  0x26   : > { %v935_v44 = vrot.slane %v242_v35, 5  ;;  %v929_v45 = vsel %vm4717_vm5, %v927_v39, %v928_v30  ;;  %v443_v52 = vrot.slane %v441_v11, 5  ;;  %v451_v53 = vshll.u32 %v242_v35, 16 }
  0x27   : > { %6304 = vst [vmem:[#allocation7_spill] sm:$0xff] %v4748_v41  ;;  %v933_v46 = vsel %vm4717_vm5, %v4001_v36, %v932_v40  ;;  %v934_v47 = vrot.slane %v932_v40, 4  ;;  %1099 = vrot.lane.b32.xlu1 %v4748_v41, %s4588_s11  ;;  %v4016_v49 = vcombine.low %v926_v38, %v929_v45  ;;  %v992_v50 = vsel %vm4717_vm5, %v990_v43, %v991_v34  ;;  %v4801_v34 = vld [vmem:[%s4685_s9 + $0x78] sm:$0xf]  ;;  %v4806_v38 = vld [vmem:[%s4685_s9 + $0x7c] sm:$0xf] }
  0x28   : > { %v4766_v54 = vcombine.low %v989_v42, %v992_v50  ;;  %v439_v56 = vrot.slane %v438_v48, 4  ;;  %v408_v57 = vshrl.u32 %v4727_v22, 16  ;;  %v448_v59 = vor.u32 %v447_v23, %v443_v52  ;;  %v4815_v48 = vld [vmem:[%s4685_s9 + $0x18] sm:$0xf] }
  0x29   : > { %v936_v55 = vsel %vm4717_vm5, %v934_v47, %v935_v44  ;;  %1083 = vrot.lane.b32.xlu0 %v4016_v49, %s4588_s11  ;;  %v453_v60 = vrot.slane %v451_v53, 5  ;;  %v411_v61 = vshll.u32 %v4727_v22, 16  ;;  %v417_v2 = vshll.u32 %v4730_v24, 16  ;;  %v4818_v49 = vld [vmem:[%s4685_s9 + $0x1c] sm:$0xf] }
  0x2a   : > { %6307 = vst [vmem:[#allocation8_spill] sm:$0xff] %v4766_v54  ;;  %v4772_v58 = vcombine.low %v933_v46, %v936_v55  ;;  %v444_v62 = vsel %vm4762_vm6, %v439_v56, %v443_v52  ;;  %v410_v63 = vrot.slane %v408_v57, 4  ;;  %v421_v7 = vshrl.u32 %v4730_v24, 16 }
  0x2b   : > { %1101 = vrot.lane.b32.xlu1 %v4766_v54, %s4588_s11  ;;  %v449_v8 = vrot.slane %v448_v59, 4  ;;  %v413_v9 = vrot.slane %v411_v61, 5  ;;  %v427_v10 = vshll.u32 %v239_v25, 16  ;;  %v626_v11 = vrot.slane %v624_v4, 4 }
  0x2c   : > { %v419_v13 = vrot.slane %v417_v2, 5  ;;  %v423_v17 = vrot.slane %v421_v7, 4  ;;  %v629_v18 = vrot.slane %v627_v5, 5  ;;  %v633_v19 = vshll.u32 %v4691_v1, 16 }
  0x2d   : > { %1085 = vrot.lane.b32.xlu0 %v4772_v58, %s4588_s11  ;;  %v454_v20 = vsel %vm4762_vm6, %v449_v8, %v453_v60  ;;  %v414_v21 = vor.u32 %v413_v9, %v410_v63  ;;  %v429_v23 = vrot.slane %v427_v10, 5  ;;  %v639_v25 = vrot.slane %v637_v6, 4  ;;  %v4832_v60 = vld [vmem:[%s4685_s9 + $0x80] sm:$0x1] }
  0x2e   : > { %v4792_v4 = vcombine.low %v444_v62, %v454_v20  ;;  %v424_v26 = vor.u32 %v423_v17, %v419_v13  ;;  %v630_v27 = vor.u32 %v629_v18, %v626_v11  ;;  %v635_v0 = vrot.slane %v633_v19, 5  ;;  %v4853_v19 = vld [vmem:[%s4685_s9 + $0x20] sm:$0x1] }
  0x2f   : > { %v415_v5 = vrot.slane %v414_v21, 4  ;;  %v643_v28 = vshll.u32 %v4738_v31, 16  ;;  %v600_v29 = vshrl.u32 %v4703_v12, 16  ;;  %v603_v30 = vshll.u32 %v4703_v12, 16 }
  0x30   : > { %841 = vrot.lane.b32.xlu1 %v4792_v4, %s4589_s12  ;;  %v425_v1 = vrot.slane %v424_v26, 4  ;;  %v631_v32 = vrot.slane %v630_v27, 4  ;;  %v640_v6 = vor.u32 %v639_v25, %v635_v0  ;;  %v609_v33 = vshll.u32 %v4710_v14, 16 }
  0x31   : > { %v420_v31 = vsel %vm4762_vm6, %v415_v5, %v419_v13  ;;  %v645_v35 = vrot.slane %v643_v28, 5  ;;  %v602_v36 = vrot.slane %v600_v29, 4  ;;  %v605_v37 = vrot.slane %v603_v30, 5 }
  0x32   : > { %v430_v39 = vsel %vm4762_vm6, %v425_v1, %v429_v23  ;;  %v636_v40 = vsel %vm4762_vm6, %v631_v32, %v635_v0  ;;  %v641_v42 = vrot.slane %v640_v6, 4  ;;  %v611_v43 = vrot.slane %v609_v33, 5 }
  0x33   : > { %v3984_v44 = vcombine.low %v420_v31, %v430_v39  ;;  %v606_v45 = vor.u32 %v605_v37, %v602_v36  ;;  %v613_v46 = vshrl.u32 %v4710_v14, 16  ;;  %v619_v47 = vshll.u32 %v4713_v15, 16  ;;  %v4865_v36 = vld [vmem:[%s4685_s9 + $0x84] sm:$0xf]  ;;  %v4868_v37 = vld [vmem:[%s4685_s9 + $0x88] sm:$0xf] }
  0x34   : > { %v646_v50 = vsel %vm4762_vm6, %v641_v42, %v645_v35  ;;  %v4824_v52 = vcombine.low %v4801_v34, %v4806_v38  ;;  %v648_v53 = vshrl.u32 %v4801_v34, 16  ;;  %v651_v55 = vshll.u32 %v4801_v34, 16 }
  0x35   : > { %839 = vrot.lane.b32.xlu0 %v3984_v44, %s4589_s12  ;;  %v4829_v56 = vcombine.low %v636_v40, %v646_v50  ;;  %v607_v15 = vrot.slane %v606_v45, 4  ;;  %v615_v57 = vrot.slane %v613_v46, 4  ;;  %v621_v59 = vrot.slane %v619_v47, 5 }
  0x36   : > { %v661_v61 = vshrl.u32 %v4806_v38, 16  ;;  %398 = vst.msk [vmem:[#allocation2 + $0x50] sm:$0xff] %vm387_vm0, %v4824_v52  ;;  %v4839_v62 = vcombine.low %v4815_v48, %v4818_v49  ;;  %v456_v63 = vshrl.u32 %v4815_v48, 16  ;;  %v459_v2 = vshll.u32 %v4815_v48, 16 }
  0x37   : > { %6308 = vst [vmem:[#allocation9_spill] sm:$0xff] %v4829_v56  ;;  %857 = vrot.lane.b32.xlu1 %v4829_v56, %s4589_s12  ;;  %v612_v7 = vsel %vm4762_vm6, %v607_v15, %v611_v43  ;;  %v616_v8 = vor.u32 %v615_v57, %v611_v43  ;;  %v469_v9 = vshrl.u32 %v4818_v49, 16  ;;  %v650_v10 = vrot.slane %v648_v53, 4  ;;  %v4885_v53 = vld [vmem:[%s4685_s9 + $0x24] sm:$0xf] }
  0x38   : > { %390 = vst.msk [vmem:[#allocation2 + $0x10] sm:$0xff] %vm387_vm0, %v4839_v62  ;;  %v653_v11 = vrot.slane %v651_v55, 5  ;;  %v657_v13 = vshll.u32 %v4806_v38, 16  ;;  %v663_v17 = vrot.slane %v661_v61, 4  ;;  %v667_v18 = vshll.u32 %v4832_v60, 16 }
  0x39   : > { %v617_v20 = vrot.slane %v616_v8, 4  ;;  %v458_v21 = vrot.slane %v456_v63, 4  ;;  %v461_v23 = vrot.slane %v459_v2, 5  ;;  %v465_v25 = vshll.u32 %v4818_v49, 16  ;;  %v4888_v55 = vld [vmem:[%s4685_s9 + $0x28] sm:$0xf] }
  0x3a   : > { %v654_v26 = vor.u32 %v653_v11, %v650_v10  ;;  %v659_v27 = vrot.slane %v657_v13, 5  ;;  %v471_v0 = vrot.slane %v469_v9, 4  ;;  %v475_v30 = vshll.u32 %v4853_v19, 16 }
  0x3b   : > { %v622_v5 = vsel %vm4762_vm6, %v617_v20, %v621_v59  ;;  %1171 = vrot.lane.b32.xlu1 %v4824_v52, %s4587_s10  ;;  %v462_v28 = vor.u32 %v461_v23, %v458_v21  ;;  %v467_v29 = vrot.slane %v465_v25, 5  ;;  %v669_v33 = vrot.slane %v667_v18, 5 }
  0x3c   : > { %v4861_v1 = vcombine.low %v612_v7, %v622_v5  ;;  %v655_v32 = vrot.slane %v654_v26, 4  ;;  %v664_v6 = vor.u32 %v663_v17, %v659_v27  ;;  %v995_v35 = vrot.slane %v4806_v38, 5  ;;  %v4936_v26 = vld [vmem:[%s4685_s9 + $0x90] sm:$0xf] }
  0x3d   : > { %v472_v31 = vor.u32 %v471_v0, %v467_v29  ;;  %v463_v42 = vrot.slane %v462_v28, 4  ;;  %v477_v38 = vrot.slane %v475_v30, 5  ;;  %v4010_v44 = vrot.slane %v4801_v34, 9 }
  0x3e   : > { %6309 = vst [vmem:[#allocation10_spill] sm:$0xff] %v4861_v1  ;;  %855 = vrot.lane.b32.xlu0 %v4861_v1, %s4589_s12  ;;  %v660_v39 = vsel %vm4762_vm6, %v655_v32, %v659_v27  ;;  %v665_v40 = vrot.slane %v664_v6, 4  ;;  %v997_v46 = vrot.slane %v995_v35, 4  ;;  %v998_v47 = vrot.slane %v4832_v60, 5  ;;  %v4939_v27 = vld [vmem:[%s4685_s9 + $0x94] sm:$0xf] }
  0x3f   : > { %1261 = vrot.lane.b32.xlu1 %v4829_v56, %s4590_s13  ;;  %v473_v43 = vrot.slane %v472_v31, 4  ;;  %v4882_v50 = vcombine.low %v4865_v36, %v4868_v37  ;;  %v468_v34 = vsel %vm4762_vm6, %v463_v42, %v467_v29  ;;  %v996_v59 = vsel %vm4717_vm5, %v4010_v44, %v995_v35  ;;  %v4957_v31 = vld [vmem:[%s4685_s9 + $0x34] sm:$0xf] }
  0x40   : > { %v670_v45 = vsel %vm4762_vm6, %v665_v40, %v669_v33  ;;  %v939_v60 = vrot.slane %v4818_v49, 5  ;;  %v4907_v61 = vcombine.low %v4885_v53, %v4888_v55  ;;  %v999_v63 = vsel %vm4717_vm5, %v997_v46, %v998_v47  ;;  %v4954_v33 = vld [vmem:[%s4685_s9 + $0x30] sm:$0xf] }
  0x41   : > { %v4890_v15 = vcombine.low %v660_v39, %v670_v45  ;;  %399 = vst.msk [vmem:[#allocation2 + $0x58] sm:$0xff] %vm387_vm0, %v4882_v50  ;;  %v478_v57 = vsel %vm4762_vm6, %v473_v43, %v477_v38  ;;  %v672_v2 = vshrl.u32 %v4865_v36, 16  ;;  %v675_v7 = vshll.u32 %v4865_v36, 16  ;;  %v4966_v39 = vld [vmem:[%s4685_s9 + $0x2c] sm:$0x1] }
  0x42   : > { %1155 = vrot.lane.b32.xlu0 %v4839_v62, %s4587_s10  ;;  %v685_v8 = vshrl.u32 %v4868_v37, 16  ;;  %391 = vst.msk [vmem:[#allocation2 + $0x18] sm:$0xff] %vm387_vm0, %v4907_v61  ;;  %v681_v9 = vshll.u32 %v4868_v37, 16  ;;  %v4919_v49 = vcombine.low %v468_v34, %v478_v57  ;;  %v4002_v10 = vrot.slane %v4815_v48, 9  ;;  %v4512_v57 = vld [vmem:[%s6281_s1] sm:$0xff]  }
  0x43   : > { %1263 = vrot.lane.b32.xlu1 %v4890_v15, %s4590_s13  ;;  %v4924_v11 = vcombine.low %v996_v59, %v999_v63  ;;  %v941_v13 = vrot.slane %v939_v60, 4  ;;  %v942_v17 = vrot.slane %v4853_v19, 5  ;;  %v674_v18 = vrot.slane %v672_v2, 4  ;;  %4394 = vmatprep.subr.bf16.mxu0 %v4512_v57 }
  0x44   : > { %v677_v20 = vrot.slane %v675_v7, 5  ;;  %v683_v21 = vrot.slane %v681_v9, 5  ;;  %v687_v23 = vrot.slane %v685_v8, 4  ;;  %v940_v48 = vsel %vm4717_vm5, %v4002_v10, %v939_v60  ;;  %v4994_v7 = vld [vmem:[%s4685_s9 + $0x9c] sm:$0xf]  ;;  %4436 = vmatprep.subr.bf16.mxu1 %v4512_v57  ;;  %4395 = vmatpush3.bf16.msra.mxu0 %v4512_v57 }
  0x45   : > { %v480_v25 = vshrl.u32 %v4885_v53, 16  ;;  %v943_v19 = vsel %vm4717_vm5, %v941_v13, %v942_v17  ;;  %v483_v0 = vshll.u32 %v4885_v53, 16  ;;  %v493_v5 = vshrl.u32 %v4888_v55, 16  ;;  %v5002_v17 = vld [vmem:[%s4685_s9 + $0xa0] sm:$0xf]  ;;  %4441 = vmatpush3.bf16.msra.mxu1 %v4512_v57 }
  0x46   : > { %1245 = vrot.lane.b32.xlu0 %v4792_v4, %s4590_s13  ;;  %v4928_v4 = vld [vmem:[%s4685_s9 + $0x8c] sm:$0x1]  ;;  %v489_v28 = vshll.u32 %v4888_v55, 16  ;;  %v678_v29 = vor.u32 %v677_v20, %v674_v18  ;;  %v688_v30 = vor.u32 %v687_v23, %v683_v21  ;;  %v4951_v6 = vcombine.low %v4936_v26, %v4939_v27 }
  0x47   : > { %1337 = vrot.lane.b32.xlu1 %v4766_v54, %s4591_s14  ;;  %v691_v32 = vshll.u32 %v4928_v4, 16  ;;  %v4961_v35 = vcombine.low %v940_v48, %v943_v19  ;;  %v482_v40 = vrot.slane %v480_v25, 4  ;;  %v485_v42 = vrot.slane %v483_v0, 5  ;;  %v5016_v19 = vld [vmem:[%s4685_s9 + $0x3c] sm:$0xf] }
  0x48   : > { %v4968_v43 = vrot.slane %v489_v28, 5  ;;  %v495_v38 = vrot.slane %v493_v5, 4  ;;  %400 = vst.msk [vmem:[#allocation2 + $0x60] sm:$0xff] %vm387_vm0, %v4951_v6  ;;  %v679_v44 = vrot.slane %v678_v29, 4  ;;  %v689_v45 = vrot.slane %v688_v30, 4 }
  0x49   : > { %v4974_v46 = vcombine.low %v4954_v33, %v4957_v31  ;;  %v486_v47 = vor.u32 %v485_v42, %v482_v40  ;;  %v696_v63 = vshrl.u32 %v4936_v26, 16  ;;  %v699_v2 = vshll.u32 %v4936_v26, 16  ;;  %v5024_v29 = vld [vmem:[%s4685_s9 + $0x40] sm:$0xf] }
  0x4a   : > { %1247 = vrot.lane.b32.xlu0 %v4919_v49, %s4590_s13  ;;  %v496_v34 = vor.u32 %v495_v38, %v4968_v43  ;;  %v684_v59 = vsel %vm4762_vm6, %v679_v44, %v683_v21  ;;  %v1002_v9 = vrot.slane %v4868_v37, 5  ;;  %v709_v10 = vshrl.u32 %v4939_v27, 16  ;;  %v4513_v37 = vld [vmem:[%s6281_s1 + $0x8] sm:$0xff]  }
  0x4b   : > { %1339 = vrot.lane.b32.xlu1 %v4924_v11, %s4591_s14  ;;  %392 = vst.msk [vmem:[#allocation2 + $0x20] sm:$0xff] %vm387_vm0, %v4974_v46  ;;  %v705_v13 = vshll.u32 %v4939_v27, 16  ;;  %v487_v20 = vrot.slane %v486_v47, 4  ;;  %v946_v21 = vrot.slane %v4888_v55, 5  ;;  %v4011_v23 = vrot.slane %v4865_v36, 9  ;;  %4396 = vmatprep.subr.bf16.mxu0 %v4513_v37 }
  0x4c   : > { %v504_v48 = vshrl.u32 %v4954_v33, 16  ;;  %v507_v25 = vshll.u32 %v4954_v33, 16  ;;  %v1005_v0 = vrot.slane %v4928_v4, 5  ;;  %v698_v5 = vrot.slane %v696_v63, 4  ;;  %4437 = vmatprep.subr.bf16.mxu1 %v4513_v37  ;;  %4397 = vmatpush3.bf16.msra.mxu0 %v4513_v37 }
  0x4d   : > { %v701_v28 = vrot.slane %v699_v2, 5  ;;  %v5021_v55 = vcombine.low %v4994_v7, %v5002_v17  ;;  %v1004_v36 = vrot.slane %v1002_v9, 4  ;;  %v4003_v30 = vrot.slane %v4885_v53, 9  ;;  %4442 = vmatpush3.bf16.msra.mxu1 %v4513_v37  ;;  %v4516_v53 = vld [vmem:[%s6281_s1 + $0x10] sm:$0xff]  }
  0x4e   : > { %1321 = vrot.lane.b32.xlu0 %v4772_v58, %s4591_s14  ;;  %v693_v58 = vrot.slane %v691_v32, 5  ;;  %v5029_v32 = vrot.slane %v705_v13, 5  ;;  %v711_v4 = vrot.slane %v709_v10, 4  ;;  %v492_v40 = vsel %vm4762_vm6, %v487_v20, %v4968_v43  ;;  %4398 = vmatprep.subr.bf16.mxu0 %v4516_v53  ;;  %v4517_v20 = vld [vmem:[%s6281_s1 + $0x18] sm:$0xff]  }
  0x4f   : > { %1407 = vrot.lane.b32.xlu1 %v4824_v52, %s4592_s15  ;;  %v499_v52 = vshll.u32 %v4966_v39, 16  ;;  %v948_v38 = vrot.slane %v946_v21, 4  ;;  %v949_v44 = vrot.slane %v4966_v39, 5  ;;  %401 = vst.msk [vmem:[#allocation2 + $0x68] sm:$0xff] %vm387_vm0, %v5021_v55  ;;  %v509_v43 = vrot.slane %v507_v25, 5  ;;  %4438 = vmatprep.subr.bf16.mxu1 %v4516_v53 }
  0x50   : > { %v694_v60 = vsel %vm4762_vm6, %v689_v45, %v693_v58  ;;  %v5040_v45 = vld [vmem:[%s4685_s9 + $0x98] sm:$0x1]  ;;  %v5052_v47 = vcombine.low %v5016_v19, %v5024_v29  ;;  %v1003_v39 = vsel %vm4717_vm5, %v4011_v23, %v1002_v9  ;;  %v702_v57 = vor.u32 %v701_v28, %v698_v5  ;;  %4399 = vmatpush3.bf16.msra.mxu0 %v4516_v53 }
  0x51   : > { %v501_v8 = vrot.slane %v499_v52, 5  ;;  %v5006_v18 = vcombine.low %v684_v59, %v694_v60  ;;  %v5048_v58 = vld [vmem:[%s4685_s9 + $0x38] sm:$0x1]  ;;  %v506_v52 = vrot.slane %v504_v48, 4  ;;  %v513_v59 = vshll.u32 %v4957_v31, 16  ;;  %4443 = vmatpush3.bf16.msra.mxu1 %v4516_v53  ;;  %4400 = vmatprep.subr.bf16.mxu0 %v4517_v20 }
  0x52   : > { %1323 = vrot.lane.b32.xlu0 %v4961_v35, %s4591_s14  ;;  %v1006_v63 = vsel %vm4717_vm5, %v1004_v36, %v1005_v0  ;;  %v712_v2 = vor.u32 %v711_v4, %v5029_v32  ;;  %393 = vst.msk [vmem:[#allocation2 + $0x28] sm:$0xff] %vm387_vm0, %v5052_v47  ;;  %v947_v9 = vsel %vm4717_vm5, %v4003_v30, %v946_v21  ;;  %v523_v13 = vshll.u32 %v5048_v58, 16  ;;  %v5093_v4 = vld [vmem:[%s4685_s9 + $0xa4] sm:$0x1] }
  0x53   : > { %1409 = vrot.lane.b32.xlu1 %v4882_v50, %s4592_s15  ;;  %v950_v10 = vsel %vm4717_vm5, %v948_v38, %v949_v44  ;;  %v5078_v37 = vcombine.low %v1003_v39, %v1006_v63  ;;  %v703_v23 = vrot.slane %v702_v57, 4  ;;  %v5080_v48 = vrot.slane %v513_v59, 5  ;;  %4439 = vmatprep.subr.bf16.mxu1 %v4517_v20 }
  0x54   : > { %v5084_v21 = vcombine.low %v947_v9, %v950_v10  ;;  %v713_v0 = vrot.slane %v712_v2, 4  ;;  %v4012_v28 = vrot.slane %v4936_v26, 9  ;;  %4401 = vmatpush3.bf16.msra.mxu0 %v4517_v20  ;;  %v5089_v36 = vrot.slane %v523_v13, 5  ;;  %v5129_v2 = vld [vmem:[%s4685_s9 + $0xa8] sm:$0xf] }
  0x55   : > { %v1009_v30 = vrot.slane %v4939_v27, 5  ;;  %4444 = vmatpush3.bf16.msra.mxu1 %v4517_v20  ;;  %v1012_v26 = vrot.slane %v5040_v45, 5  ;;  %v1016_v44 = vrot.slane %v5002_v17, 5  ;;  %v708_v27 = vsel %vm4762_vm6, %v703_v23, %v5029_v32  ;;  %v5147_v23 = vld [vmem:[%s4685_s9 + $0x4c] sm:$0xf] }
  0x56   : > { %1391 = vrot.lane.b32.xlu0 %v4839_v62, %s4592_s15  ;;  %v497_v62 = vrot.slane %v496_v34, 4  ;;  %v517_v34 = vshrl.u32 %v4957_v31, 16  ;;  %v5141_v20 = vcombine.low %v4703_v12, %v4710_v14  ;;  %v744_v14 = vshrl.u32 %v5129_v2, 16 }
  0x57   : > { %1499 = vrot.lane.b32.xlu1 %v4890_v15, %s4593_s23  ;;  %v1011_v57 = vrot.slane %v1009_v30, 4 }
  0x58   : > { %v502_v42 = vsel %vm4762_vm6, %v497_v62, %v501_v8  ;;  %v715_v8 = vshll.u32 %v5040_v45, 16  ;;  %v510_v62 = vor.u32 %v509_v43, %v506_v52  ;;  %v519_v25 = vrot.slane %v517_v34, 4  ;;  %6310 = vst [vmem:[#allocation11_spill] sm:$0xff] %v5141_v20  ;;  %396 = vst.msk [vmem:[#allocation2 + $0x40] sm:$0xff] %vm387_vm0, %v5141_v20 }
  0x59   : > { %v5060_v60 = vcombine.low %v492_v40, %v502_v42  ;;  %v3968_v40 = vcombine.low %v4727_v22, %v4730_v24  ;;  %v4013_v42 = vrot.slane %v4994_v7, 9  ;;  %v5108_v22 = vld [vmem:[%s4685_s9 + $0x44] sm:$0x1]  ;;  %v4005_v24 = vrot.slane %v5016_v19, 9 }
  0x5a   : > { %1393 = vrot.lane.b32.xlu0 %v4907_v61, %s4592_s15  ;;  %v717_v5 = vrot.slane %v715_v8, 5  ;;  %v5098_v38 = vrot.slane %v510_v62, 4  ;;  %v520_v53 = vor.u32 %v519_v25, %v5080_v48  ;;  %v960_v45 = vrot.slane %v5024_v29, 5  ;;  %v280_v8 = vld [vmem:[%s4685_s9 + $0xac] sm:$0xf] }
  0x5b   : > { %1501 = vrot.lane.b32.xlu1 %v5006_v18, %s4593_s23  ;;  %388 = vst.msk [vmem:[#allocation2] sm:$0xff] %vm387_vm0, %v3968_v40  ;;  %v1017_v32 = vsel %vm4717_vm5, %v4013_v42, %v1016_v44  ;;  %v1018_v43 = vrot.slane %v1016_v44, 4  ;;  %v963_v39 = vrot.slane %v5108_v22, 5  ;;  %v5124_v34 = vsel %vm4717_vm5, %v4012_v28, %v1009_v30  ;;  %v5144_v62 = vld [vmem:[%s4685_s9 + $0x48] sm:$0xf] }
  0x5c   : > { %v718_v52 = vsel %vm4762_vm6, %v713_v0, %v717_v5  ;;  %v961_v59 = vsel %vm4717_vm5, %v4005_v24, %v960_v45  ;;  %v962_v63 = vrot.slane %v960_v45, 4  ;;  %v5151_v0 = vrot.slane %v520_v53, 4  ;;  %v281_v42 = vld [vmem:[%s4685_s9 + $0xb0] sm:$0x1] }
  0x5d   : > { %v5149_v25 = vcombine.low %v708_v27, %v718_v52  ;;  %v5164_v12 = vcombine.low %v5129_v2, %v280_v8  ;;  %v747_v40 = vshll.u32 %v5129_v2, 16  ;;  %v757_v44 = vshrl.u32 %v280_v8, 16 }
  0x5e   : > { %1483 = vrot.lane.b32.xlu0 %v4919_v49, %s4593_s23  ;;  %v964_v28 = vsel %vm4717_vm5, %v962_v63, %v963_v39  ;;  %v555_v27 = vshll.u32 %v5144_v62, 16  ;;  %v5179_v53 = vsel %vm4717_vm5, %v1011_v57, %v1012_v26  ;;  %v565_v24 = vshrl.u32 %v5147_v23, 16 }
  0x5f   : > { %1575 = vrot.lane.b32.xlu1 %v4924_v11, %s4594_s8  ;;  %v5159_v30 = vcombine.low %v961_v59, %v964_v28  ;;  %402 = vst.msk [vmem:[#allocation2 + $0x70] sm:$0xff] %vm387_vm0, %v5164_v12  ;;  %v746_v45 = vrot.slane %v744_v14, 4  ;;  %v749_v52 = vrot.slane %v747_v40, 5  ;;  %v759_v39 = vrot.slane %v757_v44, 4 }
  0x60   : > { %v763_v59 = vshll.u32 %v281_v42, 16  ;;  %v557_v57 = vrot.slane %v555_v27, 5  ;;  %v567_v28 = vrot.slane %v565_v24, 4  ;;  %v4014_v27 = vrot.slane %v5129_v2, 9 }
  0x61   : > { %v750_v26 = vor.u32 %v749_v52, %v746_v45  ;;  %v1023_v52 = vrot.slane %v280_v8, 5  ;;  %v1026_v56 = vrot.slane %v281_v42, 5 }
  0x62   : > { %1485 = vrot.lane.b32.xlu0 %v5060_v60, %s4593_s23  ;;  %v765_v44 = vrot.slane %v763_v59, 5  ;;  %v4006_v59 = vrot.slane %v5144_v62, 9 }
  0x63   : > { %859 = vrot.lane.b32.xlu1 %v4890_v15, %s4589_s12  ;;  %v1019_v15 = vrot.slane %v5093_v4, 5  ;;  %v751_v10 = vrot.slane %v750_v26, 4  ;;  %v1025_v42 = vrot.slane %v1023_v52, 4  ;;  %v5211_v26 = vld [vmem:[%s4685_s9 + $0xb8] sm:$0xf] }
  0x65   : > { %v1020_v13 = vsel %vm4717_vm5, %v1018_v43, %v1019_v15  ;;  %v552_v15 = vshrl.u32 %v5144_v62, 16  ;;  %v753_v43 = vshll.u32 %v280_v8, 16  ;;  %v1024_v8 = vsel %vm4717_vm5, %v4014_v27, %v1023_v52  ;;  %v5226_v27 = vld [vmem:[%s4685_s9 + $0x58] sm:$0xf] }
  0x66   : > { %1559 = vrot.lane.b32.xlu0 %v4961_v35, %s4594_s8  ;;  %v5153_v5 = vcombine.low %v1017_v32, %v1020_v13  ;;  %v257_v32 = vld [vmem:[%s4685_s9 + $0x50] sm:$0x1]  ;;  %v561_v13 = vshll.u32 %v5147_v23, 16 }
  0x67   : > { %1577 = vrot.lane.b32.xlu1 %v5078_v37, %s4594_s8  ;;  %v554_v63 = vrot.slane %v552_v15, 4  ;;  %v755_v40 = vrot.slane %v753_v43, 5  ;;  %v571_v15 = vshll.u32 %v257_v32, 16 }
  0x68   : > { %v563_v54 = vrot.slane %v561_v13, 5 }
  0x69   : > { %v558_v9 = vor.u32 %v557_v57, %v554_v63  ;;  %v760_v45 = vor.u32 %v759_v39, %v755_v40  ;;  %v573_v24 = vrot.slane %v571_v15, 5  ;;  %v5203_v63 = vld [vmem:[%s4685_s9 + $0xb4] sm:$0xf]  ;;  %v967_v39 = vrot.slane %v5147_v23, 5 }
  0x6a   : > { %843 = vrot.lane.b32.xlu0 %v4919_v49, %s4589_s12  ;;  %v5173_v49 = vcombine.low %v5144_v62, %v5147_v23  ;;  %v568_v14 = vor.u32 %v567_v28, %v563_v54  ;;  %v970_v57 = vrot.slane %v257_v32, 5  ;;  %v1027_v28 = vsel %vm4717_vm5, %v1025_v42, %v1026_v56  ;;  %v5223_v15 = vld [vmem:[%s4685_s9 + $0x54] sm:$0xf] }
  0x6b   : > { %861 = vrot.lane.b32.xlu1 %v5006_v18, %s4589_s12  ;;  %v559_v43 = vrot.slane %v558_v9, 4  ;;  %v761_v2 = vrot.slane %v760_v45, 4  ;;  %v969_v23 = vrot.slane %v967_v39, 4  ;;  %v5238_v56 = vcombine.low %v5203_v63, %v5211_v26 }
  0x6c   : > { %394 = vst.msk [vmem:[#allocation2 + $0x30] sm:$0xff] %vm387_vm0, %v5173_v49  ;;  %v569_v62 = vrot.slane %v568_v14, 4  ;;  %v5234_v14 = vcombine.low %v1024_v8, %v1027_v28  ;;  %v768_v45 = vshrl.u32 %v5203_v63, 16  ;;  %v771_v52 = vshll.u32 %v5203_v63, 16 }
  0x6d   : > { %v766_v13 = vsel %vm4762_vm6, %v761_v2, %v765_v44  ;;  %6311 = vst [vmem:[#allocation12_spill] sm:$0xff] %v5238_v56  ;;  %403 = vst.msk [vmem:[#allocation2 + $0x78] sm:$0xff] %vm387_vm0, %v5238_v56  ;;  %v579_v8 = vshll.u32 %v5223_v15, 16  ;;  %v589_v42 = vshrl.u32 %v5226_v27, 16  ;;  %v4015_v1 = vrot.slane %v5203_v63, 9 }
  0x6e   : > { %1561 = vrot.lane.b32.xlu0 %v5084_v21, %s4594_s8  ;;  %v574_v32 = vsel %vm4762_vm6, %v569_v62, %v573_v24  ;;  %v5249_v24 = vld [vmem:[%s4685_s9 + $0xbc] sm:$0x1]  ;;  %v773_v62 = vrot.slane %v771_v52, 5 }
  0x6f   : > { %1103 = vrot.lane.b32.xlu1 %v4924_v11, %s4588_s11  ;;  %v756_v11 = vsel %vm4762_vm6, %v751_v10, %v755_v40  ;;  %v564_v10 = vsel %vm4762_vm6, %v559_v43, %v563_v54  ;;  %v968_v40 = vsel %vm4717_vm5, %v4006_v59, %v967_v39  ;;  %v781_v43 = vshrl.u32 %v5211_v26, 16 }
  0x70   : > { %v5230_v54 = vcombine.low %v756_v11, %v766_v13  ;;  %v5242_v44 = vcombine.low %v564_v10, %v574_v32  ;;  %v576_v59 = vshrl.u32 %v5223_v15, 16  ;;  %v770_v39 = vrot.slane %v768_v45, 4  ;;  %v260_v10 = vld [vmem:[%s4685_s9 + $0x5c] sm:$0x1] }
  0x71   : > { %v783_v13 = vrot.slane %v781_v43, 4  ;;  %v787_v28 = vshll.u32 %v5249_v24, 16  ;;  %v581_v32 = vrot.slane %v579_v8, 5  ;;  %v591_v45 = vrot.slane %v589_v42, 4 }
  0x72   : > { %845 = vrot.lane.b32.xlu0 %v5060_v60, %s4589_s12  ;;  %v774_v2 = vor.u32 %v773_v62, %v770_v39  ;;  %v595_v3 = vshll.u32 %v260_v10, 16  ;;  %v1030_v39 = vrot.slane %v5211_v26, 5  ;;  %v1033_v62 = vrot.slane %v5249_v24, 5 }
  0x73   : > { %1105 = vrot.lane.b32.xlu1 %v5078_v37, %s4588_s11  ;;  %v789_v52 = vrot.slane %v787_v28, 5  ;;  %v977_v24 = vrot.slane %v260_v10, 5  ;;  %v729_v28 = vshll.u32 %v5002_v17, 16 }
  0x74   : > { %v775_v20 = vrot.slane %v774_v2, 4  ;;  %v597_v56 = vrot.slane %v595_v3, 5  ;;  %v4007_v3 = vrot.slane %v5223_v15, 9  ;;  %v1031_v2 = vsel %vm4717_vm5, %v4015_v1, %v1030_v39 }
  0x76   : > { %1087 = vrot.lane.b32.xlu0 %v4961_v35, %s4588_s11  ;;  %v971_v35 = vsel %vm4717_vm5, %v969_v23, %v970_v57  ;;  %v777_v57 = vshll.u32 %v5211_v26, 16  ;;  %v578_v23 = vrot.slane %v576_v59, 4  ;;  %v1032_v26 = vrot.slane %v1030_v39, 4 }
  0x77   : > { %1173 = vrot.lane.b32.xlu1 %v4882_v50, %s4587_s10  ;;  %v5251_v11 = vcombine.low %v968_v40, %v971_v35  ;;  %v5258_v50 = vcombine.low %v5223_v15, %v5226_v27  ;;  %v4518_v40 = vld [vmem:[%s6281_s1 + $0x20] ss:$0 sps:$4 sm:$0xff]   ;;  %v585_v35 = vshll.u32 %v5226_v27, 16  ;;  %v537_v39 = vshll.u32 %v5024_v29, 16 }
  0x78   : > { %v779_v9 = vrot.slane %v777_v57, 5  ;;  %v582_v41 = vor.u32 %v581_v32, %v578_v23  ;;  %4446 = vmatprep.subr.msk.bf16.mxu0 %vm1725_vm7, %v4518_v40  ;;  %v1727_v59 = vsel %vm1725_vm7, %v4518_v40, 0  ;;  %4447 = vmatprep.subr.msk.bf16.mxu1 %vm1725_vm7, %v4518_v40  ;;  %vm3805_vm7 = vsmask.f32 256 }
  0x79   : > { %6312 = vst [vmem:[#allocation13_spill] sm:$0xff] %v5258_v50  ;;  %395 = vst.msk [vmem:[#allocation2 + $0x38] sm:$0xff] %vm387_vm0, %v5258_v50  ;;  %v587_v43 = vrot.slane %v585_v35, 5  ;;  %4403 = vmatpush3.bf16.msra.mxu0 %v1727_v59  ;;  %4445 = vmatpush3.bf16.msra.mxu1 %v1727_v59  ;;  %v956_v59 = vrot.slane %v5048_v58, 5  ;;  %vm1676_vm0 = vcmask 588800  }
  0x7a   : > { %1089 = vrot.lane.b32.xlu0 %v5084_v21, %s4588_s11  ;;  %v784_v50 = vor.u32 %v783_v13, %v779_v9  ;;  %v583_v8 = vrot.slane %v582_v41, 4  ;;  %v780_v63 = vsel %vm4762_vm6, %v775_v20, %v779_v9  ;;  %v1034_v13 = vsel %vm4717_vm5, %v1032_v26, %v1033_v62 }
  0x7b   : > { %1175 = vrot.lane.b32.xlu1 %v4951_v6, %s4587_s10  ;;  %v592_v42 = vor.u32 %v591_v45, %v587_v43  ;;  %v5310_v23 = vcombine.low %v1031_v2, %v1034_v13  ;;  %v4004_v45 = vrot.slane %v4954_v33, 9 }
  0x7c   : > { %v785_v57 = vrot.slane %v784_v50, 4 }
  0x7d   : > { %v593_v41 = vrot.slane %v592_v42, 4  ;;  %v541_v42 = vshrl.u32 %v5024_v29, 16 }
  0x7e   : > { %1157 = vrot.lane.b32.xlu0 %v4907_v61, %s4587_s10  ;;  %v974_v61 = vrot.slane %v5226_v27, 5  ;;  %v790_v20 = vsel %vm4762_vm6, %v785_v57, %v789_v52  ;;  %v733_v27 = vshrl.u32 %v5002_v17, 16  ;;  %v6314_v17 = vsel %vm4762_vm6, %v5098_v38, %v5080_v48 }
  0x7f   : > { %1265 = vrot.lane.b32.xlu1 %v5006_v18, %s4590_s13  ;;  %v588_v18 = vsel %vm4762_vm6, %v583_v8, %v587_v43  ;;  %v5301_v50 = vcombine.low %v780_v63, %v790_v20  ;;  %v598_v1 = vsel %vm4762_vm6, %v593_v41, %v597_v56  ;;  %v6313_v56 = vsel %vm4762_vm6, %v5151_v0, %v5089_v36 }
  0x80   : > { %v975_v9 = vsel %vm4717_vm5, %v4007_v3, %v974_v61  ;;  %v976_v15 = vrot.slane %v974_v61, 4  ;;  %v5308_v40 = vcombine.low %v588_v18, %v598_v1  ;;  %v5328_v35 = vcombine.low %v6314_v17, %v6313_v56 }
  0x81   : > { %v6315_v52 = vrot.slane %v4957_v31, 5  ;;  %v6316_v36 = vshrl.u32 %v4994_v7, 16  ;;  %v6317_v48 = vshll.u32 %v4994_v7, 16  ;;  %v731_v8 = vrot.slane %v729_v28, 5 }
  0x82   : > { %1159 = vrot.lane.b32.xlu0 %v4974_v46, %s4587_s10  ;;  %v978_v10 = vsel %vm4717_vm5, %v976_v15, %v977_v24  ;;  %v735_v33 = vrot.slane %v733_v27, 4  ;;  %v531_v7 = vshll.u32 %v5016_v19, 16  ;;  %v739_v31 = vshll.u32 %v5093_v4, 16 }
  0x83   : > { %1267 = vrot.lane.b32.xlu1 %v5149_v25, %s4590_s13  ;;  %v5314_v32 = vcombine.low %v975_v9, %v978_v10  ;;  %v955_v43 = vrot.slane %v6315_v52, 4  ;;  %v722_v0 = vrot.slane %v6316_v36, 4  ;;  %v725_v38 = vrot.slane %v6317_v48, 5 }
  0x84   : > { %v6318_v58 = vmov %v6315_v52  ;;  %v736_v63 = vor.u32 %v735_v33, %v731_v8  ;;  %v533_v61 = vrot.slane %v531_v7, 5  ;;  %v539_v18 = vrot.slane %v537_v39, 5 }
  0x85   : > { %v726_v62 = vor.u32 %v725_v38, %v722_v0  ;;  %v741_v26 = vrot.slane %v739_v31, 5  ;;  %v547_v20 = vshll.u32 %v5108_v22, 16 }
  0x86   : > { %1249 = vrot.lane.b32.xlu0 %v5060_v60, %s4590_s13  ;;  %v5338_v60 = vcombine.low %v5124_v34, %v5179_v53  ;;  %v957_v34 = vsel %vm4717_vm5, %v955_v43, %v956_v59  ;;  %v528_v53 = vshrl.u32 %v5016_v19, 16  ;;  %v543_v19 = vrot.slane %v541_v42, 4 }
  0x87   : > { %1341 = vrot.lane.b32.xlu1 %v5078_v37, %s4591_s14  ;;  %v954_v37 = vsel %vm4717_vm5, %v4004_v45, %v6318_v58  ;;  %v727_v41 = vrot.slane %v726_v62, 4  ;;  %v737_v2 = vrot.slane %v736_v63, 4  ;;  %v549_v13 = vrot.slane %v547_v20, 5  ;;  %v6319_v62 = vld [vmem:[#allocation12_spill] sm:$0xff] }
  0x88   : > { %v5361_v57 = vcombine.low %v954_v37, %v957_v34  ;;  %v530_v3 = vrot.slane %v528_v53, 4  ;;  %v544_v4 = vor.u32 %v543_v19, %v539_v18 }
  0x89   : > { %v742_v9 = vsel %vm4762_vm6, %v737_v2, %v741_v26 }
  0x8a   : > { %1251 = vrot.lane.b32.xlu0 %v5328_v35, %s4590_s13  ;;  %v545_v1 = vrot.slane %v544_v4, 4 }
  0x8b   : > { %1343 = vrot.lane.b32.xlu1 %v5338_v60, %s4591_s14 }
  0x8e   : > { %1325 = vrot.lane.b32.xlu0 %v5084_v21, %s4591_s14  ;;  %v534_v21 = vor.u32 %v533_v61, %v530_v3  ;;  %v6320_v3 = vld [vmem:[#allocation13_spill] sm:$0xff] }
  0x8f   : > { %1411 = vrot.lane.b32.xlu1 %v4951_v6, %s4592_s15  ;;  %v732_v6 = vsel %vm4762_vm6, %v727_v41, %v731_v8 }
  0x90   : > { %v5378_v24 = vcombine.low %v732_v6, %v742_v9  ;;  %v535_v27 = vrot.slane %v534_v21, 4  ;;  %v5513_v6 = vld [vmem:[%s4685_s9 + $0xc4] sm:$0xf] }
  0x91   : > { %v1170_v29 = vpop.permute.xlu1 %1169 }
  0x92   : > { %1327 = vrot.lane.b32.xlu0 %v5361_v57, %s4591_s14  ;;  %v540_v22 = vsel %vm4762_vm6, %v535_v27, %v539_v18  ;;  %v1232_v27 = vshrl.u32 %v5513_v6, 16 }
  0x93   : > { %1413 = vrot.lane.b32.xlu1 %v5021_v55, %s4592_s15  ;;  %v1154_v15 = vpop.permute.xlu0 %1153 }
  0x96   : > { %1395 = vrot.lane.b32.xlu0 %v4974_v46, %s4592_s15  ;;  %v550_v46 = vsel %vm4762_vm6, %v545_v1, %v549_v13  ;;  %v1228_v1 = vshll.u32 %v5513_v6, 16 }
  0x97   : > { %1503 = vrot.lane.b32.xlu1 %v5149_v25, %s4593_s23  ;;  %v5390_v17 = vcombine.low %v540_v22, %v550_v46 }
  0x98   : > { %v1230_v46 = vrot.slane %v1228_v1, 5 }
  0x99   : > { %v1100_v28 = vpop.permute.xlu1 %1099 }
  0x9a   : > { %1397 = vrot.lane.b32.xlu0 %v5052_v47, %s4592_s15 }
  0x9b   : > { %1505 = vrot.lane.b32.xlu1 %v5378_v24, %s4593_s23  ;;  %v1084_v10 = vpop.permute.xlu0 %1083 }
  0x9d   : > { %v1102_v56 = vpop.permute.xlu1 %1101 }
  0x9e   : > { %1487 = vrot.lane.b32.xlu0 %v5328_v35, %s4593_s23 }
  0x9f   : > { %1579 = vrot.lane.b32.xlu1 %v5338_v60, %s4594_s8  ;;  %v1086_v45 = vpop.permute.xlu0 %1085 }
  0xa2   : > { %1489 = vrot.lane.b32.xlu0 %v5390_v17, %s4593_s23  ;;  %v842_v52 = vpop.permute.xlu1 %841 }
  0xa3   : > { %863 = vrot.lane.b32.xlu1 %v5149_v25, %s4589_s12  ;;  %889 = vst.msk [vmem:[#allocation2 + $0x8] sm:$0xff] %vm887_vm8, %v842_v52 }
  0xa4   : > { %1133 = vst.msk [vmem:[#allocation2 + $0x8] sm:$0xff] %vm1131_vm9, %v1086_v45 }
  0xa6   : > { %1563 = vrot.lane.b32.xlu0 %v5361_v57, %s4594_s8 }
  0xa7   : > { %v840_v43 = vpop.permute.xlu0 %839  ;;  %1581 = vrot.lane.b32.xlu1 %v5153_v5, %s4594_s8 }
  0xa8   : > { %888 = vst.msk [vmem:[#allocation2] sm:$0xff] %vm887_vm8, %v840_v43 }
  0xa9   : > { %1132 = vst.msk [vmem:[#allocation2] sm:$0xff] %vm1131_vm9, %v1084_v10  ;;  %v858_v59 = vpop.permute.xlu1 %857  ;;  %v1234_v10 = vrot.slane %v1232_v27, 4 }
  0xaa   : > { %847 = vrot.lane.b32.xlu0 %v5328_v35, %s4589_s12  ;;  %897 = vst.msk [vmem:[#allocation2 + $0x48] sm:$0xff] %vm887_vm8, %v858_v59 }
  0xab   : > { %1202 = vst.msk [vmem:[#allocation2] sm:$0xff] %vm1201_vm10, %v1154_v15  ;;  %865 = vrot.lane.b32.xlu1 %v5378_v24, %s4589_s12 }
  0xac   : > { %1141 = vst.msk [vmem:[#allocation2 + $0x48] sm:$0xff] %vm1131_vm9, %v1102_v56 }
  0xad   : > { %v1172_v25 = vpop.permute.xlu1 %1171 }
  0xae   : > { %1565 = vrot.lane.b32.xlu0 %v5159_v30, %s4594_s8  ;;  %1211 = vst.msk [vmem:[#allocation2 + $0x48] sm:$0xff] %vm1201_vm10, %v1172_v25 }
  0xaf   : > { %1107 = vrot.lane.b32.xlu1 %v5338_v60, %s4588_s11 }
  0xb0   : > { %v856_v36 = vpop.permute.xlu0 %855 }
  0xb1   : > { %896 = vst.msk [vmem:[#allocation2 + $0x40] sm:$0xff] %vm887_vm8, %v856_v36  ;;  %v1262_v35 = vpop.permute.xlu1 %1261 }
  0xb2   : > { %1140 = vst.msk [vmem:[#allocation2 + $0x40] sm:$0xff] %vm1131_vm9, %v1100_v28  ;;  %849 = vrot.lane.b32.xlu0 %v5390_v17, %s4589_s12 }
  0xb3   : > { %1210 = vst.msk [vmem:[#allocation2 + $0x40] sm:$0xff] %vm1201_vm10, %v1170_v29  ;;  %1109 = vrot.lane.b32.xlu1 %v5153_v5, %s4588_s11 }
  0xb4   : > { %v1156_v0 = vpop.permute.xlu0 %1155  ;;  %1302 = vst.msk [vmem:[#allocation2 + $0x40] sm:$0xff] %vm1293_vm11, %v1262_v35 }
  0xb5   : > { %1203 = vst.msk [vmem:[#allocation2 + $0x8] sm:$0xff] %vm1201_vm10, %v1156_v0  ;;  %v1264_v60 = vpop.permute.xlu1 %1263 }
  0xb6   : > { %1091 = vrot.lane.b32.xlu0 %v5361_v57, %s4588_s11  ;;  %1303 = vst.msk [vmem:[#allocation2 + $0x48] sm:$0xff] %vm1293_vm11, %v1264_v60 }
  0xb7   : > { %1177 = vrot.lane.b32.xlu1 %v5021_v55, %s4587_s10 }
  0xb8   : > { %v1246_v48 = vpop.permute.xlu0 %1245 }
  0xb9   : > { %1294 = vst.msk [vmem:[#allocation2] sm:$0xff] %vm1293_vm11, %v1246_v48  ;;  %v1338_v38 = vpop.permute.xlu1 %1337 }
  0xba   : > { %1093 = vrot.lane.b32.xlu0 %v5159_v30, %s4588_s11  ;;  %1378 = vst.msk [vmem:[#allocation2 + $0x40] sm:$0xff] %vm1369_vm12, %v1338_v38 }
  0xbb   : > { %1179 = vrot.lane.b32.xlu1 %v5164_v12, %s4587_s10 }
  0xbc   : > { %v1248_v8 = vpop.permute.xlu0 %1247 }
  0xbd   : > { %1295 = vst.msk [vmem:[#allocation2 + $0x8] sm:$0xff] %vm1293_vm11, %v1248_v8  ;;  %v1340_v33 = vpop.permute.xlu1 %1339 }
  0xbe   : > { %1161 = vrot.lane.b32.xlu0 %v5052_v47, %s4587_s10  ;;  %1379 = vst.msk [vmem:[#allocation2 + $0x48] sm:$0xff] %vm1369_vm12, %v1340_v33 }
  0xbf   : > { %1269 = vrot.lane.b32.xlu1 %v5378_v24, %s4590_s13 }
  0xc0   : > { %v1322_v55 = vpop.permute.xlu0 %1321 }
  0xc1   : > { %1370 = vst.msk [vmem:[#allocation2] sm:$0xff] %vm1369_vm12, %v1322_v55  ;;  %v1408_v58 = vpop.permute.xlu1 %1407 }
  0xc2   : > { %1163 = vrot.lane.b32.xlu0 %v5173_v49, %s4587_s10  ;;  %1448 = vst.msk [vmem:[#allocation2 + $0x40] sm:$0xff] %vm1439_vm13, %v1408_v58 }
  0xc3   : > { %1271 = vrot.lane.b32.xlu1 %v5230_v54, %s4590_s13 }
  0xc4   : > { %v1324_v37 = vpop.permute.xlu0 %1323 }
  0xc5   : > { %1371 = vst.msk [vmem:[#allocation2 + $0x8] sm:$0xff] %vm1369_vm12, %v1324_v37  ;;  %v1410_v47 = vpop.permute.xlu1 %1409 }
  0xc6   : > { %1253 = vrot.lane.b32.xlu0 %v5390_v17, %s4590_s13  ;;  %1449 = vst.msk [vmem:[#allocation2 + $0x48] sm:$0xff] %vm1439_vm13, %v1410_v47  ;;  %v287_v17 = vld [vmem:[%s4685_s9 + $0xc8] sm:$0x1] }
  0xc7   : > { %1345 = vrot.lane.b32.xlu1 %v5153_v5, %s4591_s14  ;;  %v1238_v43 = vshll.u32 %v287_v17, 16 }
  0xc8   : > { %v1392_v34 = vpop.permute.xlu0 %1391 }
  0xc9   : > { %1440 = vst.msk [vmem:[#allocation2] sm:$0xff] %vm1439_vm13, %v1392_v34  ;;  %v1500_v53 = vpop.permute.xlu1 %1499  ;;  %v1240_v60 = vrot.slane %v1238_v43, 5  ;;  %v1316_v34 = vrot.slane %v287_v17, 5  ;;  %v6324_v43 = vld [vmem:[#allocation6_spill] sm:$0xff] }
  0xca   : > { %1255 = vrot.lane.b32.xlu0 %v5242_v44, %s4590_s13  ;;  %1540 = vst.msk [vmem:[#allocation2 + $0x40] sm:$0xff] %vm1531_vm14, %v1500_v53 }
  0xcb   : > { %1347 = vrot.lane.b32.xlu1 %v5234_v14, %s4591_s14 }
  0xcc   : > { %v1394_v7 = vpop.permute.xlu0 %1393 }
  0xcd   : > { %1441 = vst.msk [vmem:[#allocation2 + $0x8] sm:$0xff] %vm1439_vm13, %v1394_v7  ;;  %v1502_v42 = vpop.permute.xlu1 %1501 }
  0xce   : > { %1329 = vrot.lane.b32.xlu0 %v5159_v30, %s4591_s14  ;;  %1541 = vst.msk [vmem:[#allocation2 + $0x48] sm:$0xff] %vm1531_vm14, %v1502_v42  ;;  %v5569_v42 = vld [vmem:[%s4685_s9 + $0xcc] sm:$0xf] }
  0xcf   : > { %1415 = vrot.lane.b32.xlu1 %v5164_v12, %s4592_s15  ;;  %v4038_v17 = vrot.slane %v5569_v42, 9 }
  0xd0   : > { %v1484_v5 = vpop.permute.xlu0 %1483 }
  0xd1   : > { %1532 = vst.msk [vmem:[#allocation2] sm:$0xff] %vm1531_vm14, %v1484_v5  ;;  %v1576_v39 = vpop.permute.xlu1 %1575  ;;  %v5572_v5 = vld [vmem:[%s4685_s9 + $0xd0] sm:$0xf] }
  0xd2   : > { %1331 = vrot.lane.b32.xlu0 %v5251_v11, %s4591_s14  ;;  %1616 = vst.msk [vmem:[#allocation2 + $0x40] sm:$0xff] %vm1607_vm15, %v1576_v39  ;;  %v6321_v39 = vld [vmem:[#allocation11_spill] sm:$0xff] }
  0xd3   : > { %1417 = vrot.lane.b32.xlu1 %v6319_v62, %s4592_s15 }
  0xd4   : > { %v1486_v63 = vpop.permute.xlu0 %1485 }
  0xd5   : > { %1533 = vst.msk [vmem:[#allocation2 + $0x8] sm:$0xff] %vm1531_vm14, %v1486_v63  ;;  %v860_v30 = vpop.permute.xlu1 %859 }
  0xd6   : > { %1399 = vrot.lane.b32.xlu0 %v5173_v49, %s4592_s15  ;;  %898 = vst.msk [vmem:[#allocation2 + $0x50] sm:$0xff] %vm887_vm8, %v860_v30  ;;  %v1457_v30 = vshrl.u32 %v5569_v42, 16 }
  0xd7   : > { %1507 = vrot.lane.b32.xlu1 %v5230_v54, %s4593_s23 }
  0xd8   : > { %v1560_v12 = vpop.permute.xlu0 %1559 }
  0xd9   : > { %1608 = vst.msk [vmem:[#allocation2] sm:$0xff] %vm1607_vm15, %v1560_v12  ;;  %v1578_v31 = vpop.permute.xlu1 %1577  ;;  %v1632_v57 = vld [vmem:[#allocation2 + $0x40] sm:$0xff]  ;;  %v1460_v12 = vshll.u32 %v5569_v42, 16 }
  0xda   : > { %1401 = vrot.lane.b32.xlu0 %v6320_v3, %s4592_s15  ;;  %1617 = vst.msk [vmem:[#allocation2 + $0x48] sm:$0xff] %vm1607_vm15, %v1578_v31  ;;  %4420 = vmatprep.mubr.msk.bf16.mxu1 %vm1676_vm0, %v1632_v57  ;;  %v1470_v31 = vshrl.u32 %v5572_v5, 16  ;;  %v1466_v57 = vshll.u32 %v5572_v5, 16 }
  0xdb   : > { %1509 = vrot.lane.b32.xlu1 %v5301_v50, %s4593_s23 }
  0xdc   : > { %v844_v49 = vpop.permute.xlu0 %843 }
  0xdd   : > { %890 = vst.msk [vmem:[#allocation2 + $0x10] sm:$0xff] %vm887_vm8, %v844_v49  ;;  %v862_v61 = vpop.permute.xlu1 %861 }
  0xde   : > { %1491 = vrot.lane.b32.xlu0 %v5242_v44, %s4593_s23  ;;  %899 = vst.msk [vmem:[#allocation2 + $0x58] sm:$0xff] %vm887_vm8, %v862_v61 }
  0xdf   : > { %1583 = vrot.lane.b32.xlu1 %v5234_v14, %s4594_s8 }
  0xe0   : > { %v1562_v18 = vpop.permute.xlu0 %1561  ;;  %v1624_v19 = vld [vmem:[#allocation2] sm:$0xff] }
  0xe1   : > { %1609 = vst.msk [vmem:[#allocation2 + $0x8] sm:$0xff] %vm1607_vm15, %v1562_v18  ;;  %4404 = vmatprep.mubr.msk.bf16.mxu0 %vm1676_vm0, %v1624_v19  ;;  %v1104_v41 = vpop.permute.xlu1 %1103  ;;  %v1633_v2 = vld [vmem:[#allocation2 + $0x48] sm:$0xff]  ;;  %v1459_v18 = vrot.slane %v1457_v30, 4  ;;  %v1462_v19 = vrot.slane %v1460_v12, 5 }
  0xe2   : > { %1493 = vrot.lane.b32.xlu0 %v5308_v40, %s4593_s23  ;;  %1142 = vst.msk [vmem:[#allocation2 + $0x50] sm:$0xff] %vm1131_vm9, %v1104_v41  ;;  %4421 = vmatmul.mubr.msk.bf16.vlgmr.msra.gmra.mrb[0].mxu1 %vm1676_vm0, %v1633_v2  ;;  %v1468_v41 = vrot.slane %v1466_v57, 5  ;;  %v1472_v2 = vrot.slane %v1470_v31, 4 }
  0xe3   : > { %867 = vrot.lane.b32.xlu1 %v5230_v54, %s4589_s12  ;;  %v5510_v54 = vld [vmem:[%s4685_s9 + $0xc0] sm:$0xf] }
  0xe4   : > { %v846_v26 = vpop.permute.xlu0 %845  ;;  %v1219_v15 = vshrl.u32 %v5510_v54, 16  ;;  %v1222_v24 = vshll.u32 %v5510_v54, 16  ;;  %v5545_v25 = vcombine.low %v5510_v54, %v5513_v6  ;;  %v4034_v37 = vrot.slane %v5510_v54, 9 }
  0xe5   : > { %891 = vst.msk [vmem:[#allocation2 + $0x18] sm:$0xff] %vm887_vm8, %v846_v26  ;;  %v1106_v29 = vpop.permute.xlu1 %1105 }
  0xe6   : > { %1567 = vrot.lane.b32.xlu0 %v5251_v11, %s4594_s8  ;;  %1143 = vst.msk [vmem:[#allocation2 + $0x58] sm:$0xff] %vm1131_vm9, %v1106_v29  ;;  %v1221_v28 = vrot.slane %v1219_v15, 4  ;;  %v1224_v22 = vrot.slane %v1222_v24, 5  ;;  %v290_v29 = vld [vmem:[%s4685_s9 + $0xd4] sm:$0x1]  ;;  %s4449_s9 = smul.u32 80, %s4679_s30 }
  0xe7   : > { %1585 = vrot.lane.b32.xlu1 %v5310_v23, %s4594_s8  ;;  %v1554_v51 = vrot.slane %v290_v29, 5  ;;  %s216_s30 = sand.u32 1, %s4577_s19  }
  0xe8   : > { %v1088_v21 = vpop.permute.xlu0 %1087  ;;  %v1625_v4 = vld [vmem:[#allocation2 + $0x8] sm:$0xff]  ;;  %v1225_v52 = vor.u32 %v1224_v22, %v1221_v28  ;;  %v1551_v22 = vrot.slane %v5572_v5, 5  ;;  %s3965_s7 = sshll.u32 %s216_s30, 8 }
  0xe9   : > { %1134 = vst.msk [vmem:[#allocation2 + $0x10] sm:$0xff] %vm1131_vm9, %v1088_v21  ;;  %4405 = vmatmul.mubr.msk.bf16.vlgmr.msra.gmra.mrb[0].mxu0 %vm1676_vm0, %v1625_v4  ;;  %v1174_v20 = vpop.permute.xlu1 %1173  ;;  %v6322_v21 = vld [vmem:[#allocation10_spill] sm:$0xff]  ;;  %v1463_v4 = vor.u32 %v1462_v19, %v1459_v18 }
  0xea   : > { %851 = vrot.lane.b32.xlu0 %v5242_v44, %s4589_s12  ;;  %1212 = vst.msk [vmem:[#allocation2 + $0x50] sm:$0xff] %vm1201_vm10, %v1174_v20  ;;  %v1226_v35 = vrot.slane %v1225_v52, 4  ;;  %v1476_v20 = vshll.u32 %v290_v29, 16 }
  0xeb   : > { %869 = vrot.lane.b32.xlu1 %v5301_v50, %s4589_s12  ;;  %v1464_v15 = vrot.slane %v1463_v4, 4 }
  0xec   : > { %v1090_v9 = vpop.permute.xlu0 %1089  ;;  %v1231_v8 = vsel %vm4762_vm6, %v1226_v35, %v1230_v46  ;;  %v1478_v27 = vrot.slane %v1476_v20, 5 }
  0xed   : > { %1135 = vst.msk [vmem:[#allocation2 + $0x18] sm:$0xff] %vm1131_vm9, %v1090_v9  ;;  %v1176_v13 = vpop.permute.xlu1 %1175 }
  0xee   : > { %1569 = vrot.lane.b32.xlu0 %v5314_v32, %s4594_s8  ;;  %1213 = vst.msk [vmem:[#allocation2 + $0x58] sm:$0xff] %vm1201_vm10, %v1176_v13  ;;  %v6323_v13 = vld [vmem:[#allocation7_spill] sm:$0xff] }
  0xef   : > { %1111 = vrot.lane.b32.xlu1 %v5234_v14, %s4588_s11  ;;  %v1235_v14 = vor.u32 %v1234_v10, %v1230_v46 }
  0xf0   : > { %v1158_v44 = vpop.permute.xlu0 %1157 }
  0xf1   : > { %1204 = vst.msk [vmem:[#allocation2 + $0x10] sm:$0xff] %vm1201_vm10, %v1158_v44  ;;  %v1266_v56 = vpop.permute.xlu1 %1265  ;;  %v1236_v0 = vrot.slane %v1235_v14, 4  ;;  %v1469_v44 = vsel %vm4762_vm6, %v1464_v15, %v1468_v41 }
  0xf2   : > { %853 = vrot.lane.b32.xlu0 %v5308_v40, %s4589_s12  ;;  %1304 = vst.msk [vmem:[#allocation2 + $0x50] sm:$0xff] %vm1293_vm11, %v1266_v56 }
  0xf3   : > { %1113 = vrot.lane.b32.xlu1 %v5310_v23, %s4588_s11  ;;  %v1241_v33 = vsel %vm4762_vm6, %v1236_v0, %v1240_v60 }
  0xf4   : > { %v1160_v45 = vpop.permute.xlu0 %1159  ;;  %v5564_v58 = vcombine.low %v1231_v8, %v1241_v33 }
  0xf5   : > { %1205 = vst.msk [vmem:[#allocation2 + $0x18] sm:$0xff] %vm1201_vm10, %v1160_v45  ;;  %v1268_v59 = vpop.permute.xlu1 %1267  ;;  %v1553_v45 = vrot.slane %v1551_v22, 4 }
  0xf6   : > { %1095 = vrot.lane.b32.xlu0 %v5251_v11, %s4588_s11  ;;  %1305 = vst.msk [vmem:[#allocation2 + $0x58] sm:$0xff] %vm1293_vm11, %v1268_v59  ;;  %v1313_v11 = vrot.slane %v5513_v6, 5  ;;  %v4036_v6 = vcombine.low %v5569_v42, %v5572_v5 }
  0xf7   : > { %1181 = vrot.lane.b32.xlu1 %v6319_v62, %s4587_s10 }
  0xf8   : > { %v1250_v36 = vpop.permute.xlu0 %1249  ;;  %v1315_v47 = vrot.slane %v1313_v11, 4 }
  0xf9   : > { %1296 = vst.msk [vmem:[#allocation2 + $0x10] sm:$0xff] %vm1293_vm11, %v1250_v36  ;;  %v1342_v48 = vpop.permute.xlu1 %1341  ;;  %v1555_v36 = vsel %vm4717_vm5, %v1553_v45, %v1554_v51 }
  0xfa   : > { %1097 = vrot.lane.b32.xlu0 %v5314_v32, %s4588_s11  ;;  %1380 = vst.msk [vmem:[#allocation2 + $0x50] sm:$0xff] %vm1369_vm12, %v1342_v48  ;;  %v1317_v62 = vsel %vm4717_vm5, %v1315_v47, %v1316_v34  ;;  %v6326_v47 = vld [vmem:[#allocation8_spill] sm:$0xff] }
  0xfb   : > { %1183 = vrot.lane.b32.xlu1 %v5545_v25, %s4587_s10 }
  0xfc   : > { %v1252_v38 = vpop.permute.xlu0 %1251 }
  0xfd   : > { %1297 = vst.msk [vmem:[#allocation2 + $0x18] sm:$0xff] %vm1293_vm11, %v1252_v38  ;;  %v1344_v55 = vpop.permute.xlu1 %1343  ;;  %v6325_v38 = vld [vmem:[#allocation9_spill] sm:$0xff] }
  0xfe   : > { %1165 = vrot.lane.b32.xlu0 %v6320_v3, %s4587_s10  ;;  %1381 = vst.msk [vmem:[#allocation2 + $0x58] sm:$0xff] %vm1369_vm12, %v1344_v55 }
  0xff   : > { %1273 = vrot.lane.b32.xlu1 %v5301_v50, %s4590_s13  ;;  %v1314_v50 = vsel %vm4717_vm5, %v4034_v37, %v1313_v11 }
 0x100   : > { %v1326_v53 = vpop.permute.xlu0 %1325  ;;  %v4035_v49 = vcombine.low %v1314_v50, %v1317_v62 }
 0x101   : > { %1372 = vst.msk [vmem:[#allocation2 + $0x10] sm:$0xff] %vm1369_vm12, %v1326_v53  ;;  %v1412_v7 = vpop.permute.xlu1 %1411 }
 0x102   : > { %1167 = vrot.lane.b32.xlu0 %v6321_v39, %s4587_s10  ;;  %1450 = vst.msk [vmem:[#allocation2 + $0x50] sm:$0xff] %vm1439_vm13, %v1412_v7 }
 0x103   : > { %1275 = vrot.lane.b32.xlu1 %v5564_v58, %s4590_s13 }
 0x104   : > { %v1328_v63 = vpop.permute.xlu0 %1327 }
 0x105   : > { %1373 = vst.msk [vmem:[#allocation2 + $0x18] sm:$0xff] %vm1369_vm12, %v1328_v63  ;;  %v1414_v3 = vpop.permute.xlu1 %1413 }
 0x106   : > { %1257 = vrot.lane.b32.xlu0 %v5308_v40, %s4590_s13  ;;  %1451 = vst.msk [vmem:[#allocation2 + $0x58] sm:$0xff] %vm1439_vm13, %v1414_v3 }
 0x107   : > { %1349 = vrot.lane.b32.xlu1 %v5310_v23, %s4591_s14  ;;  %v1473_v23 = vor.u32 %v1472_v2, %v1468_v41 }
 0x108   : > { %v1396_v61 = vpop.permute.xlu0 %1395 }
 0x109   : > { %1442 = vst.msk [vmem:[#allocation2 + $0x10] sm:$0xff] %vm1439_vm13, %v1396_v61  ;;  %v1504_v26 = vpop.permute.xlu1 %1503  ;;  %v1474_v24 = vrot.slane %v1473_v23, 4 }
 0x10a   : > { %1259 = vrot.lane.b32.xlu0 %v6322_v21, %s4590_s13  ;;  %1542 = vst.msk [vmem:[#allocation2 + $0x50] sm:$0xff] %vm1531_vm14, %v1504_v26  ;;  %s5685_s13 = scalar_lea.vmem %s6285_s5, %s4449_s9  ;;  %s4372_s9 = sshll.u32 %s4650_s22, 12 }
 0x10b   : > { %1351 = vrot.lane.b32.xlu1 %v4035_v49, %s4591_s14  ;;  %v1479_v28 = vsel %vm4762_vm6, %v1474_v24, %v1478_v27  ;;  %vm3663_vm6 = vcmask 1044484  }
 0x10c   : > { %v1398_v40 = vpop.permute.xlu0 %1397  ;;  %v4037_v10 = vcombine.low %v1469_v44, %v1479_v28 }
 0x10d   : > { %1443 = vst.msk [vmem:[#allocation2 + $0x18] sm:$0xff] %vm1439_vm13, %v1398_v40  ;;  %v1506_v54 = vpop.permute.xlu1 %1505 }
 0x10e   : > { %1333 = vrot.lane.b32.xlu0 %v5314_v32, %s4591_s14  ;;  %1543 = vst.msk [vmem:[#allocation2 + $0x58] sm:$0xff] %vm1531_vm14, %v1506_v54 }
 0x10f   : > { %1419 = vrot.lane.b32.xlu1 %v5545_v25, %s4592_s15  ;;  %v1552_v25 = vsel %vm4717_vm5, %v4038_v17, %v1551_v22  ;;  %vm3660_vm5 = vcmask 1043459  }
 0x110   : > { %v1488_v9 = vpop.permute.xlu0 %1487  ;;  %v4039_v0 = vcombine.low %v1552_v25, %v1555_v36 }
 0x111   : > { %1534 = vst.msk [vmem:[#allocation2 + $0x10] sm:$0xff] %vm1531_vm14, %v1488_v9  ;;  %v1580_v1 = vpop.permute.xlu1 %1579  ;;  %v4595_v9 = vmov 0  }
 0x112   : > { %1335 = vrot.lane.b32.xlu0 %v6323_v13, %s4591_s14  ;;  %1618 = vst.msk [vmem:[#allocation2 + $0x50] sm:$0xff] %vm1607_vm15, %v1580_v1  ;;  %s6180_s14 = scalar_lea.hbm %s6284_s4, %s4372_s9 }
 0x113   : > { %1421 = vrot.lane.b32.xlu1 %v4036_v6, %s4592_s15  ;;  %3380 = vst.msk [vmem:[%s5685_s13 + $0x4] sm:$0x1] %vm3379_vm1, %v4595_v9  ;;  %3382 = vst.msk [vmem:[%s5685_s13 + $0xc] sm:$0x1] %vm3379_vm1, %v4595_v9 }
 0x114   : > { %v1490_v32 = vpop.permute.xlu0 %1489  ;;  %3398 = vst.msk [vmem:[%s5685_s13 + $0x4c] sm:$0x1] %vm3379_vm1, %v4595_v9  ;;  %3384 = vst.msk [vmem:[%s5685_s13 + $0x14] sm:$0x1] %vm3379_vm1, %v4595_v9 }
 0x115   : > { %1535 = vst.msk [vmem:[#allocation2 + $0x18] sm:$0xff] %vm1531_vm14, %v1490_v32  ;;  %v864_v46 = vpop.permute.xlu1 %863 }
 0x116   : > { %1403 = vrot.lane.b32.xlu0 %v6321_v39, %s4592_s15  ;;  %900 = vst.msk [vmem:[#allocation2 + $0x60] sm:$0xff] %vm887_vm8, %v864_v46 }
 0x117   : > { %1511 = vrot.lane.b32.xlu1 %v5564_v58, %s4593_s23  ;;  %3386 = vst.msk [vmem:[%s5685_s13 + $0x1c] sm:$0x1] %vm3379_vm1, %v4595_v9  ;;  %3388 = vst.msk [vmem:[%s5685_s13 + $0x24] sm:$0x1] %vm3379_vm1, %v4595_v9 }
 0x118   : > { %v1564_v56 = vpop.permute.xlu0 %1563  ;;  %3390 = vst.msk [vmem:[%s5685_s13 + $0x2c] sm:$0x1] %vm3379_vm1, %v4595_v9  ;;  %3392 = vst.msk [vmem:[%s5685_s13 + $0x34] sm:$0x1] %vm3379_vm1, %v4595_v9 }
 0x119   : > { %1610 = vst.msk [vmem:[#allocation2 + $0x10] sm:$0xff] %vm1607_vm15, %v1564_v56  ;;  %v1582_v52 = vpop.permute.xlu1 %1581  ;;  %v1634_v14 = vld [vmem:[#allocation2 + $0x50] sm:$0xff] }
 0x11a   : > { %1405 = vrot.lane.b32.xlu0 %v6324_v43, %s4592_s15  ;;  %1619 = vst.msk [vmem:[#allocation2 + $0x58] sm:$0xff] %vm1607_vm15, %v1582_v52  ;;  %4424 = vmatprep.mubr.msk.bf16.mxu1 %vm1676_vm0, %v1634_v14  ;;  %s6201_s15 = scalar_lea.sflag [#allocation4], %s216_s30 }
 0x11b   : > { %1513 = vrot.lane.b32.xlu1 %v4037_v10, %s4593_s23  ;;  %3394 = vst.msk [vmem:[%s5685_s13 + $0x3c] sm:$0x1] %vm3379_vm1, %v4595_v9  ;;  %3396 = vst.msk [vmem:[%s5685_s13 + $0x44] sm:$0x1] %vm3379_vm1, %v4595_v9 }
 0x11c   : > { %v848_v59 = vpop.permute.xlu0 %847  ;;  %3378 = vst.msk [vmem:[%s5685_s13] sm:$0xf] %vm3377_vm2, %v4595_v9  ;;  %3381 = vst.msk [vmem:[%s5685_s13 + $0x8] sm:$0xf] %vm3377_vm2, %v4595_v9 }
 0x11d   : > { %892 = vst.msk [vmem:[#allocation2 + $0x20] sm:$0xff] %vm887_vm8, %v848_v59  ;;  %v866_v35 = vpop.permute.xlu1 %865 }
 0x11e   : > { %1495 = vrot.lane.b32.xlu0 %v6322_v21, %s4593_s23  ;;  %901 = vst.msk [vmem:[#allocation2 + $0x68] sm:$0xff] %vm887_vm8, %v866_v35 }
 0x11f   : > { %1587 = vrot.lane.b32.xlu1 %v4035_v49, %s4594_s8  ;;  %3397 = vst.msk [vmem:[%s5685_s13 + $0x48] sm:$0xf] %vm3377_vm2, %v4595_v9  ;;  %3383 = vst.msk [vmem:[%s5685_s13 + $0x10] sm:$0xf] %vm3377_vm2, %v4595_v9 }
 0x120   : > { %v1566_v60 = vpop.permute.xlu0 %1565  ;;  %v1626_v48 = vld [vmem:[#allocation2 + $0x10] sm:$0xff]  ;;  %3385 = vst.msk [vmem:[%s5685_s13 + $0x18] sm:$0xf] %vm3377_vm2, %v4595_v9  ;;  %3387 = vst.msk [vmem:[%s5685_s13 + $0x20] sm:$0xf] %vm3377_vm2, %v4595_v9 }
 0x121   : > { %1611 = vst.msk [vmem:[#allocation2 + $0x18] sm:$0xff] %vm1607_vm15, %v1566_v60  ;;  %4408 = vmatprep.mubr.msk.bf16.mxu0 %vm1676_vm0, %v1626_v48  ;;  %v1108_v11 = vpop.permute.xlu1 %1107  ;;  %v1635_v16 = vld [vmem:[#allocation2 + $0x58] sm:$0xff] }
 0x122   : > { %1497 = vrot.lane.b32.xlu0 %v6325_v38, %s4593_s23  ;;  %1144 = vst.msk [vmem:[#allocation2 + $0x60] sm:$0xff] %vm1131_vm9, %v1108_v11  ;;  %4425 = vmatmul.mubr.msk.bf16.gmra.mrb[4].mxu1 %vm1676_vm0, %v1635_v16 }
 0x123   : > { %1589 = vrot.lane.b32.xlu1 %v4039_v0, %s4594_s8  ;;  %3389 = vst.msk [vmem:[%s5685_s13 + $0x28] sm:$0xf] %vm3377_vm2, %v4595_v9  ;;  %3391 = vst.msk [vmem:[%s5685_s13 + $0x30] sm:$0xf] %vm3377_vm2, %v4595_v9 }
 0x124   : > { %v850_v8 = vpop.permute.xlu0 %849  ;;  %3393 = vst.msk [vmem:[%s5685_s13 + $0x38] sm:$0xf] %vm3377_vm2, %v4595_v9  ;;  %3395 = vst.msk [vmem:[%s5685_s13 + $0x40] sm:$0xf] %vm3377_vm2, %v4595_v9 }
 0x125   : > { %893 = vst.msk [vmem:[#allocation2 + $0x28] sm:$0xff] %vm887_vm8, %v850_v8  ;;  %v1110_v33 = vpop.permute.xlu1 %1109 }
 0x126   : > { %1571 = vrot.lane.b32.xlu0 %v6323_v13, %s4594_s8  ;;  %1145 = vst.msk [vmem:[#allocation2 + $0x68] sm:$0xff] %vm1131_vm9, %v1110_v33 }
 0x128   : > { %v1092_v55 = vpop.permute.xlu0 %1091  ;;  %v1627_v58 = vld [vmem:[#allocation2 + $0x18] sm:$0xff] }
 0x129   : > { %1136 = vst.msk [vmem:[#allocation2 + $0x20] sm:$0xff] %vm1131_vm9, %v1092_v55  ;;  %4409 = vmatmul.mubr.msk.bf16.gmra.mrb[4].mxu0 %vm1676_vm0, %v1627_v58  ;;  %v1178_v37 = vpop.permute.xlu1 %1177 }
 0x12a   : > { %1573 = vrot.lane.b32.xlu0 %v6326_v47, %s4594_s8  ;;  %1214 = vst.msk [vmem:[#allocation2 + $0x60] sm:$0xff] %vm1201_vm10, %v1178_v37  ;;  %s5788_s8 = scalar_lea.vmem [#allocation3], %s3965_s7  ;;  %s4527_s7 = sshll.u32 %s4597_s6, 4  ;;  %s4528_s7 = int_to_ptr.vmem [resolvable:$false] %s4527_s7 }
 0x12b   : > { %s3871_s10 = sshll.u32 %s5788_s8, 4  ;;  %s6186_s10 = int_to_ptr.vmem [resolvable:$true] %s3871_s10 }
 0x12c   : > { %v1094_v34 = vpop.permute.xlu0 %1093  ;;  %s4523_s23 = scalar_lea.vmem %s6186_s10, 4096  ;;  %p4530_p0 = scmp.lt.s32.totalorder %s6186_s10, %s4528_s7 }
 0x12d   : > { %1137 = vst.msk [vmem:[#allocation2 + $0x28] sm:$0xff] %vm1131_vm9, %v1094_v34  ;;  %v1180_v53 = vpop.permute.xlu1 %1179  ;;  %p4524_p11 = scmp.ne.s32.totalorder %s6186_s10, %s4523_s23 }
 0x12e   : > { %1215 = vst.msk [vmem:[#allocation2 + $0x68] sm:$0xff] %vm1201_vm10, %v1180_v53  ;;  %v4596_v53 = vmov 1983009808  }
 0x12f   : > { %p4525_p12 = pnand %p4524_p11, %p4667_p5 }
 0x130   : > { %v1162_v7 = vpop.permute.xlu0 %1161 }
 0x131   : > { %1206 = vst.msk [vmem:[#allocation2 + $0x20] sm:$0xff] %vm1201_vm10, %v1162_v7  ;;  %v1270_v42 = vpop.permute.xlu1 %1269  ;;  %v2067_v7 = vunpack.c.l.s4 %v4596_v53  ;;  %p4526_p13 = pneg %p4525_p12 }
 0x132   : > { %1306 = vst.msk [vmem:[#allocation2 + $0x60] sm:$0xff] %vm1293_vm11, %v1270_v42  ;;  %v2069_v42 = vlaneseq }
 0x134   : > { %v1164_v5 = vpop.permute.xlu0 %1163 }
 0x135   : > { %1207 = vst.msk [vmem:[#allocation2 + $0x28] sm:$0xff] %vm1201_vm10, %v1164_v5  ;;  %v1272_v39 = vpop.permute.xlu1 %1271  ;;  %v5769_v5 = vld [vmem:[%s6282_s2] ss:$0 sm:$0xff] }
 0x136   : > { %1307 = vst.msk [vmem:[#allocation2 + $0x68] sm:$0xff] %vm1293_vm11, %v1272_v39  ;;  %v2068_v39 = vunpack.c.0.s8 %v2067_v7 }
 0x138   : > { %v1254_v50 = vpop.permute.xlu0 %1253 }
 0x139   : > { %1298 = vst.msk [vmem:[#allocation2 + $0x20] sm:$0xff] %vm1293_vm11, %v1254_v50  ;;  %v1346_v62 = vpop.permute.xlu1 %1345  ;;  %v2070_v50 = vshrl.u32 %v2069_v42, 7 }
 0x13a   : > { %1382 = vst.msk [vmem:[#allocation2 + $0x60] sm:$0xff] %vm1369_vm12, %v1346_v62  ;;  %v5774_v62 = vld [vmem:[%s6283_s3] ss:$0 sm:$0xff] }
 0x13c   : > { %v1256_v63 = vpop.permute.xlu0 %1255 }
 0x13d   : > { %1299 = vst.msk [vmem:[#allocation2 + $0x28] sm:$0xff] %vm1293_vm11, %v1256_v63  ;;  %v1348_v30 = vpop.permute.xlu1 %1347 }
 0x13e   : > { %1383 = vst.msk [vmem:[#allocation2 + $0x68] sm:$0xff] %vm1369_vm12, %v1348_v30 }
 0x140   : > { %v1330_v12 = vpop.permute.xlu0 %1329 }
 0x141   : > { %1374 = vst.msk [vmem:[#allocation2 + $0x20] sm:$0xff] %vm1369_vm12, %v1330_v12  ;;  %v1416_v31 = vpop.permute.xlu1 %1415 }
 0x142   : > { %1452 = vst.msk [vmem:[#allocation2 + $0x60] sm:$0xff] %vm1439_vm13, %v1416_v31 }
 0x144   : > { %v1332_v57 = vpop.permute.xlu0 %1331 }
 0x145   : > { %1375 = vst.msk [vmem:[#allocation2 + $0x28] sm:$0xff] %vm1369_vm12, %v1332_v57  ;;  %v1418_v3 = vpop.permute.xlu1 %1417 }
 0x146   : > { %1453 = vst.msk [vmem:[#allocation2 + $0x68] sm:$0xff] %vm1439_vm13, %v1418_v3  ;;  %v5780_v3 = vsub.s32 %v2068_v39, %v2070_v50 }
 0x148   : > { %v1400_v49 = vpop.permute.xlu0 %1399 }
 0x149   : > { %1444 = vst.msk [vmem:[#allocation2 + $0x20] sm:$0xff] %vm1439_vm13, %v1400_v49  ;;  %v1508_v61 = vpop.permute.xlu1 %1507 }
 0x14a   : > { %1544 = vst.msk [vmem:[#allocation2 + $0x60] sm:$0xff] %vm1531_vm14, %v1508_v61 }
 0x14c   : > { %v1402_v18 = vpop.permute.xlu0 %1401 }
 0x14d   : > { %1445 = vst.msk [vmem:[#allocation2 + $0x28] sm:$0xff] %vm1439_vm13, %v1402_v18  ;;  %v1510_v19 = vpop.permute.xlu1 %1509 }
 0x14e   : > { %1545 = vst.msk [vmem:[#allocation2 + $0x68] sm:$0xff] %vm1531_vm14, %v1510_v19 }
 0x150   : > { %v1492_v41 = vpop.permute.xlu0 %1491 }
 0x151   : > { %1536 = vst.msk [vmem:[#allocation2 + $0x20] sm:$0xff] %vm1531_vm14, %v1492_v41  ;;  %v1584_v2 = vpop.permute.xlu1 %1583 }
 0x152   : > { %1620 = vst.msk [vmem:[#allocation2 + $0x60] sm:$0xff] %vm1607_vm15, %v1584_v2 }
 0x154   : > { %v1494_v26 = vpop.permute.xlu0 %1493 }
 0x155   : > { %1537 = vst.msk [vmem:[#allocation2 + $0x28] sm:$0xff] %vm1531_vm14, %v1494_v26  ;;  %v868_v29 = vpop.permute.xlu1 %867 }
 0x156   : > { %902 = vst.msk [vmem:[#allocation2 + $0x70] sm:$0xff] %vm887_vm8, %v868_v29 }
 0x158   : > { %v1568_v21 = vpop.permute.xlu0 %1567 }
 0x159   : > { %1612 = vst.msk [vmem:[#allocation2 + $0x20] sm:$0xff] %vm1607_vm15, %v1568_v21  ;;  %v1586_v40 = vpop.permute.xlu1 %1585  ;;  %v1636_v4 = vld [vmem:[#allocation2 + $0x60] sm:$0xff] }
 0x15a   : > { %1621 = vst.msk [vmem:[#allocation2 + $0x68] sm:$0xff] %vm1607_vm15, %v1586_v40  ;;  %4428 = vmatprep.mubr.msk.bf16.mxu1 %vm1676_vm0, %v1636_v4 }
 0x15c   : > { %v852_v23 = vpop.permute.xlu0 %851 }
 0x15d   : > { %894 = vst.msk [vmem:[#allocation2 + $0x30] sm:$0xff] %vm887_vm8, %v852_v23  ;;  %v870_v20 = vpop.permute.xlu1 %869 }
 0x15e   : > { %903 = vst.msk [vmem:[#allocation2 + $0x78] sm:$0xff] %vm887_vm8, %v870_v20 }
 0x160   : > { %v1570_v54 = vpop.permute.xlu0 %1569  ;;  %v1628_v6 = vld [vmem:[#allocation2 + $0x20] sm:$0xff] }
 0x161   : > { %1613 = vst.msk [vmem:[#allocation2 + $0x28] sm:$0xff] %vm1607_vm15, %v1570_v54  ;;  %4412 = vmatprep.mubr.msk.bf16.mxu0 %vm1676_vm0, %v1628_v6  ;;  %v1112_v15 = vpop.permute.xlu1 %1111  ;;  %v1637_v24 = vld [vmem:[#allocation2 + $0x68] sm:$0xff] }
 0x162   : > { %1146 = vst.msk [vmem:[#allocation2 + $0x70] sm:$0xff] %vm1131_vm9, %v1112_v15  ;;  %4429 = vmatmul.mubr.msk.bf16.gmra.mrb[8].mxu1 %vm1676_vm0, %v1637_v24 }
 0x164   : > { %v854_v27 = vpop.permute.xlu0 %853 }
 0x165   : > { %895 = vst.msk [vmem:[#allocation2 + $0x38] sm:$0xff] %vm887_vm8, %v854_v27  ;;  %v1114_v1 = vpop.permute.xlu1 %1113  ;;  %vm3666_vm8 = vcmask 1045509  }
 0x166   : > { %1147 = vst.msk [vmem:[#allocation2 + $0x78] sm:$0xff] %vm1131_vm9, %v1114_v1 }
 0x168   : > { %v1096_v13 = vpop.permute.xlu0 %1095  ;;  %v1629_v32 = vld [vmem:[#allocation2 + $0x28] sm:$0xff] }
 0x169   : > { %1138 = vst.msk [vmem:[#allocation2 + $0x30] sm:$0xff] %vm1131_vm9, %v1096_v13  ;;  %4413 = vmatmul.mubr.msk.bf16.gmra.mrb[8].mxu0 %vm1676_vm0, %v1629_v32  ;;  %v1182_v44 = vpop.permute.xlu1 %1181 }
 0x16a   : > { %1216 = vst.msk [vmem:[#allocation2 + $0x70] sm:$0xff] %vm1201_vm10, %v1182_v44 }
 0x16c   : > { %v1098_v28 = vpop.permute.xlu0 %1097 }
 0x16d   : > { %1139 = vst.msk [vmem:[#allocation2 + $0x38] sm:$0xff] %vm1131_vm9, %v1098_v28  ;;  %v1184_v22 = vpop.permute.xlu1 %1183  ;;  %vm3669_vm9 = vcmask 1046534  }
 0x16e   : > { %1217 = vst.msk [vmem:[#allocation2 + $0x78] sm:$0xff] %vm1201_vm10, %v1184_v22 }
 0x170   : > { %v1166_v46 = vpop.permute.xlu0 %1165 }
 0x171   : > { %1208 = vst.msk [vmem:[#allocation2 + $0x30] sm:$0xff] %vm1201_vm10, %v1166_v46  ;;  %v1274_v10 = vpop.permute.xlu1 %1273 }
 0x172   : > { %1308 = vst.msk [vmem:[#allocation2 + $0x70] sm:$0xff] %vm1293_vm11, %v1274_v10 }
 0x174   : > { %v1168_v56 = vpop.permute.xlu0 %1167 }
 0x175   : > { %1209 = vst.msk [vmem:[#allocation2 + $0x38] sm:$0xff] %vm1201_vm10, %v1168_v56  ;;  %v1276_v17 = vpop.permute.xlu1 %1275  ;;  %vm3672_vm10 = vcmask 1047559  }
 0x176   : > { %1309 = vst.msk [vmem:[#allocation2 + $0x78] sm:$0xff] %vm1293_vm11, %v1276_v17 }
 0x178   : > { %v1258_v45 = vpop.permute.xlu0 %1257 }
 0x179   : > { %1300 = vst.msk [vmem:[#allocation2 + $0x30] sm:$0xff] %vm1293_vm11, %v1258_v45  ;;  %v1350_v51 = vpop.permute.xlu1 %1349 }
 0x17a   : > { %1384 = vst.msk [vmem:[#allocation2 + $0x70] sm:$0xff] %vm1369_vm12, %v1350_v51 }
 0x17c   : > { %v1260_v52 = vpop.permute.xlu0 %1259 }
 0x17d   : > { %1301 = vst.msk [vmem:[#allocation2 + $0x38] sm:$0xff] %vm1293_vm11, %v1260_v52  ;;  %v1352_v14 = vpop.permute.xlu1 %1351  ;;  %vm3799_vm11 = vsmask.f32 7938 }
 0x17e   : > { %1385 = vst.msk [vmem:[#allocation2 + $0x78] sm:$0xff] %vm1369_vm12, %v1352_v14 }
 0x180   : > { %v1334_v43 = vpop.permute.xlu0 %1333 }
 0x181   : > { %1376 = vst.msk [vmem:[#allocation2 + $0x30] sm:$0xff] %vm1369_vm12, %v1334_v43  ;;  %v1420_v59 = vpop.permute.xlu1 %1419 }
 0x182   : > { %1454 = vst.msk [vmem:[#allocation2 + $0x70] sm:$0xff] %vm1439_vm13, %v1420_v59 }
 0x184   : > { %v1336_v25 = vpop.permute.xlu0 %1335 }
 0x185   : > { %1377 = vst.msk [vmem:[#allocation2 + $0x38] sm:$0xff] %vm1369_vm12, %v1336_v25  ;;  %v1422_v36 = vpop.permute.xlu1 %1421  ;;  %vm5860_vm12 = vmand %vm3379_vm1, %vm3805_vm7 }
 0x186   : > { %1455 = vst.msk [vmem:[#allocation2 + $0x78] sm:$0xff] %vm1439_vm13, %v1422_v36 }
 0x188   : > { %v1404_v35 = vpop.permute.xlu0 %1403 }
 0x189   : > { %1446 = vst.msk [vmem:[#allocation2 + $0x30] sm:$0xff] %vm1439_vm13, %v1404_v35  ;;  %v1512_v0 = vpop.permute.xlu1 %1511 }
 0x18a   : > { %1546 = vst.msk [vmem:[#allocation2 + $0x70] sm:$0xff] %vm1531_vm14, %v1512_v0 }
 0x18c   : > { %v1406_v60 = vpop.permute.xlu0 %1405 }
 0x18d   : > { %1447 = vst.msk [vmem:[#allocation2 + $0x38] sm:$0xff] %vm1439_vm13, %v1406_v60  ;;  %v1514_v48 = vpop.permute.xlu1 %1513  ;;  %vm5878_vm13 = vmand %vm3377_vm2, %vm3799_vm11 }
 0x18e   : > { %1547 = vst.msk [vmem:[#allocation2 + $0x78] sm:$0xff] %vm1531_vm14, %v1514_v48 }
 0x190   : > { %v1496_v11 = vpop.permute.xlu0 %1495 }
 0x191   : > { %1538 = vst.msk [vmem:[#allocation2 + $0x30] sm:$0xff] %vm1531_vm14, %v1496_v11  ;;  %v1588_v16 = vpop.permute.xlu1 %1587 }
 0x192   : > { %1622 = vst.msk [vmem:[#allocation2 + $0x70] sm:$0xff] %vm1607_vm15, %v1588_v16 }
 0x194   : > { %v1498_v38 = vpop.permute.xlu0 %1497 }
 0x195   : > { %1539 = vst.msk [vmem:[#allocation2 + $0x38] sm:$0xff] %vm1531_vm14, %v1498_v38  ;;  %v1590_v8 = vpop.permute.xlu1 %1589 }
 0x196   : > { %1623 = vst.msk [vmem:[#allocation2 + $0x78] sm:$0xff] %vm1607_vm15, %v1590_v8 }
 0x198   : > { %v1572_v33 = vpop.permute.xlu0 %1571 }
 0x199   : > { %1614 = vst.msk [vmem:[#allocation2 + $0x30] sm:$0xff] %vm1607_vm15, %v1572_v33  ;;  %v1638_v55 = vld [vmem:[#allocation2 + $0x70] sm:$0xff] }
 0x19a   : > { %4432 = vmatprep.mubr.msk.bf16.mxu1 %vm1676_vm0, %v1638_v55 }
 0x19c   : > { %v1574_v58 = vpop.permute.xlu0 %1573 }
 0x19d   : > { %1615 = vst.msk [vmem:[#allocation2 + $0x38] sm:$0xff] %vm1607_vm15, %v1574_v58  ;;  %v1639_v37 = vld [vmem:[#allocation2 + $0x78] sm:$0xff] }
 0x19e   : > { %4433 = vmatmul.mubr.msk.bf16.gmra.mrb[12].mxu1 %vm1676_vm0, %v1639_v37 }
 0x1a0   : > { %v1630_v47 = vld [vmem:[#allocation2 + $0x30] sm:$0xff] }
 0x1a1   : > { %4416 = vmatprep.mubr.msk.bf16.mxu0 %vm1676_vm0, %v1630_v47 }
 0x1a4   : > { %v1631_v34 = vld [vmem:[#allocation2 + $0x38] sm:$0xff] }
 0x1a5   : > { %4417 = vmatmul.mubr.msk.bf16.gmra.mrb[12].mxu0 %vm1676_vm0, %v1631_v34 }
 0x1b5   : > { %v4422_v63 = vpop.f32.mrb[0].mxu1 }
 0x1b6   : > { %v1915_v30 = vmul.f32 %v4422_v63, %v5769_v5  ;;  %v1827_v12 = vpop.f32.mrb[1].mxu1 }
 0x1b7   : > { %v1913_v31 = vmul.f32 %v5769_v5, %v1827_v12  ;;  %v4423_v57 = vpop.f32.mrb[2].mxu1 }
 0x1b8   : > { %v1954_v49 = vadd.f32 %v5774_v62, %v1915_v30  ;;  %v1916_v61 = vmul.f32 %v4423_v57, %v5769_v5  ;;  %v1830_v18 = vpop.f32.mrb[3].mxu1 }
 0x1b9   : > { %v1952_v19 = vadd.f32 %v5774_v62, %v1913_v31  ;;  %v1914_v41 = vmul.f32 %v5769_v5, %v1830_v18 }
 0x1ba   : > { %v1986_v2 = vmax.f32 %v1954_v49, 0.0  ;;  %v1955_v26 = vadd.f32 %v5774_v62, %v1916_v61 }
 0x1bb   : > { %v1984_v29 = vmax.f32 %v1952_v19, 0.0  ;;  %v1953_v21 = vadd.f32 %v5774_v62, %v1914_v41 }
 0x1bc   : > { %v4406_v40 = vpop.f32.mrb[0].mxu0  ;;  %2019 = vst.msk [vmem:[%s5788_s8 + $0x90] sm:$0xff] %vm2000_vm3, %v1986_v2  ;;  %v2371_v4 = vcombine.high %v1986_v2, %v1986_v2  ;;  %v2378_v23 = vrot.slane %v1986_v2, %v5780_v3  ;;  %v5793_v20 = vmax.f32 %v1955_v26, 0.0 }
 0x1bd   : > { %v1899_v54 = vmul.f32 %v4406_v40, %v5769_v5  ;;  %v1763_v6 = vpop.f32.mrb[1].mxu0  ;;  %2017 = vst.msk [vmem:[%s5788_s8 + $0x80] sm:$0xff] %vm2000_vm3, %v1984_v29  ;;  %v2337_v9 = vcombine.high %v1984_v29, %v1984_v29  ;;  %v2344_v15 = vrot.slane %v1984_v29, %v5780_v3  ;;  %v5799_v24 = vmax.f32 %v1953_v21, 0.0 }
 0x1be   : > { %v2385_v27 = vrot.slane %v2371_v4, %v5780_v3  ;;  %v2386_v1 = vcombine.high %v2378_v23, %v2378_v23  ;;  %v4135_v13 = vrot.slane %v2378_v23, 9  ;;  %v1897_v32 = vmul.f32 %v5769_v5, %v1763_v6  ;;  %v5803_v44 = vpop.f32.mrb[2].mxu0  ;;  %2020 = vst.msk [vmem:[%s5788_s8 + $0x98] sm:$0xff] %vm2000_vm3, %v5793_v20 }
 0x1bf   : > { %v1938_v28 = vadd.f32 %v5774_v62, %v1899_v54  ;;  %v2351_v22 = vrot.slane %v2337_v9, %v5780_v3  ;;  %v2352_v46 = vcombine.high %v2344_v15, %v2344_v15  ;;  %v4127_v10 = vrot.slane %v2344_v15, 9  ;;  %v5810_v56 = vpop.f32.mrb[3].mxu0  ;;  %2018 = vst.msk [vmem:[%s5788_s8 + $0x88] sm:$0xff] %vm2000_vm3, %v5799_v24 }
 0x1c0   : > { %v2387_v17 = vcombine.high %v2385_v27, %v2385_v27  ;;  %v4136_v45 = vrot.slane %v2386_v1, 9  ;;  %v4137_v51 = vrot.slane %v2385_v27, 9  ;;  %v3193_v52 = vmax.f32 %v2378_v23, %v4135_v13 }
 0x1c1   : > { %v1970_v14 = vmax.f32 %v1938_v28, 0.0  ;;  %v1936_v43 = vadd.f32 %v5774_v62, %v1897_v32  ;;  %v2353_v59 = vcombine.high %v2351_v22, %v2351_v22  ;;  %v4128_v25 = vrot.slane %v2352_v46, 9 }
 0x1c2   : > { %v4138_v36 = vrot.slane %v2387_v17, 9  ;;  %v3194_v35 = vmax.f32 %v2386_v1, %v4136_v45  ;;  %v3195_v0 = vmax.f32 %v2385_v27, %v4137_v51  ;;  %v4129_v60 = vrot.slane %v2351_v22, 9 }
 0x1c3   : > { %2003 = vst.msk [vmem:[%s5788_s8 + $0x10] sm:$0xff] %vm2000_vm3, %v1970_v14  ;;  %v2099_v48 = vcombine.high %v1970_v14, %v1970_v14  ;;  %v2106_v11 = vrot.slane %v1970_v14, %v5780_v3  ;;  %v1968_v16 = vmax.f32 %v1936_v43, 0.0  ;;  %v4130_v38 = vrot.slane %v2353_v59, 9 }
 0x1c4   : > { %v3196_v8 = vmax.f32 %v2387_v17, %v4138_v36  ;;  %v3185_v33 = vmax.f32 %v2344_v15, %v4127_v10  ;;  %v3186_v55 = vmax.f32 %v2352_v46, %v4128_v25  ;;  %v3187_v58 = vmax.f32 %v2351_v22, %v4129_v60 }
 0x1c5   : > { %v2113_v37 = vrot.slane %v2099_v48, %v5780_v3  ;;  %v2114_v47 = vcombine.high %v2106_v11, %v2106_v11  ;;  %v4071_v34 = vrot.slane %v2106_v11, 9  ;;  %2001 = vst.msk [vmem:[%s5788_s8] sm:$0xff] %vm2000_vm3, %v1968_v16  ;;  %v2065_v53 = vcombine.high %v1968_v16, %v1968_v16 }
 0x1c6   : > { %v2072_v7 = vrot.slane %v1968_v16, %v5780_v3  ;;  %v3188_v42 = vmax.f32 %v2353_v59, %v4130_v38  ;;  %v3281_v39 = vmax.f32 %v3185_v33, %v3193_v52  ;;  %v3282_v50 = vmax.f32 %v3186_v55, %v3194_v35 }
 0x1c7   : > { %v2115_v63 = vcombine.high %v2113_v37, %v2113_v37  ;;  %v4072_v30 = vrot.slane %v2114_v47, 9  ;;  %v4073_v12 = vrot.slane %v2113_v37, 9  ;;  %v3129_v31 = vmax.f32 %v2106_v11, %v4071_v34 }
 0x1c8   : > { %v2079_v57 = vrot.slane %v2065_v53, %v5780_v3  ;;  %v2080_v49 = vcombine.high %v2072_v7, %v2072_v7  ;;  %v4063_v61 = vrot.slane %v2072_v7, 9  ;;  %v3283_v18 = vmax.f32 %v3187_v58, %v3195_v0 }
 0x1c9   : > { %v4074_v19 = vrot.slane %v2115_v63, 9  ;;  %v3130_v41 = vmax.f32 %v2114_v47, %v4072_v30  ;;  %v3131_v2 = vmax.f32 %v2113_v37, %v4073_v12  ;;  %v3284_v26 = vmax.f32 %v3188_v42, %v3196_v8 }
 0x1ca   : > { %v2081_v29 = vcombine.high %v2079_v57, %v2079_v57  ;;  %v4064_v21 = vrot.slane %v2080_v49, 9  ;;  %v4065_v40 = vrot.slane %v2079_v57, 9  ;;  %v3121_v4 = vmax.f32 %v2072_v7, %v4063_v61 }
 0x1cb   : > { %v3132_v23 = vmax.f32 %v2115_v63, %v4074_v19  ;;  %v4332_v54 = vpack.c.bf16 %v3281_v39, %v3281_v39  ;;  %v4333_v6 = vpack.c.bf16 %v3282_v50, %v3282_v50  ;;  %v4334_v9 = vpack.c.bf16 %v3283_v18, %v3283_v18 }
 0x1cc   : > { %v4066_v15 = vrot.slane %v2081_v29, 9  ;;  %v3122_v27 = vmax.f32 %v2080_v49, %v4064_v21  ;;  %v3123_v1 = vmax.f32 %v2079_v57, %v4065_v40  ;;  %v3249_v13 = vmax.f32 %v3121_v4, %v3129_v31 }
 0x1cd   : > { %v4335_v32 = vpack.c.bf16 %v3284_v26, %v3284_v26  ;;  %v3623_v28 = vunpack.c.l.b16 %v4332_v54  ;;  %v3624_v22 = vunpack.c.l.b16 %v4333_v6  ;;  %v3625_v46 = vunpack.c.l.b16 %v4334_v9 }
 0x1ce   : > { %v3124_v10 = vmax.f32 %v2081_v29, %v4066_v15  ;;  %v3250_v17 = vmax.f32 %v3122_v27, %v3130_v41  ;;  %v3251_v45 = vmax.f32 %v3123_v1, %v3131_v2  ;;  %v4300_v51 = vpack.c.bf16 %v3249_v13, %v3249_v13 }
 0x1cf   : > { %v5824_v52 = vunpack.c.l.b16 %v4335_v32  ;;  %v3713_v14 = vrot.slane %v3623_v28, 7  ;;  %v3714_v43 = vrot.slane %v3624_v22, 6  ;;  %v3716_v59 = vrot.slane %v3625_v46, 5 }
 0x1d0   : > { %v3252_v25 = vmax.f32 %v3124_v10, %v3132_v23  ;;  %v4301_v36 = vpack.c.bf16 %v3250_v17, %v3250_v17  ;;  %v4302_v35 = vpack.c.bf16 %v3251_v45, %v3251_v45  ;;  %v3591_v0 = vunpack.c.l.b16 %v4300_v51 }
 0x1d1   : > { %v3715_v60 = vsel %vm3657_vm4, %v3714_v43, %v3713_v14  ;;  %v3718_v48 = vrot.slane %v5824_v52, 4  ;;  %v1900_v11 = vmul.f32 %v5803_v44, %v5769_v5  ;;  %v2388_v16 = vcombine.high %v5793_v20, %v5793_v20 }
 0x1d2   : > { %v4303_v38 = vpack.c.bf16 %v3252_v25, %v3252_v25  ;;  %v3592_v8 = vunpack.c.l.b16 %v4301_v36  ;;  %v3593_v33 = vunpack.c.l.b16 %v4302_v35  ;;  %v3655_v55 = vrot.slane %v3591_v0, 7 }
 0x1d3   : > { %v5833_v58 = vsel %vm3660_vm5, %v3716_v59, %v3715_v60  ;;  %v1939_v37 = vadd.f32 %v5774_v62, %v1900_v11  ;;  %v2395_v47 = vrot.slane %v5793_v20, %v5780_v3  ;;  %v2402_v34 = vrot.slane %v2388_v16, %v5780_v3 }
 0x1d4   : > { %v3594_v53 = vunpack.c.l.b16 %v4303_v38  ;;  %v3656_v44 = vrot.slane %v3592_v8, 6  ;;  %v3659_v7 = vrot.slane %v3593_v33, 5  ;;  %v1898_v42 = vmul.f32 %v5769_v5, %v5810_v56 }
 0x1d5   : > { %v1971_v39 = vmax.f32 %v1939_v37, 0.0  ;;  %v2403_v50 = vcombine.high %v2395_v47, %v2395_v47  ;;  %v2404_v63 = vcombine.high %v2402_v34, %v2402_v34  ;;  %v4139_v30 = vrot.slane %v2395_v47, 9 }
 0x1d6   : > { %v3658_v12 = vsel %vm3657_vm4, %v3656_v44, %v3655_v55  ;;  %v3662_v31 = vrot.slane %v3594_v53, 4  ;;  %v4141_v57 = vrot.slane %v2402_v34, 9  ;;  %v1937_v49 = vadd.f32 %v5774_v62, %v1898_v42 }
 0x1d7   : > { %v3661_v20 = vsel %vm3660_vm5, %v3659_v7, %v3658_v12  ;;  %2004 = vst.msk [vmem:[%s5788_s8 + $0x18] sm:$0xff] %vm2000_vm3, %v1971_v39  ;;  %v2116_v61 = vcombine.high %v1971_v39, %v1971_v39  ;;  %v2123_v18 = vrot.slane %v1971_v39, %v5780_v3  ;;  %v4140_v19 = vrot.slane %v2403_v50, 9 }
 0x1d8   : > { %v4142_v56 = vrot.slane %v2404_v63, 9  ;;  %v3197_v41 = vmax.f32 %v2395_v47, %v4139_v30  ;;  %v3199_v2 = vmax.f32 %v2402_v34, %v4141_v57  ;;  %v1969_v26 = vmax.f32 %v1937_v49, 0.0  ;;  %v4265_v49 = vld [vmem:[%s5685_s13 + $0xc] sm:$0x1] }
 0x1d9   : > { %v2130_v29 = vrot.slane %v2116_v61, %v5780_v3  ;;  %v2131_v21 = vcombine.high %v2123_v18, %v2123_v18  ;;  %v4075_v40 = vrot.slane %v2123_v18, 9  ;;  %v3198_v4 = vmax.f32 %v2403_v50, %v4140_v19 }
 0x1da   : > { %v3200_v23 = vmax.f32 %v2404_v63, %v4142_v56  ;;  %2002 = vst.msk [vmem:[%s5788_s8 + $0x8] sm:$0xff] %vm2000_vm3, %v1969_v26  ;;  %v2082_v54 = vcombine.high %v1969_v26, %v1969_v26  ;;  %v2089_v6 = vrot.slane %v1969_v26, %v5780_v3  ;;  %v3664_v9 = vsel %vm3663_vm6, %v3662_v31, %v3661_v20 }
 0x1db   : > { %v2132_v15 = vcombine.high %v2130_v29, %v2130_v29  ;;  %v4076_v27 = vrot.slane %v2131_v21, 9  ;;  %v4077_v1 = vrot.slane %v2130_v29, 9  ;;  %v3133_v13 = vmax.f32 %v2123_v18, %v4075_v40 }
 0x1dc   : > { %v2096_v32 = vrot.slane %v2082_v54, %v5780_v3  ;;  %v2097_v28 = vcombine.high %v2089_v6, %v2089_v6  ;;  %v4067_v22 = vrot.slane %v2089_v6, 9  ;;  %v2354_v46 = vcombine.high %v5799_v24, %v5799_v24 }
 0x1dd   : > { %v4078_v10 = vrot.slane %v2132_v15, 9  ;;  %v3134_v17 = vmax.f32 %v2131_v21, %v4076_v27  ;;  %v3135_v45 = vmax.f32 %v2130_v29, %v4077_v1  ;;  %v2361_v51 = vrot.slane %v5799_v24, %v5780_v3 }
 0x1de   : > { %v2098_v14 = vcombine.high %v2096_v32, %v2096_v32  ;;  %v4068_v43 = vrot.slane %v2097_v28, 9  ;;  %v4069_v59 = vrot.slane %v2096_v32, 9  ;;  %v3125_v25 = vmax.f32 %v2089_v6, %v4067_v22 }
 0x1df   : > { %v3136_v36 = vmax.f32 %v2132_v15, %v4078_v10  ;;  %v2368_v35 = vrot.slane %v2354_v46, %v5780_v3  ;;  %v2369_v0 = vcombine.high %v2361_v51, %v2361_v51  ;;  %v4131_v60 = vrot.slane %v2361_v51, 9 }
 0x1e0   : > { %v4070_v11 = vrot.slane %v2098_v14, 9  ;;  %v3126_v16 = vmax.f32 %v2097_v28, %v4068_v43  ;;  %v3127_v38 = vmax.f32 %v2096_v32, %v4069_v59  ;;  %v3253_v8 = vmax.f32 %v3125_v25, %v3133_v13  ;;  %v4281_v28 = vld [vmem:[%s5685_s13 + $0x2c] sm:$0x1]  ;;  %v4279_v25 = vld [vmem:[%s5685_s13 + $0x28] sm:$0xf] }
 0x1e1   : > { %v2370_v33 = vcombine.high %v2368_v35, %v2368_v35  ;;  %v4132_v55 = vrot.slane %v2369_v0, 9  ;;  %v4133_v24 = vrot.slane %v2368_v35, 9  ;;  %v3189_v37 = vmax.f32 %v2361_v51, %v4131_v60 }
 0x1e2   : > { %v3128_v47 = vmax.f32 %v2098_v14, %v4070_v11  ;;  %v3254_v34 = vmax.f32 %v3126_v16, %v3134_v17  ;;  %v3255_v53 = vmax.f32 %v3127_v38, %v3135_v45  ;;  %v4304_v44 = vpack.c.bf16 %v3253_v8, %v3253_v8  ;;  %v4263_v17 = vld [vmem:[%s5685_s13 + $0x8] sm:$0xf] }
 0x1e3   : > { %v4134_v7 = vrot.slane %v2370_v33, 9  ;;  %v3190_v42 = vmax.f32 %v2369_v0, %v4132_v55  ;;  %v3191_v39 = vmax.f32 %v2368_v35, %v4133_v24  ;;  %v3285_v50 = vmax.f32 %v3189_v37, %v3197_v41 }
 0x1e4   : > { %v3256_v63 = vmax.f32 %v3128_v47, %v3136_v36  ;;  %v4305_v30 = vpack.c.bf16 %v3254_v34, %v3254_v34  ;;  %v4306_v12 = vpack.c.bf16 %v3255_v53, %v3255_v53  ;;  %v3595_v31 = vunpack.c.l.b16 %v4304_v44 }
 0x1e5   : > { %v3192_v20 = vmax.f32 %v2370_v33, %v4134_v7  ;;  %v3286_v61 = vmax.f32 %v3190_v42, %v3198_v4  ;;  %v3287_v18 = vmax.f32 %v3191_v39, %v3199_v2  ;;  %v4336_v19 = vpack.c.bf16 %v3285_v50, %v3285_v50 }
 0x1e6   : > { %v3596_v56 = vunpack.c.l.b16 %v4305_v30  ;;  %v3597_v26 = vunpack.c.l.b16 %v4306_v12  ;;  %v3665_v41 = vrot.slane %v3595_v31, 3  ;;  %v4364_v29 = vpack.c.bf16 %v3256_v63, %v3256_v63 }
 0x1e7   : > { %v3288_v21 = vmax.f32 %v3192_v20, %v3200_v23  ;;  %v4337_v40 = vpack.c.bf16 %v3286_v61, %v3286_v61  ;;  %v4338_v54 = vpack.c.bf16 %v3287_v18, %v3287_v18  ;;  %v3627_v6 = vunpack.c.l.b16 %v4336_v19 }
 0x1e8   : > { %v3667_v15 = vsel %vm3666_vm8, %v3665_v41, %v3664_v9  ;;  %v3668_v27 = vrot.slane %v3596_v56, 2  ;;  %v3671_v1 = vrot.slane %v3597_v26, 1  ;;  %v3808_v13 = vsel %vm5860_vm12, %v4364_v29, %v4265_v49 }
 0x1e9   : > { %4266 = vst [vmem:[%s5685_s13 + $0xc] sm:$0x1] %v3808_v13  ;;  %v3628_v2 = vunpack.c.l.b16 %v4337_v40  ;;  %v3629_v4 = vunpack.c.l.b16 %v4338_v54  ;;  %v3719_v23 = vsel %vm3663_vm6, %v3718_v48, %v5833_v58  ;;  %v3720_v32 = vrot.slane %v3627_v6, 3 }
 0x1ea   : > { %v3670_v9 = vsel %vm3669_vm9, %v3668_v27, %v3667_v15  ;;  %v4368_v22 = vpack.c.bf16 %v3288_v21, %v3288_v21 }
 0x1eb   : > { %v3673_v46 = vsel %vm3672_vm10, %v3671_v1, %v3670_v9  ;;  %v3721_v52 = vsel %vm3666_vm8, %v3720_v32, %v3719_v23  ;;  %v3722_v48 = vrot.slane %v3628_v2, 2  ;;  %v3724_v45 = vrot.slane %v3629_v4, 1 }
 0x1ec   : > { %v3765_v58 = vpack.c.b16 %v3673_v46, %v3673_v46  ;;  %v3832_v51 = vsel %vm5860_vm12, %v4368_v22, %v4281_v28 }
 0x1ed   : > { %v3723_v14 = vsel %vm3669_vm9, %v3722_v48, %v3721_v52  ;;  %4282 = vst [vmem:[%s5685_s13 + $0x2c] sm:$0x1] %v3832_v51 }
 0x1ee   : > { %v3802_v43 = vsel %vm5878_vm13, %v3765_v58, %v4263_v17  ;;  %v3725_v59 = vsel %vm3672_vm10, %v3724_v45, %v3723_v14 }
 0x1ef   : > { %4264 = vst [vmem:[%s5685_s13 + $0x8] sm:$0xf] %v3802_v43  ;;  %v3773_v36 = vpack.c.b16 %v3725_v59, %v3725_v59 }
 0x1f1   : > { %v3829_v35 = vsel %vm5878_vm13, %v3773_v36, %v4279_v25 }
 0x1f2   : > { %4280 = vst [vmem:[%s5685_s13 + $0x28] sm:$0xf] %v3829_v35 }
 0x1f5   : > { %v4426_v0 = vpop.f32.mrb[4].mxu1 }
 0x1f6   : > { %v1919_v60 = vmul.f32 %v4426_v0, %v5769_v5  ;;  %v1843_v11 = vpop.f32.mrb[5].mxu1 }
 0x1f7   : > { %v1917_v16 = vmul.f32 %v5769_v5, %v1843_v11  ;;  %v4427_v38 = vpop.f32.mrb[6].mxu1 }
 0x1f8   : > { %v1958_v8 = vadd.f32 %v5774_v62, %v1919_v60  ;;  %v1920_v33 = vmul.f32 %v4427_v38, %v5769_v5  ;;  %v1846_v55 = vpop.f32.mrb[7].mxu1 }
 0x1f9   : > { %v1956_v24 = vadd.f32 %v5774_v62, %v1917_v16  ;;  %v1918_v37 = vmul.f32 %v5769_v5, %v1846_v55 }
 0x1fa   : > { %v1990_v47 = vmax.f32 %v1958_v8, 0.0  ;;  %v1959_v34 = vadd.f32 %v5774_v62, %v1920_v33 }
 0x1fb   : > { %v1988_v53 = vmax.f32 %v1956_v24, 0.0  ;;  %v1957_v44 = vadd.f32 %v5774_v62, %v1918_v37 }
 0x1fc   : > { %v4410_v7 = vpop.f32.mrb[4].mxu0  ;;  %2023 = vst.msk [vmem:[%s5788_s8 + $0xb0] sm:$0xff] %vm2000_vm3, %v1990_v47  ;;  %v2439_v42 = vcombine.high %v1990_v47, %v1990_v47  ;;  %v2446_v39 = vrot.slane %v1990_v47, %v5780_v3  ;;  %v5907_v50 = vmax.f32 %v1959_v34, 0.0 }
 0x1fd   : > { %v1903_v63 = vmul.f32 %v4410_v7, %v5769_v5  ;;  %v1779_v30 = vpop.f32.mrb[5].mxu0  ;;  %2021 = vst.msk [vmem:[%s5788_s8 + $0xa0] sm:$0xff] %vm2000_vm3, %v1988_v53  ;;  %v2405_v12 = vcombine.high %v1988_v53, %v1988_v53  ;;  %v2412_v31 = vrot.slane %v1988_v53, %v5780_v3  ;;  %v5913_v49 = vmax.f32 %v1957_v44, 0.0 }
 0x1fe   : > { %v2453_v20 = vrot.slane %v2439_v42, %v5780_v3  ;;  %v2454_v61 = vcombine.high %v2446_v39, %v2446_v39  ;;  %v4151_v18 = vrot.slane %v2446_v39, 9  ;;  %v1901_v19 = vmul.f32 %v5769_v5, %v1779_v30  ;;  %v5917_v56 = vpop.f32.mrb[6].mxu0  ;;  %2024 = vst.msk [vmem:[%s5788_s8 + $0xb8] sm:$0xff] %vm2000_vm3, %v5907_v50 }
 0x1ff   : > { %v1942_v26 = vadd.f32 %v5774_v62, %v1903_v63  ;;  %v2419_v41 = vrot.slane %v2405_v12, %v5780_v3  ;;  %v2420_v29 = vcombine.high %v2412_v31, %v2412_v31  ;;  %v4143_v21 = vrot.slane %v2412_v31, 9  ;;  %v5924_v40 = vpop.f32.mrb[7].mxu0  ;;  %2022 = vst.msk [vmem:[%s5788_s8 + $0xa8] sm:$0xff] %vm2000_vm3, %v5913_v49 }
 0x200   : > { %v2455_v54 = vcombine.high %v2453_v20, %v2453_v20  ;;  %v4152_v6 = vrot.slane %v2454_v61, 9  ;;  %v4153_v15 = vrot.slane %v2453_v20, 9  ;;  %v3209_v27 = vmax.f32 %v2446_v39, %v4151_v18 }
 0x201   : > { %v1974_v1 = vmax.f32 %v1942_v26, 0.0  ;;  %v1940_v13 = vadd.f32 %v5774_v62, %v1901_v19  ;;  %v2421_v2 = vcombine.high %v2419_v41, %v2419_v41  ;;  %v4144_v4 = vrot.slane %v2420_v29, 9 }
 0x202   : > { %v4154_v23 = vrot.slane %v2455_v54, 9  ;;  %v3210_v32 = vmax.f32 %v2454_v61, %v4152_v6  ;;  %v3211_v28 = vmax.f32 %v2453_v20, %v4153_v15  ;;  %v4145_v9 = vrot.slane %v2419_v41, 9 }
 0x203   : > { %2007 = vst.msk [vmem:[%s5788_s8 + $0x30] sm:$0xff] %vm2000_vm3, %v1974_v1  ;;  %v2167_v22 = vcombine.high %v1974_v1, %v1974_v1  ;;  %v2174_v46 = vrot.slane %v1974_v1, %v5780_v3  ;;  %v1972_v17 = vmax.f32 %v1940_v13, 0.0  ;;  %v4146_v52 = vrot.slane %v2421_v2, 9 }
 0x204   : > { %v3212_v48 = vmax.f32 %v2455_v54, %v4154_v23  ;;  %v3201_v58 = vmax.f32 %v2412_v31, %v4143_v21  ;;  %v3202_v45 = vmax.f32 %v2420_v29, %v4144_v4  ;;  %v3203_v51 = vmax.f32 %v2419_v41, %v4145_v9 }
 0x205   : > { %v2181_v14 = vrot.slane %v2167_v22, %v5780_v3  ;;  %v2182_v43 = vcombine.high %v2174_v46, %v2174_v46  ;;  %v4087_v59 = vrot.slane %v2174_v46, 9  ;;  %2005 = vst.msk [vmem:[%s5788_s8 + $0x20] sm:$0xff] %vm2000_vm3, %v1972_v17  ;;  %v2133_v25 = vcombine.high %v1972_v17, %v1972_v17 }
 0x206   : > { %v2140_v36 = vrot.slane %v1972_v17, %v5780_v3  ;;  %v3204_v35 = vmax.f32 %v2421_v2, %v4146_v52  ;;  %v3289_v0 = vmax.f32 %v3201_v58, %v3209_v27  ;;  %v3290_v60 = vmax.f32 %v3202_v45, %v3210_v32 }
 0x207   : > { %v2183_v11 = vcombine.high %v2181_v14, %v2181_v14  ;;  %v4088_v16 = vrot.slane %v2182_v43, 9  ;;  %v4089_v38 = vrot.slane %v2181_v14, 9  ;;  %v3145_v8 = vmax.f32 %v2174_v46, %v4087_v59 }
 0x208   : > { %v2147_v33 = vrot.slane %v2133_v25, %v5780_v3  ;;  %v2148_v55 = vcombine.high %v2140_v36, %v2140_v36  ;;  %v4079_v24 = vrot.slane %v2140_v36, 9  ;;  %v3291_v37 = vmax.f32 %v3203_v51, %v3211_v28 }
 0x209   : > { %v4090_v47 = vrot.slane %v2183_v11, 9  ;;  %v3146_v34 = vmax.f32 %v2182_v43, %v4088_v16  ;;  %v3147_v53 = vmax.f32 %v2181_v14, %v4089_v38  ;;  %v3292_v44 = vmax.f32 %v3204_v35, %v3212_v48 }
 0x20a   : > { %v2149_v7 = vcombine.high %v2147_v33, %v2147_v33  ;;  %v4080_v42 = vrot.slane %v2148_v55, 9  ;;  %v4081_v39 = vrot.slane %v2147_v33, 9  ;;  %v3137_v63 = vmax.f32 %v2140_v36, %v4079_v24 }
 0x20b   : > { %v3148_v30 = vmax.f32 %v2183_v11, %v4090_v47  ;;  %v4340_v12 = vpack.c.bf16 %v3289_v0, %v3289_v0  ;;  %v4341_v31 = vpack.c.bf16 %v3290_v60, %v3290_v60  ;;  %v4342_v20 = vpack.c.bf16 %v3291_v37, %v3291_v37 }
 0x20c   : > { %v4082_v61 = vrot.slane %v2149_v7, 9  ;;  %v3138_v18 = vmax.f32 %v2148_v55, %v4080_v42  ;;  %v3139_v19 = vmax.f32 %v2147_v33, %v4081_v39  ;;  %v3257_v26 = vmax.f32 %v3137_v63, %v3145_v8 }
 0x20d   : > { %v4343_v41 = vpack.c.bf16 %v3292_v44, %v3292_v44  ;;  %v3631_v29 = vunpack.c.l.b16 %v4340_v12  ;;  %v3632_v21 = vunpack.c.l.b16 %v4341_v31  ;;  %v3633_v54 = vunpack.c.l.b16 %v4342_v20 }
 0x20e   : > { %v3140_v6 = vmax.f32 %v2149_v7, %v4082_v61  ;;  %v3258_v15 = vmax.f32 %v3138_v18, %v3146_v34  ;;  %v3259_v27 = vmax.f32 %v3139_v19, %v3147_v53  ;;  %v4308_v1 = vpack.c.bf16 %v3257_v26, %v3257_v26 }
 0x20f   : > { %v5938_v13 = vunpack.c.l.b16 %v4343_v41  ;;  %v3726_v2 = vrot.slane %v3631_v29, 7  ;;  %v3727_v4 = vrot.slane %v3632_v21, 6  ;;  %v3729_v23 = vrot.slane %v3633_v54, 5 }
 0x210   : > { %v3260_v32 = vmax.f32 %v3140_v6, %v3148_v30  ;;  %v4309_v28 = vpack.c.bf16 %v3258_v15, %v3258_v15  ;;  %v4310_v9 = vpack.c.bf16 %v3259_v27, %v3259_v27  ;;  %v3599_v22 = vunpack.c.l.b16 %v4308_v1 }
 0x211   : > { %v3728_v46 = vsel %vm3657_vm4, %v3727_v4, %v3726_v2  ;;  %v3731_v17 = vrot.slane %v5938_v13, 4  ;;  %v1904_v52 = vmul.f32 %v5917_v56, %v5769_v5  ;;  %v2456_v48 = vcombine.high %v5907_v50, %v5907_v50 }
 0x212   : > { %v4311_v58 = vpack.c.bf16 %v3260_v32, %v3260_v32  ;;  %v3600_v45 = vunpack.c.l.b16 %v4309_v28  ;;  %v3601_v51 = vunpack.c.l.b16 %v4310_v9  ;;  %v3674_v14 = vrot.slane %v3599_v22, 7 }
 0x213   : > { %v5947_v43 = vsel %vm3660_vm5, %v3729_v23, %v3728_v46  ;;  %v1943_v59 = vadd.f32 %v5774_v62, %v1904_v52  ;;  %v2463_v25 = vrot.slane %v5907_v50, %v5780_v3  ;;  %v2470_v36 = vrot.slane %v2456_v48, %v5780_v3 }
 0x214   : > { %v3602_v35 = vunpack.c.l.b16 %v4311_v58  ;;  %v3675_v56 = vrot.slane %v3600_v45, 6  ;;  %v3677_v0 = vrot.slane %v3601_v51, 5  ;;  %v1902_v60 = vmul.f32 %v5769_v5, %v5924_v40 }
 0x215   : > { %v1975_v11 = vmax.f32 %v1943_v59, 0.0  ;;  %v2471_v16 = vcombine.high %v2463_v25, %v2463_v25  ;;  %v2472_v38 = vcombine.high %v2470_v36, %v2470_v36  ;;  %v4155_v8 = vrot.slane %v2463_v25, 9 }
 0x216   : > { %v3676_v33 = vsel %vm3657_vm4, %v3675_v56, %v3674_v14  ;;  %v3679_v55 = vrot.slane %v3602_v35, 4  ;;  %v4157_v24 = vrot.slane %v2470_v36, 9  ;;  %v1941_v37 = vadd.f32 %v5774_v62, %v1902_v60 }
 0x217   : > { %v3678_v50 = vsel %vm3660_vm5, %v3677_v0, %v3676_v33  ;;  %2008 = vst.msk [vmem:[%s5788_s8 + $0x38] sm:$0xff] %vm2000_vm3, %v1975_v11  ;;  %v2184_v47 = vcombine.high %v1975_v11, %v1975_v11  ;;  %v2191_v34 = vrot.slane %v1975_v11, %v5780_v3  ;;  %v4156_v53 = vrot.slane %v2471_v16, 9 }
 0x218   : > { %v4158_v40 = vrot.slane %v2472_v38, 9  ;;  %v3213_v44 = vmax.f32 %v2463_v25, %v4155_v8  ;;  %v3215_v7 = vmax.f32 %v2470_v36, %v4157_v24  ;;  %v1973_v42 = vmax.f32 %v1941_v37, 0.0 }
 0x219   : > { %v2198_v39 = vrot.slane %v2184_v47, %v5780_v3  ;;  %v2199_v63 = vcombine.high %v2191_v34, %v2191_v34  ;;  %v4091_v30 = vrot.slane %v2191_v34, 9  ;;  %v3214_v12 = vmax.f32 %v2471_v16, %v4156_v53 }
 0x21a   : > { %v3216_v31 = vmax.f32 %v2472_v38, %v4158_v40  ;;  %2006 = vst.msk [vmem:[%s5788_s8 + $0x28] sm:$0xff] %vm2000_vm3, %v1973_v42  ;;  %v2150_v20 = vcombine.high %v1973_v42, %v1973_v42  ;;  %v2157_v61 = vrot.slane %v1973_v42, %v5780_v3  ;;  %v3680_v18 = vsel %vm3663_vm6, %v3679_v55, %v3678_v50  ;;  %v4269_v50 = vld [vmem:[%s5685_s13 + $0x14] sm:$0x1] }
 0x21b   : > { %v2200_v19 = vcombine.high %v2198_v39, %v2198_v39  ;;  %v4092_v26 = vrot.slane %v2199_v63, 9  ;;  %v4093_v41 = vrot.slane %v2198_v39, 9  ;;  %v3149_v29 = vmax.f32 %v2191_v34, %v4091_v30 }
 0x21c   : > { %v2164_v21 = vrot.slane %v2150_v20, %v5780_v3  ;;  %v2165_v54 = vcombine.high %v2157_v61, %v2157_v61  ;;  %v4083_v6 = vrot.slane %v2157_v61, 9  ;;  %v2422_v15 = vcombine.high %v5913_v49, %v5913_v49 }
 0x21d   : > { %v4094_v27 = vrot.slane %v2200_v19, 9  ;;  %v3150_v1 = vmax.f32 %v2199_v63, %v4092_v26  ;;  %v3151_v2 = vmax.f32 %v2198_v39, %v4093_v41  ;;  %v2429_v4 = vrot.slane %v5913_v49, %v5780_v3 }
 0x21e   : > { %v2166_v23 = vcombine.high %v2164_v21, %v2164_v21  ;;  %v4084_v32 = vrot.slane %v2165_v54, 9  ;;  %v4085_v28 = vrot.slane %v2164_v21, 9  ;;  %v3141_v9 = vmax.f32 %v2157_v61, %v4083_v6  ;;  %v4285_v6 = vld [vmem:[%s5685_s13 + $0x34] sm:$0x1] }
 0x21f   : > { %v3152_v22 = vmax.f32 %v2200_v19, %v4094_v27  ;;  %v2436_v46 = vrot.slane %v2422_v15, %v5780_v3  ;;  %v2437_v52 = vcombine.high %v2429_v4, %v2429_v4  ;;  %v4147_v48 = vrot.slane %v2429_v4, 9 }
 0x220   : > { %v4086_v58 = vrot.slane %v2166_v23, 9  ;;  %v3142_v45 = vmax.f32 %v2165_v54, %v4084_v32  ;;  %v3143_v51 = vmax.f32 %v2164_v21, %v4085_v28  ;;  %v3261_v14 = vmax.f32 %v3141_v9, %v3149_v29  ;;  %v4283_v9 = vld [vmem:[%s5685_s13 + $0x30] sm:$0xf] }
 0x221   : > { %v2438_v59 = vcombine.high %v2436_v46, %v2436_v46  ;;  %v4148_v25 = vrot.slane %v2437_v52, 9  ;;  %v4149_v36 = vrot.slane %v2436_v46, 9  ;;  %v3205_v35 = vmax.f32 %v2429_v4, %v4147_v48 }
 0x222   : > { %v3144_v56 = vmax.f32 %v2166_v23, %v4086_v58  ;;  %v3262_v49 = vmax.f32 %v3142_v45, %v3150_v1  ;;  %v3263_v0 = vmax.f32 %v3143_v51, %v3151_v2  ;;  %v4312_v60 = vpack.c.bf16 %v3261_v14, %v3261_v14  ;;  %v4267_v1 = vld [vmem:[%s5685_s13 + $0x10] sm:$0xf] }
 0x223   : > { %v4150_v11 = vrot.slane %v2438_v59, 9  ;;  %v3206_v16 = vmax.f32 %v2437_v52, %v4148_v25  ;;  %v3207_v38 = vmax.f32 %v2436_v46, %v4149_v36  ;;  %v3293_v8 = vmax.f32 %v3205_v35, %v3213_v44 }
 0x224   : > { %v3264_v33 = vmax.f32 %v3144_v56, %v3152_v22  ;;  %v4313_v55 = vpack.c.bf16 %v3262_v49, %v3262_v49  ;;  %v4314_v24 = vpack.c.bf16 %v3263_v0, %v3263_v0  ;;  %v3603_v37 = vunpack.c.l.b16 %v4312_v60 }
 0x225   : > { %v3208_v47 = vmax.f32 %v2438_v59, %v4150_v11  ;;  %v3294_v34 = vmax.f32 %v3206_v16, %v3214_v12  ;;  %v3295_v53 = vmax.f32 %v3207_v38, %v3215_v7  ;;  %v4344_v40 = vpack.c.bf16 %v3293_v8, %v3293_v8 }
 0x226   : > { %v3604_v42 = vunpack.c.l.b16 %v4313_v55  ;;  %v3605_v39 = vunpack.c.l.b16 %v4314_v24  ;;  %v3681_v63 = vrot.slane %v3603_v37, 3  ;;  %v4365_v30 = vpack.c.bf16 %v3264_v33, %v3264_v33 }
 0x227   : > { %v3296_v20 = vmax.f32 %v3208_v47, %v3216_v31  ;;  %v4345_v61 = vpack.c.bf16 %v3294_v34, %v3294_v34  ;;  %v4346_v19 = vpack.c.bf16 %v3295_v53, %v3295_v53  ;;  %v3635_v44 = vunpack.c.l.b16 %v4344_v40 }
 0x228   : > { %v3682_v26 = vsel %vm3666_vm8, %v3681_v63, %v3680_v18  ;;  %v3683_v41 = vrot.slane %v3604_v42, 2  ;;  %v3685_v29 = vrot.slane %v3605_v39, 1  ;;  %v3814_v21 = vsel %vm5860_vm12, %v4365_v30, %v4269_v50 }
 0x229   : > { %4270 = vst [vmem:[%s5685_s13 + $0x14] sm:$0x1] %v3814_v21  ;;  %v3636_v7 = vunpack.c.l.b16 %v4345_v61  ;;  %v3637_v12 = vunpack.c.l.b16 %v4346_v19  ;;  %v3732_v31 = vsel %vm3663_vm6, %v3731_v17, %v5947_v43  ;;  %v3733_v54 = vrot.slane %v3635_v44, 3 }
 0x22a   : > { %v3684_v18 = vsel %vm3669_vm9, %v3683_v41, %v3682_v26  ;;  %v4369_v15 = vpack.c.bf16 %v3296_v20, %v3296_v20 }
 0x22b   : > { %v3686_v27 = vsel %vm3672_vm10, %v3685_v29, %v3684_v18  ;;  %v3734_v2 = vsel %vm3666_vm8, %v3733_v54, %v3732_v31  ;;  %v3735_v4 = vrot.slane %v3636_v7, 2  ;;  %v3737_v32 = vrot.slane %v3637_v12, 1  ;;  %v6034_v29 = vld [vmem:[%s6283_s3] ss:$0 sm:$0xff] }
 0x22c   : > { %v3767_v23 = vpack.c.b16 %v3686_v27, %v3686_v27  ;;  %v3838_v13 = vsel %vm5860_vm12, %v4369_v15, %v4285_v6 }
 0x22d   : > { %v3736_v17 = vsel %vm3669_vm9, %v3735_v4, %v3734_v2  ;;  %4286 = vst [vmem:[%s5685_s13 + $0x34] sm:$0x1] %v3838_v13 }
 0x22e   : > { %v3811_v43 = vsel %vm5878_vm13, %v3767_v23, %v4267_v1  ;;  %v3738_v28 = vsel %vm3672_vm10, %v3737_v32, %v3736_v17 }
 0x22f   : > { %4268 = vst [vmem:[%s5685_s13 + $0x10] sm:$0xf] %v3811_v43  ;;  %v3775_v22 = vpack.c.b16 %v3738_v28, %v3738_v28 }
 0x231   : > { %v3835_v46 = vsel %vm5878_vm13, %v3775_v22, %v4283_v9 }
 0x232   : > { %4284 = vst [vmem:[%s5685_s13 + $0x30] sm:$0xf] %v3835_v46 }
 0x235   : > { %v4430_v52 = vpop.f32.mrb[8].mxu1 }
 0x236   : > { %v1923_v48 = vmul.f32 %v4430_v52, %v5769_v5  ;;  %v1859_v58 = vpop.f32.mrb[9].mxu1 }
 0x237   : > { %v1921_v45 = vmul.f32 %v5769_v5, %v1859_v58  ;;  %v4431_v51 = vpop.f32.mrb[10].mxu1 }
 0x238   : > { %v1962_v14 = vadd.f32 %v5774_v62, %v1923_v48  ;;  %v1924_v59 = vmul.f32 %v4431_v51, %v5769_v5  ;;  %v1862_v25 = vpop.f32.mrb[11].mxu1 }
 0x239   : > { %v1960_v36 = vadd.f32 %v5774_v62, %v1921_v45  ;;  %v1922_v35 = vmul.f32 %v5769_v5, %v1862_v25 }
 0x23a   : > { %v1994_v56 = vmax.f32 %v1962_v14, 0.0  ;;  %v1963_v49 = vadd.f32 %v5774_v62, %v1924_v59 }
 0x23b   : > { %v1992_v0 = vmax.f32 %v1960_v36, 0.0  ;;  %v1961_v60 = vadd.f32 %v5774_v62, %v1922_v35 }
 0x23c   : > { %v4414_v11 = vpop.f32.mrb[8].mxu0  ;;  %2027 = vst.msk [vmem:[%s5788_s8 + $0xd0] sm:$0xff] %vm2000_vm3, %v1994_v56  ;;  %v2507_v16 = vcombine.high %v1994_v56, %v1994_v56  ;;  %v2514_v38 = vrot.slane %v1994_v56, %v5780_v3  ;;  %v6009_v8 = vmax.f32 %v1963_v49, 0.0 }
 0x23d   : > { %v1907_v33 = vmul.f32 %v4414_v11, %v5769_v5  ;;  %v1795_v55 = vpop.f32.mrb[9].mxu0  ;;  %2025 = vst.msk [vmem:[%s5788_s8 + $0xc0] sm:$0xff] %vm2000_vm3, %v1992_v0  ;;  %v2473_v24 = vcombine.high %v1992_v0, %v1992_v0  ;;  %v2480_v37 = vrot.slane %v1992_v0, %v5780_v3  ;;  %v6015_v50 = vmax.f32 %v1961_v60, 0.0 }
 0x23e   : > { %v2521_v47 = vrot.slane %v2507_v16, %v5780_v3  ;;  %v2522_v34 = vcombine.high %v2514_v38, %v2514_v38  ;;  %v4167_v53 = vrot.slane %v2514_v38, 9  ;;  %v1905_v40 = vmul.f32 %v5769_v5, %v1795_v55  ;;  %v6019_v42 = vpop.f32.mrb[10].mxu0  ;;  %2028 = vst.msk [vmem:[%s5788_s8 + $0xd8] sm:$0xff] %vm2000_vm3, %v6009_v8 }
 0x23f   : > { %v1946_v39 = vadd.f32 %v5774_v62, %v1907_v33  ;;  %v2487_v63 = vrot.slane %v2473_v24, %v5780_v3  ;;  %v2488_v30 = vcombine.high %v2480_v37, %v2480_v37  ;;  %v4159_v20 = vrot.slane %v2480_v37, 9  ;;  %v6026_v61 = vpop.f32.mrb[11].mxu0  ;;  %2026 = vst.msk [vmem:[%s5788_s8 + $0xc8] sm:$0xff] %vm2000_vm3, %v6015_v50 }
 0x240   : > { %v2523_v19 = vcombine.high %v2521_v47, %v2521_v47  ;;  %v4168_v44 = vrot.slane %v2522_v34, 9  ;;  %v4169_v5 = vrot.slane %v2521_v47, 9  ;;  %v3225_v26 = vmax.f32 %v2514_v38, %v4167_v53 }
 0x241   : > { %v1978_v41 = vmax.f32 %v1946_v39, 0.0  ;;  %v1944_v62 = vadd.f32 %v6034_v29, %v1905_v40  ;;  %v2489_v21 = vcombine.high %v2487_v63, %v2487_v63  ;;  %v4160_v7 = vrot.slane %v2488_v30, 9 }
 0x242   : > { %v4170_v12 = vrot.slane %v2523_v19, 9  ;;  %v3226_v31 = vmax.f32 %v2522_v34, %v4168_v44  ;;  %v3227_v54 = vmax.f32 %v2521_v47, %v4169_v5  ;;  %v4161_v6 = vrot.slane %v2487_v63, 9 }
 0x243   : > { %2011 = vst.msk [vmem:[%s5788_s8 + $0x50] sm:$0xff] %vm2000_vm3, %v1978_v41  ;;  %v2235_v18 = vcombine.high %v1978_v41, %v1978_v41  ;;  %v2242_v15 = vrot.slane %v1978_v41, %v5780_v3  ;;  %v1976_v27 = vmax.f32 %v1944_v62, 0.0  ;;  %v4162_v1 = vrot.slane %v2489_v21, 9 }
 0x244   : > { %v3228_v2 = vmax.f32 %v2523_v19, %v4170_v12  ;;  %v3217_v4 = vmax.f32 %v2480_v37, %v4159_v20  ;;  %v3218_v23 = vmax.f32 %v2488_v30, %v4160_v7  ;;  %v3219_v32 = vmax.f32 %v2487_v63, %v4161_v6 }
 0x245   : > { %v2249_v13 = vrot.slane %v2235_v18, %v5780_v3  ;;  %v2250_v17 = vcombine.high %v2242_v15, %v2242_v15  ;;  %v4103_v43 = vrot.slane %v2242_v15, 9  ;;  %2009 = vst.msk [vmem:[%s5788_s8 + $0x40] sm:$0xff] %vm2000_vm3, %v1976_v27  ;;  %v2201_v28 = vcombine.high %v1976_v27, %v1976_v27 }
 0x246   : > { %v2208_v9 = vrot.slane %v1976_v27, %v5780_v3  ;;  %v3220_v22 = vmax.f32 %v2489_v21, %v4162_v1  ;;  %v3297_v46 = vmax.f32 %v3217_v4, %v3225_v26  ;;  %v3298_v52 = vmax.f32 %v3218_v23, %v3226_v31  ;;  %v6052_v27 = vld [vmem:[%s6282_s2] ss:$0 sm:$0xff] }
 0x247   : > { %v2251_v48 = vcombine.high %v2249_v13, %v2249_v13  ;;  %v4104_v58 = vrot.slane %v2250_v17, 9  ;;  %v4105_v45 = vrot.slane %v2249_v13, 9  ;;  %v3161_v51 = vmax.f32 %v2242_v15, %v4103_v43 }
 0x248   : > { %v2215_v14 = vrot.slane %v2201_v28, %v5780_v3  ;;  %v2216_v59 = vcombine.high %v2208_v9, %v2208_v9  ;;  %v4095_v25 = vrot.slane %v2208_v9, 9  ;;  %v3299_v36 = vmax.f32 %v3219_v32, %v3227_v54 }
 0x249   : > { %v4106_v35 = vrot.slane %v2251_v48, 9  ;;  %v3162_v56 = vmax.f32 %v2250_v17, %v4104_v58  ;;  %v3163_v49 = vmax.f32 %v2249_v13, %v4105_v45  ;;  %v3300_v0 = vmax.f32 %v3220_v22, %v3228_v2 }
 0x24a   : > { %v2217_v60 = vcombine.high %v2215_v14, %v2215_v14  ;;  %v4096_v11 = vrot.slane %v2216_v59, 9  ;;  %v4097_v16 = vrot.slane %v2215_v14, 9  ;;  %v3153_v38 = vmax.f32 %v2208_v9, %v4095_v25 }
 0x24b   : > { %v3164_v33 = vmax.f32 %v2251_v48, %v4106_v35  ;;  %v4348_v55 = vpack.c.bf16 %v3297_v46, %v3297_v46  ;;  %v4349_v24 = vpack.c.bf16 %v3298_v52, %v3298_v52  ;;  %v4350_v37 = vpack.c.bf16 %v3299_v36, %v3299_v36 }
 0x24c   : > { %v4098_v47 = vrot.slane %v2217_v60, 9  ;;  %v3154_v34 = vmax.f32 %v2216_v59, %v4096_v11  ;;  %v3155_v53 = vmax.f32 %v2215_v14, %v4097_v16  ;;  %v3265_v40 = vmax.f32 %v3153_v38, %v3161_v51 }
 0x24d   : > { %v4351_v39 = vpack.c.bf16 %v3300_v0, %v3300_v0  ;;  %v3639_v63 = vunpack.c.l.b16 %v4348_v55  ;;  %v3640_v30 = vunpack.c.l.b16 %v4349_v24  ;;  %v3641_v20 = vunpack.c.l.b16 %v4350_v37 }
 0x24e   : > { %v3156_v19 = vmax.f32 %v2217_v60, %v4098_v47  ;;  %v3266_v44 = vmax.f32 %v3154_v34, %v3162_v56  ;;  %v3267_v5 = vmax.f32 %v3155_v53, %v3163_v49  ;;  %v4316_v26 = vpack.c.bf16 %v3265_v40, %v3265_v40 }
 0x24f   : > { %v6045_v41 = vunpack.c.l.b16 %v4351_v39  ;;  %v3739_v62 = vrot.slane %v3639_v63, 7  ;;  %v3740_v21 = vrot.slane %v3640_v30, 6  ;;  %v3742_v7 = vrot.slane %v3641_v20, 5 }
 0x250   : > { %v3268_v12 = vmax.f32 %v3156_v19, %v3164_v33  ;;  %v4317_v31 = vpack.c.bf16 %v3266_v44, %v3266_v44  ;;  %v4318_v54 = vpack.c.bf16 %v3267_v5, %v3267_v5  ;;  %v3607_v6 = vunpack.c.l.b16 %v4316_v26 }
 0x251   : > { %v3741_v18 = vsel %vm3657_vm4, %v3740_v21, %v3739_v62  ;;  %v3744_v15 = vrot.slane %v6045_v41, 4  ;;  %v1908_v1 = vmul.f32 %v6052_v27, %v6019_v42  ;;  %v2524_v2 = vcombine.high %v6009_v8, %v6009_v8 }
 0x252   : > { %v4319_v4 = vpack.c.bf16 %v3268_v12, %v3268_v12  ;;  %v3608_v23 = vunpack.c.l.b16 %v4317_v31  ;;  %v3609_v32 = vunpack.c.l.b16 %v4318_v54  ;;  %v3687_v13 = vrot.slane %v3607_v6, 7 }
 0x253   : > { %v6059_v17 = vsel %vm3660_vm5, %v3742_v7, %v3741_v18  ;;  %v1947_v43 = vadd.f32 %v6034_v29, %v1908_v1  ;;  %v2531_v28 = vrot.slane %v6009_v8, %v5780_v3  ;;  %v2538_v9 = vrot.slane %v2524_v2, %v5780_v3 }
 0x254   : > { %v3610_v22 = vunpack.c.l.b16 %v4319_v4  ;;  %v3688_v42 = vrot.slane %v3608_v23, 6  ;;  %v3690_v46 = vrot.slane %v3609_v32, 5  ;;  %v1906_v52 = vmul.f32 %v6052_v27, %v6026_v61 }
 0x255   : > { %v1979_v48 = vmax.f32 %v1947_v43, 0.0  ;;  %v2539_v58 = vcombine.high %v2531_v28, %v2531_v28  ;;  %v2540_v45 = vcombine.high %v2538_v9, %v2538_v9  ;;  %v4171_v51 = vrot.slane %v2531_v28, 9 }
 0x256   : > { %v3689_v14 = vsel %vm3657_vm4, %v3688_v42, %v3687_v13  ;;  %v3692_v59 = vrot.slane %v3610_v22, 4  ;;  %v4173_v25 = vrot.slane %v2538_v9, 9  ;;  %v1945_v36 = vadd.f32 %v6034_v29, %v1906_v52 }
 0x257   : > { %v3691_v8 = vsel %vm3660_vm5, %v3690_v46, %v3689_v14  ;;  %2012 = vst.msk [vmem:[%s5788_s8 + $0x58] sm:$0xff] %vm2000_vm3, %v1979_v48  ;;  %v2252_v35 = vcombine.high %v1979_v48, %v1979_v48  ;;  %v2259_v56 = vrot.slane %v1979_v48, %v5780_v3  ;;  %v4172_v49 = vrot.slane %v2539_v58, 9 }
 0x258   : > { %v4174_v61 = vrot.slane %v2540_v45, 9  ;;  %v3229_v0 = vmax.f32 %v2531_v28, %v4171_v51  ;;  %v3231_v60 = vmax.f32 %v2538_v9, %v4173_v25  ;;  %v1977_v11 = vmax.f32 %v1945_v36, 0.0 }
 0x259   : > { %v2266_v16 = vrot.slane %v2252_v35, %v5780_v3  ;;  %v2267_v38 = vcombine.high %v2259_v56, %v2259_v56  ;;  %v4107_v33 = vrot.slane %v2259_v56, 9  ;;  %v3230_v55 = vmax.f32 %v2539_v58, %v4172_v49 }
 0x25a   : > { %v3232_v24 = vmax.f32 %v2540_v45, %v4174_v61  ;;  %2010 = vst.msk [vmem:[%s5788_s8 + $0x48] sm:$0xff] %vm2000_vm3, %v1977_v11  ;;  %v2218_v37 = vcombine.high %v1977_v11, %v1977_v11  ;;  %v2225_v47 = vrot.slane %v1977_v11, %v5780_v3  ;;  %v3693_v34 = vsel %vm3663_vm6, %v3692_v59, %v3691_v8  ;;  %v4273_v8 = vld [vmem:[%s5685_s13 + $0x1c] sm:$0x1] }
 0x25b   : > { %v2268_v53 = vcombine.high %v2266_v16, %v2266_v16  ;;  %v4108_v40 = vrot.slane %v2267_v38, 9  ;;  %v4109_v39 = vrot.slane %v2266_v16, 9  ;;  %v3165_v63 = vmax.f32 %v2259_v56, %v4107_v33 }
 0x25c   : > { %v2232_v30 = vrot.slane %v2218_v37, %v5780_v3  ;;  %v2233_v20 = vcombine.high %v2225_v47, %v2225_v47  ;;  %v4099_v19 = vrot.slane %v2225_v47, 9  ;;  %v2490_v44 = vcombine.high %v6015_v50, %v6015_v50 }
 0x25d   : > { %v4110_v5 = vrot.slane %v2268_v53, 9  ;;  %v3166_v26 = vmax.f32 %v2267_v38, %v4108_v40  ;;  %v3167_v62 = vmax.f32 %v2266_v16, %v4109_v39  ;;  %v2497_v21 = vrot.slane %v6015_v50, %v5780_v3 }
 0x25e   : > { %v2234_v7 = vcombine.high %v2232_v30, %v2232_v30  ;;  %v4100_v12 = vrot.slane %v2233_v20, 9  ;;  %v4101_v31 = vrot.slane %v2232_v30, 9  ;;  %v3157_v54 = vmax.f32 %v2225_v47, %v4099_v19  ;;  %v4289_v19 = vld [vmem:[%s5685_s13 + $0x3c] sm:$0x1] }
 0x25f   : > { %v3168_v6 = vmax.f32 %v2268_v53, %v4110_v5  ;;  %v2504_v18 = vrot.slane %v2490_v44, %v5780_v3  ;;  %v2505_v1 = vcombine.high %v2497_v21, %v2497_v21  ;;  %v4163_v2 = vrot.slane %v2497_v21, 9 }
 0x260   : > { %v4102_v4 = vrot.slane %v2234_v7, 9  ;;  %v3158_v23 = vmax.f32 %v2233_v20, %v4100_v12  ;;  %v3159_v32 = vmax.f32 %v2232_v30, %v4101_v31  ;;  %v3269_v13 = vmax.f32 %v3157_v54, %v3165_v63  ;;  %v4287_v54 = vld [vmem:[%s5685_s13 + $0x38] sm:$0xf] }
 0x261   : > { %v2506_v43 = vcombine.high %v2504_v18, %v2504_v18  ;;  %v4164_v28 = vrot.slane %v2505_v1, 9  ;;  %v4165_v9 = vrot.slane %v2504_v18, 9  ;;  %v3221_v22 = vmax.f32 %v2497_v21, %v4163_v2 }
 0x262   : > { %v3160_v42 = vmax.f32 %v2234_v7, %v4102_v4  ;;  %v3270_v50 = vmax.f32 %v3158_v23, %v3166_v26  ;;  %v3271_v46 = vmax.f32 %v3159_v32, %v3167_v62  ;;  %v4320_v52 = vpack.c.bf16 %v3269_v13, %v3269_v13  ;;  %v4271_v26 = vld [vmem:[%s5685_s13 + $0x18] sm:$0xf] }
 0x263   : > { %v4166_v48 = vrot.slane %v2506_v43, 9  ;;  %v3222_v58 = vmax.f32 %v2505_v1, %v4164_v28  ;;  %v3223_v45 = vmax.f32 %v2504_v18, %v4165_v9  ;;  %v3301_v51 = vmax.f32 %v3221_v22, %v3229_v0 }
 0x264   : > { %v3272_v14 = vmax.f32 %v3160_v42, %v3168_v6  ;;  %v4321_v59 = vpack.c.bf16 %v3270_v50, %v3270_v50  ;;  %v4322_v25 = vpack.c.bf16 %v3271_v46, %v3271_v46  ;;  %v3611_v36 = vunpack.c.l.b16 %v4320_v52 }
 0x265   : > { %v3224_v35 = vmax.f32 %v2506_v43, %v4166_v48  ;;  %v3302_v56 = vmax.f32 %v3222_v58, %v3230_v55  ;;  %v3303_v49 = vmax.f32 %v3223_v45, %v3231_v60  ;;  %v4352_v61 = vpack.c.bf16 %v3301_v51, %v3301_v51 }
 0x266   : > { %v3612_v11 = vunpack.c.l.b16 %v4321_v59  ;;  %v3613_v16 = vunpack.c.l.b16 %v4322_v25  ;;  %v3694_v38 = vrot.slane %v3611_v36, 3  ;;  %v4366_v33 = vpack.c.bf16 %v3272_v14, %v3272_v14 }
 0x267   : > { %v3304_v37 = vmax.f32 %v3224_v35, %v3232_v24  ;;  %v4353_v47 = vpack.c.bf16 %v3302_v56, %v3302_v56  ;;  %v4354_v53 = vpack.c.bf16 %v3303_v49, %v3303_v49  ;;  %v3643_v0 = vunpack.c.l.b16 %v4352_v61 }
 0x268   : > { %v3695_v40 = vsel %vm3666_vm8, %v3694_v38, %v3693_v34  ;;  %v3696_v39 = vrot.slane %v3612_v11, 2  ;;  %v3698_v63 = vrot.slane %v3613_v16, 1  ;;  %v3820_v30 = vsel %vm5860_vm12, %v4366_v33, %v4273_v8 }
 0x269   : > { %4274 = vst [vmem:[%s5685_s13 + $0x1c] sm:$0x1] %v3820_v30  ;;  %v3644_v60 = vunpack.c.l.b16 %v4353_v47  ;;  %v3645_v55 = vunpack.c.l.b16 %v4354_v53  ;;  %v3745_v24 = vsel %vm3663_vm6, %v3744_v15, %v6059_v17  ;;  %v3746_v20 = vrot.slane %v3643_v0, 3 }
 0x26a   : > { %v3697_v34 = vsel %vm3669_vm9, %v3696_v39, %v3695_v40  ;;  %v4370_v44 = vpack.c.bf16 %v3304_v37, %v3304_v37 }
 0x26b   : > { %v3699_v5 = vsel %vm3672_vm10, %v3698_v63, %v3697_v34  ;;  %v3747_v62 = vsel %vm3666_vm8, %v3746_v20, %v3745_v24  ;;  %v3748_v21 = vrot.slane %v3644_v60, 2  ;;  %v3750_v12 = vrot.slane %v3645_v55, 1 }
 0x26c   : > { %v3769_v7 = vpack.c.b16 %v3699_v5, %v3699_v5  ;;  %v3844_v41 = vsel %vm5860_vm12, %v4370_v44, %v4289_v19 }
 0x26d   : > { %v3749_v15 = vsel %vm3669_vm9, %v3748_v21, %v3747_v62  ;;  %4290 = vst [vmem:[%s5685_s13 + $0x3c] sm:$0x1] %v3844_v41 }
 0x26e   : > { %v3817_v17 = vsel %vm5878_vm13, %v3769_v7, %v4271_v26  ;;  %v3751_v31 = vsel %vm3672_vm10, %v3750_v12, %v3749_v15 }
 0x26f   : > { %4272 = vst [vmem:[%s5685_s13 + $0x18] sm:$0xf] %v3817_v17  ;;  %v3777_v6 = vpack.c.b16 %v3751_v31, %v3751_v31 }
 0x271   : > { %v3841_v18 = vsel %vm5878_vm13, %v3777_v6, %v4287_v54  ;;  %v4434_v1 = vpop.f32.mrb[12].mxu1 }
 0x272   : > { %4288 = vst [vmem:[%s5685_s13 + $0x38] sm:$0xf] %v3841_v18  ;;  %v1927_v2 = vmul.f32 %v6052_v27, %v4434_v1  ;;  %v1875_v4 = vpop.f32.mrb[13].mxu1 }
 0x273   : > { %v1925_v23 = vmul.f32 %v6052_v27, %v1875_v4  ;;  %v4435_v32 = vpop.f32.mrb[14].mxu1 }
 0x274   : > { %v1966_v13 = vadd.f32 %v6034_v29, %v1927_v2  ;;  %v1928_v43 = vmul.f32 %v6052_v27, %v4435_v32  ;;  %v1878_v28 = vpop.f32.mrb[15].mxu1 }
 0x275   : > { %v1964_v9 = vadd.f32 %v6034_v29, %v1925_v23  ;;  %v1926_v22 = vmul.f32 %v6052_v27, %v1878_v28 }
 0x276   : > { %v1998_v42 = vmax.f32 %v1966_v13, 0.0  ;;  %v1967_v50 = vadd.f32 %v6034_v29, %v1928_v43 }
 0x277   : > { %v1996_v46 = vmax.f32 %v1964_v9, 0.0  ;;  %v1965_v52 = vadd.f32 %v6034_v29, %v1926_v22 }
 0x278   : > { %v4418_v48 = vpop.f32.mrb[12].mxu0  ;;  %2031 = vst.msk [vmem:[%s5788_s8 + $0xf0] sm:$0xff] %vm2000_vm3, %v1998_v42  ;;  %v2575_v58 = vcombine.high %v1998_v42, %v1998_v42  ;;  %v2582_v45 = vrot.slane %v1998_v42, %v5780_v3  ;;  %v6121_v51 = vmax.f32 %v1967_v50, 0.0 }
 0x279   : > { %v1911_v14 = vmul.f32 %v6052_v27, %v4418_v48  ;;  %v1811_v59 = vpop.f32.mrb[13].mxu0  ;;  %2029 = vst.msk [vmem:[%s5788_s8 + $0xe0] sm:$0xff] %vm2000_vm3, %v1996_v46  ;;  %v2541_v25 = vcombine.high %v1996_v46, %v1996_v46  ;;  %v2548_v36 = vrot.slane %v1996_v46, %v5780_v3  ;;  %v6127_v8 = vmax.f32 %v1965_v52, 0.0 }
 0x27a   : > { %v2589_v35 = vrot.slane %v2575_v58, %v5780_v3  ;;  %v2590_v56 = vcombine.high %v2582_v45, %v2582_v45  ;;  %v4183_v49 = vrot.slane %v2582_v45, 9  ;;  %v1909_v61 = vmul.f32 %v6052_v27, %v1811_v59  ;;  %v6131_v11 = vpop.f32.mrb[14].mxu0  ;;  %2032 = vst.msk [vmem:[%s5788_s8 + $0xf8] sm:$0xff] %vm2000_vm3, %v6121_v51 }
 0x27b   : > { %v1950_v16 = vadd.f32 %v6034_v29, %v1911_v14  ;;  %v2555_v38 = vrot.slane %v2541_v25, %v5780_v3  ;;  %v2556_v33 = vcombine.high %v2548_v36, %v2548_v36  ;;  %v4175_v37 = vrot.slane %v2548_v36, 9  ;;  %v6138_v47 = vpop.f32.mrb[15].mxu0  ;;  %2030 = vst.msk [vmem:[%s5788_s8 + $0xe8] sm:$0xff] %vm2000_vm3, %v6127_v8 }
 0x27c   : > { %v2591_v53 = vcombine.high %v2589_v35, %v2589_v35  ;;  %v4184_v0 = vrot.slane %v2590_v56, 9  ;;  %v4185_v40 = vrot.slane %v2589_v35, 9  ;;  %v3241_v39 = vmax.f32 %v2582_v45, %v4183_v49 }
 0x27d   : > { %v1982_v63 = vmax.f32 %v1950_v16, 0.0  ;;  %v1948_v30 = vadd.f32 %v6034_v29, %v1909_v61  ;;  %v2557_v60 = vcombine.high %v2555_v38, %v2555_v38  ;;  %v4176_v55 = vrot.slane %v2556_v33, 9 }
 0x27e   : > { %v4186_v24 = vrot.slane %v2591_v53, 9  ;;  %v3242_v20 = vmax.f32 %v2590_v56, %v4184_v0  ;;  %v3243_v19 = vmax.f32 %v2589_v35, %v4185_v40  ;;  %v4177_v34 = vrot.slane %v2555_v38, 9 }
 0x27f   : > { %2015 = vst.msk [vmem:[%s5788_s8 + $0x70] sm:$0xff] %vm2000_vm3, %v1982_v63  ;;  %v2303_v44 = vcombine.high %v1982_v63, %v1982_v63  ;;  %v2310_v5 = vrot.slane %v1982_v63, %v5780_v3  ;;  %v1980_v26 = vmax.f32 %v1948_v30, 0.0  ;;  %v4178_v62 = vrot.slane %v2557_v60, 9 }
 0x280   : > { %v3244_v21 = vmax.f32 %v2591_v53, %v4186_v24  ;;  %v3233_v7 = vmax.f32 %v2548_v36, %v4175_v37  ;;  %v3234_v12 = vmax.f32 %v2556_v33, %v4176_v55  ;;  %v3235_v41 = vmax.f32 %v2555_v38, %v4177_v34 }
 0x281   : > { %v2317_v15 = vrot.slane %v2303_v44, %v5780_v3  ;;  %v2318_v17 = vcombine.high %v2310_v5, %v2310_v5  ;;  %v4119_v31 = vrot.slane %v2310_v5, 9  ;;  %2013 = vst.msk [vmem:[%s5788_s8 + $0x60] sm:$0xff] %vm2000_vm3, %v1980_v26  ;;  %v2269_v54 = vcombine.high %v1980_v26, %v1980_v26 }
 0x282   : > { %v2276_v6 = vrot.slane %v1980_v26, %v5780_v3  ;;  %v3236_v18 = vmax.f32 %v2557_v60, %v4178_v62  ;;  %v3305_v1 = vmax.f32 %v3233_v7, %v3241_v39  ;;  %v3306_v2 = vmax.f32 %v3234_v12, %v3242_v20 }
 0x283   : > { %v2319_v4 = vcombine.high %v2317_v15, %v2317_v15  ;;  %v4120_v23 = vrot.slane %v2318_v17, 9  ;;  %v4121_v32 = vrot.slane %v2317_v15, 9  ;;  %v3177_v13 = vmax.f32 %v2310_v5, %v4119_v31 }
 0x284   : > { %v2283_v43 = vrot.slane %v2269_v54, %v5780_v3  ;;  %v2284_v28 = vcombine.high %v2276_v6, %v2276_v6  ;;  %v4111_v9 = vrot.slane %v2276_v6, 9  ;;  %v3307_v22 = vmax.f32 %v3235_v41, %v3243_v19 }
 0x285   : > { %v4122_v42 = vrot.slane %v2319_v4, 9  ;;  %v3178_v50 = vmax.f32 %v2318_v17, %v4120_v23  ;;  %v3179_v46 = vmax.f32 %v2317_v15, %v4121_v32  ;;  %v3308_v52 = vmax.f32 %v3236_v18, %v3244_v21 }
 0x286   : > { %v2285_v48 = vcombine.high %v2283_v43, %v2283_v43  ;;  %v4112_v58 = vrot.slane %v2284_v28, 9  ;;  %v4113_v45 = vrot.slane %v2283_v43, 9  ;;  %v3169_v14 = vmax.f32 %v2276_v6, %v4111_v9 }
 0x287   : > { %v3180_v59 = vmax.f32 %v2319_v4, %v4122_v42  ;;  %v4356_v25 = vpack.c.bf16 %v3305_v1, %v3305_v1  ;;  %v4357_v36 = vpack.c.bf16 %v3306_v2, %v3306_v2  ;;  %v4358_v35 = vpack.c.bf16 %v3307_v22, %v3307_v22 }
 0x288   : > { %v4114_v56 = vrot.slane %v2285_v48, 9  ;;  %v3170_v49 = vmax.f32 %v2284_v28, %v4112_v58  ;;  %v3171_v61 = vmax.f32 %v2283_v43, %v4113_v45  ;;  %v3273_v16 = vmax.f32 %v3169_v14, %v3177_v13 }
 0x289   : > { %v4359_v38 = vpack.c.bf16 %v3308_v52, %v3308_v52  ;;  %v3647_v33 = vunpack.c.l.b16 %v4356_v25  ;;  %v3648_v37 = vunpack.c.l.b16 %v4357_v36  ;;  %v3649_v53 = vunpack.c.l.b16 %v4358_v35 }
 0x28a   : > { %v3172_v0 = vmax.f32 %v2285_v48, %v4114_v56  ;;  %v3274_v40 = vmax.f32 %v3170_v49, %v3178_v50  ;;  %v3275_v39 = vmax.f32 %v3171_v61, %v3179_v46  ;;  %v4324_v63 = vpack.c.bf16 %v3273_v16, %v3273_v16 }
 0x28b   : > { %v6152_v30 = vunpack.c.l.b16 %v4359_v38  ;;  %v3752_v60 = vrot.slane %v3647_v33, 7  ;;  %v3753_v55 = vrot.slane %v3648_v37, 6  ;;  %v3755_v24 = vrot.slane %v3649_v53, 5 }
 0x28c   : > { %v3276_v20 = vmax.f32 %v3172_v0, %v3180_v59  ;;  %v4325_v19 = vpack.c.bf16 %v3274_v40, %v3274_v40  ;;  %v4326_v34 = vpack.c.bf16 %v3275_v39, %v3275_v39  ;;  %v3615_v44 = vunpack.c.l.b16 %v4324_v63 }
 0x28d   : > { %v3754_v5 = vsel %vm3657_vm4, %v3753_v55, %v3752_v60  ;;  %v3757_v26 = vrot.slane %v6152_v30, 4  ;;  %v1912_v62 = vmul.f32 %v6052_v27, %v6131_v11  ;;  %v2592_v21 = vcombine.high %v6121_v51, %v6121_v51 }
 0x28e   : > { %v4327_v7 = vpack.c.bf16 %v3276_v20, %v3276_v20  ;;  %v3616_v12 = vunpack.c.l.b16 %v4325_v19  ;;  %v3617_v41 = vunpack.c.l.b16 %v4326_v34  ;;  %v3700_v15 = vrot.slane %v3615_v44, 7 }
 0x28f   : > { %v6161_v17 = vsel %vm3660_vm5, %v3755_v24, %v3754_v5  ;;  %v1951_v31 = vadd.f32 %v6034_v29, %v1912_v62  ;;  %v2599_v54 = vrot.slane %v6121_v51, %v5780_v3  ;;  %v2606_v6 = vrot.slane %v2592_v21, %v5780_v3 }
 0x290   : > { %v3618_v11 = vunpack.c.l.b16 %v4327_v7  ;;  %v3701_v18 = vrot.slane %v3616_v12, 6  ;;  %v3703_v1 = vrot.slane %v3617_v41, 5  ;;  %v1910_v2 = vmul.f32 %v6052_v27, %v6138_v47 }
 0x291   : > { %v1983_v4 = vmax.f32 %v1951_v31, 0.0  ;;  %v2607_v23 = vcombine.high %v2599_v54, %v2599_v54  ;;  %v2608_v32 = vcombine.high %v2606_v6, %v2606_v6  ;;  %v4187_v13 = vrot.slane %v2599_v54, 9 }
 0x292   : > { %v3702_v43 = vsel %vm3657_vm4, %v3701_v18, %v3700_v15  ;;  %v3705_v28 = vrot.slane %v3618_v11, 4  ;;  %v4189_v9 = vrot.slane %v2606_v6, 9  ;;  %v1949_v51 = vadd.f32 %v6034_v29, %v1910_v2 }
 0x293   : > { %v3704_v22 = vsel %vm3660_vm5, %v3703_v1, %v3702_v43  ;;  %2016 = vst.msk [vmem:[%s5788_s8 + $0x78] sm:$0xff] %vm2000_vm3, %v1983_v4  ;;  %v2320_v42 = vcombine.high %v1983_v4, %v1983_v4  ;;  %v2327_v27 = vrot.slane %v1983_v4, %v5780_v3  ;;  %v4188_v47 = vrot.slane %v2607_v23, 9 }
 0x294   : > { %v4190_v50 = vrot.slane %v2608_v32, 9  ;;  %v6182_v46 = vmax.f32 %v2599_v54, %v4187_v13  ;;  %v6184_v52 = vmax.f32 %v2606_v6, %v4189_v9  ;;  %v1981_v29 = vmax.f32 %v1949_v51, 0.0 }
 0x295   : > { %v2334_v48 = vrot.slane %v2320_v42, %v5780_v3  ;;  %v2335_v58 = vcombine.high %v2327_v27, %v2327_v27  ;;  %v4123_v45 = vrot.slane %v2327_v27, 9  ;;  %v6189_v14 = vmax.f32 %v2607_v23, %v4188_v47 }
 0x296   : > { %v6191_v59 = vmax.f32 %v2608_v32, %v4190_v50  ;;  %2014 = vst.msk [vmem:[%s5788_s8 + $0x68] sm:$0xff] %vm2000_vm3, %v1981_v29  ;;  %v2286_v25 = vcombine.high %v1981_v29, %v1981_v29  ;;  %v2293_v36 = vrot.slane %v1981_v29, %v5780_v3  ;;  %v6197_v35 = vsel %vm3663_vm6, %v3705_v28, %v3704_v22  ;;  %s4529_s8 = scalar_lea.vmem %s4528_s7, 8192 }
 0x297   : > { %v2336_v56 = vcombine.high %v2334_v48, %v2334_v48  ;;  %v4124_v49 = vrot.slane %v2335_v58, 9  ;;  %v4125_v61 = vrot.slane %v2334_v48, 9  ;;  %v3181_v16 = vmax.f32 %v2327_v27, %v4123_v45  ;;  %p4531_p1 = scmp.lt.s32.totalorder %s4529_s8, %s4523_s23 }
 0x299   : > { %p4532_p2 = por %p4531_p1, %p4530_p0 }
 0x29b   : > { %p4533_p3 = pnand %p4532_p2, %p4526_p13 }
 0x29d   : > { %4536 = shalt.err (!%p4533_p3)
}
 0x29e   : > { %s4537_s30 = scalar_lea.hbm %s6180_s14, 4096  ;;  %s4541_s25 = scalar_lea.hbm %s6284_s4, 8192 }
 0x29f   : > { %p4538_p4 = scmp.ne.s32.totalorder %s6180_s14, %s4537_s30  ;;  %p4542_p9 = scmp.lt.u32.totalorder %s6180_s14, %s6284_s4 }
 0x2a0   : > { %p4543_p10 = scmp.lt.u32.totalorder %s4541_s25, %s4537_s30  ;;  %p4545_p12 = scmp.lt.u32.totalorder %s4537_s30, %s6180_s14 }
 0x2a1   : > { %p4539_p7 = pnand %p4538_p4, %p4667_p5 }
 0x2a2   : > { %p4544_p11 = por %p4543_p10, %p4542_p9 }
 0x2a3   : > { %p4540_p8 = pneg %p4539_p7 }
 0x2a4   : > { %p4546_p13 = por %p4545_p12, %p4544_p11 }
 0x2a6   : > { %p4547_p0 = pnand %p4546_p13, %p4540_p8 }
 0x2a8   : > { %4550 = shalt.err (!%p4547_p0)
}
 0x2a9   : > { %s4598_s22 = smov 128   ;;  %v2300_v38 = vrot.slane %v2286_v25, %v5780_v3  ;;  %v2301_v33 = vcombine.high %v2293_v36, %v2293_v36  ;;  %v4115_v37 = vrot.slane %v2293_v36, 9  ;;  %v2558_v53 = vcombine.high %v6127_v8, %v6127_v8  ;;  %v4277_v28 = vld [vmem:[%s5685_s13 + $0x24] sm:$0x1] }
 0x2aa   : > { %4450 = dma.vmem_to_hbm [thread:$0]  (%p4667_p5), %s6186_s10, 4096, %s6180_s14, %s6201_s15, %s4598_s22, %s4598_s22, %s4589_s12   ;;  %v4126_v0 = vrot.slane %v2336_v56, 9  ;;  %v3182_v40 = vmax.f32 %v2335_v58, %v4124_v49  ;;  %v3183_v39 = vmax.f32 %v2334_v48, %v4125_v61  ;;  %v2565_v63 = vrot.slane %v6127_v8, %v5780_v3 }
 0x2ab   : > { %v2302_v60 = vcombine.high %v2300_v38, %v2300_v38  ;;  %v4116_v55 = vrot.slane %v2301_v33, 9  ;;  %v4117_v24 = vrot.slane %v2300_v38, 9  ;;  %v3173_v20 = vmax.f32 %v2293_v36, %v4115_v37  ;;  %v4275_v37 = vld [vmem:[%s5685_s13 + $0x20] sm:$0xf] }
 0x2ac   : > { %v3184_v19 = vmax.f32 %v2336_v56, %v4126_v0  ;;  %v2572_v34 = vrot.slane %v2558_v53, %v5780_v3  ;;  %v2573_v44 = vcombine.high %v2565_v63, %v2565_v63  ;;  %v4179_v5 = vrot.slane %v2565_v63, 9 }
 0x2ad   : > { %v4118_v62 = vrot.slane %v2302_v60, 9  ;;  %v3174_v21 = vmax.f32 %v2301_v33, %v4116_v55  ;;  %v3175_v7 = vmax.f32 %v2300_v38, %v4117_v24  ;;  %v3277_v12 = vmax.f32 %v3173_v20, %v3181_v16  ;;  %v4293_v16 = vld [vmem:[%s5685_s13 + $0x44] sm:$0x1] }
 0x2ae   : > { %v2574_v41 = vcombine.high %v2572_v34, %v2572_v34  ;;  %v4180_v15 = vrot.slane %v2573_v44, 9  ;;  %v4181_v31 = vrot.slane %v2572_v34, 9  ;;  %v3237_v54 = vmax.f32 %v2565_v63, %v4179_v5 }
 0x2af   : > { %v3176_v6 = vmax.f32 %v2302_v60, %v4118_v62  ;;  %v3278_v8 = vmax.f32 %v3174_v21, %v3182_v40  ;;  %v3279_v11 = vmax.f32 %v3175_v7, %v3183_v39  ;;  %v4328_v18 = vpack.c.bf16 %v3277_v12, %v3277_v12  ;;  %v4291_v60 = vld [vmem:[%s5685_s13 + $0x40] sm:$0xf] }
 0x2b0   : > { %v4182_v1 = vrot.slane %v2574_v41, 9  ;;  %v3238_v2 = vmax.f32 %v2573_v44, %v4180_v15  ;;  %v3239_v4 = vmax.f32 %v2572_v34, %v4181_v31  ;;  %v3309_v3 = vmax.f32 %v3237_v54, %v6182_v46 }
 0x2b1   : > { %v3280_v23 = vmax.f32 %v3176_v6, %v3184_v19  ;;  %v4329_v32 = vpack.c.bf16 %v3278_v8, %v3278_v8  ;;  %v4330_v13 = vpack.c.bf16 %v3279_v11, %v3279_v11  ;;  %v3619_v43 = vunpack.c.l.b16 %v4328_v18 }
 0x2b2   : > { %v3240_v9 = vmax.f32 %v2574_v41, %v4182_v1  ;;  %v3310_v51 = vmax.f32 %v3238_v2, %v6189_v14  ;;  %v3311_v22 = vmax.f32 %v3239_v4, %v6184_v52  ;;  %v4360_v42 = vpack.c.bf16 %v3309_v3, %v3309_v3 }
 0x2b3   : > { %v3620_v27 = vunpack.c.l.b16 %v4329_v32  ;;  %v3621_v47 = vunpack.c.l.b16 %v4330_v13  ;;  %v3707_v50 = vrot.slane %v3619_v43, 3  ;;  %v4367_v29 = vpack.c.bf16 %v3280_v23, %v3280_v23 }
 0x2b4   : > { %v3312_v48 = vmax.f32 %v3240_v9, %v6191_v59  ;;  %v4361_v46 = vpack.c.bf16 %v3310_v51, %v3310_v51  ;;  %v4362_v58 = vpack.c.bf16 %v3311_v22, %v3311_v22  ;;  %v3651_v45 = vunpack.c.l.b16 %v4360_v42 }
 0x2b5   : > { %v3708_v25 = vsel %vm3666_vm8, %v3707_v50, %v6197_v35  ;;  %v3709_v36 = vrot.slane %v3620_v27, 2  ;;  %v3711_v56 = vrot.slane %v3621_v47, 1  ;;  %v3826_v52 = vsel %vm5860_vm12, %v4367_v29, %v4277_v28 }
 0x2b6   : > { %4278 = vst [vmem:[%s5685_s13 + $0x24] sm:$0x1] %v3826_v52  ;;  %v3652_v14 = vunpack.c.l.b16 %v4361_v46  ;;  %v3653_v49 = vunpack.c.l.b16 %v4362_v58  ;;  %v3758_v59 = vsel %vm3663_vm6, %v3757_v26, %v6161_v17  ;;  %v3759_v61 = vrot.slane %v3651_v45, 3 }
 0x2b7   : > { %v3710_v35 = vsel %vm3669_vm9, %v3709_v36, %v3708_v25  ;;  %v4371_v38 = vpack.c.bf16 %v3312_v48, %v3312_v48 }
 0x2b8   : > { %v3712_v33 = vsel %vm3672_vm10, %v3711_v56, %v3710_v35  ;;  %v3760_v53 = vsel %vm3666_vm8, %v3759_v61, %v3758_v59  ;;  %v3761_v0 = vrot.slane %v3652_v14, 2  ;;  %v3763_v39 = vrot.slane %v3653_v49, 1 }
 0x2b9   : > { %v3771_v40 = vpack.c.b16 %v3712_v33, %v3712_v33  ;;  %v3850_v30 = vsel %vm5860_vm12, %v4371_v38, %v4293_v16 }
 0x2ba   : > { %v3762_v26 = vsel %vm3669_vm9, %v3761_v0, %v3760_v53  ;;  %4294 = vst [vmem:[%s5685_s13 + $0x44] sm:$0x1] %v3850_v30 }
 0x2bb   : > { %v3823_v17 = vsel %vm5878_vm13, %v3771_v40, %v4275_v37  ;;  %v3764_v63 = vsel %vm3672_vm10, %v3763_v39, %v3762_v26 }
 0x2bc   : > { %4276 = vst [vmem:[%s5685_s13 + $0x20] sm:$0xf] %v3823_v17  ;;  %v3779_v55 = vpack.c.b16 %v3764_v63, %v3764_v63 }
 0x2be   : > { %v3847_v24 = vsel %vm5878_vm13, %v3779_v55, %v4291_v60 }
 0x2bf   : > { %4292 = vst [vmem:[%s5685_s13 + $0x40] sm:$0xf] %v3847_v24 }
 0x2c0 PF: > { %p4456_p5 = scmp.ge.s32.totalorder %s4585_s21, 2  ;;  %s3889_s28 = sand.u32 1, %s4573_s18  }
 0x2c1   : > { %s3890_s12 = scalar_lea.sflag [#allocation4], %s3889_s28 }
 0x2c2   : > { %p4453_p1 = pnand %p4456_p5, %p4671_p6 }
 0x2c4   : > { %4568 = dma.done.wait (!%p4453_p1), %s3890_s12, 4096  }
 0x2c5   : > { %4570 = vsyncadd (!%p4453_p1), %s3890_s12, 4294963200  ;;  %p16_p2 = scmp.ge.s32.totalorder %s4654_s24, 4   ;;  %s6331_s18 = smov %s4577_s19 }
 0x2c6   : > { %s6332_s19 = smov %s4581_s20  ;;  %s6333_s20 = smov %s4665_s27 }
 0x2c7   : > { %s6334_s21 = smov %s4654_s24  ;;  %18 = sbr.rel (!%p16_p2) target bundleno = 3 (0x3), region = 84 }
 0x2ce   :  { %3903 = vsyncpa [#allocation4], 1 }
 0x2cf   :  { %3905 = vsyncpa [#allocation4 + $0x1], 1 }

// kernel: vgg_small_forward.7
= control target key start
LH: loop header
LB: loop body
LE: loop exit
PB: predicated region body
PF: predicated region fallthrough
CT: control target
= control target key end

     0   :  { %11 = vsyncpa [#allocation4], 0  ;;  %s9077_s0 = inlined_call_operand.vmem [shape: bf16[2,4,4,256], index: 0, kind: input, shape index: {}]   ;;  %s9078_s1 = inlined_call_operand.vmem [shape: bf16[2304,512], index: 1, kind: input, shape index: {}]   ;;  %s9079_s2 = inlined_call_operand.vmem [shape: f32[1,512], index: 2, kind: input, shape index: {}]   ;;  %s9080_s3 = inlined_call_operand.vmem [shape: f32[1,512], index: 3, kind: input, shape index: {}]   ;;  %s9081_s4 = inlined_call_operand.vmem [shape: bf16[512,128], index: 4, kind: input, shape index: {}]   ;;  %s9082_s5 = inlined_call_operand.vmem [shape: f32[1,128], index: 5, kind: input, shape index: {}]   ;;  %s9083_s6 = inlined_call_operand.hbm [shape: f32[2,1,128], index: 6, kind: output, shape index: {}]  }
   0x1   :  { %13 = vsyncpa [#allocation4 + $0x1], 0  ;;  %s7020_s21 = smov 0   ;;  %s7022_s22 = smov 0  }
   0x2   :  { %s7024_s23 = smov 0   ;;  %s7026_s24 = smov 0  }
   0x3 LB: > { %s7041_s25 = sadd.s32 4294967295, %s6981_s24   ;;  %s5229_s26 = sadd.s32 4294967294, %s6981_s24   ;;  %s6981_s24 = sphi %s7026_s24, %s9091_s24   ;;  %s6977_s23 = sphi %s7024_s23, %s9090_s23   ;;  %s6973_s22 = sphi %s7022_s22, %s9089_s22   ;;  %s6969_s21 = sphi %s7020_s21, %s9088_s21  }
   0x4   : > { %s7045_s27 = sadd.s32 1, %s6981_s24   ;;  %s157_s28 = sadd.s32 1, %s6977_s23 }
   0x5   : > { %s154_s29 = ssub.s32 %s6981_s24, %s7045_s27  ;;  %p167_p0 = scmp.ne.s32.totalorder %s6977_s23, %s6973_s22 }
   0x6   : > { %p155_p1 = scmp.eq.s32.totalorder %s154_s29, 0  ;;  %p168_p2 = scmp.eq.s32.totalorder %s7041_s25, 1 }
   0x7   : > { %p173_p3 = scmp.ne.s32.totalorder %s6973_s22, %s6969_s21  ;;  %p174_p4 = scmp.eq.s32.totalorder %s5229_s26, 1 }
   0x8   : > { %s7056_s30 = scalar_select %p155_p1, %s6977_s23, %s157_s28  }
   0x9   : > { %p7058_p5 = por %p168_p2, %p167_p0  ;;  %p7062_p6 = por %p174_p4, %p173_p3 }
   0xa   : > { %p5232_p7 = scmp.ge.s32.totalorder %s6981_s24, 1  ;;  %p215_p8 = scmp.lt.s32.totalorder %s6981_s24, 3 }
   0xc   : > { %p216_p9 = pnand %p5232_p7, %p215_p8 }
   0xd   : > { %v6016_v0 = vld [vmem:[%s9078_s1 + $0x4] ss:$16 sps:$4 sm:$0xff] (!%p216_p9)   ;;  %v6018_v1 = vld [vmem:[%s9078_s1 + $0xc] ss:$16 sps:$4 sm:$0xff] (!%p216_p9)   ;;  %v6020_v2 = vld [vmem:[%s9078_s1] ss:$16 sps:$4 sm:$0xff] (!%p216_p9)  }
   0xe   : > { %219 = sbr.rel (%p216_p9) target bundleno = 1060 (0x424), region = 44  ;;  %3991 = vmatprep.subr.bf16.mxu0 (!%p216_p9), %v6016_v0  ;;  %v6021_v3 = vld [vmem:[%s9078_s1 + $0x8] ss:$16 sps:$4 sm:$0xff] (!%p216_p9)   ;;  %4360 = vmatprep.subr.bf16.mxu1 (!%p216_p9), %v6018_v1  ;;  %v6022_v4 = vld [vmem:[%s9078_s1 + $0x24] ss:$16 sps:$4 sm:$0xff] (!%p216_p9)   ;;  %p244_p10 = scmp.lt.s32.totalorder (!%p216_p9), %s7041_s25, 1 }
   0xf   : > { %3992 = vmatpush1.bf16.msra.mxu0 (!%p216_p9), %v6020_v2  ;;  %4361 = vmatpush1.bf16.msra.mxu1 (!%p216_p9), %v6021_v3  ;;  %v6024_v5 = vld [vmem:[%s9078_s1 + $0x2c] ss:$16 sps:$4 sm:$0xff] (!%p216_p9)   ;;  %v6026_v6 = vld [vmem:[%s9078_s1 + $0x20] ss:$16 sps:$4 sm:$0xff] (!%p216_p9)   ;;  %v6027_v7 = vld [vmem:[%s9078_s1 + $0x28] ss:$16 sps:$4 sm:$0xff] (!%p216_p9)  }
  0x10   : > { %3993 = vmatprep.subr.bf16.mxu0 (!%p216_p9), %v6022_v4  ;;  %4362 = vmatprep.subr.bf16.mxu1 (!%p216_p9), %v6024_v5  ;;  %v6028_v8 = vld [vmem:[%s9078_s1 + $0x44] ss:$16 sps:$4 sm:$0xff] (!%p216_p9)   ;;  %v6030_v9 = vld [vmem:[%s9078_s1 + $0x4c] ss:$16 sps:$4 sm:$0xff] (!%p216_p9)   ;;  %v6032_v10 = vld [vmem:[%s9078_s1 + $0x40] ss:$16 sps:$4 sm:$0xff] (!%p216_p9)   ;;  %v1021_v4 = vlaneseq (!%p216_p9) }
  0x11   : > { %v6033_v11 = vld [vmem:[%s9078_s1 + $0x48] ss:$16 sps:$4 sm:$0xff] (!%p216_p9)   ;;  %v6034_v12 = vld [vmem:[%s9078_s1 + $0x64] ss:$16 sps:$4 sm:$0xff] (!%p216_p9)   ;;  %v6036_v13 = vld [vmem:[%s9078_s1 + $0x6c] ss:$16 sps:$4 sm:$0xff] (!%p216_p9)  }
  0x12   : > { %v6038_v14 = vld [vmem:[%s9078_s1 + $0x60] ss:$16 sps:$4 sm:$0xff] (!%p216_p9)   ;;  %v6039_v15 = vld [vmem:[%s9078_s1 + $0x68] ss:$16 sps:$4 sm:$0xff] (!%p216_p9)   ;;  %v6040_v16 = vld [vmem:[%s9078_s1 + $0x84] ss:$16 sps:$4 sm:$0xff] (!%p216_p9)  }
  0x13   : > { %3994 = vmatpush1.bf16.msra.mxu0 (!%p216_p9), %v6026_v6  ;;  %4363 = vmatpush1.bf16.msra.mxu1 (!%p216_p9), %v6027_v7  ;;  %v6042_v17 = vld [vmem:[%s9078_s1 + $0x8c] ss:$16 sps:$4 sm:$0xff] (!%p216_p9)   ;;  %v6044_v18 = vld [vmem:[%s9078_s1 + $0x80] ss:$16 sps:$4 sm:$0xff] (!%p216_p9)   ;;  %v6045_v19 = vld [vmem:[%s9078_s1 + $0x88] ss:$16 sps:$4 sm:$0xff] (!%p216_p9)  }
  0x14   : > { %3995 = vmatprep.subr.bf16.mxu0 (!%p216_p9), %v6028_v8  ;;  %4364 = vmatprep.subr.bf16.mxu1 (!%p216_p9), %v6030_v9  ;;  %v6046_v20 = vld [vmem:[%s9078_s1 + $0xa4] ss:$16 sps:$4 sm:$0xff] (!%p216_p9)   ;;  %v6048_v21 = vld [vmem:[%s9078_s1 + $0xac] ss:$16 sps:$4 sm:$0xff] (!%p216_p9)   ;;  %v6050_v22 = vld [vmem:[%s9078_s1 + $0xa0] ss:$16 sps:$4 sm:$0xff] (!%p216_p9)  }
  0x15   : > { %v6051_v23 = vld [vmem:[%s9078_s1 + $0xa8] ss:$16 sps:$4 sm:$0xff]   ;;  %v6052_v24 = vld [vmem:[%s9078_s1 + $0xc4] ss:$16 sps:$4 sm:$0xff]   ;;  %v6054_v25 = vld [vmem:[%s9078_s1 + $0xcc] ss:$16 sps:$4 sm:$0xff]  }
  0x16   : > { %v6056_v26 = vld [vmem:[%s9078_s1 + $0xc0] ss:$16 sps:$4 sm:$0xff]   ;;  %v6057_v27 = vld [vmem:[%s9078_s1 + $0xc8] ss:$16 sps:$4 sm:$0xff]   ;;  %v6058_v28 = vld [vmem:[%s9078_s1 + $0xe4] ss:$16 sps:$4 sm:$0xff]  }
  0x17   : > { %3996 = vmatpush1.bf16.msra.mxu0 %v6032_v10  ;;  %4365 = vmatpush1.bf16.msra.mxu1 %v6033_v11  ;;  %v6060_v29 = vld [vmem:[%s9078_s1 + $0xec] ss:$16 sps:$4 sm:$0xff]   ;;  %v6062_v30 = vld [vmem:[%s9078_s1 + $0xe0] ss:$16 sps:$4 sm:$0xff]   ;;  %v6063_v31 = vld [vmem:[%s9078_s1 + $0xe8] ss:$16 sps:$4 sm:$0xff]  }
  0x18   : > { %3997 = vmatprep.subr.bf16.mxu0 %v6034_v12  ;;  %4366 = vmatprep.subr.bf16.mxu1 %v6036_v13  ;;  %v6064_v32 = vld [vmem:[%s9078_s1 + $0x104] ss:$16 sps:$4 sm:$0xff]   ;;  %v6066_v33 = vld [vmem:[%s9078_s1 + $0x10c] ss:$16 sps:$4 sm:$0xff]   ;;  %v6068_v34 = vld [vmem:[%s9078_s1 + $0x100] ss:$16 sps:$4 sm:$0xff]  }
  0x19   : > { %v6069_v35 = vld [vmem:[%s9078_s1 + $0x108] ss:$16 sps:$4 sm:$0xff]   ;;  %v6070_v36 = vld [vmem:[%s9078_s1 + $0x124] ss:$16 sps:$4 sm:$0xff]   ;;  %s245_s29 = scalar_select %p244_p10, %s7041_s25, 1  ;;  %vm4785_vm15 = vcmask 1043456  }
  0x1a   : > { %v6072_v37 = vld [vmem:[%s9078_s1 + $0x12c] ss:$16 sps:$4 sm:$0xff]   ;;  %vm282_vm0 = vsmask.f32 256  ;;  %v6074_v38 = vld [vmem:[%s9078_s1 + $0x120] ss:$16 sps:$4 sm:$0xff]  }
  0x1b   : > { %3998 = vmatpush1.bf16.msra.mxu0 %v6038_v14  ;;  %4367 = vmatpush1.bf16.msra.mxu1 %v6039_v15  ;;  %vm283_vm1 = vsmask.f32 1284  ;;  %v6075_v39 = vld [vmem:[%s9078_s1 + $0x128] ss:$16 sps:$4 sm:$0xff]   ;;  %v6076_v40 = vld [vmem:[%s9078_s1 + $0x144] ss:$16 sps:$4 sm:$0xff]  }
  0x1c   : > { %3999 = vmatprep.subr.bf16.mxu0 %v6040_v16  ;;  %4368 = vmatprep.subr.bf16.mxu1 %v6042_v17  ;;  %s5867_s17 = sshll.u32 %s245_s29, 4  ;;  %v6078_v41 = vld [vmem:[%s9078_s1 + $0x14c] ss:$16 sps:$4 sm:$0xff]   ;;  %vm285_vm2 = vsmask.f32 2312  ;;  %vm284_vm8 = vmor %vm282_vm0, %vm283_vm1  ;;  %v7267_v15 = vshrl.u32 %v1021_v4, 7 }
  0x1d   : > { %vm287_vm3 = vsmask.f32 3340  ;;  %vm289_vm4 = vsmask.f32 4368  ;;  %v6080_v42 = vld [vmem:[%s9078_s1 + $0x140] ss:$16 sps:$4 sm:$0xff]   ;;  %s7208_s13 = scalar_lea.vmem %s9077_s0, %s5867_s17  ;;  %vm286_vm9 = vmor %vm284_vm8, %vm285_vm2 }
  0x1e   : > { %v6081_v43 = vld [vmem:[%s9078_s1 + $0x148] ss:$16 sps:$4 sm:$0xff]   ;;  %vm291_vm5 = vsmask.f32 5396  ;;  %v6082_v44 = vld [vmem:[%s9078_s1 + $0x164] ss:$16 sps:$4 sm:$0xff]   ;;  %vm288_vm10 = vmor %vm286_vm9, %vm287_vm3 }
  0x1f   : > { %4000 = vmatpush1.bf16.msra.mxu0 %v6044_v18  ;;  %4369 = vmatpush1.bf16.msra.mxu1 %v6045_v19  ;;  %vm293_vm6 = vsmask.f32 6424  ;;  %v6084_v45 = vld [vmem:[%s9078_s1 + $0x16c] ss:$16 sps:$4 sm:$0xff]   ;;  %vm295_vm7 = vsmask.f32 7452  ;;  %vm290_vm11 = vmor %vm288_vm10, %vm289_vm4 }
  0x20   : > { %4001 = vmatprep.subr.bf16.mxu0 %v6046_v20  ;;  %4370 = vmatprep.subr.bf16.mxu1 %v6048_v21  ;;  %v6086_v46 = vld [vmem:[%s9078_s1 + $0x160] ss:$16 sps:$4 sm:$0xff]   ;;  %v6087_v47 = vld [vmem:[%s9078_s1 + $0x168] ss:$16 sps:$4 sm:$0xff]   ;;  %v6088_v48 = vld [vmem:[%s9078_s1 + $0x184] ss:$16 sps:$4 sm:$0xff]  }
  0x21   : > { %v6090_v49 = vld [vmem:[%s9078_s1 + $0x18c] ss:$16 sps:$4 sm:$0xff]   ;;  %v5235_v50 = vld.sshfl [vmem:[%s7208_s13] sm:$0x33 pattern:$0x75316420]  ;;  %vm292_vm12 = vmor %vm290_vm11, %vm291_vm5 }
  0x22   : > { %v5236_v51 = vld.sshfl [vmem:[%s7208_s13 + $0x4] sm:$0x33 pattern:$0x75316420]  ;;  %v280_v52 = vcombine.high %v5235_v50, %v5235_v50  ;;  %v298_v53 = vshrl.u32 %v5235_v50, 16  ;;  %vm294_vm13 = vmor %vm292_vm12, %vm293_vm6  ;;  %s5864_s19 = sshll.u32 %s7041_s25, 4 }
  0x23   : > { %4002 = vmatpush1.bf16.msra.mxu0 %v6050_v22  ;;  %4371 = vmatpush1.bf16.msra.mxu1 %v6051_v23  ;;  %v5243_v54 = vld.sshfl [vmem:[%s7208_s13 + $0x8] sm:$0x33 pattern:$0x75316420]  ;;  %v270_v55 = vcombine.low %v5235_v50, %v5236_v51  ;;  %v281_v56 = vcombine.high %v5236_v51, %v5236_v51  ;;  %v307_v57 = vshrl.u32 %v5236_v51, 16  ;;  %vm7242_vm14 = vmor %vm294_vm13, %vm295_vm7  ;;  %v5241_v18 = vcombine.high %v5235_v50, %v5236_v51  ;;  %s9035_s9 = scalar_lea.hbm %s9083_s6, %s5864_s19  ;;  %s6984_s25 = smov [#allocation3]  }
  0x24   : > { %4003 = vmatprep.subr.bf16.mxu0 %v6052_v24  ;;  %4372 = vmatprep.subr.bf16.mxu1 %v6054_v25  ;;  %v303_v58 = vshll.u32 %v280_v52, 16  ;;  %v353_v59 = vcombine.high %v5243_v54, %v5243_v54  ;;  %v355_v60 = vshrl.u32 %v5243_v54, 16  ;;  %v6092_v61 = vld [vmem:[%s9078_s1 + $0x180] ss:$16 sps:$4 sm:$0xff]   ;;  %v6093_v63 = vld [vmem:[%s9078_s1 + $0x188] ss:$16 sps:$4 sm:$0xff]   ;;  %v343_v19 = vcombine.low %v5236_v51, %v5243_v54 }
  0x25   : > { %5237 = vst.sshfl [vmem:[#allocation2] sm:$0x33 pattern:$0x75316420] %v270_v55  ;;  %v312_v62 = vshll.u32 %v281_v56, 16  ;;  %s6923_s11 = sshll.u32 %s6984_s25, 4  ;;  %s6924_s11 = int_to_ptr.vmem [resolvable:$false] %s6923_s11 }
  0x26   : > { %v360_v1 = vshll.u32 %v353_v59, 16  ;;  %v6983_v2 = vmov 1983009808   ;;  %v6094_v5 = vld [vmem:[%s9078_s1 + $0x1a4] ss:$16 sps:$4 sm:$0xff]   ;;  %v305_v7 = vsel %vm7242_vm14, %v298_v53, %v303_v58  ;;  %s6925_s12 = scalar_lea.vmem %s6924_s11, 32 }
  0x27   : > { %4004 = vmatpush1.bf16.msra.mxu0 %v6056_v26  ;;  %4373 = vmatpush1.bf16.msra.mxu1 %v6057_v27  ;;  %v1019_v3 = vunpack.c.l.s4 %v6983_v2  ;;  %v6096_v6 = vld [vmem:[%s9078_s1 + $0x1ac] ss:$16 sps:$4 sm:$0xff]   ;;  %v314_v8 = vsel %vm7242_vm14, %v307_v57, %v312_v62  ;;  %v6098_v12 = vld [vmem:[%s9078_s1 + $0x1a0] ss:$16 sps:$4 sm:$0xff]   ;;  %v6099_v13 = vld [vmem:[%s9078_s1 + $0x1a8] ss:$16 sps:$4 sm:$0xff]  }
  0x28   : > { %4005 = vmatprep.subr.bf16.mxu0 %v6058_v28  ;;  %4374 = vmatprep.subr.bf16.mxu1 %v6060_v29  ;;  %v315_v9 = vcombine.low %v305_v7, %v314_v8  ;;  %v7258_v10 = vsel %vm7242_vm14, %v355_v60, %v360_v1  ;;  %v6100_v16 = vld [vmem:[%s9078_s1 + $0x1c4] ss:$16 sps:$4 sm:$0xff]   ;;  %v6102_v17 = vld [vmem:[%s9078_s1 + $0x1cc] ss:$16 sps:$4 sm:$0xff]   ;;  %v6104_v20 = vld [vmem:[%s9078_s1 + $0x1c0] ss:$16 sps:$4 sm:$0xff]  }
  0x29   : > { %v363_v11 = vcombine.low %v314_v8, %v7258_v10  ;;  %v1020_v14 = vunpack.c.0.s8 %v1019_v3  ;;  %5242 = vst.sshfl [vmem:[#allocation2 + $0x8] sm:$0x33 pattern:$0x75316420] %v5241_v18  ;;  %v6105_v21 = vld [vmem:[%s9078_s1 + $0x1c8] ss:$16 sps:$4 sm:$0xff]  }
  0x2a   : > { %5240 = vst.sshfl [vmem:[#allocation2 + $0x4] sm:$0x33 pattern:$0x75316420] %v315_v9  ;;  %v6106_v23 = vld [vmem:[%s9078_s1 + $0x1e4] ss:$16 sps:$4 sm:$0xff]  }
  0x2b   : > { %4006 = vmatpush1.bf16.msra.mxu0 %v6062_v30  ;;  %4375 = vmatpush1.bf16.msra.mxu1 %v6063_v31  ;;  %5246 = vst.sshfl [vmem:[#allocation2 + $0x10] sm:$0x33 pattern:$0x75316420] %v363_v11  ;;  %v7282_v22 = vsub.s32 %v1020_v14, %v7267_v15  ;;  %v6108_v24 = vld [vmem:[%s9078_s1 + $0x1ec] ss:$16 sps:$4 sm:$0xff]  }
  0x2c   : > { %4007 = vmatprep.subr.bf16.mxu0 %v6064_v32  ;;  %4376 = vmatprep.subr.bf16.mxu1 %v6066_v33  ;;  %5244 = vst.sshfl [vmem:[#allocation2 + $0xc] sm:$0x33 pattern:$0x75316420] %v343_v19  ;;  %v6110_v26 = vld [vmem:[%s9078_s1 + $0x1e0] ss:$16 sps:$4 sm:$0xff]  }
  0x2d   : > { %v6111_v27 = vld [vmem:[%s9078_s1 + $0x1e8] ss:$16 sps:$4 sm:$0xff]   ;;  %v6115_v30 = vld [vmem:[%s9078_s1 + $0x204] ss:$16 sps:$4 sm:$0xff]   ;;  %v6118_v32 = vld [vmem:[%s9078_s1 + $0x20c] ss:$16 sps:$4 sm:$0xff]  }
  0x2e   : > { %v6142_v50 = vld [vmem:[%s9078_s1 + $0x28c] ss:$16 sps:$4 sm:$0xff]   ;;  %v6137_v51 = vld [vmem:[%s9078_s1 + $0x280] ss:$16 sps:$4 sm:$0xff]   ;;  %v6140_v52 = vld [vmem:[%s9078_s1 + $0x288] ss:$16 sps:$4 sm:$0xff]  }
  0x2f   : > { %4008 = vmatpush1.bf16.msra.mxu0 %v6068_v34  ;;  %4377 = vmatpush1.bf16.msra.mxu1 %v6069_v35  ;;  %v6113_v34 = vld [vmem:[%s9078_s1 + $0x200] ss:$16 sps:$4 sm:$0xff]   ;;  %v6116_v35 = vld [vmem:[%s9078_s1 + $0x208] ss:$16 sps:$4 sm:$0xff]   ;;  %v6145_v53 = vld [vmem:[%s9078_s1 + $0x2a4] ss:$16 sps:$4 sm:$0xff]  }
  0x30   : > { %4009 = vmatprep.subr.bf16.mxu0 %v6070_v36  ;;  %4378 = vmatprep.subr.bf16.mxu1 %v6072_v37  ;;  %v6121_v36 = vld [vmem:[%s9078_s1 + $0x224] ss:$16 sps:$4 sm:$0xff]   ;;  %v6124_v37 = vld [vmem:[%s9078_s1 + $0x22c] ss:$16 sps:$4 sm:$0xff]   ;;  %v6143_v55 = vld [vmem:[%s9078_s1 + $0x2a0] ss:$16 sps:$4 sm:$0xff]  }
  0x31   : > { %v431_v25 = vld [vmem:[#allocation2] sm:$0xff]  ;;  %v6148_v54 = vld [vmem:[%s9078_s1 + $0x2ac] ss:$16 sps:$4 sm:$0xff]   ;;  %v6146_v56 = vld [vmem:[%s9078_s1 + $0x2a8] ss:$16 sps:$4 sm:$0xff]  }
  0x32   : > { %v1017_v28 = vcombine.high %v431_v25, %v431_v25  ;;  %v1024_v29 = vrot.slane %v431_v25, %v7282_v22  ;;  %v6151_v57 = vld [vmem:[%s9078_s1 + $0x2c4] ss:$16 sps:$4 sm:$0xff]   ;;  %v6154_v58 = vld [vmem:[%s9078_s1 + $0x2cc] ss:$16 sps:$4 sm:$0xff]   ;;  %v6149_v59 = vld [vmem:[%s9078_s1 + $0x2c0] ss:$16 sps:$4 sm:$0xff]  }
  0x33   : > { %4010 = vmatpush1.bf16.msra.mxu0 %v6074_v38  ;;  %4379 = vmatpush1.bf16.msra.mxu1 %v6075_v39  ;;  %v6119_v39 = vld [vmem:[%s9078_s1 + $0x220] ss:$16 sps:$4 sm:$0xff]   ;;  %v6152_v60 = vld [vmem:[%s9078_s1 + $0x2c8] ss:$16 sps:$4 sm:$0xff]   ;;  %v6160_v62 = vld [vmem:[%s9078_s1 + $0x2ec] ss:$16 sps:$4 sm:$0xff]  }
  0x34   : > { %4011 = vmatprep.subr.bf16.mxu0 %v6076_v40  ;;  %4380 = vmatprep.subr.bf16.mxu1 %v6078_v41  ;;  %v1032_v31 = vcombine.high %v1024_v29, %v1024_v29  ;;  %v7304_v33 = vrot.slane %v1017_v28, %v7282_v22  ;;  %v6122_v40 = vld [vmem:[%s9078_s1 + $0x228] ss:$16 sps:$4 sm:$0xff]   ;;  %v6127_v41 = vld [vmem:[%s9078_s1 + $0x244] ss:$16 sps:$4 sm:$0xff]   ;;  %v6166_v3 = vld [vmem:[%s9078_s1 + $0x30c] ss:$16 sps:$4 sm:$0xff]  }
  0x35   : > { %v6158_v1 = vld [vmem:[%s9078_s1 + $0x2e8] ss:$16 sps:$4 sm:$0xff]   ;;  %v6163_v2 = vld [vmem:[%s9078_s1 + $0x304] ss:$16 sps:$4 sm:$0xff]   ;;  %v6161_v4 = vld [vmem:[%s9078_s1 + $0x300] ss:$16 sps:$4 sm:$0xff]  }
  0x36   : > { %4023 = vmatprep.mubr.bf16.mxu0 %v1032_v31  ;;  %4392 = vmatprep.mubr.bf16.mxu1 %v1032_v31  ;;  %v1033_v38 = vcombine.high %v7304_v33, %v7304_v33  ;;  %v6172_v7 = vld [vmem:[%s9078_s1 + $0x32c] ss:$16 sps:$4 sm:$0xff]   ;;  %v6167_v8 = vld [vmem:[%s9078_s1 + $0x320] ss:$16 sps:$4 sm:$0xff]   ;;  %v6170_v9 = vld [vmem:[%s9078_s1 + $0x328] ss:$16 sps:$4 sm:$0xff]  }
  0x37   : > { %4012 = vmatpush1.bf16.msra.mxu0 %v6080_v42  ;;  %4381 = vmatpush1.bf16.msra.mxu1 %v6081_v43  ;;  %v6130_v42 = vld [vmem:[%s9078_s1 + $0x24c] ss:$16 sps:$4 sm:$0xff]   ;;  %v6125_v43 = vld [vmem:[%s9078_s1 + $0x240] ss:$16 sps:$4 sm:$0xff]   ;;  %v6175_v11 = vld [vmem:[%s9078_s1 + $0x344] ss:$16 sps:$4 sm:$0xff]  }
  0x38   : > { %4013 = vmatprep.subr.bf16.mxu0 %v6082_v44  ;;  %4382 = vmatprep.subr.bf16.mxu1 %v6084_v45  ;;  %v6128_v44 = vld [vmem:[%s9078_s1 + $0x248] ss:$16 sps:$4 sm:$0xff]   ;;  %v6133_v45 = vld [vmem:[%s9078_s1 + $0x264] ss:$16 sps:$4 sm:$0xff]   ;;  %v6179_v18 = vld [vmem:[%s9078_s1 + $0x360] ss:$16 sps:$4 sm:$0xff]  }
  0x39   : > { %v6176_v14 = vld [vmem:[%s9078_s1 + $0x348] ss:$16 sps:$4 sm:$0xff]   ;;  %v6193_v25 = vld [vmem:[%s9078_s1 + $0x3a4] ss:$16 sps:$4 sm:$0xff]   ;;  %v6197_v31 = vld [vmem:[%s9078_s1 + $0x3c0] ss:$16 sps:$4 sm:$0xff]  }
  0x3a   : > { %v6182_v19 = vld [vmem:[%s9078_s1 + $0x368] ss:$16 sps:$4 sm:$0xff]   ;;  %v6486_v0 = vld [vmem:[%s9078_s1 + $0x9c0] ss:$16 sps:$4 sm:$0xff]  }
  0x3b   : > { %4014 = vmatpush1.bf16.msra.mxu0 %v6086_v46  ;;  %4383 = vmatpush1.bf16.msra.mxu1 %v6087_v47  ;;  %v6136_v46 = vld [vmem:[%s9078_s1 + $0x26c] ss:$16 sps:$4 sm:$0xff]   ;;  %v6131_v47 = vld [vmem:[%s9078_s1 + $0x260] ss:$16 sps:$4 sm:$0xff]   ;;  %v6194_v28 = vld [vmem:[%s9078_s1 + $0x3a8] ss:$16 sps:$4 sm:$0xff]  }
  0x3c   : > { %4015 = vmatprep.subr.bf16.mxu0 %v6088_v48  ;;  %4384 = vmatprep.subr.bf16.mxu1 %v6090_v49  ;;  %v6134_v48 = vld [vmem:[%s9078_s1 + $0x268] ss:$16 sps:$4 sm:$0xff]   ;;  %v6139_v49 = vld [vmem:[%s9078_s1 + $0x284] ss:$16 sps:$4 sm:$0xff]  }
  0x3f   : > { %4016 = vmatpush1.bf16.msra.mxu0 %v6092_v61  ;;  %4385 = vmatpush1.bf16.msra.mxu1 %v6093_v63  ;;  %v6157_v61 = vld [vmem:[%s9078_s1 + $0x2e4] ss:$16 sps:$4 sm:$0xff]   ;;  %v6155_v63 = vld [vmem:[%s9078_s1 + $0x2e0] ss:$16 sps:$4 sm:$0xff]  }
  0x40   : > { %4017 = vmatprep.subr.bf16.mxu0 %v6094_v5  ;;  %4386 = vmatprep.subr.bf16.mxu1 %v6096_v6  ;;  %v6164_v5 = vld [vmem:[%s9078_s1 + $0x308] ss:$16 sps:$4 sm:$0xff]   ;;  %v6169_v6 = vld [vmem:[%s9078_s1 + $0x324] ss:$16 sps:$4 sm:$0xff]  }
  0x43   : > { %4018 = vmatpush1.bf16.msra.mxu0 %v6098_v12  ;;  %4387 = vmatpush1.bf16.msra.mxu1 %v6099_v13  ;;  %v6178_v12 = vld [vmem:[%s9078_s1 + $0x34c] ss:$16 sps:$4 sm:$0xff]   ;;  %v6173_v13 = vld [vmem:[%s9078_s1 + $0x340] ss:$16 sps:$4 sm:$0xff]  }
  0x44   : > { %4019 = vmatprep.subr.bf16.mxu0 %v6100_v16  ;;  %4388 = vmatprep.subr.bf16.mxu1 %v6102_v17  ;;  %v6181_v16 = vld [vmem:[%s9078_s1 + $0x364] ss:$16 sps:$4 sm:$0xff]   ;;  %v6184_v17 = vld [vmem:[%s9078_s1 + $0x36c] ss:$16 sps:$4 sm:$0xff]  }
  0x47   : > { %4020 = vmatpush1.bf16.msra.mxu0 %v6104_v20  ;;  %4389 = vmatpush1.bf16.msra.mxu1 %v6105_v21  ;;  %v6187_v20 = vld [vmem:[%s9078_s1 + $0x384] ss:$16 sps:$4 sm:$0xff]   ;;  %v6190_v21 = vld [vmem:[%s9078_s1 + $0x38c] ss:$16 sps:$4 sm:$0xff]  }
  0x48   : > { %4021 = vmatprep.subr.bf16.mxu0 %v6106_v23  ;;  %4390 = vmatprep.subr.bf16.mxu1 %v6108_v24  ;;  %v6185_v23 = vld [vmem:[%s9078_s1 + $0x380] ss:$16 sps:$4 sm:$0xff]   ;;  %v6188_v24 = vld [vmem:[%s9078_s1 + $0x388] ss:$16 sps:$4 sm:$0xff]  }
  0x4b   : > { %4022 = vmatpush1.bf16.msra.mxu0 %v6110_v26  ;;  %4391 = vmatpush1.bf16.msra.mxu1 %v6111_v27  ;;  %v6196_v26 = vld [vmem:[%s9078_s1 + $0x3ac] ss:$16 sps:$4 sm:$0xff]   ;;  %v6191_v27 = vld [vmem:[%s9078_s1 + $0x3a0] ss:$16 sps:$4 sm:$0xff]  }
  0x4c   : > { %4032 = vmatprep.subr.bf16.mxu0 %v6115_v30  ;;  %4401 = vmatprep.subr.bf16.mxu1 %v6118_v32  ;;  %v6202_v30 = vld [vmem:[%s9078_s1 + $0x3cc] ss:$16 sps:$4 sm:$0xff]   ;;  %v6200_v32 = vld [vmem:[%s9078_s1 + $0x3c8] ss:$16 sps:$4 sm:$0xff]  }
  0x4e   : > { %4024 = vmatmul.mubr.bf16.vlgmr.msra.gmra.mrb[0].mxu0 %v1024_v29  ;;  %4393 = vmatmul.mubr.bf16.vlgmr.msra.gmra.mrb[0].mxu1 %v1024_v29  ;;  %v6199_v29 = vld [vmem:[%s9078_s1 + $0x3c4] ss:$16 sps:$4 sm:$0xff]  }
  0x4f   : > { %4033 = vmatpush1.bf16.msra.mxu0 %v6113_v34  ;;  %4402 = vmatpush1.bf16.msra.mxu1 %v6116_v35  ;;  %v6205_v34 = vld [vmem:[%s9078_s1 + $0x3e4] ss:$16 sps:$4 sm:$0xff]   ;;  %v6208_v35 = vld [vmem:[%s9078_s1 + $0x3ec] ss:$16 sps:$4 sm:$0xff]  }
  0x50   : > { %4034 = vmatprep.subr.bf16.mxu0 %v6121_v36  ;;  %4403 = vmatprep.subr.bf16.mxu1 %v6124_v37  ;;  %v6203_v36 = vld [vmem:[%s9078_s1 + $0x3e0] ss:$16 sps:$4 sm:$0xff]   ;;  %v6206_v37 = vld [vmem:[%s9078_s1 + $0x3e8] ss:$16 sps:$4 sm:$0xff]  }
  0x51   : > { %4064 = vmatprep.mubr.bf16.mxu0 %v1033_v38  ;;  %4433 = vmatprep.mubr.bf16.mxu1 %v1033_v38  ;;  %v6211_v38 = vld [vmem:[%s9078_s1 + $0x404] ss:$16 sps:$4 sm:$0xff]  }
  0x53   : > { %4035 = vmatpush1.bf16.msra.mxu0 %v6119_v39  ;;  %4404 = vmatpush1.bf16.msra.mxu1 %v6122_v40  ;;  %v6214_v39 = vld [vmem:[%s9078_s1 + $0x40c] ss:$16 sps:$4 sm:$0xff]   ;;  %v6209_v40 = vld [vmem:[%s9078_s1 + $0x400] ss:$16 sps:$4 sm:$0xff]  }
  0x54   : > { %4036 = vmatprep.subr.bf16.mxu0 %v6127_v41  ;;  %4405 = vmatprep.subr.bf16.mxu1 %v6130_v42  ;;  %v6212_v41 = vld [vmem:[%s9078_s1 + $0x408] ss:$16 sps:$4 sm:$0xff]   ;;  %v6217_v42 = vld [vmem:[%s9078_s1 + $0x424] ss:$16 sps:$4 sm:$0xff]  }
  0x57   : > { %4037 = vmatpush1.bf16.msra.mxu0 %v6125_v43  ;;  %4406 = vmatpush1.bf16.msra.mxu1 %v6128_v44  ;;  %v6220_v43 = vld [vmem:[%s9078_s1 + $0x42c] ss:$16 sps:$4 sm:$0xff]   ;;  %v6215_v44 = vld [vmem:[%s9078_s1 + $0x420] ss:$16 sps:$4 sm:$0xff]  }
  0x58   : > { %4038 = vmatprep.subr.bf16.mxu0 %v6133_v45  ;;  %4407 = vmatprep.subr.bf16.mxu1 %v6136_v46  ;;  %v6218_v45 = vld [vmem:[%s9078_s1 + $0x428] ss:$16 sps:$4 sm:$0xff]  }
  0x59   : > { %v7520_v46 = vld [vmem:[#allocation2 + $0x8] sm:$0xff] }
  0x5b   : > { %4039 = vmatpush1.bf16.msra.mxu0 %v6131_v47  ;;  %4408 = vmatpush1.bf16.msra.mxu1 %v6134_v48  ;;  %v6223_v47 = vld [vmem:[%s9078_s1 + $0x444] ss:$16 sps:$4 sm:$0xff]   ;;  %v7527_v48 = vrot.slane %v7520_v46, %v7282_v22 }
  0x5c   : > { %4040 = vmatprep.subr.bf16.mxu0 %v6139_v49  ;;  %4409 = vmatprep.subr.bf16.mxu1 %v6142_v50  ;;  %v6221_v50 = vld [vmem:[%s9078_s1 + $0x440] ss:$16 sps:$4 sm:$0xff]  }
  0x5d   : > { %v1049_v49 = vcombine.high %v7527_v48, %v7527_v48 }
  0x5f   : > { %4041 = vmatpush1.bf16.msra.mxu0 %v6137_v51  ;;  %4410 = vmatpush1.bf16.msra.mxu1 %v6140_v52  ;;  %v6224_v51 = vld [vmem:[%s9078_s1 + $0x448] ss:$16 sps:$4 sm:$0xff]   ;;  %v6229_v52 = vld [vmem:[%s9078_s1 + $0x464] ss:$16 sps:$4 sm:$0xff]  }
  0x60   : > { %4042 = vmatprep.subr.bf16.mxu0 %v6145_v53  ;;  %4411 = vmatprep.subr.bf16.mxu1 %v6148_v54  ;;  %v6232_v53 = vld [vmem:[%s9078_s1 + $0x46c] ss:$16 sps:$4 sm:$0xff]   ;;  %v6227_v54 = vld [vmem:[%s9078_s1 + $0x460] ss:$16 sps:$4 sm:$0xff]  }
  0x63   : > { %4043 = vmatpush1.bf16.msra.mxu0 %v6143_v55  ;;  %4412 = vmatpush1.bf16.msra.mxu1 %v6146_v56  ;;  %v6230_v55 = vld [vmem:[%s9078_s1 + $0x468] ss:$16 sps:$4 sm:$0xff]   ;;  %v6235_v56 = vld [vmem:[%s9078_s1 + $0x484] ss:$16 sps:$4 sm:$0xff]  }
  0x64   : > { %4044 = vmatprep.subr.bf16.mxu0 %v6151_v57  ;;  %4413 = vmatprep.subr.bf16.mxu1 %v6154_v58  ;;  %v6238_v57 = vld [vmem:[%s9078_s1 + $0x48c] ss:$16 sps:$4 sm:$0xff]   ;;  %v6233_v58 = vld [vmem:[%s9078_s1 + $0x480] ss:$16 sps:$4 sm:$0xff]  }
  0x67   : > { %4045 = vmatpush1.bf16.msra.mxu0 %v6149_v59  ;;  %4414 = vmatpush1.bf16.msra.mxu1 %v6152_v60  ;;  %v6236_v59 = vld [vmem:[%s9078_s1 + $0x488] ss:$16 sps:$4 sm:$0xff]   ;;  %v6241_v60 = vld [vmem:[%s9078_s1 + $0x4a4] ss:$16 sps:$4 sm:$0xff]  }
  0x68   : > { %4046 = vmatprep.subr.bf16.mxu0 %v6157_v61  ;;  %4415 = vmatprep.subr.bf16.mxu1 %v6160_v62  ;;  %v6244_v61 = vld [vmem:[%s9078_s1 + $0x4ac] ss:$16 sps:$4 sm:$0xff]   ;;  %v6239_v62 = vld [vmem:[%s9078_s1 + $0x4a0] ss:$16 sps:$4 sm:$0xff]  }
  0x6b   : > { %4047 = vmatpush1.bf16.msra.mxu0 %v6155_v63  ;;  %4416 = vmatpush1.bf16.msra.mxu1 %v6158_v1  ;;  %v6242_v63 = vld [vmem:[%s9078_s1 + $0x4a8] ss:$16 sps:$4 sm:$0xff]   ;;  %v6247_v1 = vld [vmem:[%s9078_s1 + $0x4c4] ss:$16 sps:$4 sm:$0xff]  }
  0x6c   : > { %4048 = vmatprep.subr.bf16.mxu0 %v6163_v2  ;;  %4417 = vmatprep.subr.bf16.mxu1 %v6166_v3  ;;  %v6250_v2 = vld [vmem:[%s9078_s1 + $0x4cc] ss:$16 sps:$4 sm:$0xff]   ;;  %v6245_v3 = vld [vmem:[%s9078_s1 + $0x4c0] ss:$16 sps:$4 sm:$0xff]  }
  0x6f   : > { %4049 = vmatpush1.bf16.msra.mxu0 %v6161_v4  ;;  %4418 = vmatpush1.bf16.msra.mxu1 %v6164_v5  ;;  %v6248_v4 = vld [vmem:[%s9078_s1 + $0x4c8] ss:$16 sps:$4 sm:$0xff]   ;;  %v6253_v5 = vld [vmem:[%s9078_s1 + $0x4e4] ss:$16 sps:$4 sm:$0xff]  }
  0x70   : > { %4050 = vmatprep.subr.bf16.mxu0 %v6169_v6  ;;  %4419 = vmatprep.subr.bf16.mxu1 %v6172_v7  ;;  %v6256_v6 = vld [vmem:[%s9078_s1 + $0x4ec] ss:$16 sps:$4 sm:$0xff]   ;;  %v6251_v7 = vld [vmem:[%s9078_s1 + $0x4e0] ss:$16 sps:$4 sm:$0xff]  }
  0x73   : > { %4051 = vmatpush1.bf16.msra.mxu0 %v6167_v8  ;;  %4420 = vmatpush1.bf16.msra.mxu1 %v6170_v9  ;;  %v6254_v8 = vld [vmem:[%s9078_s1 + $0x4e8] ss:$16 sps:$4 sm:$0xff]   ;;  %v6259_v9 = vld [vmem:[%s9078_s1 + $0x504] ss:$16 sps:$4 sm:$0xff]  }
  0x74   : > { %4052 = vmatprep.subr.bf16.mxu0 %v6175_v11  ;;  %4421 = vmatprep.subr.bf16.mxu1 %v6178_v12  ;;  %v6262_v11 = vld [vmem:[%s9078_s1 + $0x50c] ss:$16 sps:$4 sm:$0xff]   ;;  %v6257_v12 = vld [vmem:[%s9078_s1 + $0x500] ss:$16 sps:$4 sm:$0xff]  }
  0x77   : > { %4053 = vmatpush1.bf16.msra.mxu0 %v6173_v13  ;;  %4422 = vmatpush1.bf16.msra.mxu1 %v6176_v14  ;;  %v6260_v13 = vld [vmem:[%s9078_s1 + $0x508] ss:$16 sps:$4 sm:$0xff]   ;;  %v6265_v14 = vld [vmem:[%s9078_s1 + $0x524] ss:$16 sps:$4 sm:$0xff]  }
  0x78   : > { %4054 = vmatprep.subr.bf16.mxu0 %v6181_v16  ;;  %4423 = vmatprep.subr.bf16.mxu1 %v6184_v17  ;;  %v6268_v16 = vld [vmem:[%s9078_s1 + $0x52c] ss:$16 sps:$4 sm:$0xff]   ;;  %v6263_v17 = vld [vmem:[%s9078_s1 + $0x520] ss:$16 sps:$4 sm:$0xff]  }
  0x7b   : > { %4055 = vmatpush1.bf16.msra.mxu0 %v6179_v18  ;;  %4424 = vmatpush1.bf16.msra.mxu1 %v6182_v19  ;;  %v6266_v18 = vld [vmem:[%s9078_s1 + $0x528] ss:$16 sps:$4 sm:$0xff]   ;;  %v6271_v19 = vld [vmem:[%s9078_s1 + $0x544] ss:$16 sps:$4 sm:$0xff]  }
  0x7c   : > { %4056 = vmatprep.subr.bf16.mxu0 %v6187_v20  ;;  %4425 = vmatprep.subr.bf16.mxu1 %v6190_v21  ;;  %v6274_v20 = vld [vmem:[%s9078_s1 + $0x54c] ss:$16 sps:$4 sm:$0xff]   ;;  %v6269_v21 = vld [vmem:[%s9078_s1 + $0x540] ss:$16 sps:$4 sm:$0xff]  }
  0x7f   : > { %4057 = vmatpush1.bf16.msra.mxu0 %v6185_v23  ;;  %4426 = vmatpush1.bf16.msra.mxu1 %v6188_v24  ;;  %v6272_v23 = vld [vmem:[%s9078_s1 + $0x548] ss:$16 sps:$4 sm:$0xff]   ;;  %v6277_v24 = vld [vmem:[%s9078_s1 + $0x564] ss:$16 sps:$4 sm:$0xff]  }
  0x80   : > { %4058 = vmatprep.subr.bf16.mxu0 %v6193_v25  ;;  %4427 = vmatprep.subr.bf16.mxu1 %v6196_v26  ;;  %v6280_v25 = vld [vmem:[%s9078_s1 + $0x56c] ss:$16 sps:$4 sm:$0xff]   ;;  %v6275_v26 = vld [vmem:[%s9078_s1 + $0x560] ss:$16 sps:$4 sm:$0xff]  }
  0x83   : > { %4059 = vmatpush1.bf16.msra.mxu0 %v6191_v27  ;;  %4428 = vmatpush1.bf16.msra.mxu1 %v6194_v28  ;;  %v6278_v27 = vld [vmem:[%s9078_s1 + $0x568] ss:$16 sps:$4 sm:$0xff]   ;;  %v6283_v28 = vld [vmem:[%s9078_s1 + $0x584] ss:$16 sps:$4 sm:$0xff]  }
  0x84   : > { %4060 = vmatprep.subr.bf16.mxu0 %v6199_v29  ;;  %4429 = vmatprep.subr.bf16.mxu1 %v6202_v30  ;;  %v6286_v29 = vld [vmem:[%s9078_s1 + $0x58c] ss:$16 sps:$4 sm:$0xff]   ;;  %v6281_v30 = vld [vmem:[%s9078_s1 + $0x580] ss:$16 sps:$4 sm:$0xff]  }
  0x87   : > { %4061 = vmatpush1.bf16.msra.mxu0 %v6197_v31  ;;  %4430 = vmatpush1.bf16.msra.mxu1 %v6200_v32  ;;  %v6284_v31 = vld [vmem:[%s9078_s1 + $0x588] ss:$16 sps:$4 sm:$0xff]   ;;  %v6289_v32 = vld [vmem:[%s9078_s1 + $0x5a4] ss:$16 sps:$4 sm:$0xff]  }
  0x88   : > { %4062 = vmatprep.subr.bf16.mxu0 %v6205_v34  ;;  %4431 = vmatprep.subr.bf16.mxu1 %v6208_v35  ;;  %v6292_v34 = vld [vmem:[%s9078_s1 + $0x5ac] ss:$16 sps:$4 sm:$0xff]   ;;  %v6287_v35 = vld [vmem:[%s9078_s1 + $0x5a0] ss:$16 sps:$4 sm:$0xff]  }
  0x8b   : > { %4063 = vmatpush1.bf16.msra.mxu0 %v6203_v36  ;;  %4432 = vmatpush1.bf16.msra.mxu1 %v6206_v37  ;;  %v6290_v36 = vld [vmem:[%s9078_s1 + $0x5a8] ss:$16 sps:$4 sm:$0xff]   ;;  %v6295_v37 = vld [vmem:[%s9078_s1 + $0x5c4] ss:$16 sps:$4 sm:$0xff]  }
  0x8c   : > { %4073 = vmatprep.subr.bf16.mxu0 %v6211_v38  ;;  %4442 = vmatprep.subr.bf16.mxu1 %v6214_v39  ;;  %v6298_v38 = vld [vmem:[%s9078_s1 + $0x5cc] ss:$16 sps:$4 sm:$0xff]   ;;  %v6916_v39 = vld.sshfl [vmem:[%s7208_s13 + $0x4] sm:$0x33 pattern:$0x75316420] }
  0x8e   : > { %4065 = vmatmul.mubr.bf16.vlgmr.msra.gmra.mrb[0].mxu0 %v7304_v33  ;;  %4434 = vmatmul.mubr.bf16.vlgmr.msra.gmra.mrb[0].mxu1 %v7304_v33  ;;  %v6226_v33 = vld [vmem:[%s9078_s1 + $0x44c] ss:$16 sps:$4 sm:$0xff]  }
  0x8f   : > { %4074 = vmatpush1.bf16.msra.mxu0 %v6209_v40  ;;  %4443 = vmatpush1.bf16.msra.mxu1 %v6212_v41  ;;  %v7680_v40 = vld.sshfl [vmem:[%s7208_s13 + $0x8] sm:$0x33 pattern:$0x75316420] }
  0x90   : > { %4075 = vmatprep.subr.bf16.mxu0 %v6217_v42  ;;  %4444 = vmatprep.subr.bf16.mxu1 %v6220_v43  ;;  %v5247_v41 = vcombine.high %v6916_v39, %v7680_v40  ;;  %v6293_v42 = vld [vmem:[%s9078_s1 + $0x5c0] ss:$16 sps:$4 sm:$0xff]   ;;  %v6296_v43 = vld [vmem:[%s9078_s1 + $0x5c8] ss:$16 sps:$4 sm:$0xff]   ;;  %v6379_v39 = vld [vmem:[%s9078_s1 + $0x784] ss:$16 sps:$4 sm:$0xff]  }
  0x91   : > { %4105 = vmatprep.mubr.bf16.mxu0 %v1049_v49  ;;  %4474 = vmatprep.mubr.bf16.mxu1 %v1049_v49  ;;  %v6302_v49 = vld [vmem:[%s9078_s1 + $0x5e8] ss:$16 sps:$4 sm:$0xff]  }
  0x92   : > { %5248 = vst.sshfl [vmem:[#allocation2 + $0x14] sm:$0x33 pattern:$0x75316420] %v5247_v41  ;;  %v6382_v41 = vld [vmem:[%s9078_s1 + $0x78c] ss:$16 sps:$4 sm:$0xff]  }
  0x93   : > { %4076 = vmatpush1.bf16.msra.mxu0 %v6215_v44  ;;  %4445 = vmatpush1.bf16.msra.mxu1 %v6218_v45  ;;  %v6301_v44 = vld [vmem:[%s9078_s1 + $0x5e4] ss:$16 sps:$4 sm:$0xff]   ;;  %v6304_v45 = vld [vmem:[%s9078_s1 + $0x5ec] ss:$16 sps:$4 sm:$0xff]  }
  0x94   : > { %4077 = vmatprep.subr.bf16.mxu0 %v6223_v47  ;;  %4446 = vmatprep.subr.bf16.mxu1 %v6226_v33  ;;  %v1034_v47 = vcombine.high %v7520_v46, %v7520_v46  ;;  %v6299_v33 = vld [vmem:[%s9078_s1 + $0x5e0] ss:$16 sps:$4 sm:$0xff]   ;;  %v6310_v46 = vld [vmem:[%s9078_s1 + $0x60c] ss:$16 sps:$4 sm:$0xff]  }
  0x97   : > { %4078 = vmatpush1.bf16.msra.mxu0 %v6221_v50  ;;  %4447 = vmatpush1.bf16.msra.mxu1 %v6224_v51  ;;  %v6307_v50 = vld [vmem:[%s9078_s1 + $0x604] ss:$16 sps:$4 sm:$0xff]   ;;  %v7710_v51 = vrot.slane %v1034_v47, %v7282_v22  ;;  %v6383_v47 = vld [vmem:[%s9078_s1 + $0x7a0] ss:$16 sps:$4 sm:$0xff]  }
  0x98   : > { %4079 = vmatprep.subr.bf16.mxu0 %v6229_v52  ;;  %4448 = vmatprep.subr.bf16.mxu1 %v6232_v53  ;;  %v6305_v52 = vld [vmem:[%s9078_s1 + $0x600] ss:$16 sps:$4 sm:$0xff]   ;;  %v6308_v53 = vld [vmem:[%s9078_s1 + $0x608] ss:$16 sps:$4 sm:$0xff]  }
  0x9b   : > { %4080 = vmatpush1.bf16.msra.mxu0 %v6227_v54  ;;  %4449 = vmatpush1.bf16.msra.mxu1 %v6230_v55  ;;  %v6313_v54 = vld [vmem:[%s9078_s1 + $0x624] ss:$16 sps:$4 sm:$0xff]   ;;  %v6316_v55 = vld [vmem:[%s9078_s1 + $0x62c] ss:$16 sps:$4 sm:$0xff]  }
  0x9c   : > { %4081 = vmatprep.subr.bf16.mxu0 %v6235_v56  ;;  %4450 = vmatprep.subr.bf16.mxu1 %v6238_v57  ;;  %v1050_v56 = vcombine.high %v7710_v51, %v7710_v51  ;;  %v6311_v57 = vld [vmem:[%s9078_s1 + $0x620] ss:$16 sps:$4 sm:$0xff]  }
  0x9f   : > { %4082 = vmatpush1.bf16.msra.mxu0 %v6233_v58  ;;  %4451 = vmatpush1.bf16.msra.mxu1 %v6236_v59  ;;  %v6314_v58 = vld [vmem:[%s9078_s1 + $0x628] ss:$16 sps:$4 sm:$0xff]   ;;  %v6319_v59 = vld [vmem:[%s9078_s1 + $0x644] ss:$16 sps:$4 sm:$0xff]  }
  0xa0   : > { %4083 = vmatprep.subr.bf16.mxu0 %v6241_v60  ;;  %4452 = vmatprep.subr.bf16.mxu1 %v6244_v61  ;;  %v6317_v60 = vld [vmem:[%s9078_s1 + $0x640] ss:$16 sps:$4 sm:$0xff]   ;;  %v6320_v61 = vld [vmem:[%s9078_s1 + $0x648] ss:$16 sps:$4 sm:$0xff]  }
  0xa3   : > { %4084 = vmatpush1.bf16.msra.mxu0 %v6239_v62  ;;  %4453 = vmatpush1.bf16.msra.mxu1 %v6242_v63  ;;  %v6325_v62 = vld [vmem:[%s9078_s1 + $0x664] ss:$16 sps:$4 sm:$0xff]   ;;  %v6328_v63 = vld [vmem:[%s9078_s1 + $0x66c] ss:$16 sps:$4 sm:$0xff]  }
  0xa4   : > { %4085 = vmatprep.subr.bf16.mxu0 %v6247_v1  ;;  %4454 = vmatprep.subr.bf16.mxu1 %v6250_v2  ;;  %v6323_v1 = vld [vmem:[%s9078_s1 + $0x660] ss:$16 sps:$4 sm:$0xff]   ;;  %v6326_v2 = vld [vmem:[%s9078_s1 + $0x668] ss:$16 sps:$4 sm:$0xff]  }
  0xa7   : > { %4086 = vmatpush1.bf16.msra.mxu0 %v6245_v3  ;;  %4455 = vmatpush1.bf16.msra.mxu1 %v6248_v4  ;;  %v6331_v3 = vld [vmem:[%s9078_s1 + $0x684] ss:$16 sps:$4 sm:$0xff]   ;;  %v6334_v4 = vld [vmem:[%s9078_s1 + $0x68c] ss:$16 sps:$4 sm:$0xff]  }
  0xa8   : > { %4087 = vmatprep.subr.bf16.mxu0 %v6253_v5  ;;  %4456 = vmatprep.subr.bf16.mxu1 %v6256_v6  ;;  %v6329_v5 = vld [vmem:[%s9078_s1 + $0x680] ss:$16 sps:$4 sm:$0xff]   ;;  %v6332_v6 = vld [vmem:[%s9078_s1 + $0x688] ss:$16 sps:$4 sm:$0xff]  }
  0xab   : > { %4088 = vmatpush1.bf16.msra.mxu0 %v6251_v7  ;;  %4457 = vmatpush1.bf16.msra.mxu1 %v6254_v8  ;;  %v6337_v7 = vld [vmem:[%s9078_s1 + $0x6a4] ss:$16 sps:$4 sm:$0xff]   ;;  %v6340_v8 = vld [vmem:[%s9078_s1 + $0x6ac] ss:$16 sps:$4 sm:$0xff]  }
  0xac   : > { %4089 = vmatprep.subr.bf16.mxu0 %v6259_v9  ;;  %4458 = vmatprep.subr.bf16.mxu1 %v6262_v11  ;;  %v6335_v9 = vld [vmem:[%s9078_s1 + $0x6a0] ss:$16 sps:$4 sm:$0xff]   ;;  %v6338_v11 = vld [vmem:[%s9078_s1 + $0x6a8] ss:$16 sps:$4 sm:$0xff]  }
  0xaf   : > { %4090 = vmatpush1.bf16.msra.mxu0 %v6257_v12  ;;  %4459 = vmatpush1.bf16.msra.mxu1 %v6260_v13  ;;  %v6343_v12 = vld [vmem:[%s9078_s1 + $0x6c4] ss:$16 sps:$4 sm:$0xff]   ;;  %v6346_v13 = vld [vmem:[%s9078_s1 + $0x6cc] ss:$16 sps:$4 sm:$0xff]  }
  0xb0   : > { %4091 = vmatprep.subr.bf16.mxu0 %v6265_v14  ;;  %4460 = vmatprep.subr.bf16.mxu1 %v6268_v16  ;;  %v6341_v14 = vld [vmem:[%s9078_s1 + $0x6c0] ss:$16 sps:$4 sm:$0xff]   ;;  %v6344_v16 = vld [vmem:[%s9078_s1 + $0x6c8] ss:$16 sps:$4 sm:$0xff]  }
  0xb3   : > { %4092 = vmatpush1.bf16.msra.mxu0 %v6263_v17  ;;  %4461 = vmatpush1.bf16.msra.mxu1 %v6266_v18  ;;  %v6349_v17 = vld [vmem:[%s9078_s1 + $0x6e4] ss:$16 sps:$4 sm:$0xff]   ;;  %v6352_v18 = vld [vmem:[%s9078_s1 + $0x6ec] ss:$16 sps:$4 sm:$0xff]  }
  0xb4   : > { %4093 = vmatprep.subr.bf16.mxu0 %v6271_v19  ;;  %4462 = vmatprep.subr.bf16.mxu1 %v6274_v20  ;;  %v6347_v19 = vld [vmem:[%s9078_s1 + $0x6e0] ss:$16 sps:$4 sm:$0xff]   ;;  %v6350_v20 = vld [vmem:[%s9078_s1 + $0x6e8] ss:$16 sps:$4 sm:$0xff]  }
  0xb7   : > { %4094 = vmatpush1.bf16.msra.mxu0 %v6269_v21  ;;  %4463 = vmatpush1.bf16.msra.mxu1 %v6272_v23  ;;  %v6355_v21 = vld [vmem:[%s9078_s1 + $0x704] ss:$16 sps:$4 sm:$0xff]   ;;  %v6358_v23 = vld [vmem:[%s9078_s1 + $0x70c] ss:$16 sps:$4 sm:$0xff]  }
  0xb8   : > { %4095 = vmatprep.subr.bf16.mxu0 %v6277_v24  ;;  %4464 = vmatprep.subr.bf16.mxu1 %v6280_v25  ;;  %v6353_v24 = vld [vmem:[%s9078_s1 + $0x700] ss:$16 sps:$4 sm:$0xff]   ;;  %v6356_v25 = vld [vmem:[%s9078_s1 + $0x708] ss:$16 sps:$4 sm:$0xff]  }
  0xbb   : > { %4096 = vmatpush1.bf16.msra.mxu0 %v6275_v26  ;;  %4465 = vmatpush1.bf16.msra.mxu1 %v6278_v27  ;;  %v6361_v26 = vld [vmem:[%s9078_s1 + $0x724] ss:$16 sps:$4 sm:$0xff]   ;;  %v6364_v27 = vld [vmem:[%s9078_s1 + $0x72c] ss:$16 sps:$4 sm:$0xff]  }
  0xbc   : > { %4097 = vmatprep.subr.bf16.mxu0 %v6283_v28  ;;  %4466 = vmatprep.subr.bf16.mxu1 %v6286_v29  ;;  %v6359_v28 = vld [vmem:[%s9078_s1 + $0x720] ss:$16 sps:$4 sm:$0xff]   ;;  %v6362_v29 = vld [vmem:[%s9078_s1 + $0x728] ss:$16 sps:$4 sm:$0xff]  }
  0xbf   : > { %4098 = vmatpush1.bf16.msra.mxu0 %v6281_v30  ;;  %4467 = vmatpush1.bf16.msra.mxu1 %v6284_v31  ;;  %v6367_v30 = vld [vmem:[%s9078_s1 + $0x744] ss:$16 sps:$4 sm:$0xff]   ;;  %v6370_v31 = vld [vmem:[%s9078_s1 + $0x74c] ss:$16 sps:$4 sm:$0xff]  }
  0xc0   : > { %4099 = vmatprep.subr.bf16.mxu0 %v6289_v32  ;;  %4468 = vmatprep.subr.bf16.mxu1 %v6292_v34  ;;  %v6365_v32 = vld [vmem:[%s9078_s1 + $0x740] ss:$16 sps:$4 sm:$0xff]   ;;  %v6368_v34 = vld [vmem:[%s9078_s1 + $0x748] ss:$16 sps:$4 sm:$0xff]  }
  0xc3   : > { %4100 = vmatpush1.bf16.msra.mxu0 %v6287_v35  ;;  %4469 = vmatpush1.bf16.msra.mxu1 %v6290_v36  ;;  %v6373_v35 = vld [vmem:[%s9078_s1 + $0x764] ss:$16 sps:$4 sm:$0xff]   ;;  %v6376_v36 = vld [vmem:[%s9078_s1 + $0x76c] ss:$16 sps:$4 sm:$0xff]  }
  0xc4   : > { %4101 = vmatprep.subr.bf16.mxu0 %v6295_v37  ;;  %4470 = vmatprep.subr.bf16.mxu1 %v6298_v38  ;;  %v6371_v37 = vld [vmem:[%s9078_s1 + $0x760] ss:$16 sps:$4 sm:$0xff]   ;;  %v6374_v38 = vld [vmem:[%s9078_s1 + $0x768] ss:$16 sps:$4 sm:$0xff]  }
  0xc7   : > { %4102 = vmatpush1.bf16.msra.mxu0 %v6293_v42  ;;  %4471 = vmatpush1.bf16.msra.mxu1 %v6296_v43  ;;  %v6377_v42 = vld [vmem:[%s9078_s1 + $0x780] ss:$16 sps:$4 sm:$0xff]   ;;  %v6380_v43 = vld [vmem:[%s9078_s1 + $0x788] ss:$16 sps:$4 sm:$0xff]  }
  0xc8   : > { %4103 = vmatprep.subr.bf16.mxu0 %v6301_v44  ;;  %4472 = vmatprep.subr.bf16.mxu1 %v6304_v45  ;;  %v6385_v44 = vld [vmem:[%s9078_s1 + $0x7a4] ss:$16 sps:$4 sm:$0xff]   ;;  %v6388_v45 = vld [vmem:[%s9078_s1 + $0x7ac] ss:$16 sps:$4 sm:$0xff]  }
  0xcb   : > { %4104 = vmatpush1.bf16.msra.mxu0 %v6299_v33  ;;  %4473 = vmatpush1.bf16.msra.mxu1 %v6302_v49  ;;  %v6386_v33 = vld [vmem:[%s9078_s1 + $0x7a8] ss:$16 sps:$4 sm:$0xff]   ;;  %v6391_v49 = vld [vmem:[%s9078_s1 + $0x7c4] ss:$16 sps:$4 sm:$0xff]  }
  0xcc   : > { %4114 = vmatprep.subr.bf16.mxu0 %v6307_v50  ;;  %4483 = vmatprep.subr.bf16.mxu1 %v6310_v46  ;;  %v6394_v50 = vld [vmem:[%s9078_s1 + $0x7cc] ss:$16 sps:$4 sm:$0xff]   ;;  %v6389_v46 = vld [vmem:[%s9078_s1 + $0x7c0] ss:$16 sps:$4 sm:$0xff]  }
  0xce   : > { %4106 = vmatmul.mubr.bf16.vlgmr.msra.gmra.mrb[0].mxu0 %v7527_v48  ;;  %4475 = vmatmul.mubr.bf16.vlgmr.msra.gmra.mrb[0].mxu1 %v7527_v48  ;;  %v6322_v48 = vld [vmem:[%s9078_s1 + $0x64c] ss:$16 sps:$4 sm:$0xff]  }
  0xcf   : > { %4115 = vmatpush1.bf16.msra.mxu0 %v6305_v52  ;;  %4484 = vmatpush1.bf16.msra.mxu1 %v6308_v53  ;;  %v6392_v52 = vld [vmem:[%s9078_s1 + $0x7c8] ss:$16 sps:$4 sm:$0xff]   ;;  %v6397_v53 = vld [vmem:[%s9078_s1 + $0x7e4] ss:$16 sps:$4 sm:$0xff]  }
  0xd0   : > { %4116 = vmatprep.subr.bf16.mxu0 %v6313_v54  ;;  %4485 = vmatprep.subr.bf16.mxu1 %v6316_v55  ;;  %v6400_v54 = vld [vmem:[%s9078_s1 + $0x7ec] ss:$16 sps:$4 sm:$0xff]   ;;  %v6395_v55 = vld [vmem:[%s9078_s1 + $0x7e0] ss:$16 sps:$4 sm:$0xff]  }
  0xd1   : > { %4146 = vmatprep.mubr.bf16.mxu0 %v1050_v56  ;;  %4515 = vmatprep.mubr.bf16.mxu1 %v1050_v56  ;;  %v7899_v56 = vld [vmem:[#allocation2 + $0x10] sm:$0xff] }
  0xd3   : > { %4117 = vmatpush1.bf16.msra.mxu0 %v6311_v57  ;;  %4486 = vmatpush1.bf16.msra.mxu1 %v6314_v58  ;;  %v6398_v57 = vld [vmem:[%s9078_s1 + $0x7e8] ss:$16 sps:$4 sm:$0xff]   ;;  %v6404_v58 = vld [vmem:[%s9078_s1 + $0x804] ss:$16 sps:$4 sm:$0xff]  }
  0xd4   : > { %4118 = vmatprep.subr.bf16.mxu0 %v6319_v59  ;;  %4487 = vmatprep.subr.bf16.mxu1 %v6322_v48  ;;  %v6407_v59 = vld [vmem:[%s9078_s1 + $0x80c] ss:$16 sps:$4 sm:$0xff]   ;;  %v7912_v48 = vrot.slane %v7899_v56, %v7282_v22 }
  0xd7   : > { %4119 = vmatpush1.bf16.msra.mxu0 %v6317_v60  ;;  %4488 = vmatpush1.bf16.msra.mxu1 %v6320_v61  ;;  %v6402_v60 = vld [vmem:[%s9078_s1 + $0x800] ss:$16 sps:$4 sm:$0xff]   ;;  %v6405_v61 = vld [vmem:[%s9078_s1 + $0x808] ss:$16 sps:$4 sm:$0xff]  }
  0xd8   : > { %4120 = vmatprep.subr.bf16.mxu0 %v6325_v62  ;;  %4489 = vmatprep.subr.bf16.mxu1 %v6328_v63  ;;  %v6410_v62 = vld [vmem:[%s9078_s1 + $0x824] ss:$16 sps:$4 sm:$0xff]   ;;  %v6413_v63 = vld [vmem:[%s9078_s1 + $0x82c] ss:$16 sps:$4 sm:$0xff]  }
  0xdb   : > { %4121 = vmatpush1.bf16.msra.mxu0 %v6323_v1  ;;  %4490 = vmatpush1.bf16.msra.mxu1 %v6326_v2  ;;  %v1066_v1 = vcombine.high %v7912_v48, %v7912_v48  ;;  %v6408_v2 = vld [vmem:[%s9078_s1 + $0x820] ss:$16 sps:$4 sm:$0xff]  }
  0xdc   : > { %4122 = vmatprep.subr.bf16.mxu0 %v6331_v3  ;;  %4491 = vmatprep.subr.bf16.mxu1 %v6334_v4  ;;  %v6411_v3 = vld [vmem:[%s9078_s1 + $0x828] ss:$16 sps:$4 sm:$0xff]   ;;  %v6416_v4 = vld [vmem:[%s9078_s1 + $0x844] ss:$16 sps:$4 sm:$0xff]  }
  0xdf   : > { %4123 = vmatpush1.bf16.msra.mxu0 %v6329_v5  ;;  %4492 = vmatpush1.bf16.msra.mxu1 %v6332_v6  ;;  %v6414_v5 = vld [vmem:[%s9078_s1 + $0x840] ss:$16 sps:$4 sm:$0xff]   ;;  %v6417_v6 = vld [vmem:[%s9078_s1 + $0x848] ss:$16 sps:$4 sm:$0xff]  }
  0xe0   : > { %4124 = vmatprep.subr.bf16.mxu0 %v6337_v7  ;;  %4493 = vmatprep.subr.bf16.mxu1 %v6340_v8  ;;  %v6422_v7 = vld [vmem:[%s9078_s1 + $0x864] ss:$16 sps:$4 sm:$0xff]   ;;  %v6425_v8 = vld [vmem:[%s9078_s1 + $0x86c] ss:$16 sps:$4 sm:$0xff]  }
  0xe3   : > { %4125 = vmatpush1.bf16.msra.mxu0 %v6335_v9  ;;  %4494 = vmatpush1.bf16.msra.mxu1 %v6338_v11  ;;  %v6420_v9 = vld [vmem:[%s9078_s1 + $0x860] ss:$16 sps:$4 sm:$0xff]   ;;  %v6423_v11 = vld [vmem:[%s9078_s1 + $0x868] ss:$16 sps:$4 sm:$0xff]  }
  0xe4   : > { %4126 = vmatprep.subr.bf16.mxu0 %v6343_v12  ;;  %4495 = vmatprep.subr.bf16.mxu1 %v6346_v13  ;;  %v6428_v12 = vld [vmem:[%s9078_s1 + $0x884] ss:$16 sps:$4 sm:$0xff]   ;;  %v6431_v13 = vld [vmem:[%s9078_s1 + $0x88c] ss:$16 sps:$4 sm:$0xff]  }
  0xe7   : > { %4127 = vmatpush1.bf16.msra.mxu0 %v6341_v14  ;;  %4496 = vmatpush1.bf16.msra.mxu1 %v6344_v16  ;;  %v6426_v14 = vld [vmem:[%s9078_s1 + $0x880] ss:$16 sps:$4 sm:$0xff]   ;;  %v6429_v16 = vld [vmem:[%s9078_s1 + $0x888] ss:$16 sps:$4 sm:$0xff]  }
  0xe8   : > { %4128 = vmatprep.subr.bf16.mxu0 %v6349_v17  ;;  %4497 = vmatprep.subr.bf16.mxu1 %v6352_v18  ;;  %v6434_v17 = vld [vmem:[%s9078_s1 + $0x8a4] ss:$16 sps:$4 sm:$0xff]   ;;  %v6437_v18 = vld [vmem:[%s9078_s1 + $0x8ac] ss:$16 sps:$4 sm:$0xff]  }
  0xeb   : > { %4129 = vmatpush1.bf16.msra.mxu0 %v6347_v19  ;;  %4498 = vmatpush1.bf16.msra.mxu1 %v6350_v20  ;;  %v6432_v19 = vld [vmem:[%s9078_s1 + $0x8a0] ss:$16 sps:$4 sm:$0xff]   ;;  %v6435_v20 = vld [vmem:[%s9078_s1 + $0x8a8] ss:$16 sps:$4 sm:$0xff]  }
  0xec   : > { %4130 = vmatprep.subr.bf16.mxu0 %v6355_v21  ;;  %4499 = vmatprep.subr.bf16.mxu1 %v6358_v23  ;;  %v6440_v21 = vld [vmem:[%s9078_s1 + $0x8c4] ss:$16 sps:$4 sm:$0xff]   ;;  %v6443_v23 = vld [vmem:[%s9078_s1 + $0x8cc] ss:$16 sps:$4 sm:$0xff]  }
  0xef   : > { %4131 = vmatpush1.bf16.msra.mxu0 %v6353_v24  ;;  %4500 = vmatpush1.bf16.msra.mxu1 %v6356_v25  ;;  %v6438_v24 = vld [vmem:[%s9078_s1 + $0x8c0] ss:$16 sps:$4 sm:$0xff]   ;;  %v6441_v25 = vld [vmem:[%s9078_s1 + $0x8c8] ss:$16 sps:$4 sm:$0xff]  }
  0xf0   : > { %4132 = vmatprep.subr.bf16.mxu0 %v6361_v26  ;;  %4501 = vmatprep.subr.bf16.mxu1 %v6364_v27  ;;  %v6446_v26 = vld [vmem:[%s9078_s1 + $0x8e4] ss:$16 sps:$4 sm:$0xff]   ;;  %v6449_v27 = vld [vmem:[%s9078_s1 + $0x8ec] ss:$16 sps:$4 sm:$0xff]  }
  0xf3   : > { %4133 = vmatpush1.bf16.msra.mxu0 %v6359_v28  ;;  %4502 = vmatpush1.bf16.msra.mxu1 %v6362_v29  ;;  %v6444_v28 = vld [vmem:[%s9078_s1 + $0x8e0] ss:$16 sps:$4 sm:$0xff]   ;;  %v6447_v29 = vld [vmem:[%s9078_s1 + $0x8e8] ss:$16 sps:$4 sm:$0xff]  }
  0xf4   : > { %4134 = vmatprep.subr.bf16.mxu0 %v6367_v30  ;;  %4503 = vmatprep.subr.bf16.mxu1 %v6370_v31  ;;  %v6452_v30 = vld [vmem:[%s9078_s1 + $0x904] ss:$16 sps:$4 sm:$0xff]   ;;  %v6455_v31 = vld [vmem:[%s9078_s1 + $0x90c] ss:$16 sps:$4 sm:$0xff]  }
  0xf7   : > { %4135 = vmatpush1.bf16.msra.mxu0 %v6365_v32  ;;  %4504 = vmatpush1.bf16.msra.mxu1 %v6368_v34  ;;  %v6450_v32 = vld [vmem:[%s9078_s1 + $0x900] ss:$16 sps:$4 sm:$0xff]   ;;  %v6453_v34 = vld [vmem:[%s9078_s1 + $0x908] ss:$16 sps:$4 sm:$0xff]  }
  0xf8   : > { %4136 = vmatprep.subr.bf16.mxu0 %v6373_v35  ;;  %4505 = vmatprep.subr.bf16.mxu1 %v6376_v36  ;;  %v6458_v35 = vld [vmem:[%s9078_s1 + $0x924] ss:$16 sps:$4 sm:$0xff]   ;;  %v6461_v36 = vld [vmem:[%s9078_s1 + $0x92c] ss:$16 sps:$4 sm:$0xff]  }
  0xfb   : > { %4137 = vmatpush1.bf16.msra.mxu0 %v6371_v37  ;;  %4506 = vmatpush1.bf16.msra.mxu1 %v6374_v38  ;;  %v6456_v37 = vld [vmem:[%s9078_s1 + $0x920] ss:$16 sps:$4 sm:$0xff]   ;;  %v6459_v38 = vld [vmem:[%s9078_s1 + $0x928] ss:$16 sps:$4 sm:$0xff]  }
  0xfc   : > { %4138 = vmatprep.subr.bf16.mxu0 %v6379_v39  ;;  %4507 = vmatprep.subr.bf16.mxu1 %v6382_v41  ;;  %v6464_v39 = vld [vmem:[%s9078_s1 + $0x944] ss:$16 sps:$4 sm:$0xff]   ;;  %v6467_v41 = vld [vmem:[%s9078_s1 + $0x94c] ss:$16 sps:$4 sm:$0xff]  }
  0xff   : > { %4139 = vmatpush1.bf16.msra.mxu0 %v6377_v42  ;;  %4508 = vmatpush1.bf16.msra.mxu1 %v6380_v43  ;;  %v6462_v42 = vld [vmem:[%s9078_s1 + $0x940] ss:$16 sps:$4 sm:$0xff]   ;;  %v6465_v43 = vld [vmem:[%s9078_s1 + $0x948] ss:$16 sps:$4 sm:$0xff]  }
 0x100   : > { %4140 = vmatprep.subr.bf16.mxu0 %v6385_v44  ;;  %4509 = vmatprep.subr.bf16.mxu1 %v6388_v45  ;;  %v6470_v44 = vld [vmem:[%s9078_s1 + $0x964] ss:$16 sps:$4 sm:$0xff]   ;;  %v6473_v45 = vld [vmem:[%s9078_s1 + $0x96c] ss:$16 sps:$4 sm:$0xff]  }
 0x103   : > { %4141 = vmatpush1.bf16.msra.mxu0 %v6383_v47  ;;  %4510 = vmatpush1.bf16.msra.mxu1 %v6386_v33  ;;  %v6468_v47 = vld [vmem:[%s9078_s1 + $0x960] ss:$16 sps:$4 sm:$0xff]   ;;  %v6471_v33 = vld [vmem:[%s9078_s1 + $0x968] ss:$16 sps:$4 sm:$0xff]  }
 0x104   : > { %4142 = vmatprep.subr.bf16.mxu0 %v6391_v49  ;;  %4511 = vmatprep.subr.bf16.mxu1 %v6394_v50  ;;  %v6476_v49 = vld [vmem:[%s9078_s1 + $0x984] ss:$16 sps:$4 sm:$0xff]   ;;  %v6479_v50 = vld [vmem:[%s9078_s1 + $0x98c] ss:$16 sps:$4 sm:$0xff]  }
 0x107   : > { %4143 = vmatpush1.bf16.msra.mxu0 %v6389_v46  ;;  %4512 = vmatpush1.bf16.msra.mxu1 %v6392_v52  ;;  %v8063_v46 = vld.sshfl [vmem:[%s7208_s13 + $0xc] sm:$0x33 pattern:$0x75316420]  ;;  %v6474_v52 = vld [vmem:[%s9078_s1 + $0x980] ss:$16 sps:$4 sm:$0xff]  }
 0x108   : > { %4144 = vmatprep.subr.bf16.mxu0 %v6397_v53  ;;  %4513 = vmatprep.subr.bf16.mxu1 %v6400_v54  ;;  %v6477_v53 = vld [vmem:[%s9078_s1 + $0x988] ss:$16 sps:$4 sm:$0xff]   ;;  %v401_v54 = vcombine.high %v8063_v46, %v8063_v46 }
 0x10b   : > { %4145 = vmatpush1.bf16.msra.mxu0 %v6395_v55  ;;  %4514 = vmatpush1.bf16.msra.mxu1 %v6398_v57  ;;  %v6482_v55 = vld [vmem:[%s9078_s1 + $0x9a4] ss:$16 sps:$4 sm:$0xff]   ;;  %v6485_v57 = vld [vmem:[%s9078_s1 + $0x9ac] ss:$16 sps:$4 sm:$0xff]  }
 0x10c   : > { %4155 = vmatprep.subr.bf16.mxu0 %v6404_v58  ;;  %4524 = vmatprep.subr.bf16.mxu1 %v6407_v59  ;;  %v403_v58 = vshrl.u32 %v8063_v46, 16  ;;  %v408_v59 = vshll.u32 %v401_v54, 16  ;;  %v6560_v54 = vld [vmem:[%s9078_s1 + $0xb44] ss:$16 sps:$4 sm:$0xff]  }
 0x10e   : > { %4147 = vmatmul.mubr.bf16.vlgmr.msra.gmra.mrb[0].mxu0 %v7710_v51  ;;  %4516 = vmatmul.mubr.bf16.vlgmr.msra.gmra.mrb[0].mxu1 %v7710_v51  ;;  %v6419_v51 = vld [vmem:[%s9078_s1 + $0x84c] ss:$16 sps:$4 sm:$0xff]  }
 0x10f   : > { %4156 = vmatpush1.bf16.msra.mxu0 %v6402_v60  ;;  %4525 = vmatpush1.bf16.msra.mxu1 %v6405_v61  ;;  %v6480_v60 = vld [vmem:[%s9078_s1 + $0x9a0] ss:$16 sps:$4 sm:$0xff]   ;;  %v6483_v61 = vld [vmem:[%s9078_s1 + $0x9a8] ss:$16 sps:$4 sm:$0xff]  }
 0x110   : > { %4157 = vmatprep.subr.bf16.mxu0 %v6410_v62  ;;  %4526 = vmatprep.subr.bf16.mxu1 %v6413_v63  ;;  %v410_v62 = vsel %vm7242_vm14, %v403_v58, %v408_v59  ;;  %v6488_v63 = vld [vmem:[%s9078_s1 + $0x9c4] ss:$16 sps:$4 sm:$0xff]   ;;  %v6561_v58 = vld [vmem:[%s9078_s1 + $0xb48] ss:$16 sps:$4 sm:$0xff]  }
 0x111   : > { %4187 = vmatprep.mubr.bf16.mxu0 %v1066_v1  ;;  %4556 = vmatprep.mubr.bf16.mxu1 %v1066_v1  ;;  %v6491_v1 = vld [vmem:[%s9078_s1 + $0x9cc] ss:$16 sps:$4 sm:$0xff]   ;;  %v6566_v59 = vld [vmem:[%s9078_s1 + $0xb64] ss:$16 sps:$4 sm:$0xff]  }
 0x113   : > { %4158 = vmatpush1.bf16.msra.mxu0 %v6408_v2  ;;  %4527 = vmatpush1.bf16.msra.mxu1 %v6411_v3  ;;  %v391_v2 = vcombine.low %v7680_v40, %v8063_v46  ;;  %v411_v3 = vcombine.low %v7258_v10, %v410_v62  ;;  %v6494_v40 = vld [vmem:[%s9078_s1 + $0x9e4] ss:$16 sps:$4 sm:$0xff]   ;;  %v6497_v10 = vld [vmem:[%s9078_s1 + $0x9ec] ss:$16 sps:$4 sm:$0xff]   ;;  %v6567_v62 = vld [vmem:[%s9078_s1 + $0xb68] ss:$16 sps:$4 sm:$0xff]  }
 0x114   : > { %4159 = vmatprep.subr.bf16.mxu0 %v6416_v4  ;;  %4528 = vmatprep.subr.bf16.mxu1 %v6419_v51  ;;  %v6489_v4 = vld [vmem:[%s9078_s1 + $0x9c8] ss:$16 sps:$4 sm:$0xff]   ;;  %v1051_v51 = vcombine.high %v7899_v56, %v7899_v56  ;;  %v6503_v56 = vld [vmem:[%s9078_s1 + $0xa0c] ss:$16 sps:$4 sm:$0xff]  }
 0x115   : > { %5250 = vst.sshfl [vmem:[#allocation2 + $0x18] sm:$0x33 pattern:$0x75316420] %v391_v2  ;;  %v6570_v2 = vld [vmem:[%s9078_s1 + $0xb80] ss:$16 sps:$4 sm:$0xff]  }
 0x116   : > { %5252 = vst.sshfl [vmem:[#allocation2 + $0x1c] sm:$0x33 pattern:$0x75316420] %v411_v3  ;;  %v6573_v3 = vld [vmem:[%s9078_s1 + $0xb88] ss:$16 sps:$4 sm:$0xff]  }
 0x117   : > { %4160 = vmatpush1.bf16.msra.mxu0 %v6414_v5  ;;  %4529 = vmatpush1.bf16.msra.mxu1 %v6417_v6  ;;  %v6492_v5 = vld [vmem:[%s9078_s1 + $0x9e0] ss:$16 sps:$4 sm:$0xff]   ;;  %v6495_v6 = vld [vmem:[%s9078_s1 + $0x9e8] ss:$16 sps:$4 sm:$0xff]  }
 0x118   : > { %4161 = vmatprep.subr.bf16.mxu0 %v6422_v7  ;;  %4530 = vmatprep.subr.bf16.mxu1 %v6425_v8  ;;  %v6500_v7 = vld [vmem:[%s9078_s1 + $0xa04] ss:$16 sps:$4 sm:$0xff]   ;;  %v8124_v8 = vrot.slane %v1051_v51, %v7282_v22 }
 0x119   : > { %v6584_v51 = vld [vmem:[%s9078_s1 + $0xbc4] ss:$16 sps:$4 sm:$0xff]  }
 0x11b   : > { %4162 = vmatpush1.bf16.msra.mxu0 %v6420_v9  ;;  %4531 = vmatpush1.bf16.msra.mxu1 %v6423_v11  ;;  %v6498_v9 = vld [vmem:[%s9078_s1 + $0xa00] ss:$16 sps:$4 sm:$0xff]   ;;  %v6501_v11 = vld [vmem:[%s9078_s1 + $0xa08] ss:$16 sps:$4 sm:$0xff]  }
 0x11c   : > { %4163 = vmatprep.subr.bf16.mxu0 %v6428_v12  ;;  %4532 = vmatprep.subr.bf16.mxu1 %v6431_v13  ;;  %v6506_v12 = vld [vmem:[%s9078_s1 + $0xa24] ss:$16 sps:$4 sm:$0xff]   ;;  %v6509_v13 = vld [vmem:[%s9078_s1 + $0xa2c] ss:$16 sps:$4 sm:$0xff]  }
 0x11f   : > { %4164 = vmatpush1.bf16.msra.mxu0 %v6426_v14  ;;  %4533 = vmatpush1.bf16.msra.mxu1 %v6429_v16  ;;  %v1067_v14 = vcombine.high %v8124_v8, %v8124_v8  ;;  %v6504_v16 = vld [vmem:[%s9078_s1 + $0xa20] ss:$16 sps:$4 sm:$0xff]  }
 0x120   : > { %4165 = vmatprep.subr.bf16.mxu0 %v6434_v17  ;;  %4534 = vmatprep.subr.bf16.mxu1 %v6437_v18  ;;  %v6507_v17 = vld [vmem:[%s9078_s1 + $0xa28] ss:$16 sps:$4 sm:$0xff]   ;;  %v6512_v18 = vld [vmem:[%s9078_s1 + $0xa44] ss:$16 sps:$4 sm:$0xff]  }
 0x123   : > { %4166 = vmatpush1.bf16.msra.mxu0 %v6432_v19  ;;  %4535 = vmatpush1.bf16.msra.mxu1 %v6435_v20  ;;  %v6510_v19 = vld [vmem:[%s9078_s1 + $0xa40] ss:$16 sps:$4 sm:$0xff]   ;;  %v6513_v20 = vld [vmem:[%s9078_s1 + $0xa48] ss:$16 sps:$4 sm:$0xff]  }
 0x124   : > { %4167 = vmatprep.subr.bf16.mxu0 %v6440_v21  ;;  %4536 = vmatprep.subr.bf16.mxu1 %v6443_v23  ;;  %v6518_v21 = vld [vmem:[%s9078_s1 + $0xa64] ss:$16 sps:$4 sm:$0xff]   ;;  %v6521_v23 = vld [vmem:[%s9078_s1 + $0xa6c] ss:$16 sps:$4 sm:$0xff]  }
 0x127   : > { %4168 = vmatpush1.bf16.msra.mxu0 %v6438_v24  ;;  %4537 = vmatpush1.bf16.msra.mxu1 %v6441_v25  ;;  %v6516_v24 = vld [vmem:[%s9078_s1 + $0xa60] ss:$16 sps:$4 sm:$0xff]   ;;  %v6519_v25 = vld [vmem:[%s9078_s1 + $0xa68] ss:$16 sps:$4 sm:$0xff]  }
 0x128   : > { %4169 = vmatprep.subr.bf16.mxu0 %v6446_v26  ;;  %4538 = vmatprep.subr.bf16.mxu1 %v6449_v27  ;;  %v6524_v26 = vld [vmem:[%s9078_s1 + $0xa84] ss:$16 sps:$4 sm:$0xff]   ;;  %v6527_v27 = vld [vmem:[%s9078_s1 + $0xa8c] ss:$16 sps:$4 sm:$0xff]  }
 0x12b   : > { %4170 = vmatpush1.bf16.msra.mxu0 %v6444_v28  ;;  %4539 = vmatpush1.bf16.msra.mxu1 %v6447_v29  ;;  %v6522_v28 = vld [vmem:[%s9078_s1 + $0xa80] ss:$16 sps:$4 sm:$0xff]   ;;  %v6525_v29 = vld [vmem:[%s9078_s1 + $0xa88] ss:$16 sps:$4 sm:$0xff]  }
 0x12c   : > { %4171 = vmatprep.subr.bf16.mxu0 %v6452_v30  ;;  %4540 = vmatprep.subr.bf16.mxu1 %v6455_v31  ;;  %v6530_v30 = vld [vmem:[%s9078_s1 + $0xaa4] ss:$16 sps:$4 sm:$0xff]   ;;  %v6533_v31 = vld [vmem:[%s9078_s1 + $0xaac] ss:$16 sps:$4 sm:$0xff]  }
 0x12f   : > { %4172 = vmatpush1.bf16.msra.mxu0 %v6450_v32  ;;  %4541 = vmatpush1.bf16.msra.mxu1 %v6453_v34  ;;  %v6528_v32 = vld [vmem:[%s9078_s1 + $0xaa0] ss:$16 sps:$4 sm:$0xff]   ;;  %v6531_v34 = vld [vmem:[%s9078_s1 + $0xaa8] ss:$16 sps:$4 sm:$0xff]  }
 0x130   : > { %4173 = vmatprep.subr.bf16.mxu0 %v6458_v35  ;;  %4542 = vmatprep.subr.bf16.mxu1 %v6461_v36  ;;  %v6536_v35 = vld [vmem:[%s9078_s1 + $0xac4] ss:$16 sps:$4 sm:$0xff]   ;;  %v6539_v36 = vld [vmem:[%s9078_s1 + $0xacc] ss:$16 sps:$4 sm:$0xff]  }
 0x133   : > { %4174 = vmatpush1.bf16.msra.mxu0 %v6456_v37  ;;  %4543 = vmatpush1.bf16.msra.mxu1 %v6459_v38  ;;  %v6534_v37 = vld [vmem:[%s9078_s1 + $0xac0] ss:$16 sps:$4 sm:$0xff]   ;;  %v6537_v38 = vld [vmem:[%s9078_s1 + $0xac8] ss:$16 sps:$4 sm:$0xff]  }
 0x134   : > { %4175 = vmatprep.subr.bf16.mxu0 %v6464_v39  ;;  %4544 = vmatprep.subr.bf16.mxu1 %v6467_v41  ;;  %v6542_v39 = vld [vmem:[%s9078_s1 + $0xae4] ss:$16 sps:$4 sm:$0xff]   ;;  %v6545_v41 = vld [vmem:[%s9078_s1 + $0xaec] ss:$16 sps:$4 sm:$0xff]  }
 0x137   : > { %4176 = vmatpush1.bf16.msra.mxu0 %v6462_v42  ;;  %4545 = vmatpush1.bf16.msra.mxu1 %v6465_v43  ;;  %v6540_v42 = vld [vmem:[%s9078_s1 + $0xae0] ss:$16 sps:$4 sm:$0xff]   ;;  %v6543_v43 = vld [vmem:[%s9078_s1 + $0xae8] ss:$16 sps:$4 sm:$0xff]  }
 0x138   : > { %4177 = vmatprep.subr.bf16.mxu0 %v6470_v44  ;;  %4546 = vmatprep.subr.bf16.mxu1 %v6473_v45  ;;  %v6548_v44 = vld [vmem:[%s9078_s1 + $0xb04] ss:$16 sps:$4 sm:$0xff]   ;;  %v6551_v45 = vld [vmem:[%s9078_s1 + $0xb0c] ss:$16 sps:$4 sm:$0xff]  }
 0x13b   : > { %4178 = vmatpush1.bf16.msra.mxu0 %v6468_v47  ;;  %4547 = vmatpush1.bf16.msra.mxu1 %v6471_v33  ;;  %v6546_v47 = vld [vmem:[%s9078_s1 + $0xb00] ss:$16 sps:$4 sm:$0xff]   ;;  %v6549_v33 = vld [vmem:[%s9078_s1 + $0xb08] ss:$16 sps:$4 sm:$0xff]  }
 0x13c   : > { %4179 = vmatprep.subr.bf16.mxu0 %v6476_v49  ;;  %4548 = vmatprep.subr.bf16.mxu1 %v6479_v50  ;;  %v6554_v49 = vld [vmem:[%s9078_s1 + $0xb24] ss:$16 sps:$4 sm:$0xff]   ;;  %v6557_v50 = vld [vmem:[%s9078_s1 + $0xb2c] ss:$16 sps:$4 sm:$0xff]  }
 0x13f   : > { %4180 = vmatpush1.bf16.msra.mxu0 %v6474_v52  ;;  %4549 = vmatpush1.bf16.msra.mxu1 %v6477_v53  ;;  %v6552_v52 = vld [vmem:[%s9078_s1 + $0xb20] ss:$16 sps:$4 sm:$0xff]   ;;  %v6555_v53 = vld [vmem:[%s9078_s1 + $0xb28] ss:$16 sps:$4 sm:$0xff]  }
 0x140   : > { %4181 = vmatprep.subr.bf16.mxu0 %v6482_v55  ;;  %4550 = vmatprep.subr.bf16.mxu1 %v6485_v57  ;;  %v6563_v55 = vld [vmem:[%s9078_s1 + $0xb4c] ss:$16 sps:$4 sm:$0xff]   ;;  %v6558_v57 = vld [vmem:[%s9078_s1 + $0xb40] ss:$16 sps:$4 sm:$0xff]  }
 0x143   : > { %4182 = vmatpush1.bf16.msra.mxu0 %v6480_v60  ;;  %4551 = vmatpush1.bf16.msra.mxu1 %v6483_v61  ;;  %v6569_v60 = vld [vmem:[%s9078_s1 + $0xb6c] ss:$16 sps:$4 sm:$0xff]   ;;  %v6564_v61 = vld [vmem:[%s9078_s1 + $0xb60] ss:$16 sps:$4 sm:$0xff]  }
 0x144   : > { %4183 = vmatprep.subr.bf16.mxu0 %v6488_v63  ;;  %4552 = vmatprep.subr.bf16.mxu1 %v6491_v1  ;;  %v6572_v63 = vld [vmem:[%s9078_s1 + $0xb84] ss:$16 sps:$4 sm:$0xff]   ;;  %v6575_v1 = vld [vmem:[%s9078_s1 + $0xb8c] ss:$16 sps:$4 sm:$0xff]  }
 0x147   : > { %4184 = vmatpush1.bf16.msra.mxu0 %v6486_v0  ;;  %4553 = vmatpush1.bf16.msra.mxu1 %v6489_v4  ;;  %v6578_v0 = vld [vmem:[%s9078_s1 + $0xba4] ss:$16 sps:$4 sm:$0xff]   ;;  %v6581_v4 = vld [vmem:[%s9078_s1 + $0xbac] ss:$16 sps:$4 sm:$0xff]  }
 0x148   : > { %4185 = vmatprep.subr.bf16.mxu0 %v6494_v40  ;;  %4554 = vmatprep.subr.bf16.mxu1 %v6497_v10  ;;  %v6576_v40 = vld [vmem:[%s9078_s1 + $0xba0] ss:$16 sps:$4 sm:$0xff]   ;;  %v6579_v10 = vld [vmem:[%s9078_s1 + $0xba8] ss:$16 sps:$4 sm:$0xff]  }
 0x14b   : > { %4186 = vmatpush1.bf16.msra.mxu0 %v6492_v5  ;;  %4555 = vmatpush1.bf16.msra.mxu1 %v6495_v6  ;;  %v6587_v5 = vld [vmem:[%s9078_s1 + $0xbcc] ss:$16 sps:$4 sm:$0xff]   ;;  %v6582_v6 = vld [vmem:[%s9078_s1 + $0xbc0] ss:$16 sps:$4 sm:$0xff]  }
 0x14c   : > { %4196 = vmatprep.subr.bf16.mxu0 %v6500_v7  ;;  %4565 = vmatprep.subr.bf16.mxu1 %v6503_v56  ;;  %v6585_v7 = vld [vmem:[%s9078_s1 + $0xbc8] ss:$16 sps:$4 sm:$0xff]   ;;  %v6590_v56 = vld [vmem:[%s9078_s1 + $0xbe4] ss:$16 sps:$4 sm:$0xff]  }
 0x14e   : > { %4188 = vmatmul.mubr.bf16.vlgmr.msra.gmra.mrb[0].mxu0 %v7912_v48  ;;  %4557 = vmatmul.mubr.bf16.vlgmr.msra.gmra.mrb[0].mxu1 %v7912_v48  ;;  %v6515_v48 = vld [vmem:[%s9078_s1 + $0xa4c] ss:$16 sps:$4 sm:$0xff]  }
 0x14f   : > { %4197 = vmatpush1.bf16.msra.mxu0 %v6498_v9  ;;  %4566 = vmatpush1.bf16.msra.mxu1 %v6501_v11  ;;  %v6593_v9 = vld [vmem:[%s9078_s1 + $0xbec] ss:$16 sps:$4 sm:$0xff]  }
 0x150   : > { %4198 = vmatprep.subr.bf16.mxu0 %v6506_v12  ;;  %4567 = vmatprep.subr.bf16.mxu1 %v6509_v13  ;;  %v8310_v11 = vld [vmem:[#allocation2 + $0x18] sm:$0xff]  ;;  %v6588_v12 = vld [vmem:[%s9078_s1 + $0xbe0] ss:$16 sps:$4 sm:$0xff]  }
 0x151   : > { %4228 = vmatprep.mubr.bf16.mxu0 %v1067_v14  ;;  %4597 = vmatprep.mubr.bf16.mxu1 %v1067_v14  ;;  %v6591_v13 = vld [vmem:[%s9078_s1 + $0xbe8] ss:$16 sps:$4 sm:$0xff]   ;;  %v6597_v14 = vld [vmem:[%s9078_s1 + $0xc04] ss:$16 sps:$4 sm:$0xff]  }
 0x153   : > { %4199 = vmatpush1.bf16.msra.mxu0 %v6504_v16  ;;  %4568 = vmatpush1.bf16.msra.mxu1 %v6507_v17  ;;  %v6600_v16 = vld [vmem:[%s9078_s1 + $0xc0c] ss:$16 sps:$4 sm:$0xff]   ;;  %v8326_v17 = vrot.slane %v8310_v11, %v7282_v22 }
 0x154   : > { %4200 = vmatprep.subr.bf16.mxu0 %v6512_v18  ;;  %4569 = vmatprep.subr.bf16.mxu1 %v6515_v48  ;;  %v6595_v18 = vld [vmem:[%s9078_s1 + $0xc00] ss:$16 sps:$4 sm:$0xff]   ;;  %v6598_v48 = vld [vmem:[%s9078_s1 + $0xc08] ss:$16 sps:$4 sm:$0xff]  }
 0x157   : > { %4201 = vmatpush1.bf16.msra.mxu0 %v6510_v19  ;;  %4570 = vmatpush1.bf16.msra.mxu1 %v6513_v20  ;;  %v6603_v19 = vld [vmem:[%s9078_s1 + $0xc24] ss:$16 sps:$4 sm:$0xff]   ;;  %v6606_v20 = vld [vmem:[%s9078_s1 + $0xc2c] ss:$16 sps:$4 sm:$0xff]  }
 0x158   : > { %4202 = vmatprep.subr.bf16.mxu0 %v6518_v21  ;;  %4571 = vmatprep.subr.bf16.mxu1 %v6521_v23  ;;  %v1083_v21 = vcombine.high %v8326_v17, %v8326_v17  ;;  %v6601_v23 = vld [vmem:[%s9078_s1 + $0xc20] ss:$16 sps:$4 sm:$0xff]  }
 0x15b   : > { %4203 = vmatpush1.bf16.msra.mxu0 %v6516_v24  ;;  %4572 = vmatpush1.bf16.msra.mxu1 %v6519_v25  ;;  %v6604_v24 = vld [vmem:[%s9078_s1 + $0xc28] ss:$16 sps:$4 sm:$0xff]   ;;  %v6609_v25 = vld [vmem:[%s9078_s1 + $0xc44] ss:$16 sps:$4 sm:$0xff]  }
 0x15c   : > { %4204 = vmatprep.subr.bf16.mxu0 %v6524_v26  ;;  %4573 = vmatprep.subr.bf16.mxu1 %v6527_v27  ;;  %v6607_v26 = vld [vmem:[%s9078_s1 + $0xc40] ss:$16 sps:$4 sm:$0xff]   ;;  %v6610_v27 = vld [vmem:[%s9078_s1 + $0xc48] ss:$16 sps:$4 sm:$0xff]  }
 0x15f   : > { %4205 = vmatpush1.bf16.msra.mxu0 %v6522_v28  ;;  %4574 = vmatpush1.bf16.msra.mxu1 %v6525_v29  ;;  %v6615_v28 = vld [vmem:[%s9078_s1 + $0xc64] ss:$16 sps:$4 sm:$0xff]   ;;  %v6618_v29 = vld [vmem:[%s9078_s1 + $0xc6c] ss:$16 sps:$4 sm:$0xff]  }
 0x160   : > { %4206 = vmatprep.subr.bf16.mxu0 %v6530_v30  ;;  %4575 = vmatprep.subr.bf16.mxu1 %v6533_v31  ;;  %v6613_v30 = vld [vmem:[%s9078_s1 + $0xc60] ss:$16 sps:$4 sm:$0xff]   ;;  %v6616_v31 = vld [vmem:[%s9078_s1 + $0xc68] ss:$16 sps:$4 sm:$0xff]  }
 0x163   : > { %4207 = vmatpush1.bf16.msra.mxu0 %v6528_v32  ;;  %4576 = vmatpush1.bf16.msra.mxu1 %v6531_v34  ;;  %v6621_v32 = vld [vmem:[%s9078_s1 + $0xc84] ss:$16 sps:$4 sm:$0xff]   ;;  %v6624_v34 = vld [vmem:[%s9078_s1 + $0xc8c] ss:$16 sps:$4 sm:$0xff]  }
 0x164   : > { %4208 = vmatprep.subr.bf16.mxu0 %v6536_v35  ;;  %4577 = vmatprep.subr.bf16.mxu1 %v6539_v36  ;;  %v6619_v35 = vld [vmem:[%s9078_s1 + $0xc80] ss:$16 sps:$4 sm:$0xff]   ;;  %v6622_v36 = vld [vmem:[%s9078_s1 + $0xc88] ss:$16 sps:$4 sm:$0xff]  }
 0x167   : > { %4209 = vmatpush1.bf16.msra.mxu0 %v6534_v37  ;;  %4578 = vmatpush1.bf16.msra.mxu1 %v6537_v38  ;;  %v6627_v37 = vld [vmem:[%s9078_s1 + $0xca4] ss:$16 sps:$4 sm:$0xff]   ;;  %v6630_v38 = vld [vmem:[%s9078_s1 + $0xcac] ss:$16 sps:$4 sm:$0xff]  }
 0x168   : > { %4210 = vmatprep.subr.bf16.mxu0 %v6542_v39  ;;  %4579 = vmatprep.subr.bf16.mxu1 %v6545_v41  ;;  %v6625_v39 = vld [vmem:[%s9078_s1 + $0xca0] ss:$16 sps:$4 sm:$0xff]   ;;  %v6628_v41 = vld [vmem:[%s9078_s1 + $0xca8] ss:$16 sps:$4 sm:$0xff]  }
 0x16b   : > { %4211 = vmatpush1.bf16.msra.mxu0 %v6540_v42  ;;  %4580 = vmatpush1.bf16.msra.mxu1 %v6543_v43  ;;  %v6633_v42 = vld [vmem:[%s9078_s1 + $0xcc4] ss:$16 sps:$4 sm:$0xff]   ;;  %v6636_v43 = vld [vmem:[%s9078_s1 + $0xccc] ss:$16 sps:$4 sm:$0xff]  }
 0x16c   : > { %4212 = vmatprep.subr.bf16.mxu0 %v6548_v44  ;;  %4581 = vmatprep.subr.bf16.mxu1 %v6551_v45  ;;  %v6631_v44 = vld [vmem:[%s9078_s1 + $0xcc0] ss:$16 sps:$4 sm:$0xff]   ;;  %v6634_v45 = vld [vmem:[%s9078_s1 + $0xcc8] ss:$16 sps:$4 sm:$0xff]  }
 0x16f   : > { %4213 = vmatpush1.bf16.msra.mxu0 %v6546_v47  ;;  %4582 = vmatpush1.bf16.msra.mxu1 %v6549_v33  ;;  %v6639_v47 = vld [vmem:[%s9078_s1 + $0xce4] ss:$16 sps:$4 sm:$0xff]   ;;  %v6642_v33 = vld [vmem:[%s9078_s1 + $0xcec] ss:$16 sps:$4 sm:$0xff]  }
 0x170   : > { %4214 = vmatprep.subr.bf16.mxu0 %v6554_v49  ;;  %4583 = vmatprep.subr.bf16.mxu1 %v6557_v50  ;;  %v6637_v49 = vld [vmem:[%s9078_s1 + $0xce0] ss:$16 sps:$4 sm:$0xff]   ;;  %v6640_v50 = vld [vmem:[%s9078_s1 + $0xce8] ss:$16 sps:$4 sm:$0xff]  }
 0x173   : > { %4215 = vmatpush1.bf16.msra.mxu0 %v6552_v52  ;;  %4584 = vmatpush1.bf16.msra.mxu1 %v6555_v53  ;;  %v6645_v52 = vld [vmem:[%s9078_s1 + $0xd04] ss:$16 sps:$4 sm:$0xff]   ;;  %v6648_v53 = vld [vmem:[%s9078_s1 + $0xd0c] ss:$16 sps:$4 sm:$0xff]  }
 0x174   : > { %4216 = vmatprep.subr.bf16.mxu0 %v6560_v54  ;;  %4585 = vmatprep.subr.bf16.mxu1 %v6563_v55  ;;  %v6643_v54 = vld [vmem:[%s9078_s1 + $0xd00] ss:$16 sps:$4 sm:$0xff]   ;;  %v6646_v55 = vld [vmem:[%s9078_s1 + $0xd08] ss:$16 sps:$4 sm:$0xff]  }
 0x177   : > { %4217 = vmatpush1.bf16.msra.mxu0 %v6558_v57  ;;  %4586 = vmatpush1.bf16.msra.mxu1 %v6561_v58  ;;  %v6651_v57 = vld [vmem:[%s9078_s1 + $0xd24] ss:$16 sps:$4 sm:$0xff]   ;;  %v6654_v58 = vld [vmem:[%s9078_s1 + $0xd2c] ss:$16 sps:$4 sm:$0xff]  }
 0x178   : > { %4218 = vmatprep.subr.bf16.mxu0 %v6566_v59  ;;  %4587 = vmatprep.subr.bf16.mxu1 %v6569_v60  ;;  %v6649_v59 = vld [vmem:[%s9078_s1 + $0xd20] ss:$16 sps:$4 sm:$0xff]   ;;  %v6652_v60 = vld [vmem:[%s9078_s1 + $0xd28] ss:$16 sps:$4 sm:$0xff]  }
 0x17b   : > { %4219 = vmatpush1.bf16.msra.mxu0 %v6564_v61  ;;  %4588 = vmatpush1.bf16.msra.mxu1 %v6567_v62  ;;  %v6657_v61 = vld [vmem:[%s9078_s1 + $0xd44] ss:$16 sps:$4 sm:$0xff]   ;;  %v6660_v62 = vld [vmem:[%s9078_s1 + $0xd4c] ss:$16 sps:$4 sm:$0xff]  }
 0x17c   : > { %4220 = vmatprep.subr.bf16.mxu0 %v6572_v63  ;;  %4589 = vmatprep.subr.bf16.mxu1 %v6575_v1  ;;  %v6655_v63 = vld [vmem:[%s9078_s1 + $0xd40] ss:$16 sps:$4 sm:$0xff]   ;;  %v6658_v1 = vld [vmem:[%s9078_s1 + $0xd48] ss:$16 sps:$4 sm:$0xff]  }
 0x17f   : > { %4221 = vmatpush1.bf16.msra.mxu0 %v6570_v2  ;;  %4590 = vmatpush1.bf16.msra.mxu1 %v6573_v3  ;;  %v6663_v2 = vld [vmem:[%s9078_s1 + $0xd64] ss:$16 sps:$4 sm:$0xff]   ;;  %v6666_v3 = vld [vmem:[%s9078_s1 + $0xd6c] ss:$16 sps:$4 sm:$0xff]  }
 0x180   : > { %4222 = vmatprep.subr.bf16.mxu0 %v6578_v0  ;;  %4591 = vmatprep.subr.bf16.mxu1 %v6581_v4  ;;  %v6661_v0 = vld [vmem:[%s9078_s1 + $0xd60] ss:$16 sps:$4 sm:$0xff]   ;;  %v6664_v4 = vld [vmem:[%s9078_s1 + $0xd68] ss:$16 sps:$4 sm:$0xff]  }
 0x183   : > { %4223 = vmatpush1.bf16.msra.mxu0 %v6576_v40  ;;  %4592 = vmatpush1.bf16.msra.mxu1 %v6579_v10  ;;  %v6669_v40 = vld [vmem:[%s9078_s1 + $0xd84] ss:$16 sps:$4 sm:$0xff]   ;;  %v6672_v10 = vld [vmem:[%s9078_s1 + $0xd8c] ss:$16 sps:$4 sm:$0xff]  }
 0x184   : > { %4224 = vmatprep.subr.bf16.mxu0 %v6584_v51  ;;  %4593 = vmatprep.subr.bf16.mxu1 %v6587_v5  ;;  %v6667_v51 = vld [vmem:[%s9078_s1 + $0xd80] ss:$16 sps:$4 sm:$0xff]   ;;  %v6670_v5 = vld [vmem:[%s9078_s1 + $0xd88] ss:$16 sps:$4 sm:$0xff]  }
 0x187   : > { %4225 = vmatpush1.bf16.msra.mxu0 %v6582_v6  ;;  %4594 = vmatpush1.bf16.msra.mxu1 %v6585_v7  ;;  %v6675_v6 = vld [vmem:[%s9078_s1 + $0xda4] ss:$16 sps:$4 sm:$0xff]   ;;  %v6678_v7 = vld [vmem:[%s9078_s1 + $0xdac] ss:$16 sps:$4 sm:$0xff]  }
 0x188   : > { %4226 = vmatprep.subr.bf16.mxu0 %v6590_v56  ;;  %4595 = vmatprep.subr.bf16.mxu1 %v6593_v9  ;;  %v6673_v56 = vld [vmem:[%s9078_s1 + $0xda0] ss:$16 sps:$4 sm:$0xff]   ;;  %v6676_v9 = vld [vmem:[%s9078_s1 + $0xda8] ss:$16 sps:$4 sm:$0xff]  }
 0x18b   : > { %4227 = vmatpush1.bf16.msra.mxu0 %v6588_v12  ;;  %4596 = vmatpush1.bf16.msra.mxu1 %v6591_v13  ;;  %v6681_v12 = vld [vmem:[%s9078_s1 + $0xdc4] ss:$16 sps:$4 sm:$0xff]   ;;  %v6684_v13 = vld [vmem:[%s9078_s1 + $0xdcc] ss:$16 sps:$4 sm:$0xff]  }
 0x18c   : > { %4237 = vmatprep.subr.bf16.mxu0 %v6597_v14  ;;  %4606 = vmatprep.subr.bf16.mxu1 %v6600_v16  ;;  %v6918_v14 = vld.sshfl [vmem:[%s7208_s13 + $0x8] sm:$0x33 pattern:$0x75316420]  ;;  %s242_s13 = sand.u32 1, %s6973_s22  }
 0x18d   : > { %v5253_v16 = vcombine.high %v6918_v14, %v8063_v46  ;;  %v6690_v46 = vld [vmem:[%s9078_s1 + $0xdec] ss:$16 sps:$4 sm:$0xff]   ;;  %v6771_v14 = vld [vmem:[%s9078_s1 + $0xfa4] ss:$16 sps:$4 sm:$0xff]   ;;  %s243_s20 = scalar_lea.vmem [#allocation3], %s242_s13  ;;  %s5162_s29 = scalar_lea.sflag [#allocation4], %s242_s13 }
 0x18e   : > { %4229 = vmatmul.mubr.bf16.vlgmr.msra.gmra.mrb[0].mxu0 %v8124_v8  ;;  %4598 = vmatmul.mubr.bf16.vlgmr.msra.gmra.mrb[0].mxu1 %v8124_v8  ;;  %v6612_v8 = vld [vmem:[%s9078_s1 + $0xc4c] ss:$16 sps:$4 sm:$0xff]   ;;  %s5174_s17 = sshll.u32 %s243_s20, 4  ;;  %s9037_s17 = int_to_ptr.vmem [resolvable:$true] %s5174_s17 }
 0x18f   : > { %4238 = vmatpush1.bf16.msra.mxu0 %v6595_v18  ;;  %4607 = vmatpush1.bf16.msra.mxu1 %v6598_v48  ;;  %v6679_v18 = vld [vmem:[%s9078_s1 + $0xdc0] ss:$16 sps:$4 sm:$0xff]   ;;  %v6682_v48 = vld [vmem:[%s9078_s1 + $0xdc8] ss:$16 sps:$4 sm:$0xff]   ;;  %s6919_s10 = scalar_lea.vmem %s9037_s17, 16  ;;  %p6926_p0 = scmp.lt.s32.totalorder %s9037_s17, %s6924_s11 }
 0x190   : > { %4239 = vmatprep.subr.bf16.mxu0 %v6603_v19  ;;  %4608 = vmatprep.subr.bf16.mxu1 %v6606_v20  ;;  %5254 = vst.sshfl [vmem:[#allocation2 + $0x20] sm:$0x33 pattern:$0x75316420] %v5253_v16  ;;  %v6687_v19 = vld [vmem:[%s9078_s1 + $0xde4] ss:$16 sps:$4 sm:$0xff]   ;;  %v1068_v20 = vcombine.high %v8310_v11, %v8310_v11  ;;  %p6920_p11 = scmp.ne.s32.totalorder %s9037_s17, %s6919_s10  ;;  %p6927_p1 = scmp.lt.s32.totalorder %s6925_s12, %s6919_s10 }
 0x191   : > { %4269 = vmatprep.mubr.bf16.mxu0 %v1083_v21  ;;  %4638 = vmatprep.mubr.bf16.mxu1 %v1083_v21  ;;  %v6685_v21 = vld [vmem:[%s9078_s1 + $0xde0] ss:$16 sps:$4 sm:$0xff]   ;;  %v6696_v11 = vld [vmem:[%s9078_s1 + $0xe0c] ss:$16 sps:$4 sm:$0xff]  }
 0x192   : > { %v6774_v16 = vld [vmem:[%s9078_s1 + $0xfac] ss:$16 sps:$4 sm:$0xff]   ;;  %p6921_p12 = pnand %p6920_p11, %p7058_p5  ;;  %p6928_p2 = por %p6927_p1, %p6926_p0 }
 0x193   : > { %4240 = vmatpush1.bf16.msra.mxu0 %v6601_v23  ;;  %4609 = vmatpush1.bf16.msra.mxu1 %v6604_v24  ;;  %v6688_v23 = vld [vmem:[%s9078_s1 + $0xde8] ss:$16 sps:$4 sm:$0xff]   ;;  %v6693_v24 = vld [vmem:[%s9078_s1 + $0xe04] ss:$16 sps:$4 sm:$0xff]  }
 0x194   : > { %4241 = vmatprep.subr.bf16.mxu0 %v6609_v25  ;;  %4610 = vmatprep.subr.bf16.mxu1 %v6612_v8  ;;  %v8529_v25 = vrot.slane %v1068_v20, %v7282_v22  ;;  %v6691_v8 = vld [vmem:[%s9078_s1 + $0xe00] ss:$16 sps:$4 sm:$0xff]   ;;  %v6702_v22 = vld [vmem:[%s9078_s1 + $0xe2c] ss:$16 sps:$4 sm:$0xff]   ;;  %p6922_p13 = pneg %p6921_p12 }
 0x195   : > { %v6775_v20 = vld [vmem:[%s9078_s1 + $0xfc0] ss:$16 sps:$4 sm:$0xff]  }
 0x196   : > { %p6929_p3 = pnand %p6928_p2, %p6922_p13 }
 0x197   : > { %4242 = vmatpush1.bf16.msra.mxu0 %v6607_v26  ;;  %4611 = vmatpush1.bf16.msra.mxu1 %v6610_v27  ;;  %v6694_v26 = vld [vmem:[%s9078_s1 + $0xe08] ss:$16 sps:$4 sm:$0xff]   ;;  %v6699_v27 = vld [vmem:[%s9078_s1 + $0xe24] ss:$16 sps:$4 sm:$0xff]  }
 0x198   : > { %4243 = vmatprep.subr.bf16.mxu0 %v6615_v28  ;;  %4612 = vmatprep.subr.bf16.mxu1 %v6618_v29  ;;  %v1084_v28 = vcombine.high %v8529_v25, %v8529_v25  ;;  %v6697_v29 = vld [vmem:[%s9078_s1 + $0xe20] ss:$16 sps:$4 sm:$0xff]  }
 0x19b   : > { %4244 = vmatpush1.bf16.msra.mxu0 %v6613_v30  ;;  %4613 = vmatpush1.bf16.msra.mxu1 %v6616_v31  ;;  %v6700_v30 = vld [vmem:[%s9078_s1 + $0xe28] ss:$16 sps:$4 sm:$0xff]   ;;  %v6705_v31 = vld [vmem:[%s9078_s1 + $0xe44] ss:$16 sps:$4 sm:$0xff]  }
 0x19c   : > { %4245 = vmatprep.subr.bf16.mxu0 %v6621_v32  ;;  %4614 = vmatprep.subr.bf16.mxu1 %v6624_v34  ;;  %v6703_v32 = vld [vmem:[%s9078_s1 + $0xe40] ss:$16 sps:$4 sm:$0xff]   ;;  %v6706_v34 = vld [vmem:[%s9078_s1 + $0xe48] ss:$16 sps:$4 sm:$0xff]  }
 0x19f   : > { %4246 = vmatpush1.bf16.msra.mxu0 %v6619_v35  ;;  %4615 = vmatpush1.bf16.msra.mxu1 %v6622_v36  ;;  %v6711_v35 = vld [vmem:[%s9078_s1 + $0xe64] ss:$16 sps:$4 sm:$0xff]   ;;  %v6714_v36 = vld [vmem:[%s9078_s1 + $0xe6c] ss:$16 sps:$4 sm:$0xff]  }
 0x1a0   : > { %4247 = vmatprep.subr.bf16.mxu0 %v6627_v37  ;;  %4616 = vmatprep.subr.bf16.mxu1 %v6630_v38  ;;  %v6709_v37 = vld [vmem:[%s9078_s1 + $0xe60] ss:$16 sps:$4 sm:$0xff]   ;;  %v6712_v38 = vld [vmem:[%s9078_s1 + $0xe68] ss:$16 sps:$4 sm:$0xff]  }
 0x1a3   : > { %4248 = vmatpush1.bf16.msra.mxu0 %v6625_v39  ;;  %4617 = vmatpush1.bf16.msra.mxu1 %v6628_v41  ;;  %v6717_v39 = vld [vmem:[%s9078_s1 + $0xe84] ss:$16 sps:$4 sm:$0xff]   ;;  %v6720_v41 = vld [vmem:[%s9078_s1 + $0xe8c] ss:$16 sps:$4 sm:$0xff]  }
 0x1a4   : > { %4249 = vmatprep.subr.bf16.mxu0 %v6633_v42  ;;  %4618 = vmatprep.subr.bf16.mxu1 %v6636_v43  ;;  %v6715_v42 = vld [vmem:[%s9078_s1 + $0xe80] ss:$16 sps:$4 sm:$0xff]   ;;  %v6718_v43 = vld [vmem:[%s9078_s1 + $0xe88] ss:$16 sps:$4 sm:$0xff]  }
 0x1a7   : > { %4250 = vmatpush1.bf16.msra.mxu0 %v6631_v44  ;;  %4619 = vmatpush1.bf16.msra.mxu1 %v6634_v45  ;;  %v6723_v44 = vld [vmem:[%s9078_s1 + $0xea4] ss:$16 sps:$4 sm:$0xff]   ;;  %v6726_v45 = vld [vmem:[%s9078_s1 + $0xeac] ss:$16 sps:$4 sm:$0xff]  }
 0x1a8   : > { %4251 = vmatprep.subr.bf16.mxu0 %v6639_v47  ;;  %4620 = vmatprep.subr.bf16.mxu1 %v6642_v33  ;;  %v6721_v47 = vld [vmem:[%s9078_s1 + $0xea0] ss:$16 sps:$4 sm:$0xff]   ;;  %v6724_v33 = vld [vmem:[%s9078_s1 + $0xea8] ss:$16 sps:$4 sm:$0xff]  }
 0x1ab   : > { %4252 = vmatpush1.bf16.msra.mxu0 %v6637_v49  ;;  %4621 = vmatpush1.bf16.msra.mxu1 %v6640_v50  ;;  %v6729_v49 = vld [vmem:[%s9078_s1 + $0xec4] ss:$16 sps:$4 sm:$0xff]   ;;  %v6732_v50 = vld [vmem:[%s9078_s1 + $0xecc] ss:$16 sps:$4 sm:$0xff]  }
 0x1ac   : > { %4253 = vmatprep.subr.bf16.mxu0 %v6645_v52  ;;  %4622 = vmatprep.subr.bf16.mxu1 %v6648_v53  ;;  %v6727_v52 = vld [vmem:[%s9078_s1 + $0xec0] ss:$16 sps:$4 sm:$0xff]   ;;  %v6730_v53 = vld [vmem:[%s9078_s1 + $0xec8] ss:$16 sps:$4 sm:$0xff]  }
 0x1af   : > { %4254 = vmatpush1.bf16.msra.mxu0 %v6643_v54  ;;  %4623 = vmatpush1.bf16.msra.mxu1 %v6646_v55  ;;  %v6735_v54 = vld [vmem:[%s9078_s1 + $0xee4] ss:$16 sps:$4 sm:$0xff]   ;;  %v6738_v55 = vld [vmem:[%s9078_s1 + $0xeec] ss:$16 sps:$4 sm:$0xff]  }
 0x1b0   : > { %4255 = vmatprep.subr.bf16.mxu0 %v6651_v57  ;;  %4624 = vmatprep.subr.bf16.mxu1 %v6654_v58  ;;  %v6733_v57 = vld [vmem:[%s9078_s1 + $0xee0] ss:$16 sps:$4 sm:$0xff]   ;;  %v6736_v58 = vld [vmem:[%s9078_s1 + $0xee8] ss:$16 sps:$4 sm:$0xff]  }
 0x1b3   : > { %4256 = vmatpush1.bf16.msra.mxu0 %v6649_v59  ;;  %4625 = vmatpush1.bf16.msra.mxu1 %v6652_v60  ;;  %v6741_v59 = vld [vmem:[%s9078_s1 + $0xf04] ss:$16 sps:$4 sm:$0xff]   ;;  %v6744_v60 = vld [vmem:[%s9078_s1 + $0xf0c] ss:$16 sps:$4 sm:$0xff]  }
 0x1b4   : > { %4257 = vmatprep.subr.bf16.mxu0 %v6657_v61  ;;  %4626 = vmatprep.subr.bf16.mxu1 %v6660_v62  ;;  %v6739_v61 = vld [vmem:[%s9078_s1 + $0xf00] ss:$16 sps:$4 sm:$0xff]   ;;  %v6742_v62 = vld [vmem:[%s9078_s1 + $0xf08] ss:$16 sps:$4 sm:$0xff]  }
 0x1b7   : > { %4258 = vmatpush1.bf16.msra.mxu0 %v6655_v63  ;;  %4627 = vmatpush1.bf16.msra.mxu1 %v6658_v1  ;;  %v6747_v63 = vld [vmem:[%s9078_s1 + $0xf24] ss:$16 sps:$4 sm:$0xff]   ;;  %v6750_v1 = vld [vmem:[%s9078_s1 + $0xf2c] ss:$16 sps:$4 sm:$0xff]  }
 0x1b8   : > { %4259 = vmatprep.subr.bf16.mxu0 %v6663_v2  ;;  %4628 = vmatprep.subr.bf16.mxu1 %v6666_v3  ;;  %v6745_v2 = vld [vmem:[%s9078_s1 + $0xf20] ss:$16 sps:$4 sm:$0xff]   ;;  %v6748_v3 = vld [vmem:[%s9078_s1 + $0xf28] ss:$16 sps:$4 sm:$0xff]  }
 0x1bb   : > { %4260 = vmatpush1.bf16.msra.mxu0 %v6661_v0  ;;  %4629 = vmatpush1.bf16.msra.mxu1 %v6664_v4  ;;  %v6753_v0 = vld [vmem:[%s9078_s1 + $0xf44] ss:$16 sps:$4 sm:$0xff]   ;;  %v6756_v4 = vld [vmem:[%s9078_s1 + $0xf4c] ss:$16 sps:$4 sm:$0xff]  }
 0x1bc   : > { %4261 = vmatprep.subr.bf16.mxu0 %v6669_v40  ;;  %4630 = vmatprep.subr.bf16.mxu1 %v6672_v10  ;;  %v6751_v40 = vld [vmem:[%s9078_s1 + $0xf40] ss:$16 sps:$4 sm:$0xff]   ;;  %v6754_v10 = vld [vmem:[%s9078_s1 + $0xf48] ss:$16 sps:$4 sm:$0xff]  }
 0x1bf   : > { %4262 = vmatpush1.bf16.msra.mxu0 %v6667_v51  ;;  %4631 = vmatpush1.bf16.msra.mxu1 %v6670_v5  ;;  %v6759_v51 = vld [vmem:[%s9078_s1 + $0xf64] ss:$16 sps:$4 sm:$0xff]   ;;  %v6762_v5 = vld [vmem:[%s9078_s1 + $0xf6c] ss:$16 sps:$4 sm:$0xff]  }
 0x1c0   : > { %4263 = vmatprep.subr.bf16.mxu0 %v6675_v6  ;;  %4632 = vmatprep.subr.bf16.mxu1 %v6678_v7  ;;  %v6757_v6 = vld [vmem:[%s9078_s1 + $0xf60] ss:$16 sps:$4 sm:$0xff]   ;;  %v6760_v7 = vld [vmem:[%s9078_s1 + $0xf68] ss:$16 sps:$4 sm:$0xff]  }
 0x1c3   : > { %4264 = vmatpush1.bf16.msra.mxu0 %v6673_v56  ;;  %4633 = vmatpush1.bf16.msra.mxu1 %v6676_v9  ;;  %v6765_v56 = vld [vmem:[%s9078_s1 + $0xf84] ss:$16 sps:$4 sm:$0xff]   ;;  %v6768_v9 = vld [vmem:[%s9078_s1 + $0xf8c] ss:$16 sps:$4 sm:$0xff]  }
 0x1c4   : > { %4265 = vmatprep.subr.bf16.mxu0 %v6681_v12  ;;  %4634 = vmatprep.subr.bf16.mxu1 %v6684_v13  ;;  %v6763_v12 = vld [vmem:[%s9078_s1 + $0xf80] ss:$16 sps:$4 sm:$0xff]   ;;  %v6766_v13 = vld [vmem:[%s9078_s1 + $0xf88] ss:$16 sps:$4 sm:$0xff]  }
 0x1c7   : > { %4266 = vmatpush1.bf16.msra.mxu0 %v6679_v18  ;;  %4635 = vmatpush1.bf16.msra.mxu1 %v6682_v48  ;;  %v6769_v18 = vld [vmem:[%s9078_s1 + $0xfa0] ss:$16 sps:$4 sm:$0xff]   ;;  %v6772_v48 = vld [vmem:[%s9078_s1 + $0xfa8] ss:$16 sps:$4 sm:$0xff]  }
 0x1c8   : > { %4267 = vmatprep.subr.bf16.mxu0 %v6687_v19  ;;  %4636 = vmatprep.subr.bf16.mxu1 %v6690_v46  ;;  %v6777_v19 = vld [vmem:[%s9078_s1 + $0xfc4] ss:$16 sps:$4 sm:$0xff]   ;;  %v6780_v46 = vld [vmem:[%s9078_s1 + $0xfcc] ss:$16 sps:$4 sm:$0xff]  }
 0x1cb   : > { %4268 = vmatpush1.bf16.msra.mxu0 %v6685_v21  ;;  %4637 = vmatpush1.bf16.msra.mxu1 %v6688_v23  ;;  %v6778_v21 = vld [vmem:[%s9078_s1 + $0xfc8] ss:$16 sps:$4 sm:$0xff]   ;;  %v6783_v23 = vld [vmem:[%s9078_s1 + $0xfe4] ss:$16 sps:$4 sm:$0xff]  }
 0x1cc   : > { %4278 = vmatprep.subr.bf16.mxu0 %v6693_v24  ;;  %4647 = vmatprep.subr.bf16.mxu1 %v6696_v11  ;;  %v6786_v24 = vld [vmem:[%s9078_s1 + $0xfec] ss:$16 sps:$4 sm:$0xff]   ;;  %v6781_v11 = vld [vmem:[%s9078_s1 + $0xfe0] ss:$16 sps:$4 sm:$0xff]  }
 0x1ce   : > { %4270 = vmatmul.mubr.bf16.vlgmr.msra.gmra.mrb[0].mxu0 %v8326_v17  ;;  %4639 = vmatmul.mubr.bf16.vlgmr.msra.gmra.mrb[0].mxu1 %v8326_v17  ;;  %v6708_v17 = vld [vmem:[%s9078_s1 + $0xe4c] ss:$16 sps:$4 sm:$0xff]  }
 0x1cf   : > { %4279 = vmatpush1.bf16.msra.mxu0 %v6691_v8  ;;  %4648 = vmatpush1.bf16.msra.mxu1 %v6694_v26  ;;  %v6784_v8 = vld [vmem:[%s9078_s1 + $0xfe8] ss:$16 sps:$4 sm:$0xff]   ;;  %v6790_v26 = vld [vmem:[%s9078_s1 + $0x1004] ss:$16 sps:$4 sm:$0xff]  }
 0x1d0   : > { %4280 = vmatprep.subr.bf16.mxu0 %v6699_v27  ;;  %4649 = vmatprep.subr.bf16.mxu1 %v6702_v22  ;;  %v6793_v27 = vld [vmem:[%s9078_s1 + $0x100c] ss:$16 sps:$4 sm:$0xff]   ;;  %v8727_v22 = vld.sshfl [vmem:[#allocation2 + $0x20] sm:$0x33 pattern:$0x76325410] }
 0x1d1   : > { %4310 = vmatprep.mubr.bf16.mxu0 %v1084_v28  ;;  %4679 = vmatprep.mubr.bf16.mxu1 %v1084_v28  ;;  %v6788_v28 = vld [vmem:[%s9078_s1 + $0x1000] ss:$16 sps:$4 sm:$0xff]  }
 0x1d3   : > { %4281 = vmatpush1.bf16.msra.mxu0 %v6697_v29  ;;  %4650 = vmatpush1.bf16.msra.mxu1 %v6700_v30  ;;  %v6791_v29 = vld [vmem:[%s9078_s1 + $0x1008] ss:$16 sps:$4 sm:$0xff]   ;;  %v6796_v30 = vld [vmem:[%s9078_s1 + $0x1024] ss:$16 sps:$4 sm:$0xff]  }
 0x1d4   : > { %4282 = vmatprep.subr.bf16.mxu0 %v6705_v31  ;;  %4651 = vmatprep.subr.bf16.mxu1 %v6708_v17  ;;  %v6799_v31 = vld [vmem:[%s9078_s1 + $0x102c] ss:$16 sps:$4 sm:$0xff]   ;;  %v1092_v17 = vcombine.high %v8727_v22, %v8727_v22 }
 0x1d7   : > { %4283 = vmatpush1.bf16.msra.mxu0 %v6703_v32  ;;  %4652 = vmatpush1.bf16.msra.mxu1 %v6706_v34  ;;  %v6794_v32 = vld [vmem:[%s9078_s1 + $0x1020] ss:$16 sps:$4 sm:$0xff]   ;;  %v6797_v34 = vld [vmem:[%s9078_s1 + $0x1028] ss:$16 sps:$4 sm:$0xff]  }
 0x1d8   : > { %4284 = vmatprep.subr.bf16.mxu0 %v6711_v35  ;;  %4653 = vmatprep.subr.bf16.mxu1 %v6714_v36  ;;  %v6802_v35 = vld [vmem:[%s9078_s1 + $0x1044] ss:$16 sps:$4 sm:$0xff]   ;;  %v6800_v36 = vld [vmem:[%s9078_s1 + $0x1040] ss:$16 sps:$4 sm:$0xff]  }
 0x1db   : > { %4285 = vmatpush1.bf16.msra.mxu0 %v6709_v37  ;;  %4654 = vmatpush1.bf16.msra.mxu1 %v6712_v38  ;;  %v6803_v37 = vld [vmem:[%s9078_s1 + $0x1048] ss:$16 sps:$4 sm:$0xff]   ;;  %v6808_v38 = vld [vmem:[%s9078_s1 + $0x1064] ss:$16 sps:$4 sm:$0xff]  }
 0x1dc   : > { %4286 = vmatprep.subr.bf16.mxu0 %v6717_v39  ;;  %4655 = vmatprep.subr.bf16.mxu1 %v6720_v41  ;;  %v6811_v39 = vld [vmem:[%s9078_s1 + $0x106c] ss:$16 sps:$4 sm:$0xff]   ;;  %v6806_v41 = vld [vmem:[%s9078_s1 + $0x1060] ss:$16 sps:$4 sm:$0xff]  }
 0x1df   : > { %4287 = vmatpush1.bf16.msra.mxu0 %v6715_v42  ;;  %4656 = vmatpush1.bf16.msra.mxu1 %v6718_v43  ;;  %v6809_v42 = vld [vmem:[%s9078_s1 + $0x1068] ss:$16 sps:$4 sm:$0xff]   ;;  %v6814_v43 = vld [vmem:[%s9078_s1 + $0x1084] ss:$16 sps:$4 sm:$0xff]  }
 0x1e0   : > { %4288 = vmatprep.subr.bf16.mxu0 %v6723_v44  ;;  %4657 = vmatprep.subr.bf16.mxu1 %v6726_v45  ;;  %v6817_v44 = vld [vmem:[%s9078_s1 + $0x108c] ss:$16 sps:$4 sm:$0xff]   ;;  %v6812_v45 = vld [vmem:[%s9078_s1 + $0x1080] ss:$16 sps:$4 sm:$0xff]  }
 0x1e3   : > { %4289 = vmatpush1.bf16.msra.mxu0 %v6721_v47  ;;  %4658 = vmatpush1.bf16.msra.mxu1 %v6724_v33  ;;  %v6815_v47 = vld [vmem:[%s9078_s1 + $0x1088] ss:$16 sps:$4 sm:$0xff]   ;;  %v6820_v33 = vld [vmem:[%s9078_s1 + $0x10a4] ss:$16 sps:$4 sm:$0xff]  }
 0x1e4   : > { %4290 = vmatprep.subr.bf16.mxu0 %v6729_v49  ;;  %4659 = vmatprep.subr.bf16.mxu1 %v6732_v50  ;;  %v6823_v49 = vld [vmem:[%s9078_s1 + $0x10ac] ss:$16 sps:$4 sm:$0xff]   ;;  %v6818_v50 = vld [vmem:[%s9078_s1 + $0x10a0] ss:$16 sps:$4 sm:$0xff]  }
 0x1e7   : > { %4291 = vmatpush1.bf16.msra.mxu0 %v6727_v52  ;;  %4660 = vmatpush1.bf16.msra.mxu1 %v6730_v53  ;;  %v6821_v52 = vld [vmem:[%s9078_s1 + $0x10a8] ss:$16 sps:$4 sm:$0xff]   ;;  %v6826_v53 = vld [vmem:[%s9078_s1 + $0x10c4] ss:$16 sps:$4 sm:$0xff]  }
 0x1e8   : > { %4292 = vmatprep.subr.bf16.mxu0 %v6735_v54  ;;  %4661 = vmatprep.subr.bf16.mxu1 %v6738_v55  ;;  %v6829_v54 = vld [vmem:[%s9078_s1 + $0x10cc] ss:$16 sps:$4 sm:$0xff]   ;;  %v6824_v55 = vld [vmem:[%s9078_s1 + $0x10c0] ss:$16 sps:$4 sm:$0xff]  }
 0x1eb   : > { %4293 = vmatpush1.bf16.msra.mxu0 %v6733_v57  ;;  %4662 = vmatpush1.bf16.msra.mxu1 %v6736_v58  ;;  %v6827_v57 = vld [vmem:[%s9078_s1 + $0x10c8] ss:$16 sps:$4 sm:$0xff]   ;;  %v6832_v58 = vld [vmem:[%s9078_s1 + $0x10e4] ss:$16 sps:$4 sm:$0xff]  }
 0x1ec   : > { %4294 = vmatprep.subr.bf16.mxu0 %v6741_v59  ;;  %4663 = vmatprep.subr.bf16.mxu1 %v6744_v60  ;;  %v6835_v59 = vld [vmem:[%s9078_s1 + $0x10ec] ss:$16 sps:$4 sm:$0xff]   ;;  %v6830_v60 = vld [vmem:[%s9078_s1 + $0x10e0] ss:$16 sps:$4 sm:$0xff]  }
 0x1ef   : > { %4295 = vmatpush1.bf16.msra.mxu0 %v6739_v61  ;;  %4664 = vmatpush1.bf16.msra.mxu1 %v6742_v62  ;;  %v6833_v61 = vld [vmem:[%s9078_s1 + $0x10e8] ss:$16 sps:$4 sm:$0xff]   ;;  %v6838_v62 = vld [vmem:[%s9078_s1 + $0x1104] ss:$16 sps:$4 sm:$0xff]  }
 0x1f0   : > { %4296 = vmatprep.subr.bf16.mxu0 %v6747_v63  ;;  %4665 = vmatprep.subr.bf16.mxu1 %v6750_v1  ;;  %v6841_v63 = vld [vmem:[%s9078_s1 + $0x110c] ss:$16 sps:$4 sm:$0xff]   ;;  %v6836_v1 = vld [vmem:[%s9078_s1 + $0x1100] ss:$16 sps:$4 sm:$0xff]  }
 0x1f3   : > { %4297 = vmatpush1.bf16.msra.mxu0 %v6745_v2  ;;  %4666 = vmatpush1.bf16.msra.mxu1 %v6748_v3  ;;  %v6839_v2 = vld [vmem:[%s9078_s1 + $0x1108] ss:$16 sps:$4 sm:$0xff]   ;;  %v6844_v3 = vld [vmem:[%s9078_s1 + $0x1124] ss:$16 sps:$4 sm:$0xff]  }
 0x1f4   : > { %4298 = vmatprep.subr.bf16.mxu0 %v6753_v0  ;;  %4667 = vmatprep.subr.bf16.mxu1 %v6756_v4  ;;  %v6847_v0 = vld [vmem:[%s9078_s1 + $0x112c] ss:$16 sps:$4 sm:$0xff]   ;;  %v6842_v4 = vld [vmem:[%s9078_s1 + $0x1120] ss:$16 sps:$4 sm:$0xff]  }
 0x1f7   : > { %4299 = vmatpush1.bf16.msra.mxu0 %v6751_v40  ;;  %4668 = vmatpush1.bf16.msra.mxu1 %v6754_v10  ;;  %v6845_v40 = vld [vmem:[%s9078_s1 + $0x1128] ss:$16 sps:$4 sm:$0xff]   ;;  %v6850_v10 = vld [vmem:[%s9078_s1 + $0x1144] ss:$16 sps:$4 sm:$0xff]  }
 0x1f8   : > { %4300 = vmatprep.subr.bf16.mxu0 %v6759_v51  ;;  %4669 = vmatprep.subr.bf16.mxu1 %v6762_v5  ;;  %v6853_v51 = vld [vmem:[%s9078_s1 + $0x114c] ss:$16 sps:$4 sm:$0xff]   ;;  %v6848_v5 = vld [vmem:[%s9078_s1 + $0x1140] ss:$16 sps:$4 sm:$0xff]  }
 0x1fb   : > { %4301 = vmatpush1.bf16.msra.mxu0 %v6757_v6  ;;  %4670 = vmatpush1.bf16.msra.mxu1 %v6760_v7  ;;  %v6851_v6 = vld [vmem:[%s9078_s1 + $0x1148] ss:$16 sps:$4 sm:$0xff]   ;;  %v6856_v7 = vld [vmem:[%s9078_s1 + $0x1164] ss:$16 sps:$4 sm:$0xff]  }
 0x1fc   : > { %4302 = vmatprep.subr.bf16.mxu0 %v6765_v56  ;;  %4671 = vmatprep.subr.bf16.mxu1 %v6768_v9  ;;  %v6859_v56 = vld [vmem:[%s9078_s1 + $0x116c] ss:$16 sps:$4 sm:$0xff]   ;;  %v6854_v9 = vld [vmem:[%s9078_s1 + $0x1160] ss:$16 sps:$4 sm:$0xff]  }
 0x1ff   : > { %4303 = vmatpush1.bf16.msra.mxu0 %v6763_v12  ;;  %4672 = vmatpush1.bf16.msra.mxu1 %v6766_v13  ;;  %v6857_v12 = vld [vmem:[%s9078_s1 + $0x1168] ss:$16 sps:$4 sm:$0xff]   ;;  %v6862_v13 = vld [vmem:[%s9078_s1 + $0x1184] ss:$16 sps:$4 sm:$0xff]  }
 0x200   : > { %4304 = vmatprep.subr.bf16.mxu0 %v6771_v14  ;;  %4673 = vmatprep.subr.bf16.mxu1 %v6774_v16  ;;  %v6865_v14 = vld [vmem:[%s9078_s1 + $0x118c] ss:$16 sps:$4 sm:$0xff]   ;;  %v6860_v16 = vld [vmem:[%s9078_s1 + $0x1180] ss:$16 sps:$4 sm:$0xff]  }
 0x203   : > { %4305 = vmatpush1.bf16.msra.mxu0 %v6769_v18  ;;  %4674 = vmatpush1.bf16.msra.mxu1 %v6772_v48  ;;  %v6863_v18 = vld [vmem:[%s9078_s1 + $0x1188] ss:$16 sps:$4 sm:$0xff]   ;;  %v6868_v48 = vld [vmem:[%s9078_s1 + $0x11a4] ss:$16 sps:$4 sm:$0xff]  }
 0x204   : > { %4306 = vmatprep.subr.bf16.mxu0 %v6777_v19  ;;  %4675 = vmatprep.subr.bf16.mxu1 %v6780_v46  ;;  %v6871_v19 = vld [vmem:[%s9078_s1 + $0x11ac] ss:$16 sps:$4 sm:$0xff]   ;;  %v6866_v46 = vld [vmem:[%s9078_s1 + $0x11a0] ss:$16 sps:$4 sm:$0xff]  }
 0x207   : > { %4307 = vmatpush1.bf16.msra.mxu0 %v6775_v20  ;;  %4676 = vmatpush1.bf16.msra.mxu1 %v6778_v21  ;;  %v6869_v20 = vld [vmem:[%s9078_s1 + $0x11a8] ss:$16 sps:$4 sm:$0xff]   ;;  %v6874_v21 = vld [vmem:[%s9078_s1 + $0x11c4] ss:$16 sps:$4 sm:$0xff]  }
 0x208   : > { %4308 = vmatprep.subr.bf16.mxu0 %v6783_v23  ;;  %4677 = vmatprep.subr.bf16.mxu1 %v6786_v24  ;;  %v6877_v23 = vld [vmem:[%s9078_s1 + $0x11cc] ss:$16 sps:$4 sm:$0xff]   ;;  %v6872_v24 = vld [vmem:[%s9078_s1 + $0x11c0] ss:$16 sps:$4 sm:$0xff]  }
 0x20b   : > { %4309 = vmatpush1.bf16.msra.mxu0 %v6781_v11  ;;  %4678 = vmatpush1.bf16.msra.mxu1 %v6784_v8  ;;  %v6875_v11 = vld [vmem:[%s9078_s1 + $0x11c8] ss:$16 sps:$4 sm:$0xff]   ;;  %v6880_v8 = vld [vmem:[%s9078_s1 + $0x11e4] ss:$16 sps:$4 sm:$0xff]  }
 0x20c   : > { %4319 = vmatprep.subr.bf16.mxu0 %v6790_v26  ;;  %4688 = vmatprep.subr.bf16.mxu1 %v6793_v27  ;;  %v6883_v26 = vld [vmem:[%s9078_s1 + $0x11ec] ss:$16 sps:$4 sm:$0xff]   ;;  %v6878_v27 = vld [vmem:[%s9078_s1 + $0x11e0] ss:$16 sps:$4 sm:$0xff]  }
 0x20e   : > { %4311 = vmatmul.mubr.bf16.vlgmr.msra.gmra.mrb[0].mxu0 %v8529_v25  ;;  %4680 = vmatmul.mubr.bf16.vlgmr.msra.gmra.mrb[0].mxu1 %v8529_v25  ;;  %v6805_v25 = vld [vmem:[%s9078_s1 + $0x104c] ss:$16 sps:$4 sm:$0xff]  }
 0x20f   : > { %4320 = vmatpush1.bf16.msra.mxu0 %v6788_v28  ;;  %4689 = vmatpush1.bf16.msra.mxu1 %v6791_v29  ;;  %v6881_v28 = vld [vmem:[%s9078_s1 + $0x11e8] ss:$16 sps:$4 sm:$0xff]   ;;  %v6884_v29 = vld [vmem:[%s9081_s4 + $0x40] sm:$0xff]  }
 0x210   : > { %4321 = vmatprep.subr.bf16.mxu0 %v6796_v30  ;;  %4690 = vmatprep.subr.bf16.mxu1 %v6799_v31  ;;  %v6885_v30 = vld [vmem:[%s9081_s4 + $0xc0] sm:$0xff]  }
 0x211   : > { %4351 = vmatprep.mubr.bf16.mxu0 %v1092_v17  ;;  %4720 = vmatprep.mubr.bf16.mxu1 %v1092_v17  ;;  %v6886_v31 = vld [vmem:[%s9081_s4] sm:$0xff]  }
 0x212   : > { %v6887_v17 = vld [vmem:[%s9081_s4 + $0x80] sm:$0xff]  }
 0x213   : > { %4322 = vmatpush1.bf16.msra.mxu0 %v6794_v32  ;;  %4691 = vmatpush1.bf16.msra.mxu1 %v6797_v34  ;;  %v6888_v32 = vld [vmem:[%s9081_s4 + $0x48] sm:$0xff]  }
 0x214   : > { %4323 = vmatprep.subr.bf16.mxu0 %v6802_v35  ;;  %4692 = vmatprep.subr.bf16.mxu1 %v6805_v25  ;;  %v6889_v34 = vld [vmem:[%s9081_s4 + $0xc8] sm:$0xff]  }
 0x215   : > { %v6890_v35 = vld [vmem:[%s9081_s4 + $0x8] sm:$0xff]  }
 0x216   : > { %v6891_v25 = vld [vmem:[%s9081_s4 + $0x88] sm:$0xff]  }
 0x217   : > { %4324 = vmatpush1.bf16.msra.mxu0 %v6800_v36  ;;  %4693 = vmatpush1.bf16.msra.mxu1 %v6803_v37  ;;  %v6892_v36 = vld [vmem:[%s9081_s4 + $0x50] sm:$0xff]  }
 0x218   : > { %4325 = vmatprep.subr.bf16.mxu0 %v6808_v38  ;;  %4694 = vmatprep.subr.bf16.mxu1 %v6811_v39  ;;  %v6894_v37 = vld [vmem:[%s9081_s4 + $0x10] sm:$0xff]   ;;  %v6896_v39 = vld [vmem:[%s9081_s4 + $0x58] sm:$0xff]  }
 0x219   : > { %v6895_v38 = vld [vmem:[%s9081_s4 + $0x90] sm:$0xff]  }
 0x21b   : > { %4326 = vmatpush1.bf16.msra.mxu0 %v6806_v41  ;;  %4695 = vmatpush1.bf16.msra.mxu1 %v6809_v42  ;;  %v6897_v41 = vld [vmem:[%s9081_s4 + $0xd8] sm:$0xff]  }
 0x21c   : > { %4327 = vmatprep.subr.bf16.mxu0 %v6814_v43  ;;  %4696 = vmatprep.subr.bf16.mxu1 %v6817_v44  ;;  %v6898_v42 = vld [vmem:[%s9081_s4 + $0x18] sm:$0xff]   ;;  %v6900_v44 = vld [vmem:[%s9081_s4 + $0x60] sm:$0xff]  }
 0x21d   : > { %v6899_v43 = vld [vmem:[%s9081_s4 + $0x98] sm:$0xff]  }
 0x21f   : > { %4328 = vmatpush1.bf16.msra.mxu0 %v6812_v45  ;;  %4697 = vmatpush1.bf16.msra.mxu1 %v6815_v47  ;;  %v6901_v45 = vld [vmem:[%s9081_s4 + $0xe0] sm:$0xff]  }
 0x220   : > { %4329 = vmatprep.subr.bf16.mxu0 %v6820_v33  ;;  %4698 = vmatprep.subr.bf16.mxu1 %v6823_v49  ;;  %v6902_v47 = vld [vmem:[%s9081_s4 + $0x20] sm:$0xff]   ;;  %v6904_v49 = vld [vmem:[%s9081_s4 + $0x68] sm:$0xff]  }
 0x221   : > { %v6903_v33 = vld [vmem:[%s9081_s4 + $0xa0] sm:$0xff]  }
 0x223   : > { %4330 = vmatpush1.bf16.msra.mxu0 %v6818_v50  ;;  %4699 = vmatpush1.bf16.msra.mxu1 %v6821_v52  ;;  %v6905_v50 = vld [vmem:[%s9081_s4 + $0xe8] sm:$0xff]  }
 0x224   : > { %4331 = vmatprep.subr.bf16.mxu0 %v6826_v53  ;;  %4700 = vmatprep.subr.bf16.mxu1 %v6829_v54  ;;  %v6906_v52 = vld [vmem:[%s9081_s4 + $0x28] sm:$0xff]   ;;  %v6908_v54 = vld [vmem:[%s9081_s4 + $0x70] sm:$0xff]  }
 0x225   : > { %v6907_v53 = vld [vmem:[%s9081_s4 + $0xa8] sm:$0xff]  }
 0x227   : > { %4332 = vmatpush1.bf16.msra.mxu0 %v6824_v55  ;;  %4701 = vmatpush1.bf16.msra.mxu1 %v6827_v57  ;;  %v6909_v55 = vld [vmem:[%s9081_s4 + $0xf0] sm:$0xff]  }
 0x228   : > { %4333 = vmatprep.subr.bf16.mxu0 %v6832_v58  ;;  %4702 = vmatprep.subr.bf16.mxu1 %v6835_v59  ;;  %v6910_v57 = vld [vmem:[%s9081_s4 + $0x30] sm:$0xff]   ;;  %v6912_v59 = vld [vmem:[%s9081_s4 + $0x78] sm:$0xff]  }
 0x229   : > { %v6911_v58 = vld [vmem:[%s9081_s4 + $0xb0] sm:$0xff]  }
 0x22b   : > { %4334 = vmatpush1.bf16.msra.mxu0 %v6830_v60  ;;  %4703 = vmatpush1.bf16.msra.mxu1 %v6833_v61  ;;  %v6913_v60 = vld [vmem:[%s9081_s4 + $0xf8] sm:$0xff]  }
 0x22c   : > { %4335 = vmatprep.subr.bf16.mxu0 %v6838_v62  ;;  %4704 = vmatprep.subr.bf16.mxu1 %v6841_v63  ;;  %v6914_v61 = vld [vmem:[%s9081_s4 + $0x38] sm:$0xff]   ;;  %v4733_v63 = vsub.s32 0, %v7267_v15 }
 0x22d   : > { %v6915_v62 = vld [vmem:[%s9081_s4 + $0xb8] sm:$0xff]  }
 0x22f   : > { %4336 = vmatpush1.bf16.msra.mxu0 %v6836_v1  ;;  %4705 = vmatpush1.bf16.msra.mxu1 %v6839_v2  ;;  %v4741_v1 = vsub.s32 2, %v7267_v15  ;;  %v4729_v2 = vld [vmem:[%s9079_s2] sm:$0xf] }
 0x230   : > { %4337 = vmatprep.subr.bf16.mxu0 %v6844_v3  ;;  %4706 = vmatprep.subr.bf16.mxu1 %v6847_v0  ;;  %v4737_v3 = vsub.s32 1, %v7267_v15  ;;  %v4745_v0 = vsub.s32 3, %v7267_v15 }
 0x233   : > { %4338 = vmatpush1.bf16.msra.mxu0 %v6842_v4  ;;  %4707 = vmatpush1.bf16.msra.mxu1 %v6845_v40  ;;  %v4755_v4 = vld [vmem:[%s9080_s3] sm:$0xf]  ;;  %v4734_v40 = vrot.slane %v4729_v2, %v4733_v63 }
 0x234   : > { %4339 = vmatprep.subr.bf16.mxu0 %v6850_v10  ;;  %4708 = vmatprep.subr.bf16.mxu1 %v6853_v51  ;;  %v4742_v10 = vrot.slane %v4729_v2, %v4741_v1  ;;  %v4738_v51 = vrot.slane %v4729_v2, %v4737_v3 }
 0x237   : > { %4340 = vmatpush1.bf16.msra.mxu0 %v6848_v5  ;;  %4709 = vmatpush1.bf16.msra.mxu1 %v6851_v6  ;;  %v4746_v5 = vrot.slane %v4729_v2, %v4745_v0  ;;  %v4760_v6 = vrot.slane %v4755_v4, %v4733_v63 }
 0x238   : > { %4341 = vmatprep.subr.bf16.mxu0 %v6856_v7  ;;  %4710 = vmatprep.subr.bf16.mxu1 %v6859_v56  ;;  %v4768_v7 = vrot.slane %v4755_v4, %v4741_v1 }
 0x23b   : > { %4342 = vmatpush1.bf16.msra.mxu0 %v6854_v9  ;;  %4711 = vmatpush1.bf16.msra.mxu1 %v6857_v12  ;;  %v4764_v12 = vrot.slane %v4755_v4, %v4737_v3 }
 0x23c   : > { %4343 = vmatprep.subr.bf16.mxu0 %v6862_v13  ;;  %4712 = vmatprep.subr.bf16.mxu1 %v6865_v14  ;;  %v4772_v13 = vrot.slane %v4755_v4, %v4745_v0 }
 0x23f   : > { %4344 = vmatpush1.bf16.msra.mxu0 %v6860_v16  ;;  %4713 = vmatpush1.bf16.msra.mxu1 %v6863_v18 }
 0x240   : > { %4345 = vmatprep.subr.bf16.mxu0 %v6868_v48  ;;  %4714 = vmatprep.subr.bf16.mxu1 %v6871_v19 }
 0x243   : > { %4346 = vmatpush1.bf16.msra.mxu0 %v6866_v46  ;;  %4715 = vmatpush1.bf16.msra.mxu1 %v6869_v20 }
 0x244   : > { %4347 = vmatprep.subr.bf16.mxu0 %v6874_v21  ;;  %4716 = vmatprep.subr.bf16.mxu1 %v6877_v23 }
 0x247   : > { %4348 = vmatpush1.bf16.msra.mxu0 %v6872_v24  ;;  %4717 = vmatpush1.bf16.msra.mxu1 %v6875_v11 }
 0x248   : > { %4349 = vmatprep.subr.bf16.mxu0 %v6880_v8  ;;  %4718 = vmatprep.subr.bf16.mxu1 %v6883_v26 }
 0x24b   : > { %4350 = vmatpush1.bf16.msra.mxu0 %v6878_v27  ;;  %4719 = vmatpush1.bf16.msra.mxu1 %v6881_v28 }
 0x24c   : > { %5868 = vmatprep.subr.bf16.mxu0 %v6884_v29  ;;  %5890 = vmatprep.subr.bf16.mxu1 %v6885_v30 }
 0x24e   : > { %4352 = vmatmul.mubr.bf16.vlgmr.msra.gmra.mrb[0].mxu0 %v8727_v22  ;;  %4721 = vmatmul.mubr.bf16.vlgmr.msra.gmra.mrb[0].mxu1 %v8727_v22  ;;  %v6893_v22 = vld [vmem:[%s9081_s4 + $0xd0] sm:$0xff]  }
 0x24f   : > { %5869 = vmatpush3.bf16.msra.mxu0 %v6886_v31  ;;  %5891 = vmatpush3.bf16.msra.mxu1 %v6887_v17 }
 0x250   : > { %5870 = vmatprep.subr.bf16.mxu0 %v6888_v32  ;;  %5892 = vmatprep.subr.bf16.mxu1 %v6889_v34 }
 0x253   : > { %5871 = vmatpush3.bf16.msra.mxu0 %v6890_v35  ;;  %5893 = vmatpush3.bf16.msra.mxu1 %v6891_v25 }
 0x254   : > { %5872 = vmatprep.subr.bf16.mxu0 %v6892_v36  ;;  %5894 = vmatprep.subr.bf16.mxu1 %v6893_v22 }
 0x257   : > { %5873 = vmatpush3.bf16.msra.mxu0 %v6894_v37  ;;  %5895 = vmatpush3.bf16.msra.mxu1 %v6895_v38 }
 0x258   : > { %5874 = vmatprep.subr.bf16.mxu0 %v6896_v39  ;;  %5896 = vmatprep.subr.bf16.mxu1 %v6897_v41 }
 0x25b   : > { %5875 = vmatpush3.bf16.msra.mxu0 %v6898_v42  ;;  %5897 = vmatpush3.bf16.msra.mxu1 %v6899_v43 }
 0x25c   : > { %5876 = vmatprep.subr.bf16.mxu0 %v6900_v44  ;;  %5898 = vmatprep.subr.bf16.mxu1 %v6901_v45 }
 0x25f   : > { %5877 = vmatpush3.bf16.msra.mxu0 %v6902_v47  ;;  %5899 = vmatpush3.bf16.msra.mxu1 %v6903_v33 }
 0x260   : > { %5878 = vmatprep.subr.bf16.mxu0 %v6904_v49  ;;  %5900 = vmatprep.subr.bf16.mxu1 %v6905_v50 }
 0x263   : > { %5879 = vmatpush3.bf16.msra.mxu0 %v6906_v52  ;;  %5901 = vmatpush3.bf16.msra.mxu1 %v6907_v53 }
 0x264   : > { %5880 = vmatprep.subr.bf16.mxu0 %v6908_v54  ;;  %5902 = vmatprep.subr.bf16.mxu1 %v6909_v55 }
 0x267   : > { %5881 = vmatpush3.bf16.msra.mxu0 %v6910_v57  ;;  %5903 = vmatpush3.bf16.msra.mxu1 %v6911_v58 }
 0x268   : > { %5882 = vmatprep.subr.bf16.mxu0 %v6912_v59  ;;  %5904 = vmatprep.subr.bf16.mxu1 %v6913_v60 }
 0x26b   : > { %5883 = vmatpush3.bf16.msra.mxu0 %v6914_v61  ;;  %5905 = vmatpush3.bf16.msra.mxu1 %v6915_v62 }
 0x321   : > { %v4353_v56 = vpop.f32.mrb[0].mxu0  ;;  %v4722_v9 = vpop.f32.mrb[0].mxu1 }
 0x322   : > { %v4751_v14 = vmul.f32 %v4734_v40, %v4353_v56  ;;  %v4753_v16 = vmul.f32 %v4742_v10, %v4722_v9  ;;  %v4355_v18 = vpop.f32.mrb[1].mxu0  ;;  %v4724_v48 = vpop.f32.mrb[1].mxu1 }
 0x323   : > { %v4752_v19 = vmul.f32 %v4738_v51, %v4355_v18  ;;  %v4754_v15 = vmul.f32 %v4746_v5, %v4724_v48  ;;  %v4357_v46 = vpop.f32.mrb[2].mxu0  ;;  %v4726_v20 = vpop.f32.mrb[2].mxu1  ;;  %v4887_v51 = vld [vmem:[%s9082_s5] sm:$0x1] }
 0x324   : > { %v4777_v21 = vadd.f32 %v4760_v6, %v4751_v14  ;;  %v4779_v23 = vadd.f32 %v4768_v7, %v4753_v16  ;;  %v4358_v24 = vpop.f32.mrb[3].mxu0  ;;  %v4727_v11 = vpop.f32.mrb[3].mxu1 }
 0x325   : > { %v4778_v8 = vadd.f32 %v4764_v12, %v4752_v19  ;;  %v4780_v26 = vadd.f32 %v4772_v13, %v4754_v15 }
 0x326   : > { %v4781_v27 = vmax.f32 %v4777_v21, 0.0  ;;  %v4783_v28 = vmax.f32 %v4779_v23, 0.0 }
 0x327   : > { %v4782_v29 = vmax.f32 %v4778_v8, 0.0  ;;  %v4784_v30 = vmax.f32 %v4780_v26, 0.0 }
 0x328   : > { %v4786_v31 = vsel %vm4785_vm15, %v4781_v27, 0.0  ;;  %v4800_v17 = vsel %vm4785_vm15, %v4783_v28, 0.0 }
 0x329   : > { %v4787_v32 = vrot.slane %v4786_v31, 4  ;;  %v4801_v34 = vrot.slane %v4800_v17, 4  ;;  %v4793_v35 = vsel %vm4785_vm15, %v4782_v29, 0.0  ;;  %v4807_v25 = vsel %vm4785_vm15, %v4784_v30, 0.0 }
 0x32a   : > { %v4794_v36 = vrot.slane %v4793_v35, 4  ;;  %v4808_v22 = vrot.slane %v4807_v25, 4 }
 0x32b   : > { %v4788_v37 = vadd.f32 %v4787_v32, %v4786_v31  ;;  %v4802_v38 = vadd.f32 %v4801_v34, %v4800_v17 }
 0x32c   : > { %v4795_v39 = vadd.f32 %v4794_v36, %v4793_v35  ;;  %v4809_v41 = vadd.f32 %v4808_v22, %v4807_v25 }
 0x32d   : > { %v4789_v42 = vrot.slane %v4788_v37, 2  ;;  %v4803_v43 = vrot.slane %v4802_v38, 2 }
 0x32e   : > { %v4796_v44 = vrot.slane %v4795_v39, 2  ;;  %v4810_v45 = vrot.slane %v4809_v41, 2 }
 0x32f   : > { %v4790_v47 = vadd.f32 %v4789_v42, %v4788_v37  ;;  %v4804_v33 = vadd.f32 %v4803_v43, %v4802_v38 }
 0x330   : > { %v4797_v49 = vadd.f32 %v4796_v44, %v4795_v39  ;;  %v4811_v50 = vadd.f32 %v4810_v45, %v4809_v41 }
 0x331   : > { %v4791_v52 = vrot.slane %v4790_v47, 1  ;;  %v4805_v53 = vrot.slane %v4804_v33, 1 }
 0x332   : > { %v4798_v54 = vrot.slane %v4797_v49, 1  ;;  %v4812_v55 = vrot.slane %v4811_v50, 1 }
 0x333   : > { %v4792_v57 = vadd.f32 %v4791_v52, %v4790_v47  ;;  %v4806_v58 = vadd.f32 %v4805_v53, %v4804_v33 }
 0x334   : > { %v4799_v59 = vadd.f32 %v4798_v54, %v4797_v49  ;;  %v4813_v60 = vadd.f32 %v4812_v55, %v4811_v50 }
 0x335   : > { %v4815_v61 = vmul.f32 0.25, %v4792_v57  ;;  %v4817_v62 = vmul.f32 0.25, %v4806_v58 }
 0x336   : > { %v4816_v63 = vmul.f32 0.25, %v4799_v59  ;;  %v4818_v1 = vmul.f32 0.25, %v4813_v60 }
 0x337   : > { %v4819_v0 = vpack.c.bf16 %v4815_v61, %v4815_v61  ;;  %v4821_v4 = vpack.c.bf16 %v4817_v62, %v4817_v62 }
 0x338   : > { %v4820_v2 = vpack.c.bf16 %v4816_v63, %v4816_v63  ;;  %v4822_v3 = vpack.c.bf16 %v4818_v1, %v4818_v1 }
 0x33a   : > { %5112 = vmatprep.mubr.bf16.mxu0 %v4820_v2  ;;  %5152 = vmatprep.mubr.bf16.mxu1 %v4822_v3 }
 0x33b   : > { %5113 = vmatmul.mubr.bf16.vlgmr.msra.gmra.mrb[4].mxu0 %v4819_v0  ;;  %5153 = vmatmul.mubr.bf16.vlgmr.msra.gmra.mrb[4].mxu1 %v4821_v4 }
 0x40e   : > { %v5884_v40 = vpop.f32.mrb[4].mxu0  ;;  %v5906_v10 = vpop.f32.mrb[4].mxu1 }
 0x40f   : > { %v5885_v5 = vpop.f32.mrb[5].mxu0  ;;  %v5907_v6 = vpop.f32.mrb[5].mxu1 }
 0x410   : > { %v5886_v7 = vadd.f32 %v5885_v5, %v5884_v40  ;;  %v5908_v56 = vadd.f32 %v5907_v6, %v5906_v10  ;;  %v5887_v9 = vpop.f32.mrb[6].mxu0  ;;  %v5909_v12 = vpop.f32.mrb[6].mxu1 }
 0x411   : > { %v5888_v13 = vpop.f32.mrb[7].mxu0  ;;  %v5910_v14 = vpop.f32.mrb[7].mxu1 }
 0x412   : > { %v5115_v16 = vadd.f32 %v5886_v7, %v4887_v51 }
 0x414   : > { %v5155_v18 = vadd.f32 %v5908_v56, %v5115_v16 }
 0x416   : > { %5160 = vst [vmem:[%s243_s20] sm:$0x1] %v5155_v18 }
 0x417   : > { %6932 = shalt.err (!%p6929_p3)
}
 0x418   : > { %s6933_s14 = scalar_lea.hbm %s9035_s9, 16  ;;  %s6937_s16 = scalar_lea.hbm %s9083_s6, 32 }
 0x419   : > { %p6934_p4 = scmp.ne.s32.totalorder %s9035_s9, %s6933_s14  ;;  %p6938_p9 = scmp.lt.u32.totalorder %s9035_s9, %s9083_s6 }
 0x41a   : > { %p6939_p10 = scmp.lt.u32.totalorder %s6937_s16, %s6933_s14  ;;  %p6941_p12 = scmp.lt.u32.totalorder %s6933_s14, %s9035_s9 }
 0x41b   : > { %p6935_p7 = pnand %p6934_p4, %p7058_p5 }
 0x41c   : > { %p6940_p11 = por %p6939_p10, %p6938_p9 }
 0x41d   : > { %p6936_p8 = pneg %p6935_p7 }
 0x41e   : > { %p6942_p13 = por %p6941_p12, %p6940_p11 }
 0x420   : > { %p6943_p0 = pnand %p6942_p13, %p6936_p8 }
 0x422   : > { %6946 = shalt.err (!%p6943_p0)
}
 0x423   : > { %5976 = dma.vmem_to_hbm [thread:$0]  (%p7058_p5), %s9037_s17, 16, %s9035_s9, %s5162_s29  }
 0x424 PF: > { %p5982_p1 = scmp.ge.s32.totalorder %s6981_s24, 2  ;;  %s5186_s20 = sand.u32 1, %s6969_s21  }
 0x425   : > { %s5187_s26 = scalar_lea.sflag [#allocation4], %s5186_s20 }
 0x426   : > { %p5979_p2 = pnand %p5982_p1, %p7062_p6 }
 0x428   : > { %6964 = dma.done.wait (!%p5979_p2), %s5187_s26, 16  }
 0x429   : > { %6966 = vsyncadd (!%p5979_p2), %s5187_s26, 4294967280  ;;  %p16_p3 = scmp.ge.s32.totalorder %s7045_s27, 4   ;;  %s9088_s21 = smov %s6973_s22 }
 0x42a   : > { %s9089_s22 = smov %s6977_s23  ;;  %s9090_s23 = smov %s7056_s30 }
 0x42b   : > { %s9091_s24 = smov %s7045_s27  ;;  %18 = sbr.rel (!%p16_p3) target bundleno = 3 (0x3), region = 79 }
 0x432   :  { %5191 = vsyncpa [#allocation4], 1 }
 0x433   :  { %5193 = vsyncpa [#allocation4 + $0x1], 1 }

</bundles_post_ra>
